<compile_context>
chip_gen: v6e
topology: v6e:2x2x1
jax: 0.10.0
libtpu: 0.0.40
codegen_flags: <defaults>
</compile_context>

<pallas_src>
import jax
import jax.numpy as jnp
from jax.experimental import pallas as pl
from jax.experimental.pallas import tpu as pltpu


def _round_up(v, m):
    return ((v + m - 1) // m) * m


# ----------------------------------------------------------------------------
# Fused kernel: stage x into a flat zero-padded scratch -> 3x3 conv (+bias,
# ReLU) -> stage into a second flat padded scratch -> 3x3 conv (+bias, ReLU)
# -> residual add.  One grid step == one image.
#
# Flat layout: pixel (i, j) of an HxW image lives at flat row (i+1)*WP + (j+1)
# of a ((H+3)*WP, C) scratch, WP = round_up(W+2, 8).  For a 3x3 tap (ky, kx),
# the operand of the matmul is the contiguous slice [ky*WP+kx, ky*WP+kx+H*WP);
# output flat index i*WP+j holds pixel (i, j) for j < W and junk for j >= W,
# which is discarded when the accumulator is reshaped to (H, WP, C)[:, :W, :].
# ----------------------------------------------------------------------------
def _make_kernel(H, W, C, Ch, WP):
    HWP = H * WP

    def kernel(x_ref, w1_ref, b1_ref, w2_ref, b2_ref, o_ref, xpad_ref, ypad_ref):
        cdt = xpad_ref.dtype

        # ---- stage 0: stage x into the flat padded scratch ------------------
        # Zero ONLY the halo strips every step (interior is fully overwritten;
        # per-step border zeroing is also megacore-safe, unlike zero-once).
        zc_top = jnp.zeros((WP + 1, C), cdt)     # top pad row + left pad of image row 0
        zc_gap = jnp.zeros((WP - W, C), cdt)     # right pad of row r + gap + left pad of row r+1
        zc_bot = jnp.zeros((2 * WP, C), cdt)     # bottom pad row + overflow row
        xpad_ref[0:WP + 1, :] = zc_top
        xpad_ref[(H + 1) * WP:(H + 3) * WP, :] = zc_bot
        for h in range(H):
            base = (h + 1) * WP
            xpad_ref[base + 1:base + 1 + W, :] = x_ref[h].astype(cdt)
            xpad_ref[base + W + 1:base + WP + 1, :] = zc_gap

        # ---- stage 1: RepConv 3x3 (1x1 branch + BN folded) + ReLU ------------
        # Bias-initialized f32 accumulator + 9 contiguous-slice dot-accumulates.
        acc1 = jnp.broadcast_to(b1_ref[...].astype(jnp.float32), (HWP, Ch))
        for t in range(9):
            ky, kx = divmod(t, 3)
            r0 = ky * WP + kx
            win = xpad_ref[r0:r0 + HWP, :]
            acc1 = acc1 + jnp.dot(win, w1_ref[t],
                                  preferred_element_type=jnp.float32)
        y1 = jnp.maximum(acc1, 0.0)                       # ReLU in f32

        # ---- stage 1 -> stage 2 staging --------------------------------------
        # One bulk contiguous store of the whole slab (junk columns included),
        # then re-zero only the halo strips the junk clobbered.
        zh_top = jnp.zeros((WP + 1, Ch), cdt)
        zh_gap = jnp.zeros((WP - W, Ch), cdt)
        zh_bot = jnp.zeros((2 * WP, Ch), cdt)
        ypad_ref[WP + 1:WP + 1 + HWP, :] = y1.astype(cdt)
        ypad_ref[0:WP + 1, :] = zh_top
        ypad_ref[(H + 1) * WP:(H + 3) * WP, :] = zh_bot
        for r in range(1, H + 1):
            ypad_ref[r * WP + W + 1:(r + 1) * WP + 1, :] = zh_gap

        # ---- stage 2: ConvBNAct 3x3 (BN folded) + ReLU -----------------------
        acc2 = jnp.broadcast_to(b2_ref[...].astype(jnp.float32), (HWP, C))
        for t in range(9):
            ky, kx = divmod(t, 3)
            r0 = ky * WP + kx
            win = ypad_ref[r0:r0 + HWP, :]
            acc2 = acc2 + jnp.dot(win, w2_ref[t],
                                  preferred_element_type=jnp.float32)
        y2 = jnp.maximum(acc2, 0.0)

        # ---- residual add + store (drop junk columns; f32 add) ---------------
        y2v = y2.reshape(H, WP, C)[:, :W, :]
        out = x_ref[...].astype(jnp.float32) + y2v
        o_ref[...] = out.astype(o_ref.dtype)

    return kernel


def fused_basic_block_nhwc(x_nhwc, w1, b1, w2, b2):
    """x_nhwc: (N,H,W,C) f32; w1: (9,C,Ch) [compute dtype]; b1: (1,Ch) f32;
    w2: (9,Ch,C) [compute dtype]; b2: (1,C) f32."""
    N, H, W, C = x_nhwc.shape
    Ch = w1.shape[2]
    cdt = w1.dtype                                  # staging / MXU-input dtype
    WP = _round_up(W + 2, 8)
    PAD_ROWS = (H + 3) * WP

    kernel = _make_kernel(H, W, C, Ch, WP)

    flops = int(2 * N * H * W * 9 * (C * Ch + Ch * C) + 3 * N * H * W * C)
    bytes_accessed = int(x_nhwc.dtype.itemsize * 2 * N * H * W * C
                         + (w1.size + w2.size) * jnp.dtype(cdt).itemsize
                         + 4 * (b1.size + b2.size))

    # Raise the scoped-VMEM limit only when the per-step footprint needs it.
    itemsize = jnp.dtype(cdt).itemsize
    vmem_est = (2 * 2 * H * W * C * x_nhwc.dtype.itemsize        # x/out double buffers
                + PAD_ROWS * (C + Ch) * itemsize                 # padded scratches
                + 4 * H * WP * (C + Ch)                          # f32 accumulators
                + 2 * (w1.size + w2.size) * itemsize)
    vmem_limit = None
    if vmem_est > 24 * 1024 * 1024:
        vmem_limit = int(min(vmem_est * 2, 112 * 1024 * 1024))

    return pl.pallas_call(
        kernel,
        out_shape=jax.ShapeDtypeStruct((N, H, W, C), x_nhwc.dtype),
        grid_spec=pltpu.PrefetchScalarGridSpec(
            num_scalar_prefetch=0,
            grid=(N,),
            in_specs=[
                pl.BlockSpec((None, H, W, C), lambda n: (n, 0, 0, 0)),
                pl.BlockSpec((9, C, Ch), lambda n: (0, 0, 0)),
                pl.BlockSpec((1, Ch), lambda n: (0, 0)),
                pl.BlockSpec((9, Ch, C), lambda n: (0, 0, 0)),
                pl.BlockSpec((1, C), lambda n: (0, 0)),
            ],
            out_specs=pl.BlockSpec((None, H, W, C), lambda n: (n, 0, 0, 0)),
            scratch_shapes=[
                pltpu.VMEM((PAD_ROWS, C), cdt),    # flat padded input staging
                pltpu.VMEM((PAD_ROWS, Ch), cdt),   # flat padded hidden activation
            ],
        ),
        compiler_params=pltpu.CompilerParams(
            dimension_semantics=("parallel",),      # batch across TCs
            vmem_limit_bytes=vmem_limit),
        cost_estimate=pl.CostEstimate(flops=flops, transcendentals=0,
                                      bytes_accessed=bytes_accessed),
    )(x_nhwc, w1, b1, w2, b2)


# ----------------------------------------------------------------------------
# Host-side parameter construction + BN folding (exact eval-mode semantics).
# ----------------------------------------------------------------------------
def make_raw_params(key, c_in, c_hidden):
    ks = jax.random.split(key, 6)

    def bn(k, n):
        k1, k2, k3, k4 = jax.random.split(k, 4)
        gamma = 1.0 + 0.1 * jax.random.normal(k1, (n,), jnp.float32)
        beta = 0.1 * jax.random.normal(k2, (n,), jnp.float32)
        mean = 0.1 * jax.random.normal(k3, (n,), jnp.float32)
        var = 1.0 + 0.1 * jnp.abs(jax.random.normal(k4, (n,), jnp.float32))
        return gamma, beta, mean, var

    wd = jax.random.normal(ks[0], (3, 3, c_in, c_hidden), jnp.float32) / jnp.sqrt(9.0 * c_in)
    gd, bd, md, vd = bn(ks[1], c_hidden)
    w11 = jax.random.normal(ks[2], (1, 1, c_in, c_hidden), jnp.float32) / jnp.sqrt(1.0 * c_in)
    g1, b1x, m1, v1 = bn(ks[3], c_hidden)
    w2 = jax.random.normal(ks[4], (3, 3, c_hidden, c_in), jnp.float32) / jnp.sqrt(9.0 * c_hidden)
    g2, b2x, m2, v2 = bn(ks[5], c_in)
    return dict(wd=wd, gd=gd, bd=bd, md=md, vd=vd,
                w11=w11, g1=g1, b1x=b1x, m1=m1, v1=v1,
                w2raw=w2, g2=g2, b2x=b2x, m2=m2, v2=v2)


def fold_params(raw, eps=1e-5, compute_dtype=jnp.float32):
    """Fold BN into conv weights; merge RepConv 1x1 branch into the 3x3 centre tap."""
    c_in, c_hidden = raw["wd"].shape[2], raw["wd"].shape[3]
    sd = raw["gd"] / jnp.sqrt(raw["vd"] + eps)
    bd = raw["bd"] - raw["md"] * sd
    s1 = raw["g1"] / jnp.sqrt(raw["v1"] + eps)
    b1 = raw["b1x"] - raw["m1"] * s1
    w_eq = raw["wd"] * sd
    w_eq = w_eq.at[1, 1].add(raw["w11"][0, 0] * s1)     # 1x1 branch -> centre tap
    s2 = raw["g2"] / jnp.sqrt(raw["v2"] + eps)
    b2 = raw["b2x"] - raw["m2"] * s2
    w2_eq = raw["w2raw"] * s2
    return dict(w1=w_eq.reshape(9, c_in, c_hidden).astype(compute_dtype),
                b1=(bd + b1).reshape(1, c_hidden).astype(jnp.float32),
                w2=w2_eq.reshape(9, c_hidden, c_in).astype(compute_dtype),
                b2=b2.reshape(1, c_in).astype(jnp.float32))


def basic_block_forward(x_nchw, folded):
    # Transpose once at the module boundary; keep whole networks NHWC in practice.
    x = jnp.transpose(x_nchw, (0, 2, 3, 1))
    y = fused_basic_block_nhwc(x, folded["w1"], folded["b1"], folded["w2"], folded["b2"])
    return jnp.transpose(y, (0, 3, 1, 2))


# ----------------------------------------------------------------------------
# Pure-JAX reference of the unfused PyTorch module (eval-mode BN), for checking.
# ----------------------------------------------------------------------------
def _ref_forward_nhwc(x, raw, eps=1e-5):
    dn = ("NHWC", "HWIO", "NHWC")

    def bnorm(y, g, b, m, v):
        return (y - m) / jnp.sqrt(v + eps) * g + b

    yd = jax.lax.conv_general_dilated(x, raw["wd"], (1, 1), "SAME", dimension_numbers=dn,
                                      precision=jax.lax.Precision.HIGHEST)
    yd = bnorm(yd, raw["gd"], raw["bd"], raw["md"], raw["vd"])
    y1 = jax.lax.conv_general_dilated(x, raw["w11"], (1, 1), "SAME", dimension_numbers=dn,
                                      precision=jax.lax.Precision.HIGHEST)
    y1 = bnorm(y1, raw["g1"], raw["b1x"], raw["m1"], raw["v1"])
    y = jnp.maximum(yd + y1, 0.0)                       # RepConv ReLU
    y2 = jax.lax.conv_general_dilated(y, raw["w2raw"], (1, 1), "SAME", dimension_numbers=dn,
                                      precision=jax.lax.Precision.HIGHEST)
    y2 = bnorm(y2, raw["g2"], raw["b2x"], raw["m2"], raw["v2"])
    y2 = jnp.maximum(y2, 0.0)                           # ConvBNAct ReLU
    return x + y2                                       # shortcut


if __name__ == "__main__":
    key = jax.random.PRNGKey(0)
    kx, kp = jax.random.split(key)

    N, C, H, W = 2, 4, 16, 16          # ch_in == ch_out (module asserts this)
    ch_hidden_ratio = 1.0
    Ch = int(C * ch_hidden_ratio)

    x_nchw = jax.random.normal(kx, (N, C, H, W), jnp.float32)
    raw = make_raw_params(kp, C, Ch)

    ref = jnp.transpose(_ref_forward_nhwc(jnp.transpose(x_nchw, (0, 2, 3, 1)), raw),
                        (0, 3, 1, 2))

    # --- f32 path: strict check against the unfused eval-mode module ---------
    folded_f32 = fold_params(raw, compute_dtype=jnp.float32)
    out_f32 = basic_block_forward(x_nchw, folded_f32)
    jax.block_until_ready(out_f32)
    assert out_f32.shape == (N, C, H, W), out_f32.shape
    if not jnp.allclose(out_f32, ref, rtol=1e-2, atol=1e-2):
        raise AssertionError(
            f"f32 mismatch vs reference, max abs err="
            f"{float(jnp.max(jnp.abs(out_f32 - ref)))}")

    # --- bf16 staging path (recommended fast path): looser tolerance ---------
    folded_bf16 = fold_params(raw, compute_dtype=jnp.bfloat16)
    out_bf16 = basic_block_forward(x_nchw, folded_bf16)
    jax.block_until_ready(out_bf16)
    if not jnp.allclose(out_bf16, ref, rtol=1e-1, atol=1e-1):
        raise AssertionError(
            f"bf16 mismatch vs reference, max abs err="
            f"{float(jnp.max(jnp.abs(out_bf16 - ref)))}")

    print("KERNEL_OK")
</pallas_src>

<mosaic_0001>
module attributes {stable_mosaic.version = 11 : i64} {
  func.func @kernel(%arg0: i32, %arg1: memref<1x16x16x4xf32, #tpu.memory_space<vmem>>, %arg2: memref<9x4x4xf32, #tpu.memory_space<vmem>>, %arg3: memref<1x4xf32, #tpu.memory_space<vmem>>, %arg4: memref<9x4x4xf32, #tpu.memory_space<vmem>>, %arg5: memref<1x4xf32, #tpu.memory_space<vmem>>, %arg6: memref<1x16x16x4xf32, #tpu.memory_space<vmem>>, %arg7: memref<456x4xf32, #tpu.memory_space<vmem>>, %arg8: memref<456x4xf32, #tpu.memory_space<vmem>>) attributes {dimension_semantics = [#tpu.dimension_semantics<parallel>], iteration_bounds = array<i64: 2>, scalar_prefetch = 0 : i64, scratch_operands = 2 : i64, tpu.core_type = #tpu.core_type<tc>, window_params = [{transform_indices = @transform_0, window_bounds = array<i64: 1, 16, 16, 4>}, {pipeline_mode = #tpu.pipeline_mode<synchronous>, transform_indices = @transform_1, window_bounds = array<i64: 9, 4, 4>}, {pipeline_mode = #tpu.pipeline_mode<synchronous>, transform_indices = @transform_2, window_bounds = array<i64: 1, 4>}, {pipeline_mode = #tpu.pipeline_mode<synchronous>, transform_indices = @transform_3, window_bounds = array<i64: 9, 4, 4>}, {pipeline_mode = #tpu.pipeline_mode<synchronous>, transform_indices = @transform_4, window_bounds = array<i64: 1, 4>}, {transform_indices = @transform_5, window_bounds = array<i64: 1, 16, 16, 4>}]} {
    %cst = arith.constant 0.000000e+00 : f32
    %0 = vector.broadcast %cst : f32 to vector<25x4xf32>
    %cst_0 = arith.constant 0.000000e+00 : f32
    %1 = vector.broadcast %cst_0 : f32 to vector<8x4xf32>
    %cst_1 = arith.constant 0.000000e+00 : f32
    %2 = vector.broadcast %cst_1 : f32 to vector<48x4xf32>
    %c0 = arith.constant 0 : index
    %c0_2 = arith.constant 0 : index
    %3 = vector.load %arg7[%c0, %c0_2] : memref<456x4xf32, #tpu.memory_space<vmem>>, vector<25x4xf32>
    tpu.vector_store %arg7[%c0, %c0_2], %0 {strides = array<i32>} : memref<456x4xf32, #tpu.memory_space<vmem>>, vector<25x4xf32>,
    %c408 = arith.constant 408 : index
    %c0_3 = arith.constant 0 : index
    %4 = vector.load %arg7[%c408, %c0_3] : memref<456x4xf32, #tpu.memory_space<vmem>>, vector<48x4xf32>
    tpu.vector_store %arg7[%c408, %c0_3], %2 {strides = array<i32>} : memref<456x4xf32, #tpu.memory_space<vmem>>, vector<48x4xf32>,
    %c0_4 = arith.constant 0 : index
    %c0_5 = arith.constant 0 : index
    %c0_6 = arith.constant 0 : index
    %c0_7 = arith.constant 0 : index
    %5 = vector.load %arg1[%c0_4, %c0_5, %c0_6, %c0_7] : memref<1x16x16x4xf32, #tpu.memory_space<vmem>>, vector<1x1x16x4xf32>
    %6 = vector.shape_cast %5 : vector<1x1x16x4xf32> to vector<16x4xf32>
    %c25 = arith.constant 25 : index
    %c0_8 = arith.constant 0 : index
    %7 = vector.load %arg7[%c25, %c0_8] : memref<456x4xf32, #tpu.memory_space<vmem>>, vector<16x4xf32>
    tpu.vector_store %arg7[%c25, %c0_8], %6 {strides = array<i32>} : memref<456x4xf32, #tpu.memory_space<vmem>>, vector<16x4xf32>,
    %c41 = arith.constant 41 : index
    %c0_9 = arith.constant 0 : index
    %8 = vector.load %arg7[%c41, %c0_9] : memref<456x4xf32, #tpu.memory_space<vmem>>, vector<8x4xf32>
    tpu.vector_store %arg7[%c41, %c0_9], %1 {strides = array<i32>} : memref<456x4xf32, #tpu.memory_space<vmem>>, vector<8x4xf32>,
    %c0_10 = arith.constant 0 : index
    %c1 = arith.constant 1 : index
    %c0_11 = arith.constant 0 : index
    %c0_12 = arith.constant 0 : index
    %9 = vector.load %arg1[%c0_10, %c1, %c0_11, %c0_12] : memref<1x16x16x4xf32, #tpu.memory_space<vmem>>, vector<1x1x16x4xf32>
    %10 = vector.shape_cast %9 : vector<1x1x16x4xf32> to vector<16x4xf32>
    %c49 = arith.constant 49 : index
    %c0_13 = arith.constant 0 : index
    %11 = vector.load %arg7[%c49, %c0_13] : memref<456x4xf32, #tpu.memory_space<vmem>>, vector<16x4xf32>
    tpu.vector_store %arg7[%c49, %c0_13], %10 {strides = array<i32>} : memref<456x4xf32, #tpu.memory_space<vmem>>, vector<16x4xf32>,
    %c65 = arith.constant 65 : index
    %c0_14 = arith.constant 0 : index
    %12 = vector.load %arg7[%c65, %c0_14] : memref<456x4xf32, #tpu.memory_space<vmem>>, vector<8x4xf32>
    tpu.vector_store %arg7[%c65, %c0_14], %1 {strides = array<i32>} : memref<456x4xf32, #tpu.memory_space<vmem>>, vector<8x4xf32>,
    %c0_15 = arith.constant 0 : index
    %c2 = arith.constant 2 : index
    %c0_16 = arith.constant 0 : index
    %c0_17 = arith.constant 0 : index
    %13 = vector.load %arg1[%c0_15, %c2, %c0_16, %c0_17] : memref<1x16x16x4xf32, #tpu.memory_space<vmem>>, vector<1x1x16x4xf32>
    %14 = vector.shape_cast %13 : vector<1x1x16x4xf32> to vector<16x4xf32>
    %c73 = arith.constant 73 : index
    %c0_18 = arith.constant 0 : index
    %15 = vector.load %arg7[%c73, %c0_18] : memref<456x4xf32, #tpu.memory_space<vmem>>, vector<16x4xf32>
    tpu.vector_store %arg7[%c73, %c0_18], %14 {strides = array<i32>} : memref<456x4xf32, #tpu.memory_space<vmem>>, vector<16x4xf32>,
    %c89 = arith.constant 89 : index
    %c0_19 = arith.constant 0 : index
    %16 = vector.load %arg7[%c89, %c0_19] : memref<456x4xf32, #tpu.memory_space<vmem>>, vector<8x4xf32>
    tpu.vector_store %arg7[%c89, %c0_19], %1 {strides = array<i32>} : memref<456x4xf32, #tpu.memory_space<vmem>>, vector<8x4xf32>,
    %c0_20 = arith.constant 0 : index
    %c3 = arith.constant 3 : index
    %c0_21 = arith.constant 0 : index
    %c0_22 = arith.constant 0 : index
    %17 = vector.load %arg1[%c0_20, %c3, %c0_21, %c0_22] : memref<1x16x16x4xf32, #tpu.memory_space<vmem>>, vector<1x1x16x4xf32>
    %18 = vector.shape_cast %17 : vector<1x1x16x4xf32> to vector<16x4xf32>
    %c97 = arith.constant 97 : index
    %c0_23 = arith.constant 0 : index
    %19 = vector.load %arg7[%c97, %c0_23] : memref<456x4xf32, #tpu.memory_space<vmem>>, vector<16x4xf32>
    tpu.vector_store %arg7[%c97, %c0_23], %18 {strides = array<i32>} : memref<456x4xf32, #tpu.memory_space<vmem>>, vector<16x4xf32>,
    %c113 = arith.constant 113 : index
    %c0_24 = arith.constant 0 : index
    %20 = vector.load %arg7[%c113, %c0_24] : memref<456x4xf32, #tpu.memory_space<vmem>>, vector<8x4xf32>
    tpu.vector_store %arg7[%c113, %c0_24], %1 {strides = array<i32>} : memref<456x4xf32, #tpu.memory_space<vmem>>, vector<8x4xf32>,
    %c0_25 = arith.constant 0 : index
    %c4 = arith.constant 4 : index
    %c0_26 = arith.constant 0 : index
    %c0_27 = arith.constant 0 : index
    %21 = vector.load %arg1[%c0_25, %c4, %c0_26, %c0_27] : memref<1x16x16x4xf32, #tpu.memory_space<vmem>>, vector<1x1x16x4xf32>
    %22 = vector.shape_cast %21 : vector<1x1x16x4xf32> to vector<16x4xf32>
    %c121 = arith.constant 121 : index
    %c0_28 = arith.constant 0 : index
    %23 = vector.load %arg7[%c121, %c0_28] : memref<456x4xf32, #tpu.memory_space<vmem>>, vector<16x4xf32>
    tpu.vector_store %arg7[%c121, %c0_28], %22 {strides = array<i32>} : memref<456x4xf32, #tpu.memory_space<vmem>>, vector<16x4xf32>,
    %c137 = arith.constant 137 : index
    %c0_29 = arith.constant 0 : index
    %24 = vector.load %arg7[%c137, %c0_29] : memref<456x4xf32, #tpu.memory_space<vmem>>, vector<8x4xf32>
    tpu.vector_store %arg7[%c137, %c0_29], %1 {strides = array<i32>} : memref<456x4xf32, #tpu.memory_space<vmem>>, vector<8x4xf32>,
    %c0_30 = arith.constant 0 : index
    %c5 = arith.constant 5 : index
    %c0_31 = arith.constant 0 : index
    %c0_32 = arith.constant 0 : index
    %25 = vector.load %arg1[%c0_30, %c5, %c0_31, %c0_32] : memref<1x16x16x4xf32, #tpu.memory_space<vmem>>, vector<1x1x16x4xf32>
    %26 = vector.shape_cast %25 : vector<1x1x16x4xf32> to vector<16x4xf32>
    %c145 = arith.constant 145 : index
    %c0_33 = arith.constant 0 : index
    %27 = vector.load %arg7[%c145, %c0_33] : memref<456x4xf32, #tpu.memory_space<vmem>>, vector<16x4xf32>
    tpu.vector_store %arg7[%c145, %c0_33], %26 {strides = array<i32>} : memref<456x4xf32, #tpu.memory_space<vmem>>, vector<16x4xf32>,
    %c161 = arith.constant 161 : index
    %c0_34 = arith.constant 0 : index
    %28 = vector.load %arg7[%c161, %c0_34] : memref<456x4xf32, #tpu.memory_space<vmem>>, vector<8x4xf32>
    tpu.vector_store %arg7[%c161, %c0_34], %1 {strides = array<i32>} : memref<456x4xf32, #tpu.memory_space<vmem>>, vector<8x4xf32>,
    %c0_35 = arith.constant 0 : index
    %c6 = arith.constant 6 : index
    %c0_36 = arith.constant 0 : index
    %c0_37 = arith.constant 0 : index
    %29 = vector.load %arg1[%c0_35, %c6, %c0_36, %c0_37] : memref<1x16x16x4xf32, #tpu.memory_space<vmem>>, vector<1x1x16x4xf32>
    %30 = vector.shape_cast %29 : vector<1x1x16x4xf32> to vector<16x4xf32>
    %c169 = arith.constant 169 : index
    %c0_38 = arith.constant 0 : index
    %31 = vector.load %arg7[%c169, %c0_38] : memref<456x4xf32, #tpu.memory_space<vmem>>, vector<16x4xf32>
    tpu.vector_store %arg7[%c169, %c0_38], %30 {strides = array<i32>} : memref<456x4xf32, #tpu.memory_space<vmem>>, vector<16x4xf32>,
    %c185 = arith.constant 185 : index
    %c0_39 = arith.constant 0 : index
    %32 = vector.load %arg7[%c185, %c0_39] : memref<456x4xf32, #tpu.memory_space<vmem>>, vector<8x4xf32>
    tpu.vector_store %arg7[%c185, %c0_39], %1 {strides = array<i32>} : memref<456x4xf32, #tpu.memory_space<vmem>>, vector<8x4xf32>,
    %c0_40 = arith.constant 0 : index
    %c7 = arith.constant 7 : index
    %c0_41 = arith.constant 0 : index
    %c0_42 = arith.constant 0 : index
    %33 = vector.load %arg1[%c0_40, %c7, %c0_41, %c0_42] : memref<1x16x16x4xf32, #tpu.memory_space<vmem>>, vector<1x1x16x4xf32>
    %34 = vector.shape_cast %33 : vector<1x1x16x4xf32> to vector<16x4xf32>
    %c193 = arith.constant 193 : index
    %c0_43 = arith.constant 0 : index
    %35 = vector.load %arg7[%c193, %c0_43] : memref<456x4xf32, #tpu.memory_space<vmem>>, vector<16x4xf32>
    tpu.vector_store %arg7[%c193, %c0_43], %34 {strides = array<i32>} : memref<456x4xf32, #tpu.memory_space<vmem>>, vector<16x4xf32>,
    %c209 = arith.constant 209 : index
    %c0_44 = arith.constant 0 : index
    %36 = vector.load %arg7[%c209, %c0_44] : memref<456x4xf32, #tpu.memory_space<vmem>>, vector<8x4xf32>
    tpu.vector_store %arg7[%c209, %c0_44], %1 {strides = array<i32>} : memref<456x4xf32, #tpu.memory_space<vmem>>, vector<8x4xf32>,
    %c0_45 = arith.constant 0 : index
    %c8 = arith.constant 8 : index
    %c0_46 = arith.constant 0 : index
    %c0_47 = arith.constant 0 : index
    %37 = vector.load %arg1[%c0_45, %c8, %c0_46, %c0_47] : memref<1x16x16x4xf32, #tpu.memory_space<vmem>>, vector<1x1x16x4xf32>
    %38 = vector.shape_cast %37 : vector<1x1x16x4xf32> to vector<16x4xf32>
    %c217 = arith.constant 217 : index
    %c0_48 = arith.constant 0 : index
    %39 = vector.load %arg7[%c217, %c0_48] : memref<456x4xf32, #tpu.memory_space<vmem>>, vector<16x4xf32>
    tpu.vector_store %arg7[%c217, %c0_48], %38 {strides = array<i32>} : memref<456x4xf32, #tpu.memory_space<vmem>>, vector<16x4xf32>,
    %c233 = arith.constant 233 : index
    %c0_49 = arith.constant 0 : index
    %40 = vector.load %arg7[%c233, %c0_49] : memref<456x4xf32, #tpu.memory_space<vmem>>, vector<8x4xf32>
    tpu.vector_store %arg7[%c233, %c0_49], %1 {strides = array<i32>} : memref<456x4xf32, #tpu.memory_space<vmem>>, vector<8x4xf32>,
    %c0_50 = arith.constant 0 : index
    %c9 = arith.constant 9 : index
    %c0_51 = arith.constant 0 : index
    %c0_52 = arith.constant 0 : index
    %41 = vector.load %arg1[%c0_50, %c9, %c0_51, %c0_52] : memref<1x16x16x4xf32, #tpu.memory_space<vmem>>, vector<1x1x16x4xf32>
    %42 = vector.shape_cast %41 : vector<1x1x16x4xf32> to vector<16x4xf32>
    %c241 = arith.constant 241 : index
    %c0_53 = arith.constant 0 : index
    %43 = vector.load %arg7[%c241, %c0_53] : memref<456x4xf32, #tpu.memory_space<vmem>>, vector<16x4xf32>
    tpu.vector_store %arg7[%c241, %c0_53], %42 {strides = array<i32>} : memref<456x4xf32, #tpu.memory_space<vmem>>, vector<16x4xf32>,
    %c257 = arith.constant 257 : index
    %c0_54 = arith.constant 0 : index
    %44 = vector.load %arg7[%c257, %c0_54] : memref<456x4xf32, #tpu.memory_space<vmem>>, vector<8x4xf32>
    tpu.vector_store %arg7[%c257, %c0_54], %1 {strides = array<i32>} : memref<456x4xf32, #tpu.memory_space<vmem>>, vector<8x4xf32>,
    %c0_55 = arith.constant 0 : index
    %c10 = arith.constant 10 : index
    %c0_56 = arith.constant 0 : index
    %c0_57 = arith.constant 0 : index
    %45 = vector.load %arg1[%c0_55, %c10, %c0_56, %c0_57] : memref<1x16x16x4xf32, #tpu.memory_space<vmem>>, vector<1x1x16x4xf32>
    %46 = vector.shape_cast %45 : vector<1x1x16x4xf32> to vector<16x4xf32>
    %c265 = arith.constant 265 : index
    %c0_58 = arith.constant 0 : index
    %47 = vector.load %arg7[%c265, %c0_58] : memref<456x4xf32, #tpu.memory_space<vmem>>, vector<16x4xf32>
    tpu.vector_store %arg7[%c265, %c0_58], %46 {strides = array<i32>} : memref<456x4xf32, #tpu.memory_space<vmem>>, vector<16x4xf32>,
    %c281 = arith.constant 281 : index
    %c0_59 = arith.constant 0 : index
    %48 = vector.load %arg7[%c281, %c0_59] : memref<456x4xf32, #tpu.memory_space<vmem>>, vector<8x4xf32>
    tpu.vector_store %arg7[%c281, %c0_59], %1 {strides = array<i32>} : memref<456x4xf32, #tpu.memory_space<vmem>>, vector<8x4xf32>,
    %c0_60 = arith.constant 0 : index
    %c11 = arith.constant 11 : index
    %c0_61 = arith.constant 0 : index
    %c0_62 = arith.constant 0 : index
    %49 = vector.load %arg1[%c0_60, %c11, %c0_61, %c0_62] : memref<1x16x16x4xf32, #tpu.memory_space<vmem>>, vector<1x1x16x4xf32>
    %50 = vector.shape_cast %49 : vector<1x1x16x4xf32> to vector<16x4xf32>
    %c289 = arith.constant 289 : index
    %c0_63 = arith.constant 0 : index
    %51 = vector.load %arg7[%c289, %c0_63] : memref<456x4xf32, #tpu.memory_space<vmem>>, vector<16x4xf32>
    tpu.vector_store %arg7[%c289, %c0_63], %50 {strides = array<i32>} : memref<456x4xf32, #tpu.memory_space<vmem>>, vector<16x4xf32>,
    %c305 = arith.constant 305 : index
    %c0_64 = arith.constant 0 : index
    %52 = vector.load %arg7[%c305, %c0_64] : memref<456x4xf32, #tpu.memory_space<vmem>>, vector<8x4xf32>
    tpu.vector_store %arg7[%c305, %c0_64], %1 {strides = array<i32>} : memref<456x4xf32, #tpu.memory_space<vmem>>, vector<8x4xf32>,
    %c0_65 = arith.constant 0 : index
    %c12 = arith.constant 12 : index
    %c0_66 = arith.constant 0 : index
    %c0_67 = arith.constant 0 : index
    %53 = vector.load %arg1[%c0_65, %c12, %c0_66, %c0_67] : memref<1x16x16x4xf32, #tpu.memory_space<vmem>>, vector<1x1x16x4xf32>
    %54 = vector.shape_cast %53 : vector<1x1x16x4xf32> to vector<16x4xf32>
    %c313 = arith.constant 313 : index
    %c0_68 = arith.constant 0 : index
    %55 = vector.load %arg7[%c313, %c0_68] : memref<456x4xf32, #tpu.memory_space<vmem>>, vector<16x4xf32>
    tpu.vector_store %arg7[%c313, %c0_68], %54 {strides = array<i32>} : memref<456x4xf32, #tpu.memory_space<vmem>>, vector<16x4xf32>,
    %c329 = arith.constant 329 : index
    %c0_69 = arith.constant 0 : index
    %56 = vector.load %arg7[%c329, %c0_69] : memref<456x4xf32, #tpu.memory_space<vmem>>, vector<8x4xf32>
    tpu.vector_store %arg7[%c329, %c0_69], %1 {strides = array<i32>} : memref<456x4xf32, #tpu.memory_space<vmem>>, vector<8x4xf32>,
    %c0_70 = arith.constant 0 : index
    %c13 = arith.constant 13 : index
    %c0_71 = arith.constant 0 : index
    %c0_72 = arith.constant 0 : index
    %57 = vector.load %arg1[%c0_70, %c13, %c0_71, %c0_72] : memref<1x16x16x4xf32, #tpu.memory_space<vmem>>, vector<1x1x16x4xf32>
    %58 = vector.shape_cast %57 : vector<1x1x16x4xf32> to vector<16x4xf32>
    %c337 = arith.constant 337 : index
    %c0_73 = arith.constant 0 : index
    %59 = vector.load %arg7[%c337, %c0_73] : memref<456x4xf32, #tpu.memory_space<vmem>>, vector<16x4xf32>
    tpu.vector_store %arg7[%c337, %c0_73], %58 {strides = array<i32>} : memref<456x4xf32, #tpu.memory_space<vmem>>, vector<16x4xf32>,
    %c353 = arith.constant 353 : index
    %c0_74 = arith.constant 0 : index
    %60 = vector.load %arg7[%c353, %c0_74] : memref<456x4xf32, #tpu.memory_space<vmem>>, vector<8x4xf32>
    tpu.vector_store %arg7[%c353, %c0_74], %1 {strides = array<i32>} : memref<456x4xf32, #tpu.memory_space<vmem>>, vector<8x4xf32>,
    %c0_75 = arith.constant 0 : index
    %c14 = arith.constant 14 : index
    %c0_76 = arith.constant 0 : index
    %c0_77 = arith.constant 0 : index
    %61 = vector.load %arg1[%c0_75, %c14, %c0_76, %c0_77] : memref<1x16x16x4xf32, #tpu.memory_space<vmem>>, vector<1x1x16x4xf32>
    %62 = vector.shape_cast %61 : vector<1x1x16x4xf32> to vector<16x4xf32>
    %c361 = arith.constant 361 : index
    %c0_78 = arith.constant 0 : index
    %63 = vector.load %arg7[%c361, %c0_78] : memref<456x4xf32, #tpu.memory_space<vmem>>, vector<16x4xf32>
    tpu.vector_store %arg7[%c361, %c0_78], %62 {strides = array<i32>} : memref<456x4xf32, #tpu.memory_space<vmem>>, vector<16x4xf32>,
    %c377 = arith.constant 377 : index
    %c0_79 = arith.constant 0 : index
    %64 = vector.load %arg7[%c377, %c0_79] : memref<456x4xf32, #tpu.memory_space<vmem>>, vector<8x4xf32>
    tpu.vector_store %arg7[%c377, %c0_79], %1 {strides = array<i32>} : memref<456x4xf32, #tpu.memory_space<vmem>>, vector<8x4xf32>,
    %c0_80 = arith.constant 0 : index
    %c15 = arith.constant 15 : index
    %c0_81 = arith.constant 0 : index
    %c0_82 = arith.constant 0 : index
    %65 = vector.load %arg1[%c0_80, %c15, %c0_81, %c0_82] : memref<1x16x16x4xf32, #tpu.memory_space<vmem>>, vector<1x1x16x4xf32>
    %66 = vector.shape_cast %65 : vector<1x1x16x4xf32> to vector<16x4xf32>
    %c385 = arith.constant 385 : index
    %c0_83 = arith.constant 0 : index
    %67 = vector.load %arg7[%c385, %c0_83] : memref<456x4xf32, #tpu.memory_space<vmem>>, vector<16x4xf32>
    tpu.vector_store %arg7[%c385, %c0_83], %66 {strides = array<i32>} : memref<456x4xf32, #tpu.memory_space<vmem>>, vector<16x4xf32>,
    %c401 = arith.constant 401 : index
    %c0_84 = arith.constant 0 : index
    %68 = vector.load %arg7[%c401, %c0_84] : memref<456x4xf32, #tpu.memory_space<vmem>>, vector<8x4xf32>
    tpu.vector_store %arg7[%c401, %c0_84], %1 {strides = array<i32>} : memref<456x4xf32, #tpu.memory_space<vmem>>, vector<8x4xf32>,
    %c0_85 = arith.constant 0 : index
    %c0_86 = arith.constant 0 : index
    %69 = vector.load %arg3[%c0_85, %c0_86] : memref<1x4xf32, #tpu.memory_space<vmem>>, vector<1x4xf32>
    %70 = vector.shape_cast %69 : vector<1x4xf32> to vector<1x4xf32>
    %71 = vector.broadcast %70 : vector<1x4xf32> to vector<384x4xf32>
    %c0_87 = arith.constant 0 : index
    %c0_88 = arith.constant 0 : index
    %72 = vector.load %arg7[%c0_87, %c0_88] : memref<456x4xf32, #tpu.memory_space<vmem>>, vector<384x4xf32>
    %c0_89 = arith.constant 0 : index
    %c0_90 = arith.constant 0 : index
    %c0_91 = arith.constant 0 : index
    %73 = vector.load %arg2[%c0_89, %c0_90, %c0_91] : memref<9x4x4xf32, #tpu.memory_space<vmem>>, vector<1x4x4xf32>
    %74 = vector.shape_cast %73 : vector<1x4x4xf32> to vector<4x4xf32>
    %cst_92 = arith.constant dense<0.000000e+00> : vector<384x4xf32>
    %75 = tpu.matmul %72, %74, %cst_92 {dimension_numbers = #tpu.dot_dimension_numbers<[1], [0], [0], [1], [0, 0, 1, 1], [], []>} : vector<384x4xf32>, vector<4x4xf32>, vector<384x4xf32> -> vector<384x4xf32>
    %76 = arith.addf %71, %75 : vector<384x4xf32>
    %c1_93 = arith.constant 1 : index
    %c0_94 = arith.constant 0 : index
    %77 = vector.load %arg7[%c1_93, %c0_94] : memref<456x4xf32, #tpu.memory_space<vmem>>, vector<384x4xf32>
    %c1_95 = arith.constant 1 : index
    %c0_96 = arith.constant 0 : index
    %c0_97 = arith.constant 0 : index
    %78 = vector.load %arg2[%c1_95, %c0_96, %c0_97] : memref<9x4x4xf32, #tpu.memory_space<vmem>>, vector<1x4x4xf32>
    %79 = vector.shape_cast %78 : vector<1x4x4xf32> to vector<4x4xf32>
    %cst_98 = arith.constant dense<0.000000e+00> : vector<384x4xf32>
    %80 = tpu.matmul %77, %79, %cst_98 {dimension_numbers = #tpu.dot_dimension_numbers<[1], [0], [0], [1], [0, 0, 1, 1], [], []>} : vector<384x4xf32>, vector<4x4xf32>, vector<384x4xf32> -> vector<384x4xf32>
    %81 = arith.addf %76, %80 : vector<384x4xf32>
    %c2_99 = arith.constant 2 : index
    %c0_100 = arith.constant 0 : index
    %82 = vector.load %arg7[%c2_99, %c0_100] : memref<456x4xf32, #tpu.memory_space<vmem>>, vector<384x4xf32>
    %c2_101 = arith.constant 2 : index
    %c0_102 = arith.constant 0 : index
    %c0_103 = arith.constant 0 : index
    %83 = vector.load %arg2[%c2_101, %c0_102, %c0_103] : memref<9x4x4xf32, #tpu.memory_space<vmem>>, vector<1x4x4xf32>
    %84 = vector.shape_cast %83 : vector<1x4x4xf32> to vector<4x4xf32>
    %cst_104 = arith.constant dense<0.000000e+00> : vector<384x4xf32>
    %85 = tpu.matmul %82, %84, %cst_104 {dimension_numbers = #tpu.dot_dimension_numbers<[1], [0], [0], [1], [0, 0, 1, 1], [], []>} : vector<384x4xf32>, vector<4x4xf32>, vector<384x4xf32> -> vector<384x4xf32>
    %86 = arith.addf %81, %85 : vector<384x4xf32>
    %c24 = arith.constant 24 : index
    %c0_105 = arith.constant 0 : index
    %87 = vector.load %arg7[%c24, %c0_105] : memref<456x4xf32, #tpu.memory_space<vmem>>, vector<384x4xf32>
    %c3_106 = arith.constant 3 : index
    %c0_107 = arith.constant 0 : index
    %c0_108 = arith.constant 0 : index
    %88 = vector.load %arg2[%c3_106, %c0_107, %c0_108] : memref<9x4x4xf32, #tpu.memory_space<vmem>>, vector<1x4x4xf32>
    %89 = vector.shape_cast %88 : vector<1x4x4xf32> to vector<4x4xf32>
    %cst_109 = arith.constant dense<0.000000e+00> : vector<384x4xf32>
    %90 = tpu.matmul %87, %89, %cst_109 {dimension_numbers = #tpu.dot_dimension_numbers<[1], [0], [0], [1], [0, 0, 1, 1], [], []>} : vector<384x4xf32>, vector<4x4xf32>, vector<384x4xf32> -> vector<384x4xf32>
    %91 = arith.addf %86, %90 : vector<384x4xf32>
    %c25_110 = arith.constant 25 : index
    %c0_111 = arith.constant 0 : index
    %92 = vector.load %arg7[%c25_110, %c0_111] : memref<456x4xf32, #tpu.memory_space<vmem>>, vector<384x4xf32>
    %c4_112 = arith.constant 4 : index
    %c0_113 = arith.constant 0 : index
    %c0_114 = arith.constant 0 : index
    %93 = vector.load %arg2[%c4_112, %c0_113, %c0_114] : memref<9x4x4xf32, #tpu.memory_space<vmem>>, vector<1x4x4xf32>
    %94 = vector.shape_cast %93 : vector<1x4x4xf32> to vector<4x4xf32>
    %cst_115 = arith.constant dense<0.000000e+00> : vector<384x4xf32>
    %95 = tpu.matmul %92, %94, %cst_115 {dimension_numbers = #tpu.dot_dimension_numbers<[1], [0], [0], [1], [0, 0, 1, 1], [], []>} : vector<384x4xf32>, vector<4x4xf32>, vector<384x4xf32> -> vector<384x4xf32>
    %96 = arith.addf %91, %95 : vector<384x4xf32>
    %c26 = arith.constant 26 : index
    %c0_116 = arith.constant 0 : index
    %97 = vector.load %arg7[%c26, %c0_116] : memref<456x4xf32, #tpu.memory_space<vmem>>, vector<384x4xf32>
    %c5_117 = arith.constant 5 : index
    %c0_118 = arith.constant 0 : index
    %c0_119 = arith.constant 0 : index
    %98 = vector.load %arg2[%c5_117, %c0_118, %c0_119] : memref<9x4x4xf32, #tpu.memory_space<vmem>>, vector<1x4x4xf32>
    %99 = vector.shape_cast %98 : vector<1x4x4xf32> to vector<4x4xf32>
    %cst_120 = arith.constant dense<0.000000e+00> : vector<384x4xf32>
    %100 = tpu.matmul %97, %99, %cst_120 {dimension_numbers = #tpu.dot_dimension_numbers<[1], [0], [0], [1], [0, 0, 1, 1], [], []>} : vector<384x4xf32>, vector<4x4xf32>, vector<384x4xf32> -> vector<384x4xf32>
    %101 = arith.addf %96, %100 : vector<384x4xf32>
    %c48 = arith.constant 48 : index
    %c0_121 = arith.constant 0 : index
    %102 = vector.load %arg7[%c48, %c0_121] : memref<456x4xf32, #tpu.memory_space<vmem>>, vector<384x4xf32>
    %c6_122 = arith.constant 6 : index
    %c0_123 = arith.constant 0 : index
    %c0_124 = arith.constant 0 : index
    %103 = vector.load %arg2[%c6_122, %c0_123, %c0_124] : memref<9x4x4xf32, #tpu.memory_space<vmem>>, vector<1x4x4xf32>
    %104 = vector.shape_cast %103 : vector<1x4x4xf32> to vector<4x4xf32>
    %cst_125 = arith.constant dense<0.000000e+00> : vector<384x4xf32>
    %105 = tpu.matmul %102, %104, %cst_125 {dimension_numbers = #tpu.dot_dimension_numbers<[1], [0], [0], [1], [0, 0, 1, 1], [], []>} : vector<384x4xf32>, vector<4x4xf32>, vector<384x4xf32> -> vector<384x4xf32>
    %106 = arith.addf %101, %105 : vector<384x4xf32>
    %c49_126 = arith.constant 49 : index
    %c0_127 = arith.constant 0 : index
    %107 = vector.load %arg7[%c49_126, %c0_127] : memref<456x4xf32, #tpu.memory_space<vmem>>, vector<384x4xf32>
    %c7_128 = arith.constant 7 : index
    %c0_129 = arith.constant 0 : index
    %c0_130 = arith.constant 0 : index
    %108 = vector.load %arg2[%c7_128, %c0_129, %c0_130] : memref<9x4x4xf32, #tpu.memory_space<vmem>>, vector<1x4x4xf32>
    %109 = vector.shape_cast %108 : vector<1x4x4xf32> to vector<4x4xf32>
    %cst_131 = arith.constant dense<0.000000e+00> : vector<384x4xf32>
    %110 = tpu.matmul %107, %109, %cst_131 {dimension_numbers = #tpu.dot_dimension_numbers<[1], [0], [0], [1], [0, 0, 1, 1], [], []>} : vector<384x4xf32>, vector<4x4xf32>, vector<384x4xf32> -> vector<384x4xf32>
    %111 = arith.addf %106, %110 : vector<384x4xf32>
    %c50 = arith.constant 50 : index
    %c0_132 = arith.constant 0 : index
    %112 = vector.load %arg7[%c50, %c0_132] : memref<456x4xf32, #tpu.memory_space<vmem>>, vector<384x4xf32>
    %c8_133 = arith.constant 8 : index
    %c0_134 = arith.constant 0 : index
    %c0_135 = arith.constant 0 : index
    %113 = vector.load %arg2[%c8_133, %c0_134, %c0_135] : memref<9x4x4xf32, #tpu.memory_space<vmem>>, vector<1x4x4xf32>
    %114 = vector.shape_cast %113 : vector<1x4x4xf32> to vector<4x4xf32>
    %cst_136 = arith.constant dense<0.000000e+00> : vector<384x4xf32>
    %115 = tpu.matmul %112, %114, %cst_136 {dimension_numbers = #tpu.dot_dimension_numbers<[1], [0], [0], [1], [0, 0, 1, 1], [], []>} : vector<384x4xf32>, vector<4x4xf32>, vector<384x4xf32> -> vector<384x4xf32>
    %116 = arith.addf %111, %115 : vector<384x4xf32>
    %cst_137 = arith.constant 0.000000e+00 : f32
    %117 = vector.broadcast %cst_137 : f32 to vector<384x4xf32>
    %118 = arith.maximumf %116, %117 : vector<384x4xf32>
    %cst_138 = arith.constant 0.000000e+00 : f32
    %119 = vector.broadcast %cst_138 : f32 to vector<25x4xf32>
    %cst_139 = arith.constant 0.000000e+00 : f32
    %120 = vector.broadcast %cst_139 : f32 to vector<8x4xf32>
    %cst_140 = arith.constant 0.000000e+00 : f32
    %121 = vector.broadcast %cst_140 : f32 to vector<48x4xf32>
    %c25_141 = arith.constant 25 : index
    %c0_142 = arith.constant 0 : index
    %122 = vector.load %arg8[%c25_141, %c0_142] : memref<456x4xf32, #tpu.memory_space<vmem>>, vector<384x4xf32>
    tpu.vector_store %arg8[%c25_141, %c0_142], %118 {strides = array<i32>} : memref<456x4xf32, #tpu.memory_space<vmem>>, vector<384x4xf32>,
    %c0_143 = arith.constant 0 : index
    %c0_144 = arith.constant 0 : index
    %123 = vector.load %arg8[%c0_143, %c0_144] : memref<456x4xf32, #tpu.memory_space<vmem>>, vector<25x4xf32>
    tpu.vector_store %arg8[%c0_143, %c0_144], %119 {strides = array<i32>} : memref<456x4xf32, #tpu.memory_space<vmem>>, vector<25x4xf32>,
    %c408_145 = arith.constant 408 : index
    %c0_146 = arith.constant 0 : index
    %124 = vector.load %arg8[%c408_145, %c0_146] : memref<456x4xf32, #tpu.memory_space<vmem>>, vector<48x4xf32>
    tpu.vector_store %arg8[%c408_145, %c0_146], %121 {strides = array<i32>} : memref<456x4xf32, #tpu.memory_space<vmem>>, vector<48x4xf32>,
    %c41_147 = arith.constant 41 : index
    %c0_148 = arith.constant 0 : index
    %125 = vector.load %arg8[%c41_147, %c0_148] : memref<456x4xf32, #tpu.memory_space<vmem>>, vector<8x4xf32>
    tpu.vector_store %arg8[%c41_147, %c0_148], %120 {strides = array<i32>} : memref<456x4xf32, #tpu.memory_space<vmem>>, vector<8x4xf32>,
    %c65_149 = arith.constant 65 : index
    %c0_150 = arith.constant 0 : index
    %126 = vector.load %arg8[%c65_149, %c0_150] : memref<456x4xf32, #tpu.memory_space<vmem>>, vector<8x4xf32>
    tpu.vector_store %arg8[%c65_149, %c0_150], %120 {strides = array<i32>} : memref<456x4xf32, #tpu.memory_space<vmem>>, vector<8x4xf32>,
    %c89_151 = arith.constant 89 : index
    %c0_152 = arith.constant 0 : index
    %127 = vector.load %arg8[%c89_151, %c0_152] : memref<456x4xf32, #tpu.memory_space<vmem>>, vector<8x4xf32>
    tpu.vector_store %arg8[%c89_151, %c0_152], %120 {strides = array<i32>} : memref<456x4xf32, #tpu.memory_space<vmem>>, vector<8x4xf32>,
    %c113_153 = arith.constant 113 : index
    %c0_154 = arith.constant 0 : index
    %128 = vector.load %arg8[%c113_153, %c0_154] : memref<456x4xf32, #tpu.memory_space<vmem>>, vector<8x4xf32>
    tpu.vector_store %arg8[%c113_153, %c0_154], %120 {strides = array<i32>} : memref<456x4xf32, #tpu.memory_space<vmem>>, vector<8x4xf32>,
    %c137_155 = arith.constant 137 : index
    %c0_156 = arith.constant 0 : index
    %129 = vector.load %arg8[%c137_155, %c0_156] : memref<456x4xf32, #tpu.memory_space<vmem>>, vector<8x4xf32>
    tpu.vector_store %arg8[%c137_155, %c0_156], %120 {strides = array<i32>} : memref<456x4xf32, #tpu.memory_space<vmem>>, vector<8x4xf32>,
    %c161_157 = arith.constant 161 : index
    %c0_158 = arith.constant 0 : index
    %130 = vector.load %arg8[%c161_157, %c0_158] : memref<456x4xf32, #tpu.memory_space<vmem>>, vector<8x4xf32>
    tpu.vector_store %arg8[%c161_157, %c0_158], %120 {strides = array<i32>} : memref<456x4xf32, #tpu.memory_space<vmem>>, vector<8x4xf32>,
    %c185_159 = arith.constant 185 : index
    %c0_160 = arith.constant 0 : index
    %131 = vector.load %arg8[%c185_159, %c0_160] : memref<456x4xf32, #tpu.memory_space<vmem>>, vector<8x4xf32>
    tpu.vector_store %arg8[%c185_159, %c0_160], %120 {strides = array<i32>} : memref<456x4xf32, #tpu.memory_space<vmem>>, vector<8x4xf32>,
    %c209_161 = arith.constant 209 : index
    %c0_162 = arith.constant 0 : index
    %132 = vector.load %arg8[%c209_161, %c0_162] : memref<456x4xf32, #tpu.memory_space<vmem>>, vector<8x4xf32>
    tpu.vector_store %arg8[%c209_161, %c0_162], %120 {strides = array<i32>} : memref<456x4xf32, #tpu.memory_space<vmem>>, vector<8x4xf32>,
    %c233_163 = arith.constant 233 : index
    %c0_164 = arith.constant 0 : index
    %133 = vector.load %arg8[%c233_163, %c0_164] : memref<456x4xf32, #tpu.memory_space<vmem>>, vector<8x4xf32>
    tpu.vector_store %arg8[%c233_163, %c0_164], %120 {strides = array<i32>} : memref<456x4xf32, #tpu.memory_space<vmem>>, vector<8x4xf32>,
    %c257_165 = arith.constant 257 : index
    %c0_166 = arith.constant 0 : index
    %134 = vector.load %arg8[%c257_165, %c0_166] : memref<456x4xf32, #tpu.memory_space<vmem>>, vector<8x4xf32>
    tpu.vector_store %arg8[%c257_165, %c0_166], %120 {strides = array<i32>} : memref<456x4xf32, #tpu.memory_space<vmem>>, vector<8x4xf32>,
    %c281_167 = arith.constant 281 : index
    %c0_168 = arith.constant 0 : index
    %135 = vector.load %arg8[%c281_167, %c0_168] : memref<456x4xf32, #tpu.memory_space<vmem>>, vector<8x4xf32>
    tpu.vector_store %arg8[%c281_167, %c0_168], %120 {strides = array<i32>} : memref<456x4xf32, #tpu.memory_space<vmem>>, vector<8x4xf32>,
    %c305_169 = arith.constant 305 : index
    %c0_170 = arith.constant 0 : index
    %136 = vector.load %arg8[%c305_169, %c0_170] : memref<456x4xf32, #tpu.memory_space<vmem>>, vector<8x4xf32>
    tpu.vector_store %arg8[%c305_169, %c0_170], %120 {strides = array<i32>} : memref<456x4xf32, #tpu.memory_space<vmem>>, vector<8x4xf32>,
    %c329_171 = arith.constant 329 : index
    %c0_172 = arith.constant 0 : index
    %137 = vector.load %arg8[%c329_171, %c0_172] : memref<456x4xf32, #tpu.memory_space<vmem>>, vector<8x4xf32>
    tpu.vector_store %arg8[%c329_171, %c0_172], %120 {strides = array<i32>} : memref<456x4xf32, #tpu.memory_space<vmem>>, vector<8x4xf32>,
    %c353_173 = arith.constant 353 : index
    %c0_174 = arith.constant 0 : index
    %138 = vector.load %arg8[%c353_173, %c0_174] : memref<456x4xf32, #tpu.memory_space<vmem>>, vector<8x4xf32>
    tpu.vector_store %arg8[%c353_173, %c0_174], %120 {strides = array<i32>} : memref<456x4xf32, #tpu.memory_space<vmem>>, vector<8x4xf32>,
    %c377_175 = arith.constant 377 : index
    %c0_176 = arith.constant 0 : index
    %139 = vector.load %arg8[%c377_175, %c0_176] : memref<456x4xf32, #tpu.memory_space<vmem>>, vector<8x4xf32>
    tpu.vector_store %arg8[%c377_175, %c0_176], %120 {strides = array<i32>} : memref<456x4xf32, #tpu.memory_space<vmem>>, vector<8x4xf32>,
    %c401_177 = arith.constant 401 : index
    %c0_178 = arith.constant 0 : index
    %140 = vector.load %arg8[%c401_177, %c0_178] : memref<456x4xf32, #tpu.memory_space<vmem>>, vector<8x4xf32>
    tpu.vector_store %arg8[%c401_177, %c0_178], %120 {strides = array<i32>} : memref<456x4xf32, #tpu.memory_space<vmem>>, vector<8x4xf32>,
    %c0_179 = arith.constant 0 : index
    %c0_180 = arith.constant 0 : index
    %141 = vector.load %arg5[%c0_179, %c0_180] : memref<1x4xf32, #tpu.memory_space<vmem>>, vector<1x4xf32>
    %142 = vector.shape_cast %141 : vector<1x4xf32> to vector<1x4xf32>
    %143 = vector.broadcast %142 : vector<1x4xf32> to vector<384x4xf32>
    %c0_181 = arith.constant 0 : index
    %c0_182 = arith.constant 0 : index
    %144 = vector.load %arg8[%c0_181, %c0_182] : memref<456x4xf32, #tpu.memory_space<vmem>>, vector<384x4xf32>
    %c0_183 = arith.constant 0 : index
    %c0_184 = arith.constant 0 : index
    %c0_185 = arith.constant 0 : index
    %145 = vector.load %arg4[%c0_183, %c0_184, %c0_185] : memref<9x4x4xf32, #tpu.memory_space<vmem>>, vector<1x4x4xf32>
    %146 = vector.shape_cast %145 : vector<1x4x4xf32> to vector<4x4xf32>
    %cst_186 = arith.constant dense<0.000000e+00> : vector<384x4xf32>
    %147 = tpu.matmul %144, %146, %cst_186 {dimension_numbers = #tpu.dot_dimension_numbers<[1], [0], [0], [1], [0, 0, 1, 1], [], []>} : vector<384x4xf32>, vector<4x4xf32>, vector<384x4xf32> -> vector<384x4xf32>
    %148 = arith.addf %143, %147 : vector<384x4xf32>
    %c1_187 = arith.constant 1 : index
    %c0_188 = arith.constant 0 : index
    %149 = vector.load %arg8[%c1_187, %c0_188] : memref<456x4xf32, #tpu.memory_space<vmem>>, vector<384x4xf32>
    %c1_189 = arith.constant 1 : index
    %c0_190 = arith.constant 0 : index
    %c0_191 = arith.constant 0 : index
    %150 = vector.load %arg4[%c1_189, %c0_190, %c0_191] : memref<9x4x4xf32, #tpu.memory_space<vmem>>, vector<1x4x4xf32>
    %151 = vector.shape_cast %150 : vector<1x4x4xf32> to vector<4x4xf32>
    %cst_192 = arith.constant dense<0.000000e+00> : vector<384x4xf32>
    %152 = tpu.matmul %149, %151, %cst_192 {dimension_numbers = #tpu.dot_dimension_numbers<[1], [0], [0], [1], [0, 0, 1, 1], [], []>} : vector<384x4xf32>, vector<4x4xf32>, vector<384x4xf32> -> vector<384x4xf32>
    %153 = arith.addf %148, %152 : vector<384x4xf32>
    %c2_193 = arith.constant 2 : index
    %c0_194 = arith.constant 0 : index
    %154 = vector.load %arg8[%c2_193, %c0_194] : memref<456x4xf32, #tpu.memory_space<vmem>>, vector<384x4xf32>
    %c2_195 = arith.constant 2 : index
    %c0_196 = arith.constant 0 : index
    %c0_197 = arith.constant 0 : index
    %155 = vector.load %arg4[%c2_195, %c0_196, %c0_197] : memref<9x4x4xf32, #tpu.memory_space<vmem>>, vector<1x4x4xf32>
    %156 = vector.shape_cast %155 : vector<1x4x4xf32> to vector<4x4xf32>
    %cst_198 = arith.constant dense<0.000000e+00> : vector<384x4xf32>
    %157 = tpu.matmul %154, %156, %cst_198 {dimension_numbers = #tpu.dot_dimension_numbers<[1], [0], [0], [1], [0, 0, 1, 1], [], []>} : vector<384x4xf32>, vector<4x4xf32>, vector<384x4xf32> -> vector<384x4xf32>
    %158 = arith.addf %153, %157 : vector<384x4xf32>
    %c24_199 = arith.constant 24 : index
    %c0_200 = arith.constant 0 : index
    %159 = vector.load %arg8[%c24_199, %c0_200] : memref<456x4xf32, #tpu.memory_space<vmem>>, vector<384x4xf32>
    %c3_201 = arith.constant 3 : index
    %c0_202 = arith.constant 0 : index
    %c0_203 = arith.constant 0 : index
    %160 = vector.load %arg4[%c3_201, %c0_202, %c0_203] : memref<9x4x4xf32, #tpu.memory_space<vmem>>, vector<1x4x4xf32>
    %161 = vector.shape_cast %160 : vector<1x4x4xf32> to vector<4x4xf32>
    %cst_204 = arith.constant dense<0.000000e+00> : vector<384x4xf32>
    %162 = tpu.matmul %159, %161, %cst_204 {dimension_numbers = #tpu.dot_dimension_numbers<[1], [0], [0], [1], [0, 0, 1, 1], [], []>} : vector<384x4xf32>, vector<4x4xf32>, vector<384x4xf32> -> vector<384x4xf32>
    %163 = arith.addf %158, %162 : vector<384x4xf32>
    %c25_205 = arith.constant 25 : index
    %c0_206 = arith.constant 0 : index
    %164 = vector.load %arg8[%c25_205, %c0_206] : memref<456x4xf32, #tpu.memory_space<vmem>>, vector<384x4xf32>
    %c4_207 = arith.constant 4 : index
    %c0_208 = arith.constant 0 : index
    %c0_209 = arith.constant 0 : index
    %165 = vector.load %arg4[%c4_207, %c0_208, %c0_209] : memref<9x4x4xf32, #tpu.memory_space<vmem>>, vector<1x4x4xf32>
    %166 = vector.shape_cast %165 : vector<1x4x4xf32> to vector<4x4xf32>
    %cst_210 = arith.constant dense<0.000000e+00> : vector<384x4xf32>
    %167 = tpu.matmul %164, %166, %cst_210 {dimension_numbers = #tpu.dot_dimension_numbers<[1], [0], [0], [1], [0, 0, 1, 1], [], []>} : vector<384x4xf32>, vector<4x4xf32>, vector<384x4xf32> -> vector<384x4xf32>
    %168 = arith.addf %163, %167 : vector<384x4xf32>
    %c26_211 = arith.constant 26 : index
    %c0_212 = arith.constant 0 : index
    %169 = vector.load %arg8[%c26_211, %c0_212] : memref<456x4xf32, #tpu.memory_space<vmem>>, vector<384x4xf32>
    %c5_213 = arith.constant 5 : index
    %c0_214 = arith.constant 0 : index
    %c0_215 = arith.constant 0 : index
    %170 = vector.load %arg4[%c5_213, %c0_214, %c0_215] : memref<9x4x4xf32, #tpu.memory_space<vmem>>, vector<1x4x4xf32>
    %171 = vector.shape_cast %170 : vector<1x4x4xf32> to vector<4x4xf32>
    %cst_216 = arith.constant dense<0.000000e+00> : vector<384x4xf32>
    %172 = tpu.matmul %169, %171, %cst_216 {dimension_numbers = #tpu.dot_dimension_numbers<[1], [0], [0], [1], [0, 0, 1, 1], [], []>} : vector<384x4xf32>, vector<4x4xf32>, vector<384x4xf32> -> vector<384x4xf32>
    %173 = arith.addf %168, %172 : vector<384x4xf32>
    %c48_217 = arith.constant 48 : index
    %c0_218 = arith.constant 0 : index
    %174 = vector.load %arg8[%c48_217, %c0_218] : memref<456x4xf32, #tpu.memory_space<vmem>>, vector<384x4xf32>
    %c6_219 = arith.constant 6 : index
    %c0_220 = arith.constant 0 : index
    %c0_221 = arith.constant 0 : index
    %175 = vector.load %arg4[%c6_219, %c0_220, %c0_221] : memref<9x4x4xf32, #tpu.memory_space<vmem>>, vector<1x4x4xf32>
    %176 = vector.shape_cast %175 : vector<1x4x4xf32> to vector<4x4xf32>
    %cst_222 = arith.constant dense<0.000000e+00> : vector<384x4xf32>
    %177 = tpu.matmul %174, %176, %cst_222 {dimension_numbers = #tpu.dot_dimension_numbers<[1], [0], [0], [1], [0, 0, 1, 1], [], []>} : vector<384x4xf32>, vector<4x4xf32>, vector<384x4xf32> -> vector<384x4xf32>
    %178 = arith.addf %173, %177 : vector<384x4xf32>
    %c49_223 = arith.constant 49 : index
    %c0_224 = arith.constant 0 : index
    %179 = vector.load %arg8[%c49_223, %c0_224] : memref<456x4xf32, #tpu.memory_space<vmem>>, vector<384x4xf32>
    %c7_225 = arith.constant 7 : index
    %c0_226 = arith.constant 0 : index
    %c0_227 = arith.constant 0 : index
    %180 = vector.load %arg4[%c7_225, %c0_226, %c0_227] : memref<9x4x4xf32, #tpu.memory_space<vmem>>, vector<1x4x4xf32>
    %181 = vector.shape_cast %180 : vector<1x4x4xf32> to vector<4x4xf32>
    %cst_228 = arith.constant dense<0.000000e+00> : vector<384x4xf32>
    %182 = tpu.matmul %179, %181, %cst_228 {dimension_numbers = #tpu.dot_dimension_numbers<[1], [0], [0], [1], [0, 0, 1, 1], [], []>} : vector<384x4xf32>, vector<4x4xf32>, vector<384x4xf32> -> vector<384x4xf32>
    %183 = arith.addf %178, %182 : vector<384x4xf32>
    %c50_229 = arith.constant 50 : index
    %c0_230 = arith.constant 0 : index
    %184 = vector.load %arg8[%c50_229, %c0_230] : memref<456x4xf32, #tpu.memory_space<vmem>>, vector<384x4xf32>
    %c8_231 = arith.constant 8 : index
    %c0_232 = arith.constant 0 : index
    %c0_233 = arith.constant 0 : index
    %185 = vector.load %arg4[%c8_231, %c0_232, %c0_233] : memref<9x4x4xf32, #tpu.memory_space<vmem>>, vector<1x4x4xf32>
    %186 = vector.shape_cast %185 : vector<1x4x4xf32> to vector<4x4xf32>
    %cst_234 = arith.constant dense<0.000000e+00> : vector<384x4xf32>
    %187 = tpu.matmul %184, %186, %cst_234 {dimension_numbers = #tpu.dot_dimension_numbers<[1], [0], [0], [1], [0, 0, 1, 1], [], []>} : vector<384x4xf32>, vector<4x4xf32>, vector<384x4xf32> -> vector<384x4xf32>
    %188 = arith.addf %183, %187 : vector<384x4xf32>
    %cst_235 = arith.constant 0.000000e+00 : f32
    %189 = vector.broadcast %cst_235 : f32 to vector<384x4xf32>
    %190 = arith.maximumf %188, %189 : vector<384x4xf32>
    %191 = vector.shape_cast %190 : vector<384x4xf32> to vector<16x24x4xf32>
    %192 = vector.extract_strided_slice %191 {offsets = [0, 0, 0], sizes = [16, 16, 4], strides = [1, 1, 1]} : vector<16x24x4xf32> to vector<16x16x4xf32>
    %c0_236 = arith.constant 0 : index
    %c0_237 = arith.constant 0 : index
    %c0_238 = arith.constant 0 : index
    %c0_239 = arith.constant 0 : index
    %193 = vector.load %arg1[%c0_236, %c0_237, %c0_238, %c0_239] : memref<1x16x16x4xf32, #tpu.memory_space<vmem>>, vector<1x16x16x4xf32>
    %194 = vector.shape_cast %193 : vector<1x16x16x4xf32> to vector<16x16x4xf32>
    %195 = arith.addf %194, %192 : vector<16x16x4xf32>
    %c0_240 = arith.constant 0 : index
    %c0_241 = arith.constant 0 : index
    %c0_242 = arith.constant 0 : index
    %c0_243 = arith.constant 0 : index
    %196 = vector.load %arg6[%c0_240, %c0_241, %c0_242, %c0_243] : memref<1x16x16x4xf32, #tpu.memory_space<vmem>>, vector<1x16x16x4xf32>
    %197 = vector.shape_cast %196 : vector<1x16x16x4xf32> to vector<16x16x4xf32>
    %198 = vector.shape_cast %195 : vector<16x16x4xf32> to vector<1x16x16x4xf32>
    tpu.vector_store %arg6[%c0_240, %c0_241, %c0_242, %c0_243], %198 {strides = array<i32>} : memref<1x16x16x4xf32, #tpu.memory_space<vmem>>, vector<1x16x16x4xf32>,
    return
  }
  func.func @transform_0(%arg0: i32) -> (i32, i32, i32, i32) {
    %c0_i32 = arith.constant 0 : i32
    %c0_i32_0 = arith.constant 0 : i32
    %c0_i32_1 = arith.constant 0 : i32
    %c0_i32_2 = arith.constant 0 : i32
    return %arg0, %c0_i32, %c0_i32_0, %c0_i32_1 : i32, i32, i32, i32
  }
  func.func @transform_1(%arg0: i32) -> (i32, i32, i32) {
    %c0_i32 = arith.constant 0 : i32
    %c0_i32_0 = arith.constant 0 : i32
    %c0_i32_1 = arith.constant 0 : i32
    %c0_i32_2 = arith.constant 0 : i32
    return %c0_i32, %c0_i32_0, %c0_i32_1 : i32, i32, i32
  }
  func.func @transform_2(%arg0: i32) -> (i32, i32) {
    %c0_i32 = arith.constant 0 : i32
    %c0_i32_0 = arith.constant 0 : i32
    %c0_i32_1 = arith.constant 0 : i32
    return %c0_i32, %c0_i32_0 : i32, i32
  }
  func.func @transform_3(%arg0: i32) -> (i32, i32, i32) {
    %c0_i32 = arith.constant 0 : i32
    %c0_i32_0 = arith.constant 0 : i32
    %c0_i32_1 = arith.constant 0 : i32
    %c0_i32_2 = arith.constant 0 : i32
    return %c0_i32, %c0_i32_0, %c0_i32_1 : i32, i32, i32
  }
  func.func @transform_4(%arg0: i32) -> (i32, i32) {
    %c0_i32 = arith.constant 0 : i32
    %c0_i32_0 = arith.constant 0 : i32
    %c0_i32_1 = arith.constant 0 : i32
    return %c0_i32, %c0_i32_0 : i32, i32
  }
  func.func @transform_5(%arg0: i32) -> (i32, i32, i32, i32) {
    %c0_i32 = arith.constant 0 : i32
    %c0_i32_0 = arith.constant 0 : i32
    %c0_i32_1 = arith.constant 0 : i32
    %c0_i32_2 = arith.constant 0 : i32
    return %arg0, %c0_i32, %c0_i32_0, %c0_i32_1 : i32, i32, i32, i32
  }
}

</mosaic_0001>

<bundles_post_ra>
// kernel: tpu_custom_call.1
= control target key start
LH: loop header
LB: loop body
LE: loop exit
PB: predicated region body
PF: predicated region fallthrough
CT: control target
= control target key end

     0   :  { %s13469_s18 = smov 0   ;;  %s17177_s0 = inlined_call_operand.vmem [shape: f32[2,16,16,4], index: 0, kind: input, shape index: {}]   ;;  %s17178_s1 = inlined_call_operand.vmem [shape: f32[9,4,4], index: 1, kind: input, shape index: {}]   ;;  %s17179_s2 = inlined_call_operand.vmem [shape: f32[1,4], index: 2, kind: input, shape index: {}]   ;;  %s17180_s3 = inlined_call_operand.vmem [shape: f32[9,4,4], index: 3, kind: input, shape index: {}]   ;;  %s17181_s4 = inlined_call_operand.vmem [shape: f32[1,4], index: 4, kind: input, shape index: {}]   ;;  %s17182_s5 = inlined_call_operand.vmem [shape: f32[2,16,16,4], index: 5, kind: output, shape index: {}]  }
   0x1 LB: > { %s10262_s19 = sadd.s32 4294967295, %s13436_s18   ;;  %p10266_p0 = scmp.ge.s32.totalorder %s13436_s18, 1  ;;  %s13436_s18 = sphi %s13469_s18, %s15_s18  }
   0x2   : > { %p187_p1 = scmp.lt.s32.totalorder %s13436_s18, 3 }
   0x4   : > { %p188_p2 = pnand %p10266_p0, %p187_p1 }
   0x6   : > { %191 = sbr.rel (%p188_p2) target bundleno = 1298 (0x512), region = 40 }
   0xb   : > { %v387_v0 = vld [vmem:[%s17178_s1] sm:$0xf]  ;;  %vm532_vm0 = vcmask 1043456   ;;  %vm225_vm1 = vcmask 31744   ;;  %p13482_p3 = scmp.lt.s32.totalorder %s10262_s19, 1  ;;  %v17183_v1 = vmov 0.0  }
   0xc   : > { %12087 = vmatprep.subr.msk.mxu0 %vm532_vm0, %v387_v0  ;;  %226 = vst.msk [vmem:[#allocation2] sm:$0xff] %vm225_vm1, %v17183_v1  ;;  %227 = vst.msk [vmem:[#allocation2 + $0x8] sm:$0xff] %vm225_vm1, %v17183_v1  ;;  %v10351_v2 = vld [vmem:[%s17178_s1 + $0x4] sm:$0xf]  ;;  %v10401_v3 = vld [vmem:[%s17178_s1 + $0x8] sm:$0xf] }
   0xd   : > { %228 = vst.msk [vmem:[#allocation2 + $0x10] sm:$0xff] %vm225_vm1, %v17183_v1  ;;  %231 = vst.msk [vmem:[#allocation2 + $0x198] sm:$0xff] %vm225_vm1, %v17183_v1  ;;  %vm229_vm2 = vcmask 24576   ;;  %12088 = vmatpush3.msk.msra.mxu0 %vm532_vm0, %v387_v0  ;;  %12161 = vmatprep.subr.msk.mxu1 %vm532_vm0, %v10351_v2  ;;  %s17513_s19 = smov (!%p13482_p3, %s10262_s19), 1  ;;  %v10451_v4 = vld [vmem:[%s17178_s1 + $0xc] sm:$0xf] }
   0xe   : > { %232 = vst.msk [vmem:[#allocation2 + $0x1a0] sm:$0xff] %vm225_vm1, %v17183_v1  ;;  %233 = vst.msk [vmem:[#allocation2 + $0x1a8] sm:$0xff] %vm225_vm1, %v17183_v1  ;;  %12235 = vmatprep.subr.msk.mxu0 %vm532_vm0, %v10401_v3  ;;  %12162 = vmatpush3.msk.msra.mxu1 %vm532_vm0, %v10351_v2  ;;  %s11203_s29 = sshll.u32 %s17513_s19, 8  ;;  %v13594_v17 = vld [vmem:[%s17178_s1 + $0x10] sm:$0xf] }
   0xf   : > { %234 = vst.msk [vmem:[#allocation2 + $0x1b0] sm:$0xff] %vm225_vm1, %v17183_v1  ;;  %241 = vst.msk [vmem:[#allocation2 + $0x29] sm:$0xff] %vm225_vm1, %v17183_v1  ;;  %12309 = vmatprep.subr.msk.mxu1 %vm532_vm0, %v10451_v4  ;;  %s13573_s7 = scalar_lea.vmem %s17177_s0, %s11203_s29  ;;  %s17047_s27 = scalar_lea.vmem %s17182_s5, %s11203_s29 }
  0x10   : > { %247 = vst.msk [vmem:[#allocation2 + $0x41] sm:$0xff] %vm225_vm1, %v17183_v1  ;;  %253 = vst.msk [vmem:[#allocation2 + $0x59] sm:$0xff] %vm225_vm1, %v17183_v1  ;;  %v237_v5 = vld [vmem:[%s13573_s7] sm:$0xff]  ;;  %v238_v6 = vld [vmem:[%s13573_s7 + $0x8] sm:$0xff] }
  0x11   : > { %259 = vst.msk [vmem:[#allocation2 + $0x71] sm:$0xff] %vm225_vm1, %v17183_v1  ;;  %265 = vst.msk [vmem:[#allocation2 + $0x89] sm:$0xff] %vm225_vm1, %v17183_v1  ;;  %v10271_v7 = vld [vmem:[%s13573_s7 + $0x10] sm:$0xff]  ;;  %v10272_v8 = vld [vmem:[%s13573_s7 + $0x18] sm:$0xff] }
  0x12   : > { %271 = vst.msk [vmem:[#allocation2 + $0xa1] sm:$0xff] %vm225_vm1, %v17183_v1  ;;  %277 = vst.msk [vmem:[#allocation2 + $0xb9] sm:$0xff] %vm225_vm1, %v17183_v1  ;;  %v10273_v9 = vld [vmem:[%s13573_s7 + $0x20] sm:$0xff]  ;;  %v10274_v10 = vld [vmem:[%s13573_s7 + $0x28] sm:$0xff] }
  0x13   : > { %283 = vst.msk [vmem:[#allocation2 + $0xd1] sm:$0xff] %vm225_vm1, %v17183_v1  ;;  %289 = vst.msk [vmem:[#allocation2 + $0xe9] sm:$0xff] %vm225_vm1, %v17183_v1  ;;  %v339_v11 = vld [vmem:[#allocation2] sm:$0xff]  ;;  %v340_v12 = vld [vmem:[#allocation2 + $0x8] sm:$0xff] }
  0x14   : > { %295 = vst.msk [vmem:[#allocation2 + $0x101] sm:$0xff] %vm225_vm1, %v17183_v1  ;;  %301 = vst.msk [vmem:[#allocation2 + $0x119] sm:$0xff] %vm225_vm1, %v17183_v1  ;;  %v889_v13 = vld [vmem:[#allocation2 + $0x1] sm:$0xff]  ;;  %12089 = vmatprep.mubr.msk.f32.mxu0 %vm225_vm1, %v339_v11  ;;  %v890_v14 = vld [vmem:[#allocation2 + $0x9] sm:$0xff] }
  0x15   : > { %307 = vst.msk [vmem:[#allocation2 + $0x131] sm:$0xff] %vm225_vm1, %v17183_v1  ;;  %313 = vst.msk [vmem:[#allocation2 + $0x149] sm:$0xff] %vm225_vm1, %v17183_v1  ;;  %12163 = vmatprep.mubr.msk.f32.mxu1 %vm225_vm1, %v889_v13  ;;  %v341_v15 = vld [vmem:[#allocation2 + $0x10] sm:$0xff]  ;;  %12090 = vmatmul.mubr.msk.f32.vlgmr.msra.gmra.mxu0 %vm225_vm1, %v340_v12  ;;  %v10276_v19 = vld [vmem:[%s13573_s7 + $0x38] sm:$0xff] }
  0x16   : > { %319 = vst.msk [vmem:[#allocation2 + $0x161] sm:$0xff] %vm225_vm1, %v17183_v1  ;;  %325 = vst.msk [vmem:[#allocation2 + $0x179] sm:$0xff] %vm225_vm1, %v17183_v1  ;;  %12164 = vmatmul.mubr.msk.f32.vlgmr.msra.gmra.mxu1 %vm225_vm1, %v890_v14  ;;  %12236 = vmatpush3.msk.msra.mxu0 %vm532_vm0, %v10401_v3  ;;  %v10275_v18 = vld [vmem:[%s13573_s7 + $0x30] sm:$0xff]  ;;  %v10277_v20 = vld [vmem:[%s13573_s7 + $0x40] sm:$0xff] }
  0x17   : > { %5385 = vst.msk [vmem:[#allocation3] sm:$0xff] %vm225_vm1, %v17183_v1  ;;  %5386 = vst.msk [vmem:[#allocation3 + $0x8] sm:$0xff] %vm225_vm1, %v17183_v1  ;;  %12092 = vmatprep.mubr.msk.f32.mxu0 %vm225_vm1, %v341_v15  ;;  %v10278_v21 = vld [vmem:[%s13573_s7 + $0x48] sm:$0xff]  ;;  %12310 = vmatpush3.msk.msra.mxu1 %vm532_vm0, %v10451_v4  ;;  %v10279_v22 = vld [vmem:[%s13573_s7 + $0x50] sm:$0xff] }
  0x18   : > { %5387 = vst.msk [vmem:[#allocation3 + $0x10] sm:$0xff] %vm225_vm1, %v17183_v1  ;;  %5390 = vst.msk [vmem:[#allocation3 + $0x1a0] sm:$0xff] %vm225_vm1, %v17183_v1  ;;  %v10280_v23 = vld [vmem:[%s13573_s7 + $0x58] sm:$0xff]  ;;  %v10281_v24 = vld [vmem:[%s13573_s7 + $0x60] sm:$0xff]  ;;  %12383 = vmatprep.subr.msk.mxu0 %vm532_vm0, %v13594_v17 }
  0x19   : > { %5391 = vst.msk [vmem:[#allocation3 + $0x1a8] sm:$0xff] %vm225_vm1, %v17183_v1  ;;  %5392 = vst.msk [vmem:[#allocation3 + $0x1b0] sm:$0xff] %vm225_vm1, %v17183_v1  ;;  %v13634_v30 = vld [vmem:[#allocation2 + $0x29] sm:$0xff]  ;;  %v13654_v36 = vld [vmem:[#allocation2 + $0x41] sm:$0xff] }
  0x1a   : > { %331 = vst.msk [vmem:[#allocation2 + $0x191] sm:$0xff] %vm225_vm1, %v17183_v1  ;;  %239 = vst.msk [vmem:[#allocation2 + $0x19] sm:$0xff] %vm225_vm1, %v237_v5  ;;  %v10282_v41 = vld [vmem:[%s13573_s7 + $0x68] sm:$0xff]  ;;  %v10283_v42 = vld [vmem:[%s13573_s7 + $0x70] sm:$0xff] }
  0x1b   : > { %230 = vst.msk [vmem:[#allocation2 + $0x18] sm:$0x1] %vm229_vm2, %v17183_v1  ;;  %5388 = vst.msk [vmem:[#allocation3 + $0x18] sm:$0x1] %vm229_vm2, %v17183_v1  ;;  %v13674_v43 = vld [vmem:[#allocation2 + $0x59] sm:$0xff]  ;;  %v10286_v47 = vld [vmem:[%s13573_s7 + $0x88] sm:$0xff] }
  0x1c   : > { %240 = vst.msk [vmem:[#allocation2 + $0x21] sm:$0xff] %vm225_vm1, %v238_v6  ;;  %245 = vst.msk [vmem:[#allocation2 + $0x31] sm:$0xff] %vm225_vm1, %v10271_v7  ;;  %v10284_v44 = vld [vmem:[%s13573_s7 + $0x78] sm:$0xff]  ;;  %v10285_v45 = vld [vmem:[%s13573_s7 + $0x80] sm:$0xff] }
  0x1d   : > { %246 = vst.msk [vmem:[#allocation2 + $0x39] sm:$0xff] %vm225_vm1, %v10272_v8  ;;  %251 = vst.msk [vmem:[#allocation2 + $0x49] sm:$0xff] %vm225_vm1, %v10273_v9  ;;  %v10287_v48 = vld [vmem:[%s13573_s7 + $0x90] sm:$0xff]  ;;  %v10288_v50 = vld [vmem:[%s13573_s7 + $0x98] sm:$0xff] }
  0x1e   : > { %252 = vst.msk [vmem:[#allocation2 + $0x51] sm:$0xff] %vm225_vm1, %v10274_v10  ;;  %257 = vst.msk [vmem:[#allocation2 + $0x61] sm:$0xff] %vm225_vm1, %v10275_v18  ;;  %v10289_v51 = vld [vmem:[%s13573_s7 + $0xa0] sm:$0xff]  ;;  %v10290_v53 = vld [vmem:[%s13573_s7 + $0xa8] sm:$0xff] }
  0x1f   : > { %258 = vst.msk [vmem:[#allocation2 + $0x69] sm:$0xff] %vm225_vm1, %v10276_v19  ;;  %263 = vst.msk [vmem:[#allocation2 + $0x79] sm:$0xff] %vm225_vm1, %v10277_v20  ;;  %v10291_v54 = vld [vmem:[%s13573_s7 + $0xb0] sm:$0xff]  ;;  %v10292_v55 = vld [vmem:[%s13573_s7 + $0xb8] sm:$0xff] }
  0x20   : > { %264 = vst.msk [vmem:[#allocation2 + $0x81] sm:$0xff] %vm225_vm1, %v10278_v21  ;;  %269 = vst.msk [vmem:[#allocation2 + $0x91] sm:$0xff] %vm225_vm1, %v10279_v22  ;;  %v10293_v56 = vld [vmem:[%s13573_s7 + $0xc0] sm:$0xff]  ;;  %v10294_v58 = vld [vmem:[%s13573_s7 + $0xc8] sm:$0xff] }
  0x21   : > { %v13615_v26 = vld [vmem:[#allocation2 + $0x19] sm:$0xff]  ;;  %270 = vst.msk [vmem:[#allocation2 + $0x99] sm:$0xff] %vm225_vm1, %v10280_v23  ;;  %275 = vst.msk [vmem:[#allocation2 + $0xa9] sm:$0xff] %vm225_vm1, %v10281_v24  ;;  %v10295_v59 = vld [vmem:[%s13573_s7 + $0xd0] sm:$0xff] }
  0x22   : > { %v891_v16 = vld [vmem:[#allocation2 + $0x11] sm:$0xff]  ;;  %276 = vst.msk [vmem:[#allocation2 + $0xb1] sm:$0xff] %vm225_vm1, %v10282_v41  ;;  %281 = vst.msk [vmem:[#allocation2 + $0xc1] sm:$0xff] %vm225_vm1, %v10283_v42  ;;  %v10297_v62 = vld [vmem:[%s13573_s7 + $0xe0] sm:$0xff] }
  0x23   : > { %12166 = vmatprep.mubr.msk.f32.mxu1 %vm225_vm1, %v891_v16  ;;  %v13613_v25 = vld [vmem:[#allocation2 + $0x18] sm:$0xff]  ;;  %v13617_v27 = vld [vmem:[#allocation2 + $0x20] sm:$0xff]  ;;  %v13630_v29 = vld [vmem:[#allocation2 + $0x28] sm:$0xff]  ;;  %282 = vst.msk [vmem:[#allocation2 + $0xc9] sm:$0xff] %vm225_vm1, %v10284_v44 }
  0x24   : > { %12093 = vmatmul.mubr.msk.f32.gmra.mxu0 %vm225_vm1, %v13613_v25  ;;  %12167 = vmatmul.mubr.msk.f32.gmra.mxu1 %vm225_vm1, %v13615_v26  ;;  %v13626_v28 = vld [vmem:[#allocation2 + $0x21] sm:$0xff]  ;;  %v13636_v31 = vld [vmem:[#allocation2 + $0x30] sm:$0xff]  ;;  %v13646_v33 = vld [vmem:[#allocation2 + $0x38] sm:$0xff]  ;;  %287 = vst.msk [vmem:[#allocation2 + $0xd9] sm:$0xff] %vm225_vm1, %v10285_v45 }
  0x25   : > { %12095 = vmatprep.mubr.msk.f32.mxu0 %vm225_vm1, %v13617_v27  ;;  %12169 = vmatprep.mubr.msk.f32.mxu1 %vm225_vm1, %v13626_v28  ;;  %v13638_v32 = vld [vmem:[#allocation2 + $0x31] sm:$0xff]  ;;  %v13650_v34 = vld [vmem:[#allocation2 + $0x39] sm:$0xff]  ;;  %v13662_v37 = vld [vmem:[#allocation2 + $0x48] sm:$0xff]  ;;  %288 = vst.msk [vmem:[#allocation2 + $0xe1] sm:$0xff] %vm225_vm1, %v10286_v47 }
  0x26   : > { %v13652_v35 = vld [vmem:[#allocation2 + $0x40] sm:$0xff]  ;;  %v13666_v38 = vld [vmem:[#allocation2 + $0x49] sm:$0xff]  ;;  %v13670_v40 = vld [vmem:[#allocation2 + $0x51] sm:$0xff]  ;;  %293 = vst.msk [vmem:[#allocation2 + $0xf1] sm:$0xff] %vm225_vm1, %v10287_v48 }
  0x27   : > { %v13668_v39 = vld [vmem:[#allocation2 + $0x50] sm:$0xff]  ;;  %v13684_v46 = vld [vmem:[#allocation2 + $0x58] sm:$0xff]  ;;  %v13694_v49 = vld [vmem:[#allocation2 + $0x60] sm:$0xff]  ;;  %294 = vst.msk [vmem:[#allocation2 + $0xf9] sm:$0xff] %vm225_vm1, %v10288_v50 }
  0x28   : > { %12096 = vmatmul.mubr.msk.f32.gmra.mxu0 %vm225_vm1, %v13630_v29  ;;  %12170 = vmatmul.mubr.msk.f32.gmra.mxu1 %vm225_vm1, %v13634_v30  ;;  %v13700_v52 = vld [vmem:[#allocation2 + $0x61] sm:$0xff]  ;;  %299 = vst.msk [vmem:[#allocation2 + $0x109] sm:$0xff] %vm225_vm1, %v10289_v51  ;;  %300 = vst.msk [vmem:[#allocation2 + $0x111] sm:$0xff] %vm225_vm1, %v10290_v53  ;;  %v13724_v60 = vld [vmem:[#allocation2 + $0x69] sm:$0xff] }
  0x29   : > { %12098 = vmatprep.mubr.msk.f32.mxu0 %vm225_vm1, %v13636_v31  ;;  %12172 = vmatprep.mubr.msk.f32.mxu1 %vm225_vm1, %v13638_v32  ;;  %305 = vst.msk [vmem:[#allocation2 + $0x121] sm:$0xff] %vm225_vm1, %v10291_v54  ;;  %v13714_v57 = vld [vmem:[#allocation2 + $0x68] sm:$0xff]  ;;  %306 = vst.msk [vmem:[#allocation2 + $0x129] sm:$0xff] %vm225_vm1, %v10292_v55  ;;  %v10296_v61 = vld [vmem:[%s13573_s7 + $0xd8] sm:$0xff] }
  0x2a   : > { %311 = vst.msk [vmem:[#allocation2 + $0x139] sm:$0xff] %vm225_vm1, %v10293_v56  ;;  %312 = vst.msk [vmem:[#allocation2 + $0x141] sm:$0xff] %vm225_vm1, %v10294_v58  ;;  %v13730_v63 = vld [vmem:[#allocation2 + $0x70] sm:$0xff]  ;;  %v13742_v2 = vld [vmem:[#allocation2 + $0x78] sm:$0xff] }
  0x2b   : > { %317 = vst.msk [vmem:[#allocation2 + $0x151] sm:$0xff] %vm225_vm1, %v10295_v59  ;;  %v13732_v0 = vld [vmem:[#allocation2 + $0x71] sm:$0xff]  ;;  %318 = vst.msk [vmem:[#allocation2 + $0x159] sm:$0xff] %vm225_vm1, %v10296_v61  ;;  %v13746_v3 = vld [vmem:[#allocation2 + $0x79] sm:$0xff] }
  0x2c   : > { %12099 = vmatmul.mubr.msk.f32.gmra.mxu0 %vm225_vm1, %v13646_v33  ;;  %12173 = vmatmul.mubr.msk.f32.gmra.mxu1 %vm225_vm1, %v13650_v34  ;;  %323 = vst.msk [vmem:[#allocation2 + $0x169] sm:$0xff] %vm225_vm1, %v10297_v62  ;;  %17223 = vst [vmem:[#allocation4_spill] sm:$0xff] %v13746_v3  ;;  %v13748_v4 = vld [vmem:[#allocation2 + $0x80] sm:$0xff]  ;;  %v13758_v6 = vld [vmem:[#allocation2 + $0x88] sm:$0xff] }
  0x2d   : > { %12101 = vmatprep.mubr.msk.f32.mxu0 %vm225_vm1, %v13652_v35  ;;  %12175 = vmatprep.mubr.msk.f32.mxu1 %vm225_vm1, %v13654_v36  ;;  %v13750_v5 = vld [vmem:[#allocation2 + $0x81] sm:$0xff]  ;;  %v13762_v7 = vld [vmem:[#allocation2 + $0x89] sm:$0xff]  ;;  %v13766_v9 = vld [vmem:[#allocation2 + $0x91] sm:$0xff] }
  0x2e   : > { %17224 = vst [vmem:[#allocation5_spill] sm:$0xff] %v13750_v5  ;;  %17225 = vst [vmem:[#allocation6_spill] sm:$0xff] %v13762_v7  ;;  %v13764_v8 = vld [vmem:[#allocation2 + $0x90] sm:$0xff]  ;;  %v13774_v10 = vld [vmem:[#allocation2 + $0x98] sm:$0xff] }
  0x2f   : > { %17226 = vst [vmem:[#allocation7_spill] sm:$0xff] %v13766_v9  ;;  %v13778_v11 = vld [vmem:[#allocation2 + $0x99] sm:$0xff]  ;;  %v13782_v13 = vld [vmem:[#allocation2 + $0xa1] sm:$0xff]  ;;  %v13796_v16 = vld [vmem:[#allocation2 + $0xa9] sm:$0xff] }
  0x30   : > { %12102 = vmatmul.mubr.msk.f32.gmra.mxu0 %vm225_vm1, %v13662_v37  ;;  %12176 = vmatmul.mubr.msk.f32.gmra.mxu1 %vm225_vm1, %v13666_v38  ;;  %17227 = vst [vmem:[#allocation8_spill] sm:$0xff] %v13778_v11  ;;  %v13780_v12 = vld [vmem:[#allocation2 + $0xa0] sm:$0xff]  ;;  %17228 = vst [vmem:[#allocation9_spill] sm:$0xff] %v13782_v13  ;;  %v10298_v14 = vld [vmem:[%s13573_s7 + $0xe8] sm:$0xff] }
  0x31   : > { %12104 = vmatprep.mubr.msk.f32.mxu0 %vm225_vm1, %v13668_v39  ;;  %12178 = vmatprep.mubr.msk.f32.mxu1 %vm225_vm1, %v13670_v40  ;;  %324 = vst.msk [vmem:[#allocation2 + $0x171] sm:$0xff] %vm225_vm1, %v10298_v14  ;;  %v13792_v15 = vld [vmem:[#allocation2 + $0xa8] sm:$0xff]  ;;  %17229 = vst [vmem:[#allocation10_spill] sm:$0xff] %v13796_v16  ;;  %v13798_v18 = vld [vmem:[#allocation2 + $0xb0] sm:$0xff] }
  0x32   : > { %v13800_v19 = vld [vmem:[#allocation2 + $0xb1] sm:$0xff]  ;;  %v13812_v21 = vld [vmem:[#allocation2 + $0xb9] sm:$0xff]  ;;  %v13816_v23 = vld [vmem:[#allocation2 + $0xc1] sm:$0xff] }
  0x33   : > { %17230 = vst [vmem:[#allocation11_spill] sm:$0xff] %v13800_v19  ;;  %v13808_v20 = vld [vmem:[#allocation2 + $0xb8] sm:$0xff]  ;;  %17231 = vst [vmem:[#allocation12_spill] sm:$0xff] %v13812_v21  ;;  %v13814_v22 = vld [vmem:[#allocation2 + $0xc0] sm:$0xff] }
  0x34   : > { %12105 = vmatmul.mubr.msk.f32.gmra.mxu0 %vm225_vm1, %v13684_v46  ;;  %12179 = vmatmul.mubr.msk.f32.gmra.mxu1 %vm225_vm1, %v13674_v43  ;;  %17232 = vst [vmem:[#allocation13_spill] sm:$0xff] %v13816_v23  ;;  %v13824_v24 = vld [vmem:[#allocation2 + $0xc8] sm:$0xff]  ;;  %v13830_v42 = vld [vmem:[#allocation2 + $0xd0] sm:$0xff]  ;;  %v13840_v45 = vld [vmem:[#allocation2 + $0xd8] sm:$0xff] }
  0x35   : > { %12107 = vmatprep.mubr.msk.f32.mxu0 %vm225_vm1, %v13694_v49  ;;  %12181 = vmatprep.mubr.msk.f32.mxu1 %vm225_vm1, %v13700_v52  ;;  %v13828_v41 = vld [vmem:[#allocation2 + $0xc9] sm:$0xff]  ;;  %v13832_v44 = vld [vmem:[#allocation2 + $0xd1] sm:$0xff]  ;;  %v13844_v47 = vld [vmem:[#allocation2 + $0xd9] sm:$0xff] }
  0x36   : > { %17233 = vst [vmem:[#allocation14_spill] sm:$0xff] %v13828_v41  ;;  %17234 = vst [vmem:[#allocation15_spill] sm:$0xff] %v13832_v44  ;;  %v13846_v48 = vld [vmem:[#allocation2 + $0xe0] sm:$0xff]  ;;  %v10299_v51 = vld [vmem:[%s13573_s7 + $0xf0] sm:$0xff] }
  0x37   : > { %17235 = vst [vmem:[#allocation16_spill] sm:$0xff] %v13844_v47  ;;  %v13848_v50 = vld [vmem:[#allocation2 + $0xe1] sm:$0xff]  ;;  %329 = vst.msk [vmem:[#allocation2 + $0x181] sm:$0xff] %vm225_vm1, %v10299_v51  ;;  %v10300_v53 = vld [vmem:[%s13573_s7 + $0xf8] sm:$0xff] }
  0x38   : > { %12108 = vmatmul.mubr.msk.f32.gmra.mxu0 %vm225_vm1, %v13714_v57  ;;  %12182 = vmatmul.mubr.msk.f32.gmra.mxu1 %vm225_vm1, %v13724_v60  ;;  %17236 = vst [vmem:[#allocation17_spill] sm:$0xff] %v13848_v50  ;;  %v13859_v54 = vld [vmem:[#allocation2 + $0xe8] sm:$0xff]  ;;  %330 = vst.msk [vmem:[#allocation2 + $0x189] sm:$0xff] %vm225_vm1, %v10300_v53  ;;  %v13864_v56 = vld [vmem:[#allocation2 + $0xf0] sm:$0xff] }
  0x39   : > { %12110 = vmatprep.mubr.msk.f32.mxu0 %vm225_vm1, %v13730_v63  ;;  %12184 = vmatprep.mubr.msk.f32.mxu1 %vm225_vm1, %v13732_v0  ;;  %v918_v55 = vld [vmem:[#allocation2 + $0xe9] sm:$0xff]  ;;  %v13866_v58 = vld [vmem:[#allocation2 + $0xf1] sm:$0xff]  ;;  %v920_v61 = vld [vmem:[#allocation2 + $0xf9] sm:$0xff] }
  0x3a   : > { %17237 = vst [vmem:[#allocation18_spill] sm:$0xff] %v13866_v58  ;;  %v13873_v59 = vld [vmem:[#allocation2 + $0xf8] sm:$0xff]  ;;  %v13877_v62 = vld [vmem:[#allocation2 + $0x100] sm:$0xff]  ;;  %v13885_v51 = vld [vmem:[%s17178_s1 + $0x14] sm:$0xf] }
  0x3b   : > { %v921_v14 = vld [vmem:[#allocation2 + $0x101] sm:$0xff]  ;;  %v13892_v1 = vld [vmem:[#allocation2 + $0x110] sm:$0xff]  ;;  %12457 = vmatprep.subr.msk.mxu1 %vm532_vm0, %v13885_v51 }
  0x3c   : > { %12111 = vmatmul.mubr.msk.f32.gmra.mxu0 %vm225_vm1, %v13742_v2  ;;  %12185 = vmatmul.mubr.msk.f32.gmra.mxu1 %vm225_vm1, %v13746_v3  ;;  %v13889_v53 = vld [vmem:[#allocation2 + $0x108] sm:$0xff] }
  0x3d   : > { %12113 = vmatprep.mubr.msk.f32.mxu0 %vm225_vm1, %v13748_v4  ;;  %12187 = vmatprep.mubr.msk.f32.mxu1 %vm225_vm1, %v13750_v5  ;;  %v936_v5 = vld [vmem:[#allocation2 + $0x179] sm:$0xff]  ;;  %v1439_v3 = vld [vmem:[#allocation2 + $0x2] sm:$0xff] }
  0x40   : > { %12114 = vmatmul.mubr.msk.f32.gmra.mxu0 %vm225_vm1, %v13758_v6  ;;  %12188 = vmatmul.mubr.msk.f32.gmra.mxu1 %vm225_vm1, %v13762_v7  ;;  %v13954_v7 = vld [vmem:[#allocation2 + $0x170] sm:$0xff] }
  0x41   : > { %12116 = vmatprep.mubr.msk.f32.mxu0 %vm225_vm1, %v13764_v8  ;;  %12190 = vmatprep.mubr.msk.f32.mxu1 %vm225_vm1, %v13766_v9  ;;  %v934_v9 = vld [vmem:[#allocation2 + $0x169] sm:$0xff] }
  0x44   : > { %12117 = vmatmul.mubr.msk.f32.gmra.mxu0 %vm225_vm1, %v13774_v10  ;;  %12191 = vmatmul.mubr.msk.f32.gmra.mxu1 %vm225_vm1, %v13778_v11  ;;  %v13944_v11 = vld [vmem:[#allocation2 + $0x160] sm:$0xff] }
  0x45   : > { %12119 = vmatprep.mubr.msk.f32.mxu0 %vm225_vm1, %v13780_v12  ;;  %12193 = vmatprep.mubr.msk.f32.mxu1 %vm225_vm1, %v13782_v13  ;;  %v932_v13 = vld [vmem:[#allocation2 + $0x159] sm:$0xff] }
  0x48   : > { %12120 = vmatmul.mubr.msk.f32.gmra.mxu0 %vm225_vm1, %v13792_v15  ;;  %12194 = vmatmul.mubr.msk.f32.gmra.mxu1 %vm225_vm1, %v13796_v16  ;;  %v13934_v16 = vld [vmem:[#allocation2 + $0x150] sm:$0xff] }
  0x49   : > { %12122 = vmatprep.mubr.msk.f32.mxu0 %vm225_vm1, %v13798_v18  ;;  %12196 = vmatprep.mubr.msk.f32.mxu1 %vm225_vm1, %v13800_v19  ;;  %v930_v19 = vld [vmem:[#allocation2 + $0x149] sm:$0xff] }
  0x4c   : > { %12123 = vmatmul.mubr.msk.f32.gmra.mxu0 %vm225_vm1, %v13808_v20  ;;  %12197 = vmatmul.mubr.msk.f32.gmra.mxu1 %vm225_vm1, %v13812_v21  ;;  %v13924_v21 = vld [vmem:[#allocation2 + $0x140] sm:$0xff] }
  0x4d   : > { %12125 = vmatprep.mubr.msk.f32.mxu0 %vm225_vm1, %v13814_v22  ;;  %12199 = vmatprep.mubr.msk.f32.mxu1 %vm225_vm1, %v13816_v23  ;;  %v928_v23 = vld [vmem:[#allocation2 + $0x139] sm:$0xff] }
  0x50   : > { %12126 = vmatmul.mubr.msk.f32.gmra.mxu0 %vm225_vm1, %v13824_v24  ;;  %12200 = vmatmul.mubr.msk.f32.gmra.mxu1 %vm225_vm1, %v13828_v41  ;;  %v13914_v41 = vld [vmem:[#allocation2 + $0x130] sm:$0xff] }
  0x51   : > { %12128 = vmatprep.mubr.msk.f32.mxu0 %vm225_vm1, %v13830_v42  ;;  %12202 = vmatprep.mubr.msk.f32.mxu1 %vm225_vm1, %v13832_v44  ;;  %v926_v44 = vld [vmem:[#allocation2 + $0x129] sm:$0xff] }
  0x54   : > { %12129 = vmatmul.mubr.msk.f32.gmra.mxu0 %vm225_vm1, %v13840_v45  ;;  %12203 = vmatmul.mubr.msk.f32.gmra.mxu1 %vm225_vm1, %v13844_v47  ;;  %v925_v47 = vld [vmem:[#allocation2 + $0x121] sm:$0xff] }
  0x55   : > { %12131 = vmatprep.mubr.msk.f32.mxu0 %vm225_vm1, %v13846_v48  ;;  %12205 = vmatprep.mubr.msk.f32.mxu1 %vm225_vm1, %v13848_v50  ;;  %v13904_v50 = vld [vmem:[#allocation2 + $0x120] sm:$0xff] }
  0x58   : > { %12132 = vmatmul.mubr.msk.f32.gmra.mxu0 %vm225_vm1, %v13859_v54  ;;  %12206 = vmatmul.mubr.msk.f32.gmra.mxu1 %vm225_vm1, %v918_v55  ;;  %v922_v55 = vld [vmem:[#allocation2 + $0x109] sm:$0xff] }
  0x59   : > { %12134 = vmatprep.mubr.msk.f32.mxu0 %vm225_vm1, %v13864_v56  ;;  %12208 = vmatprep.mubr.msk.f32.mxu1 %vm225_vm1, %v13866_v58  ;;  %v923_v58 = vld [vmem:[#allocation2 + $0x111] sm:$0xff] }
  0x5c   : > { %12135 = vmatmul.mubr.msk.f32.gmra.mxu0 %vm225_vm1, %v13873_v59  ;;  %12209 = vmatmul.mubr.msk.f32.gmra.mxu1 %vm225_vm1, %v920_v61  ;;  %v13901_v61 = vld [vmem:[#allocation2 + $0x118] sm:$0xff] }
  0x5d   : > { %12137 = vmatprep.mubr.msk.f32.mxu0 %vm225_vm1, %v13877_v62  ;;  %12211 = vmatprep.mubr.msk.f32.mxu1 %vm225_vm1, %v921_v14  ;;  %v924_v14 = vld [vmem:[#allocation2 + $0x119] sm:$0xff] }
  0x60   : > { %12138 = vmatmul.mubr.msk.f32.gmra.mxu0 %vm225_vm1, %v13889_v53  ;;  %12212 = vmatmul.mubr.msk.f32.gmra.mxu1 %vm225_vm1, %v922_v55  ;;  %v13911_v55 = vld [vmem:[#allocation2 + $0x128] sm:$0xff] }
  0x61   : > { %12140 = vmatprep.mubr.msk.f32.mxu0 %vm225_vm1, %v13892_v1  ;;  %12214 = vmatprep.mubr.msk.f32.mxu1 %vm225_vm1, %v923_v58  ;;  %v927_v58 = vld [vmem:[#allocation2 + $0x131] sm:$0xff] }
  0x64   : > { %12141 = vmatmul.mubr.msk.f32.gmra.mxu0 %vm225_vm1, %v13901_v61  ;;  %12215 = vmatmul.mubr.msk.f32.gmra.mxu1 %vm225_vm1, %v924_v14  ;;  %v13921_v14 = vld [vmem:[#allocation2 + $0x138] sm:$0xff] }
  0x65   : > { %12143 = vmatprep.mubr.msk.f32.mxu0 %vm225_vm1, %v13904_v50  ;;  %12217 = vmatprep.mubr.msk.f32.mxu1 %vm225_vm1, %v925_v47  ;;  %v929_v47 = vld [vmem:[#allocation2 + $0x141] sm:$0xff] }
  0x68   : > { %12144 = vmatmul.mubr.msk.f32.gmra.mxu0 %vm225_vm1, %v13911_v55  ;;  %12218 = vmatmul.mubr.msk.f32.gmra.mxu1 %vm225_vm1, %v926_v44  ;;  %v13931_v44 = vld [vmem:[#allocation2 + $0x148] sm:$0xff] }
  0x69   : > { %12146 = vmatprep.mubr.msk.f32.mxu0 %vm225_vm1, %v13914_v41  ;;  %12220 = vmatprep.mubr.msk.f32.mxu1 %vm225_vm1, %v927_v58  ;;  %v931_v58 = vld [vmem:[#allocation2 + $0x151] sm:$0xff] }
  0x6c   : > { %12147 = vmatmul.mubr.msk.f32.gmra.mxu0 %vm225_vm1, %v13921_v14  ;;  %12221 = vmatmul.mubr.msk.f32.gmra.mxu1 %vm225_vm1, %v928_v23  ;;  %v13941_v23 = vld [vmem:[#allocation2 + $0x158] sm:$0xff] }
  0x6d   : > { %12149 = vmatprep.mubr.msk.f32.mxu0 %vm225_vm1, %v13924_v21  ;;  %12223 = vmatprep.mubr.msk.f32.mxu1 %vm225_vm1, %v929_v47  ;;  %v933_v47 = vld [vmem:[#allocation2 + $0x161] sm:$0xff] }
  0x70   : > { %12150 = vmatmul.mubr.msk.f32.gmra.mxu0 %vm225_vm1, %v13931_v44  ;;  %12224 = vmatmul.mubr.msk.f32.gmra.mxu1 %vm225_vm1, %v930_v19  ;;  %v13951_v19 = vld [vmem:[#allocation2 + $0x168] sm:$0xff] }
  0x71   : > { %12152 = vmatprep.mubr.msk.f32.mxu0 %vm225_vm1, %v13934_v16  ;;  %12226 = vmatprep.mubr.msk.f32.mxu1 %vm225_vm1, %v931_v58  ;;  %v935_v58 = vld [vmem:[#allocation2 + $0x171] sm:$0xff] }
  0x74   : > { %12153 = vmatmul.mubr.msk.f32.gmra.mxu0 %vm225_vm1, %v13941_v23  ;;  %12227 = vmatmul.mubr.msk.f32.gmra.mxu1 %vm225_vm1, %v932_v13  ;;  %v13961_v13 = vld [vmem:[#allocation2 + $0x178] sm:$0xff] }
  0x75   : > { %12155 = vmatprep.mubr.msk.f32.mxu0 %vm225_vm1, %v13944_v11  ;;  %12229 = vmatprep.mubr.msk.f32.mxu1 %vm225_vm1, %v933_v47  ;;  %v1440_v47 = vld [vmem:[#allocation2 + $0xa] sm:$0xff] }
  0x78   : > { %12156 = vmatmul.mubr.msk.f32.gmra.mxu0 %vm225_vm1, %v13951_v19  ;;  %12230 = vmatmul.mubr.msk.f32.gmra.mxu1 %vm225_vm1, %v934_v9  ;;  %v1441_v9 = vld [vmem:[#allocation2 + $0x12] sm:$0xff] }
  0x79   : > { %12158 = vmatprep.mubr.msk.f32.mxu0 %vm225_vm1, %v13954_v7  ;;  %12232 = vmatprep.mubr.msk.f32.mxu1 %vm225_vm1, %v935_v58  ;;  %v13976_v58 = vld [vmem:[%s17178_s1 + $0x18] sm:$0xf] }
  0x7c   : > { %12159 = vmatmul.mubr.msk.f32.gmra.mxu0 %vm225_vm1, %v13961_v13  ;;  %12233 = vmatmul.mubr.msk.f32.gmra.mxu1 %vm225_vm1, %v936_v5  ;;  %v14081_v5 = vld [vmem:[#allocation2 + $0x9a] sm:$0xff] }
  0x7d   : > { %12237 = vmatprep.mubr.msk.f32.mxu0 %vm225_vm1, %v1439_v3  ;;  %12311 = vmatprep.mubr.msk.f32.mxu1 %vm225_vm1, %v13613_v25  ;;  %v13981_v3 = vld [vmem:[#allocation2 + $0x1a] sm:$0xff]  ;;  %v13985_v25 = vld [vmem:[#allocation2 + $0x22] sm:$0xff] }
  0x80   : > { %12238 = vmatmul.mubr.msk.f32.vlgmr.msra.gmra.mxu0 %vm225_vm1, %v1440_v47  ;;  %12312 = vmatmul.mubr.msk.f32.vlgmr.msra.gmra.mxu1 %vm225_vm1, %v13617_v27  ;;  %v14001_v27 = vld [vmem:[#allocation2 + $0x32] sm:$0xff] }
  0x81   : > { %12384 = vmatpush3.msk.msra.mxu0 %vm532_vm0, %v13594_v17  ;;  %12240 = vmatprep.mubr.msk.f32.mxu0 %vm225_vm1, %v1441_v9  ;;  %v13997_v17 = vld [vmem:[#allocation2 + $0x2a] sm:$0xff] }
  0x82   : > { %12314 = vmatprep.mubr.msk.f32.mxu1 %vm225_vm1, %v13630_v29  ;;  %12458 = vmatpush3.msk.msra.mxu1 %vm532_vm0, %v13885_v51  ;;  %v14009_v29 = vld [vmem:[#allocation2 + $0x3a] sm:$0xff]  ;;  %v14188_v51 = vld [vmem:[#allocation2 + $0x122] sm:$0xff]  ;;  %v2036_v47 = vld [vmem:[#allocation2 + $0x190] sm:$0xff] }
  0x83   : > { %12531 = vmatprep.subr.msk.mxu0 %vm532_vm0, %v13976_v58 }
  0x84   : > { %12241 = vmatmul.mubr.msk.f32.gmra.mxu0 %vm225_vm1, %v13981_v3  ;;  %12315 = vmatmul.mubr.msk.f32.gmra.mxu1 %vm225_vm1, %v13636_v31  ;;  %v14013_v31 = vld [vmem:[#allocation2 + $0x42] sm:$0xff] }
  0x85   : > { %12243 = vmatprep.mubr.msk.f32.mxu0 %vm225_vm1, %v13985_v25  ;;  %12317 = vmatprep.mubr.msk.f32.mxu1 %vm225_vm1, %v13646_v33  ;;  %v14021_v33 = vld [vmem:[#allocation2 + $0x4a] sm:$0xff] }
  0x88   : > { %12244 = vmatmul.mubr.msk.f32.gmra.mxu0 %vm225_vm1, %v13997_v17  ;;  %12318 = vmatmul.mubr.msk.f32.gmra.mxu1 %vm225_vm1, %v13652_v35  ;;  %v14025_v35 = vld [vmem:[#allocation2 + $0x52] sm:$0xff] }
  0x89   : > { %12246 = vmatprep.mubr.msk.f32.mxu0 %vm225_vm1, %v14001_v27  ;;  %12320 = vmatprep.mubr.msk.f32.mxu1 %vm225_vm1, %v13662_v37  ;;  %v14033_v37 = vld [vmem:[#allocation2 + $0x5a] sm:$0xff] }
  0x8c   : > { %12247 = vmatmul.mubr.msk.f32.gmra.mxu0 %vm225_vm1, %v14009_v29  ;;  %12321 = vmatmul.mubr.msk.f32.gmra.mxu1 %vm225_vm1, %v13668_v39  ;;  %v14037_v39 = vld [vmem:[#allocation2 + $0x62] sm:$0xff] }
  0x8d   : > { %12249 = vmatprep.mubr.msk.f32.mxu0 %vm225_vm1, %v14013_v31  ;;  %12323 = vmatprep.mubr.msk.f32.mxu1 %vm225_vm1, %v13684_v46  ;;  %v14045_v46 = vld [vmem:[#allocation2 + $0x6a] sm:$0xff] }
  0x90   : > { %12250 = vmatmul.mubr.msk.f32.gmra.mxu0 %vm225_vm1, %v14021_v33  ;;  %12324 = vmatmul.mubr.msk.f32.gmra.mxu1 %vm225_vm1, %v13694_v49  ;;  %v14049_v49 = vld [vmem:[#allocation2 + $0x72] sm:$0xff] }
  0x91   : > { %12252 = vmatprep.mubr.msk.f32.mxu0 %vm225_vm1, %v14025_v35  ;;  %12326 = vmatprep.mubr.msk.f32.mxu1 %vm225_vm1, %v13714_v57  ;;  %v14057_v57 = vld [vmem:[#allocation2 + $0x7a] sm:$0xff] }
  0x94   : > { %12253 = vmatmul.mubr.msk.f32.gmra.mxu0 %vm225_vm1, %v14033_v37  ;;  %12327 = vmatmul.mubr.msk.f32.gmra.mxu1 %vm225_vm1, %v13730_v63  ;;  %v14061_v63 = vld [vmem:[#allocation2 + $0x82] sm:$0xff] }
  0x95   : > { %12255 = vmatprep.mubr.msk.f32.mxu0 %vm225_vm1, %v14037_v39  ;;  %12329 = vmatprep.mubr.msk.f32.mxu1 %vm225_vm1, %v13742_v2  ;;  %v14069_v2 = vld [vmem:[#allocation2 + $0x8a] sm:$0xff] }
  0x98   : > { %12256 = vmatmul.mubr.msk.f32.gmra.mxu0 %vm225_vm1, %v14045_v46  ;;  %12330 = vmatmul.mubr.msk.f32.gmra.mxu1 %vm225_vm1, %v13748_v4  ;;  %v14073_v4 = vld [vmem:[#allocation2 + $0x92] sm:$0xff] }
  0x99   : > { %12258 = vmatprep.mubr.msk.f32.mxu0 %vm225_vm1, %v14049_v49  ;;  %12332 = vmatprep.mubr.msk.f32.mxu1 %vm225_vm1, %v13758_v6  ;;  %v14085_v6 = vld [vmem:[#allocation2 + $0xa2] sm:$0xff] }
  0x9c   : > { %12259 = vmatmul.mubr.msk.f32.gmra.mxu0 %vm225_vm1, %v14057_v57  ;;  %12333 = vmatmul.mubr.msk.f32.gmra.mxu1 %vm225_vm1, %v13764_v8  ;;  %v14093_v8 = vld [vmem:[#allocation2 + $0xaa] sm:$0xff] }
  0x9d   : > { %12261 = vmatprep.mubr.msk.f32.mxu0 %vm225_vm1, %v14061_v63  ;;  %12335 = vmatprep.mubr.msk.f32.mxu1 %vm225_vm1, %v13774_v10  ;;  %v14097_v10 = vld [vmem:[#allocation2 + $0xb2] sm:$0xff] }
  0xa0   : > { %12262 = vmatmul.mubr.msk.f32.gmra.mxu0 %vm225_vm1, %v14069_v2  ;;  %12336 = vmatmul.mubr.msk.f32.gmra.mxu1 %vm225_vm1, %v13780_v12  ;;  %v14105_v12 = vld [vmem:[#allocation2 + $0xba] sm:$0xff] }
  0xa1   : > { %12264 = vmatprep.mubr.msk.f32.mxu0 %vm225_vm1, %v14073_v4  ;;  %12338 = vmatprep.mubr.msk.f32.mxu1 %vm225_vm1, %v13792_v15  ;;  %v14109_v15 = vld [vmem:[#allocation2 + $0xc2] sm:$0xff] }
  0xa4   : > { %12265 = vmatmul.mubr.msk.f32.gmra.mxu0 %vm225_vm1, %v14081_v5  ;;  %12339 = vmatmul.mubr.msk.f32.gmra.mxu1 %vm225_vm1, %v13798_v18  ;;  %v14117_v18 = vld [vmem:[#allocation2 + $0xca] sm:$0xff] }
  0xa5   : > { %12267 = vmatprep.mubr.msk.f32.mxu0 %vm225_vm1, %v14085_v6  ;;  %12341 = vmatprep.mubr.msk.f32.mxu1 %vm225_vm1, %v13808_v20  ;;  %v14121_v20 = vld [vmem:[#allocation2 + $0xd2] sm:$0xff] }
  0xa8   : > { %12268 = vmatmul.mubr.msk.f32.gmra.mxu0 %vm225_vm1, %v14093_v8  ;;  %12342 = vmatmul.mubr.msk.f32.gmra.mxu1 %vm225_vm1, %v13814_v22  ;;  %v14129_v22 = vld [vmem:[#allocation2 + $0xda] sm:$0xff] }
  0xa9   : > { %12270 = vmatprep.mubr.msk.f32.mxu0 %vm225_vm1, %v14097_v10  ;;  %12344 = vmatprep.mubr.msk.f32.mxu1 %vm225_vm1, %v13824_v24  ;;  %v14133_v24 = vld [vmem:[#allocation2 + $0xe2] sm:$0xff] }
  0xac   : > { %12271 = vmatmul.mubr.msk.f32.gmra.mxu0 %vm225_vm1, %v14105_v12  ;;  %12345 = vmatmul.mubr.msk.f32.gmra.mxu1 %vm225_vm1, %v13830_v42  ;;  %v14141_v42 = vld [vmem:[#allocation2 + $0xea] sm:$0xff] }
  0xad   : > { %12273 = vmatprep.mubr.msk.f32.mxu0 %vm225_vm1, %v14109_v15  ;;  %12347 = vmatprep.mubr.msk.f32.mxu1 %vm225_vm1, %v13840_v45  ;;  %v14145_v45 = vld [vmem:[#allocation2 + $0xf2] sm:$0xff] }
  0xb0   : > { %12274 = vmatmul.mubr.msk.f32.gmra.mxu0 %vm225_vm1, %v14117_v18  ;;  %12348 = vmatmul.mubr.msk.f32.gmra.mxu1 %vm225_vm1, %v13846_v48  ;;  %v14153_v48 = vld [vmem:[#allocation2 + $0xfa] sm:$0xff] }
  0xb1   : > { %12276 = vmatprep.mubr.msk.f32.mxu0 %vm225_vm1, %v14121_v20  ;;  %12350 = vmatprep.mubr.msk.f32.mxu1 %vm225_vm1, %v13859_v54  ;;  %v14157_v54 = vld [vmem:[#allocation2 + $0x102] sm:$0xff] }
  0xb4   : > { %12277 = vmatmul.mubr.msk.f32.gmra.mxu0 %vm225_vm1, %v14129_v22  ;;  %12351 = vmatmul.mubr.msk.f32.gmra.mxu1 %vm225_vm1, %v13864_v56  ;;  %v14165_v56 = vld [vmem:[#allocation2 + $0x10a] sm:$0xff] }
  0xb5   : > { %12279 = vmatprep.mubr.msk.f32.mxu0 %vm225_vm1, %v14133_v24  ;;  %12353 = vmatprep.mubr.msk.f32.mxu1 %vm225_vm1, %v13873_v59  ;;  %v14172_v59 = vld [vmem:[%s17178_s1 + $0x1c] sm:$0xf] }
  0xb6   : > { %12605 = vmatprep.subr.msk.mxu1 %vm532_vm0, %v14172_v59 }
  0xb8   : > { %12280 = vmatmul.mubr.msk.f32.gmra.mxu0 %vm225_vm1, %v14141_v42  ;;  %12354 = vmatmul.mubr.msk.f32.gmra.mxu1 %vm225_vm1, %v13877_v62  ;;  %v14174_v62 = vld [vmem:[#allocation2 + $0x112] sm:$0xff] }
  0xb9   : > { %12282 = vmatprep.mubr.msk.f32.mxu0 %vm225_vm1, %v14145_v45  ;;  %12356 = vmatprep.mubr.msk.f32.mxu1 %vm225_vm1, %v13889_v53  ;;  %v14200_v53 = vld [vmem:[#allocation2 + $0x132] sm:$0xff] }
  0xbc   : > { %12283 = vmatmul.mubr.msk.f32.gmra.mxu0 %vm225_vm1, %v14153_v48  ;;  %12357 = vmatmul.mubr.msk.f32.gmra.mxu1 %vm225_vm1, %v13892_v1  ;;  %v14184_v1 = vld [vmem:[#allocation2 + $0x11a] sm:$0xff] }
  0xbd   : > { %12285 = vmatprep.mubr.msk.f32.mxu0 %vm225_vm1, %v14157_v54  ;;  %12359 = vmatprep.mubr.msk.f32.mxu1 %vm225_vm1, %v13901_v61  ;;  %v14212_v61 = vld [vmem:[#allocation2 + $0x142] sm:$0xff] }
  0xc0   : > { %12286 = vmatmul.mubr.msk.f32.gmra.mxu0 %vm225_vm1, %v14165_v56  ;;  %12360 = vmatmul.mubr.msk.f32.gmra.mxu1 %vm225_vm1, %v13904_v50  ;;  %v14196_v50 = vld [vmem:[#allocation2 + $0x12a] sm:$0xff] }
  0xc1   : > { %12288 = vmatprep.mubr.msk.f32.mxu0 %vm225_vm1, %v14174_v62  ;;  %12362 = vmatprep.mubr.msk.f32.mxu1 %vm225_vm1, %v13911_v55  ;;  %v14224_v55 = vld [vmem:[#allocation2 + $0x152] sm:$0xff] }
  0xc4   : > { %12289 = vmatmul.mubr.msk.f32.gmra.mxu0 %vm225_vm1, %v14184_v1  ;;  %12363 = vmatmul.mubr.msk.f32.gmra.mxu1 %vm225_vm1, %v13914_v41  ;;  %v14208_v41 = vld [vmem:[#allocation2 + $0x13a] sm:$0xff] }
  0xc5   : > { %12291 = vmatprep.mubr.msk.f32.mxu0 %vm225_vm1, %v14188_v51  ;;  %12365 = vmatprep.mubr.msk.f32.mxu1 %vm225_vm1, %v13921_v14  ;;  %v14236_v14 = vld [vmem:[#allocation2 + $0x162] sm:$0xff] }
  0xc8   : > { %12292 = vmatmul.mubr.msk.f32.gmra.mxu0 %vm225_vm1, %v14196_v50  ;;  %12366 = vmatmul.mubr.msk.f32.gmra.mxu1 %vm225_vm1, %v13924_v21  ;;  %v14220_v21 = vld [vmem:[#allocation2 + $0x14a] sm:$0xff] }
  0xc9   : > { %12294 = vmatprep.mubr.msk.f32.mxu0 %vm225_vm1, %v14200_v53  ;;  %12368 = vmatprep.mubr.msk.f32.mxu1 %vm225_vm1, %v13931_v44  ;;  %v2034_v44 = vld [vmem:[#allocation2 + $0x180] sm:$0xff] }
  0xcc   : > { %12295 = vmatmul.mubr.msk.f32.gmra.mxu0 %vm225_vm1, %v14208_v41  ;;  %12369 = vmatmul.mubr.msk.f32.gmra.mxu1 %vm225_vm1, %v13934_v16  ;;  %v14232_v16 = vld [vmem:[#allocation2 + $0x15a] sm:$0xff] }
  0xcd   : > { %12297 = vmatprep.mubr.msk.f32.mxu0 %vm225_vm1, %v14212_v61  ;;  %12371 = vmatprep.mubr.msk.f32.mxu1 %vm225_vm1, %v13941_v23  ;;  %v14248_v23 = vld [vmem:[#allocation2 + $0x172] sm:$0xff] }
  0xd0   : > { %12298 = vmatmul.mubr.msk.f32.gmra.mxu0 %vm225_vm1, %v14220_v21  ;;  %12372 = vmatmul.mubr.msk.f32.gmra.mxu1 %vm225_vm1, %v13944_v11  ;;  %v14244_v11 = vld [vmem:[#allocation2 + $0x16a] sm:$0xff] }
  0xd1   : > { %12300 = vmatprep.mubr.msk.f32.mxu0 %vm225_vm1, %v14224_v55  ;;  %12374 = vmatprep.mubr.msk.f32.mxu1 %vm225_vm1, %v13951_v19  ;;  %v2035_v19 = vld [vmem:[#allocation2 + $0x188] sm:$0xff] }
  0xd4   : > { %12301 = vmatmul.mubr.msk.f32.gmra.mxu0 %vm225_vm1, %v14232_v16  ;;  %12375 = vmatmul.mubr.msk.f32.gmra.mxu1 %vm225_vm1, %v13954_v7  ;;  %v14255_v7 = vld [vmem:[#allocation2 + $0x17a] sm:$0xff] }
  0xd5   : > { %12303 = vmatprep.mubr.msk.f32.mxu0 %vm225_vm1, %v14236_v14  ;;  %12377 = vmatprep.mubr.msk.f32.mxu1 %vm225_vm1, %v13961_v13  ;;  %17238 = vst [vmem:[#allocation19_spill] sm:$0xff] %v14255_v7  ;;  %v14264_v13 = vld [vmem:[%s17179_s2] ss:$0 sm:$0xff]  ;;  %v12091_v9 = vpop.f32.mrf.mxu0 }
  0xd8   : > { %12304 = vmatmul.mubr.msk.f32.gmra.mxu0 %vm225_vm1, %v14244_v11  ;;  %12378 = vmatmul.mubr.msk.f32.gmra.mxu1 %vm225_vm1, %v2034_v44  ;;  %v12165_v44 = vpop.f32.mrf.mxu1 }
  0xd9   : > { %12306 = vmatprep.mubr.msk.f32.mxu0 %vm225_vm1, %v14248_v23  ;;  %12380 = vmatprep.mubr.msk.f32.mxu1 %vm225_vm1, %v2035_v19  ;;  %v842_v19 = vadd.f32 %v12091_v9, %v14264_v13 }
  0xdc   : > { %12307 = vmatmul.mubr.msk.f32.gmra.mxu0 %vm225_vm1, %v14255_v7  ;;  %12381 = vmatmul.mubr.msk.f32.gmra.mxu1 %vm225_vm1, %v2036_v47  ;;  %v14278_v47 = vld [vmem:[%s17178_s1 + $0x20] sm:$0xf]  ;;  %v14285_v7 = vadd.f32 %v12165_v44, %v842_v19 }
  0xdd   : > { %12385 = vmatprep.mubr.msk.f32.mxu0 %vm225_vm1, %v13615_v26  ;;  %12459 = vmatprep.mubr.msk.f32.mxu1 %vm225_vm1, %v13981_v3  ;;  %v602_v26 = vpop.f32.mrf.mxu0  ;;  %v1152_v3 = vpop.f32.mrf.mxu1 }
  0xde   : > { %v841_v9 = vadd.f32 %v14264_v13, %v602_v26 }
  0xe0   : > { %12386 = vmatmul.mubr.msk.f32.vlgmr.msra.gmra.mxu0 %vm225_vm1, %v13626_v28  ;;  %12460 = vmatmul.mubr.msk.f32.vlgmr.msra.gmra.mxu1 %vm225_vm1, %v13985_v25  ;;  %v14293_v28 = vadd.f32 %v1152_v3, %v841_v9 }
  0xe1   : > { %12532 = vmatpush3.msk.msra.mxu0 %vm532_vm0, %v13976_v58  ;;  %12388 = vmatprep.mubr.msk.f32.mxu0 %vm225_vm1, %v13634_v30 }
  0xe2   : > { %12462 = vmatprep.mubr.msk.f32.mxu1 %vm225_vm1, %v13997_v17  ;;  %12606 = vmatpush3.msk.msra.mxu1 %vm532_vm0, %v14172_v59 }
  0xe3   : > { %12679 = vmatprep.subr.msk.mxu0 %vm532_vm0, %v14278_v47 }
  0xe4   : > { %v12094_v58 = vpop.f32.mrf.mxu0  ;;  %12389 = vmatmul.mubr.msk.f32.gmra.mxu0 %vm225_vm1, %v13638_v32  ;;  %v12168_v30 = vpop.f32.mrf.mxu1  ;;  %12463 = vmatmul.mubr.msk.f32.gmra.mxu1 %vm225_vm1, %v14001_v27 }
  0xe5   : > { %v844_v25 = vadd.f32 %v12094_v58, %v14264_v13  ;;  %12391 = vmatprep.mubr.msk.f32.mxu0 %vm225_vm1, %v13650_v34  ;;  %12465 = vmatprep.mubr.msk.f32.mxu1 %vm225_vm1, %v14009_v29 }
  0xe6   : > { %v612_v17 = vpop.f32.mrf.mxu0  ;;  %v1162_v59 = vpop.f32.mrf.mxu1 }
  0xe7   : > { %v843_v44 = vadd.f32 %v14264_v13, %v612_v17  ;;  %v14305_v19 = vadd.f32 %v12168_v30, %v844_v25 }
  0xe8   : > { %v12097_v26 = vpop.f32.mrf.mxu0  ;;  %12392 = vmatmul.mubr.msk.f32.gmra.mxu0 %vm225_vm1, %v13654_v36  ;;  %v12171_v32 = vpop.f32.mrf.mxu1  ;;  %12466 = vmatmul.mubr.msk.f32.gmra.mxu1 %vm225_vm1, %v14013_v31 }
  0xe9   : > { %v846_v27 = vadd.f32 %v12097_v26, %v14264_v13  ;;  %v14312_v34 = vadd.f32 %v1162_v59, %v843_v44  ;;  %12394 = vmatprep.mubr.msk.f32.mxu0 %vm225_vm1, %v13666_v38  ;;  %12468 = vmatprep.mubr.msk.f32.mxu1 %vm225_vm1, %v14021_v33 }
  0xea   : > { %v622_v29 = vpop.f32.mrf.mxu0  ;;  %v1172_v3 = vpop.f32.mrf.mxu1 }
  0xeb   : > { %v845_v9 = vadd.f32 %v14264_v13, %v622_v29  ;;  %v14319_v58 = vadd.f32 %v12171_v32, %v846_v27 }
  0xec   : > { %v12100_v36 = vpop.f32.mrf.mxu0  ;;  %12395 = vmatmul.mubr.msk.f32.gmra.mxu0 %vm225_vm1, %v13670_v40  ;;  %v12174_v31 = vpop.f32.mrf.mxu1  ;;  %12469 = vmatmul.mubr.msk.f32.gmra.mxu1 %vm225_vm1, %v14025_v35 }
  0xed   : > { %v848_v30 = vadd.f32 %v12100_v36, %v14264_v13  ;;  %v14326_v38 = vadd.f32 %v1172_v3, %v845_v9  ;;  %12397 = vmatprep.mubr.msk.f32.mxu0 %vm225_vm1, %v13674_v43  ;;  %12471 = vmatprep.mubr.msk.f32.mxu1 %vm225_vm1, %v14033_v37  ;;  %v17239_v3 = vld [vmem:[#allocation4_spill] sm:$0xff] }
  0xee   : > { %v632_v33 = vpop.f32.mrf.mxu0  ;;  %v1182_v25 = vpop.f32.mrf.mxu1 }
  0xef   : > { %v847_v17 = vadd.f32 %v14264_v13, %v632_v33  ;;  %v14333_v59 = vadd.f32 %v12174_v31, %v848_v30  ;;  %v17240_v30 = vld [vmem:[#allocation5_spill] sm:$0xff] }
  0xf0   : > { %v12103_v40 = vpop.f32.mrf.mxu0  ;;  %12398 = vmatmul.mubr.msk.f32.gmra.mxu0 %vm225_vm1, %v13700_v52  ;;  %v12177_v35 = vpop.f32.mrf.mxu1  ;;  %12472 = vmatmul.mubr.msk.f32.gmra.mxu1 %vm225_vm1, %v14037_v39 }
  0xf1   : > { %v850_v44 = vadd.f32 %v12103_v40, %v14264_v13  ;;  %v14340_v43 = vadd.f32 %v1182_v25, %v847_v17  ;;  %12400 = vmatprep.mubr.msk.f32.mxu0 %vm225_vm1, %v13724_v60  ;;  %12474 = vmatprep.mubr.msk.f32.mxu1 %vm225_vm1, %v14045_v46  ;;  %v17241_v17 = vld [vmem:[#allocation6_spill] sm:$0xff] }
  0xf2   : > { %v642_v37 = vpop.f32.mrf.mxu0  ;;  %v1192_v26 = vpop.f32.mrf.mxu1 }
  0xf3   : > { %v849_v32 = vadd.f32 %v14264_v13, %v642_v37  ;;  %v14347_v27 = vadd.f32 %v12177_v35, %v850_v44 }
  0xf4   : > { %v12106_v52 = vpop.f32.mrf.mxu0  ;;  %12401 = vmatmul.mubr.msk.f32.gmra.mxu0 %vm225_vm1, %v13732_v0  ;;  %v12180_v39 = vpop.f32.mrf.mxu1  ;;  %12475 = vmatmul.mubr.msk.f32.gmra.mxu1 %vm225_vm1, %v14049_v49 }
  0xf5   : > { %v852_v29 = vadd.f32 %v12106_v52, %v14264_v13  ;;  %v14354_v60 = vadd.f32 %v1192_v26, %v849_v32  ;;  %12403 = vmatprep.mubr.msk.f32.mxu0 %vm225_vm1, %v17239_v3  ;;  %12477 = vmatprep.mubr.msk.f32.mxu1 %vm225_vm1, %v14057_v57  ;;  %v17242_v26 = vld [vmem:[#allocation7_spill] sm:$0xff] }
  0xf6   : > { %v652_v46 = vpop.f32.mrf.mxu0  ;;  %v1202_v9 = vpop.f32.mrf.mxu1 }
  0xf7   : > { %v851_v36 = vadd.f32 %v14264_v13, %v652_v46  ;;  %v14361_v31 = vadd.f32 %v12180_v39, %v852_v29  ;;  %v17243_v39 = vld [vmem:[#allocation8_spill] sm:$0xff] }
  0xf8   : > { %v12109_v0 = vpop.f32.mrf.mxu0  ;;  %12404 = vmatmul.mubr.msk.f32.gmra.mxu0 %vm225_vm1, %v17240_v30  ;;  %v12183_v49 = vpop.f32.mrf.mxu1  ;;  %12478 = vmatmul.mubr.msk.f32.gmra.mxu1 %vm225_vm1, %v14061_v63 }
  0xf9   : > { %v854_v33 = vadd.f32 %v12109_v0, %v14264_v13  ;;  %v14368_v25 = vadd.f32 %v1202_v9, %v851_v36  ;;  %12406 = vmatprep.mubr.msk.f32.mxu0 %vm225_vm1, %v17241_v17  ;;  %12480 = vmatprep.mubr.msk.f32.mxu1 %vm225_vm1, %v14069_v2  ;;  %v17244_v36 = vld [vmem:[#allocation9_spill] sm:$0xff] }
  0xfa   : > { %v662_v57 = vpop.f32.mrf.mxu0  ;;  %v1212_v40 = vpop.f32.mrf.mxu1 }
  0xfb   : > { %v853_v35 = vadd.f32 %v14264_v13, %v662_v57  ;;  %v14375_v44 = vadd.f32 %v12183_v49, %v854_v33  ;;  %v17245_v49 = vld [vmem:[#allocation10_spill] sm:$0xff] }
  0xfc   : > { %v12112_v37 = vpop.f32.mrf.mxu0  ;;  %12407 = vmatmul.mubr.msk.f32.gmra.mxu0 %vm225_vm1, %v17242_v26  ;;  %v12186_v63 = vpop.f32.mrf.mxu1  ;;  %12481 = vmatmul.mubr.msk.f32.gmra.mxu1 %vm225_vm1, %v14073_v4 }
  0xfd   : > { %v856_v32 = vadd.f32 %v12112_v37, %v14264_v13  ;;  %v14382_v52 = vadd.f32 %v1212_v40, %v853_v35  ;;  %12409 = vmatprep.mubr.msk.f32.mxu0 %vm225_vm1, %v17243_v39  ;;  %12483 = vmatprep.mubr.msk.f32.mxu1 %vm225_vm1, %v14081_v5  ;;  %v17246_v35 = vld [vmem:[#allocation11_spill] sm:$0xff] }
  0xfe   : > { %v672_v2 = vpop.f32.mrf.mxu0  ;;  %v1222_v29 = vpop.f32.mrf.mxu1 }
  0xff   : > { %v855_v3 = vadd.f32 %v14264_v13, %v672_v2  ;;  %v14389_v46 = vadd.f32 %v12186_v63, %v856_v32  ;;  %v17247_v63 = vld [vmem:[#allocation12_spill] sm:$0xff] }
 0x100   : > { %v12115_v9 = vpop.f32.mrf.mxu0  ;;  %12410 = vmatmul.mubr.msk.f32.gmra.mxu0 %vm225_vm1, %v17244_v36  ;;  %v12189_v4 = vpop.f32.mrf.mxu1  ;;  %12484 = vmatmul.mubr.msk.f32.gmra.mxu1 %vm225_vm1, %v14085_v6 }
 0x101   : > { %v858_v0 = vadd.f32 %v12115_v9, %v14264_v13  ;;  %v14396_v30 = vadd.f32 %v1222_v29, %v855_v3  ;;  %12412 = vmatprep.mubr.msk.f32.mxu0 %vm225_vm1, %v17245_v49  ;;  %12486 = vmatprep.mubr.msk.f32.mxu1 %vm225_vm1, %v14093_v8  ;;  %v17248_v3 = vld [vmem:[#allocation13_spill] sm:$0xff] }
 0x102   : > { %v682_v5 = vpop.f32.mrf.mxu0  ;;  %v1232_v33 = vpop.f32.mrf.mxu1 }
 0x103   : > { %v857_v17 = vadd.f32 %v14264_v13, %v682_v5  ;;  %v14403_v57 = vadd.f32 %v12189_v4, %v858_v0  ;;  %v17249_v4 = vld [vmem:[#allocation14_spill] sm:$0xff] }
 0x104   : > { %v12118_v40 = vpop.f32.mrf.mxu0  ;;  %12413 = vmatmul.mubr.msk.f32.gmra.mxu0 %vm225_vm1, %v17246_v35  ;;  %v12192_v6 = vpop.f32.mrf.mxu1  ;;  %12487 = vmatmul.mubr.msk.f32.gmra.mxu1 %vm225_vm1, %v14097_v10 }
 0x105   : > { %v860_v37 = vadd.f32 %v12118_v40, %v14264_v13  ;;  %v14410_v26 = vadd.f32 %v1232_v33, %v857_v17  ;;  %12415 = vmatprep.mubr.msk.f32.mxu0 %vm225_vm1, %v17247_v63  ;;  %12489 = vmatprep.mubr.msk.f32.mxu1 %vm225_vm1, %v14105_v12  ;;  %v17250_v17 = vld [vmem:[#allocation15_spill] sm:$0xff] }
 0x106   : > { %v692_v8 = vpop.f32.mrf.mxu0  ;;  %v1242_v32 = vpop.f32.mrf.mxu1  ;;  %v14444_v63 = vld [vmem:[#allocation2 + $0xe9] sm:$0xff] }
 0x107   : > { %v859_v39 = vadd.f32 %v14264_v13, %v692_v8  ;;  %v14417_v2 = vadd.f32 %v12192_v6, %v860_v37  ;;  %v17251_v6 = vld [vmem:[#allocation16_spill] sm:$0xff] }
 0x108   : > { %v12121_v29 = vpop.f32.mrf.mxu0  ;;  %12416 = vmatmul.mubr.msk.f32.gmra.mxu0 %vm225_vm1, %v17248_v3  ;;  %v12195_v10 = vpop.f32.mrf.mxu1  ;;  %12490 = vmatmul.mubr.msk.f32.gmra.mxu1 %vm225_vm1, %v14109_v15 }
 0x109   : > { %v862_v9 = vadd.f32 %v12121_v29, %v14264_v13  ;;  %v14424_v36 = vadd.f32 %v1242_v32, %v859_v39  ;;  %12418 = vmatprep.mubr.msk.f32.mxu0 %vm225_vm1, %v17249_v4  ;;  %12492 = vmatprep.mubr.msk.f32.mxu1 %vm225_vm1, %v14117_v18  ;;  %v14460_v4 = vld [vmem:[#allocation2 + $0xf9] sm:$0xff] }
 0x10a   : > { %v702_v12 = vpop.f32.mrf.mxu0  ;;  %v1252_v0 = vpop.f32.mrf.mxu1 }
 0x10b   : > { %v861_v49 = vadd.f32 %v14264_v13, %v702_v12  ;;  %v14431_v5 = vadd.f32 %v12195_v10, %v862_v9 }
 0x10c   : > { %v12124_v33 = vpop.f32.mrf.mxu0  ;;  %12419 = vmatmul.mubr.msk.f32.gmra.mxu0 %vm225_vm1, %v17250_v17  ;;  %v12198_v15 = vpop.f32.mrf.mxu1  ;;  %12493 = vmatmul.mubr.msk.f32.gmra.mxu1 %vm225_vm1, %v14121_v20  ;;  %v17252_v20 = vld [vmem:[#allocation17_spill] sm:$0xff] }
 0x10d   : > { %v864_v40 = vadd.f32 %v12124_v33, %v14264_v13  ;;  %v14438_v35 = vadd.f32 %v1252_v0, %v861_v49  ;;  %12421 = vmatprep.mubr.msk.f32.mxu0 %vm225_vm1, %v17251_v6  ;;  %12495 = vmatprep.mubr.msk.f32.mxu1 %vm225_vm1, %v14129_v22 }
 0x10e   : > { %v712_v18 = vpop.f32.mrf.mxu0  ;;  %v1262_v37 = vpop.f32.mrf.mxu1 }
 0x10f   : > { %v863_v8 = vadd.f32 %v14264_v13, %v712_v18  ;;  %v14447_v32 = vadd.f32 %v12198_v15, %v864_v40  ;;  %v14478_v18 = vld [vmem:[#allocation2 + $0x109] sm:$0xff] }
 0x110   : > { %v12127_v39 = vpop.f32.mrf.mxu0  ;;  %12422 = vmatmul.mubr.msk.f32.gmra.mxu0 %vm225_vm1, %v17252_v20  ;;  %v12201_v29 = vpop.f32.mrf.mxu1  ;;  %12496 = vmatmul.mubr.msk.f32.gmra.mxu1 %vm225_vm1, %v14133_v24  ;;  %v17253_v24 = vld [vmem:[#allocation18_spill] sm:$0xff] }
 0x111   : > { %v866_v3 = vadd.f32 %v12127_v39, %v14264_v13  ;;  %v14454_v10 = vadd.f32 %v1262_v37, %v863_v8  ;;  %12424 = vmatprep.mubr.msk.f32.mxu0 %vm225_vm1, %v14444_v63  ;;  %12498 = vmatprep.mubr.msk.f32.mxu1 %vm225_vm1, %v14141_v42  ;;  %v14474_v42 = vld [vmem:[#allocation2 + $0x101] sm:$0xff] }
 0x112   : > { %v722_v22 = vpop.f32.mrf.mxu0  ;;  %v1272_v9 = vpop.f32.mrf.mxu1 }
 0x113   : > { %v865_v12 = vadd.f32 %v14264_v13, %v722_v22  ;;  %v14463_v0 = vadd.f32 %v12201_v29, %v866_v3 }
 0x114   : > { %v12130_v49 = vpop.f32.mrf.mxu0  ;;  %12425 = vmatmul.mubr.msk.f32.gmra.mxu0 %vm225_vm1, %v17253_v24  ;;  %v12204_v33 = vpop.f32.mrf.mxu1  ;;  %12499 = vmatmul.mubr.msk.f32.gmra.mxu1 %vm225_vm1, %v14145_v45 }
 0x115   : > { %v868_v17 = vadd.f32 %v12130_v49, %v14264_v13  ;;  %v14470_v15 = vadd.f32 %v1272_v9, %v865_v12  ;;  %12427 = vmatprep.mubr.msk.f32.mxu0 %vm225_vm1, %v14460_v4  ;;  %12501 = vmatprep.mubr.msk.f32.mxu1 %vm225_vm1, %v14153_v48  ;;  %v14492_v48 = vld [vmem:[#allocation2 + $0x111] sm:$0xff]  ;;  %v14496_v9 = vld [vmem:[#allocation2 + $0x119] sm:$0xff] }
 0x116   : > { %v732_v40 = vpop.f32.mrf.mxu0  ;;  %v1282_v6 = vpop.f32.mrf.mxu1 }
 0x117   : > { %v867_v37 = vadd.f32 %v14264_v13, %v732_v40  ;;  %v14481_v8 = vadd.f32 %v12204_v33, %v868_v17 }
 0x118   : > { %v12133_v45 = vpop.f32.mrf.mxu0  ;;  %12428 = vmatmul.mubr.msk.f32.gmra.mxu0 %vm225_vm1, %v14474_v42  ;;  %v12207_v39 = vpop.f32.mrf.mxu1  ;;  %12502 = vmatmul.mubr.msk.f32.gmra.mxu1 %vm225_vm1, %v14157_v54 }
 0x119   : > { %v870_v20 = vadd.f32 %v12133_v45, %v14264_v13  ;;  %v14488_v29 = vadd.f32 %v1282_v6, %v867_v37  ;;  %12430 = vmatprep.mubr.msk.f32.mxu0 %vm225_vm1, %v14478_v18  ;;  %12504 = vmatprep.mubr.msk.f32.mxu1 %vm225_vm1, %v14165_v56  ;;  %v14510_v56 = vld [vmem:[#allocation2 + $0x121] sm:$0xff]  ;;  %v14514_v37 = vld [vmem:[#allocation2 + $0x129] sm:$0xff] }
 0x11a   : > { %v742_v3 = vpop.f32.mrf.mxu0  ;;  %v1292_v22 = vpop.f32.mrf.mxu1 }
 0x11b   : > { %v869_v12 = vadd.f32 %v14264_v13, %v742_v3  ;;  %v14499_v49 = vadd.f32 %v12207_v39, %v870_v20 }
 0x11c   : > { %v12136_v54 = vpop.f32.mrf.mxu0  ;;  %12431 = vmatmul.mubr.msk.f32.gmra.mxu0 %vm225_vm1, %v14492_v48  ;;  %v12210_v24 = vpop.f32.mrf.mxu1  ;;  %12505 = vmatmul.mubr.msk.f32.gmra.mxu1 %vm225_vm1, %v14174_v62 }
 0x11d   : > { %v872_v33 = vadd.f32 %v12136_v54, %v14264_v13  ;;  %v14506_v17 = vadd.f32 %v1292_v22, %v869_v12  ;;  %12433 = vmatprep.mubr.msk.f32.mxu0 %vm225_vm1, %v14496_v9  ;;  %12507 = vmatprep.mubr.msk.f32.mxu1 %vm225_vm1, %v14184_v1  ;;  %v14528_v1 = vld [vmem:[#allocation2 + $0x131] sm:$0xff] }
 0x11e   : > { %v752_v40 = vpop.f32.mrf.mxu0  ;;  %v1302_v6 = vpop.f32.mrf.mxu1 }
 0x11f   : > { %v871_v45 = vadd.f32 %v14264_v13, %v752_v40  ;;  %v14517_v39 = vadd.f32 %v12210_v24, %v872_v33  ;;  %v14532_v24 = vld [vmem:[#allocation2 + $0x139] sm:$0xff] }
 0x120   : > { %v12139_v62 = vpop.f32.mrf.mxu0  ;;  %12434 = vmatmul.mubr.msk.f32.gmra.mxu0 %vm225_vm1, %v14510_v56  ;;  %v12213_v20 = vpop.f32.mrf.mxu1  ;;  %12508 = vmatmul.mubr.msk.f32.gmra.mxu1 %vm225_vm1, %v14188_v51 }
 0x121   : > { %v874_v3 = vadd.f32 %v12139_v62, %v14264_v13  ;;  %v14524_v22 = vadd.f32 %v1302_v6, %v871_v45  ;;  %12436 = vmatprep.mubr.msk.f32.mxu0 %vm225_vm1, %v14514_v37  ;;  %12510 = vmatprep.mubr.msk.f32.mxu1 %vm225_vm1, %v14196_v50  ;;  %v14546_v50 = vld [vmem:[#allocation2 + $0x141] sm:$0xff] }
 0x122   : > { %v762_v12 = vpop.f32.mrf.mxu0  ;;  %v1312_v54 = vpop.f32.mrf.mxu1 }
 0x123   : > { %17254 = vst [vmem:[#allocation4_spill] sm:$0xff] %v14524_v22  ;;  %v873_v33 = vadd.f32 %v14264_v13, %v762_v12  ;;  %v14535_v40 = vadd.f32 %v12213_v20, %v874_v3  ;;  %v14550_v12 = vld [vmem:[#allocation2 + $0x149] sm:$0xff] }
 0x124   : > { %v12142_v51 = vpop.f32.mrf.mxu0  ;;  %12437 = vmatmul.mubr.msk.f32.gmra.mxu0 %vm225_vm1, %v14528_v1  ;;  %v12216_v6 = vpop.f32.mrf.mxu1  ;;  %12511 = vmatmul.mubr.msk.f32.gmra.mxu1 %vm225_vm1, %v14200_v53 }
 0x125   : > { %17255 = vst [vmem:[#allocation5_spill] sm:$0xff] %v14535_v40  ;;  %v876_v45 = vadd.f32 %v12142_v51, %v14264_v13  ;;  %v14542_v62 = vadd.f32 %v1312_v54, %v873_v33  ;;  %12439 = vmatprep.mubr.msk.f32.mxu0 %vm225_vm1, %v14532_v24  ;;  %12513 = vmatprep.mubr.msk.f32.mxu1 %vm225_vm1, %v14208_v41  ;;  %v14564_v41 = vld [vmem:[#allocation2 + $0x151] sm:$0xff] }
 0x126   : > { %v772_v20 = vpop.f32.mrf.mxu0  ;;  %v1322_v3 = vpop.f32.mrf.mxu1 }
 0x127   : > { %17256 = vst [vmem:[#allocation6_spill] sm:$0xff] %v14542_v62  ;;  %v875_v40 = vadd.f32 %v14264_v13, %v772_v20  ;;  %v14553_v22 = vadd.f32 %v12216_v6, %v876_v45  ;;  %v14568_v20 = vld [vmem:[#allocation2 + $0x159] sm:$0xff] }
 0x128   : > { %v12145_v53 = vpop.f32.mrf.mxu0  ;;  %12440 = vmatmul.mubr.msk.f32.gmra.mxu0 %vm225_vm1, %v14546_v50  ;;  %v12219_v54 = vpop.f32.mrf.mxu1  ;;  %12514 = vmatmul.mubr.msk.f32.gmra.mxu1 %vm225_vm1, %v14212_v61  ;;  %17259 = vst [vmem:[#allocation9_spill] sm:$0xff] %v14568_v20 }
 0x129   : > { %17257 = vst [vmem:[#allocation7_spill] sm:$0xff] %v14553_v22  ;;  %v878_v33 = vadd.f32 %v12145_v53, %v14264_v13  ;;  %v14560_v51 = vadd.f32 %v1322_v3, %v875_v40  ;;  %12442 = vmatprep.mubr.msk.f32.mxu0 %vm225_vm1, %v14550_v12  ;;  %12516 = vmatprep.mubr.msk.f32.mxu1 %vm225_vm1, %v14220_v21  ;;  %v14582_v21 = vld [vmem:[#allocation2 + $0x161] sm:$0xff] }
 0x12a   : > { %v782_v6 = vpop.f32.mrf.mxu0  ;;  %v1332_v45 = vpop.f32.mrf.mxu1  ;;  %17262 = vst [vmem:[#allocation12_spill] sm:$0xff] %v14582_v21 }
 0x12b   : > { %17258 = vst [vmem:[#allocation8_spill] sm:$0xff] %v14560_v51  ;;  %v877_v22 = vadd.f32 %v14264_v13, %v782_v6  ;;  %v14571_v62 = vadd.f32 %v12219_v54, %v878_v33  ;;  %v14586_v6 = vld [vmem:[#allocation2 + $0x169] sm:$0xff] }
 0x12c   : > { %v12148_v61 = vpop.f32.mrf.mxu0  ;;  %12443 = vmatmul.mubr.msk.f32.gmra.mxu0 %vm225_vm1, %v14564_v41  ;;  %v12222_v40 = vpop.f32.mrf.mxu1  ;;  %12517 = vmatmul.mubr.msk.f32.gmra.mxu1 %vm225_vm1, %v14224_v55  ;;  %17263 = vst [vmem:[#allocation13_spill] sm:$0xff] %v14586_v6 }
 0x12d   : > { %17260 = vst [vmem:[#allocation10_spill] sm:$0xff] %v14571_v62  ;;  %v880_v3 = vadd.f32 %v12148_v61, %v14264_v13  ;;  %v14578_v53 = vadd.f32 %v1332_v45, %v877_v22  ;;  %12445 = vmatprep.mubr.msk.f32.mxu0 %vm225_vm1, %v14568_v20  ;;  %12519 = vmatprep.mubr.msk.f32.mxu1 %vm225_vm1, %v14232_v16  ;;  %v14600_v16 = vld [vmem:[#allocation2 + $0x171] sm:$0xff] }
 0x12e   : > { %v792_v54 = vpop.f32.mrf.mxu0  ;;  %v1342_v33 = vpop.f32.mrf.mxu1  ;;  %17266 = vst [vmem:[#allocation16_spill] sm:$0xff] %v14600_v16 }
 0x12f   : > { %17261 = vst [vmem:[#allocation11_spill] sm:$0xff] %v14578_v53  ;;  %v879_v62 = vadd.f32 %v14264_v13, %v792_v54  ;;  %v14589_v51 = vadd.f32 %v12222_v40, %v880_v3  ;;  %v14604_v54 = vld [vmem:[#allocation2 + $0x179] sm:$0xff] }
 0x130   : > { %v12151_v55 = vpop.f32.mrf.mxu0  ;;  %12446 = vmatmul.mubr.msk.f32.gmra.mxu0 %vm225_vm1, %v14582_v21  ;;  %v12225_v22 = vpop.f32.mrf.mxu1  ;;  %12520 = vmatmul.mubr.msk.f32.gmra.mxu1 %vm225_vm1, %v14236_v14  ;;  %17267 = vst [vmem:[#allocation17_spill] sm:$0xff] %v14604_v54 }
 0x131   : > { %17264 = vst [vmem:[#allocation14_spill] sm:$0xff] %v14589_v51  ;;  %v882_v45 = vadd.f32 %v12151_v55, %v14264_v13  ;;  %v14596_v61 = vadd.f32 %v1342_v33, %v879_v62  ;;  %12448 = vmatprep.mubr.msk.f32.mxu0 %vm225_vm1, %v14586_v6  ;;  %12522 = vmatprep.mubr.msk.f32.mxu1 %vm225_vm1, %v14244_v11  ;;  %v14618_v11 = vld [vmem:[#allocation2 + $0x181] sm:$0xff] }
 0x132   : > { %v802_v40 = vpop.f32.mrf.mxu0  ;;  %v1352_v3 = vpop.f32.mrf.mxu1  ;;  %17270 = vst [vmem:[#allocation21_spill] sm:$0xff] %v14618_v11 }
 0x133   : > { %17265 = vst [vmem:[#allocation15_spill] sm:$0xff] %v14596_v61  ;;  %v881_v51 = vadd.f32 %v14264_v13, %v802_v40  ;;  %v14607_v53 = vadd.f32 %v12225_v22, %v882_v45  ;;  %v17271_v40 = vld [vmem:[#allocation19_spill] sm:$0xff] }
 0x134   : > { %v12154_v14 = vpop.f32.mrf.mxu0  ;;  %12449 = vmatmul.mubr.msk.f32.gmra.mxu0 %vm225_vm1, %v14600_v16  ;;  %v12228_v62 = vpop.f32.mrf.mxu1  ;;  %12523 = vmatmul.mubr.msk.f32.gmra.mxu1 %vm225_vm1, %v14248_v23  ;;  %v3134_v22 = vld [vmem:[#allocation2 + $0x182] sm:$0xff]  ;;  %v3135_v16 = vld [vmem:[#allocation2 + $0x18a] sm:$0xff] }
 0x135   : > { %17268 = vst [vmem:[#allocation18_spill] sm:$0xff] %v14607_v53  ;;  %v884_v33 = vadd.f32 %v12154_v14, %v14264_v13  ;;  %v14614_v55 = vadd.f32 %v1352_v3, %v881_v51  ;;  %12451 = vmatprep.mubr.msk.f32.mxu0 %vm225_vm1, %v14604_v54  ;;  %12525 = vmatprep.mubr.msk.f32.mxu1 %vm225_vm1, %v17271_v40  ;;  %v14622_v61 = vld [vmem:[#allocation2 + $0x189] sm:$0xff]  ;;  %v4189_v54 = vld [vmem:[#allocation2 + $0x31] sm:$0xff] }
 0x136   : > { %v812_v45 = vpop.f32.mrf.mxu0  ;;  %v1362_v53 = vpop.f32.mrf.mxu1  ;;  %17272 = vst [vmem:[#allocation19_spill] sm:$0xff] %v14622_v61 }
 0x137   : > { %17269 = vst [vmem:[#allocation20_spill] sm:$0xff] %v14614_v55  ;;  %v883_v23 = vadd.f32 %v14264_v13, %v812_v45  ;;  %v14625_v6 = vadd.f32 %v12228_v62, %v884_v33  ;;  %v14635_v55 = vld [vmem:[#allocation2 + $0x191] sm:$0xff] }
 0x138   : > { %v12157_v51 = vpop.f32.mrf.mxu0  ;;  %12452 = vmatmul.mubr.msk.f32.gmra.mxu0 %vm225_vm1, %v14618_v11  ;;  %v12231_v3 = vpop.f32.mrf.mxu1  ;;  %12526 = vmatmul.mubr.msk.f32.gmra.mxu1 %vm225_vm1, %v3134_v22  ;;  %17275 = vst [vmem:[#allocation24_spill] sm:$0xff] %v14635_v55  ;;  %v3136_v62 = vld [vmem:[#allocation2 + $0x192] sm:$0xff] }
 0x139   : > { %17273 = vst [vmem:[#allocation22_spill] sm:$0xff] %v14625_v6  ;;  %v886_v14 = vadd.f32 %v12157_v51, %v14264_v13  ;;  %v14631_v40 = vadd.f32 %v1362_v53, %v883_v23  ;;  %12454 = vmatprep.mubr.msk.f32.mxu0 %vm225_vm1, %v14622_v61  ;;  %12528 = vmatprep.mubr.msk.f32.mxu1 %vm225_vm1, %v3135_v16  ;;  %v3639_v6 = vld [vmem:[#allocation2 + $0x30] sm:$0xff]  ;;  %v3640_v16 = vld [vmem:[#allocation2 + $0x38] sm:$0xff] }
 0x13a   : > { %v822_v33 = vpop.f32.mrf.mxu0  ;;  %v1372_v45 = vpop.f32.mrf.mxu1 }
 0x13b   : > { %17274 = vst [vmem:[#allocation23_spill] sm:$0xff] %v14631_v40  ;;  %v885_v11 = vadd.f32 %v14264_v13, %v822_v33  ;;  %v14639_v21 = vadd.f32 %v12231_v3, %v886_v14  ;;  %v4190_v40 = vld [vmem:[#allocation2 + $0x39] sm:$0xff] }
 0x13c   : > { %v12160_v22 = vpop.f32.mrf.mxu0  ;;  %12455 = vmatmul.mubr.msk.f32.gmra.mxu0 %vm225_vm1, %v14635_v55  ;;  %v12234_v53 = vpop.f32.mrf.mxu1  ;;  %12529 = vmatmul.mubr.msk.f32.gmra.mxu1 %vm225_vm1, %v3136_v62  ;;  %v3641_v14 = vld [vmem:[#allocation2 + $0x40] sm:$0xff] }
 0x13d   : > { %17276 = vst [vmem:[#allocation25_spill] sm:$0xff] %v14639_v21  ;;  %v888_v23 = vadd.f32 %v12160_v22, %v14264_v13  ;;  %v14645_v51 = vadd.f32 %v1372_v45, %v885_v11  ;;  %12533 = vmatprep.mubr.msk.f32.mxu0 %vm225_vm1, %v3639_v6  ;;  %12607 = vmatprep.mubr.msk.f32.mxu1 %vm225_vm1, %v4189_v54  ;;  %v4191_v55 = vld [vmem:[#allocation2 + $0x41] sm:$0xff] }
 0x13e   : > { %v832_v33 = vpop.f32.mrf.mxu0  ;;  %v1382_v3 = vpop.f32.mrf.mxu1  ;;  %v3642_v54 = vld [vmem:[#allocation2 + $0x48] sm:$0xff] }
 0x13f   : > { %v887_v21 = vadd.f32 %v14264_v13, %v832_v33  ;;  %v14650_v61 = vadd.f32 %v12234_v53, %v888_v23  ;;  %v4192_v13 = vld [vmem:[#allocation2 + $0x49] sm:$0xff]  ;;  %v4193_v23 = vld [vmem:[#allocation2 + $0x51] sm:$0xff] }
 0x140   : > { %v12239_v20 = vpop.f32.mrf.mxu0  ;;  %12534 = vmatmul.mubr.msk.f32.vlgmr.msra.gmra.mxu0 %vm225_vm1, %v3640_v16  ;;  %v12313_v62 = vpop.f32.mrf.mxu1  ;;  %12608 = vmatmul.mubr.msk.f32.vlgmr.msra.gmra.mxu1 %vm225_vm1, %v4190_v40  ;;  %v3643_v53 = vld [vmem:[#allocation2 + $0x50] sm:$0xff]  ;;  %v3644_v33 = vld [vmem:[#allocation2 + $0x58] sm:$0xff] }
 0x141   : > { %v14654_v11 = vadd.f32 %v1382_v3, %v887_v21  ;;  %v1942_v6 = vadd.f32 %v12239_v20, %v14285_v7  ;;  %12680 = vmatpush3.msk.msra.mxu0 %vm532_vm0, %v14278_v47  ;;  %12536 = vmatprep.mubr.msk.f32.mxu0 %vm225_vm1, %v3641_v14  ;;  %v3645_v14 = vld [vmem:[#allocation2 + $0x60] sm:$0xff] }
 0x142   : > { %v1702_v45 = vpop.f32.mrf.mxu0  ;;  %v2252_v22 = vpop.f32.mrf.mxu1  ;;  %12610 = vmatprep.mubr.msk.f32.mxu1 %vm225_vm1, %v4191_v55  ;;  %v4194_v55 = vld [vmem:[#allocation2 + $0x59] sm:$0xff] }
 0x143   : > { %v1941_v16 = vadd.f32 %v1702_v45, %v14293_v28  ;;  %v14662_v40 = vadd.f32 %v12313_v62, %v1942_v6  ;;  %v4195_v62 = vld [vmem:[#allocation2 + $0x61] sm:$0xff] }
 0x144   : > { %v12242_v21 = vpop.f32.mrf.mxu0  ;;  %12537 = vmatmul.mubr.msk.f32.gmra.mxu0 %vm225_vm1, %v3642_v54  ;;  %v12316_v7 = vpop.f32.mrf.mxu1  ;;  %12611 = vmatmul.mubr.msk.f32.gmra.mxu1 %vm225_vm1, %v4192_v13 }
 0x145   : > { %v1944_v47 = vadd.f32 %v12242_v21, %v14305_v19  ;;  %v14667_v20 = vadd.f32 %v2252_v22, %v1941_v16  ;;  %12539 = vmatprep.mubr.msk.f32.mxu0 %vm225_vm1, %v3643_v53  ;;  %12613 = vmatprep.mubr.msk.f32.mxu1 %vm225_vm1, %v4193_v23  ;;  %v3646_v53 = vld [vmem:[#allocation2 + $0x68] sm:$0xff]  ;;  %v3647_v21 = vld [vmem:[#allocation2 + $0x70] sm:$0xff] }
 0x146   : > { %v1712_v3 = vpop.f32.mrf.mxu0  ;;  %v2262_v28 = vpop.f32.mrf.mxu1  ;;  %v4196_v23 = vld [vmem:[#allocation2 + $0x69] sm:$0xff] }
 0x147   : > { %v1943_v6 = vadd.f32 %v1712_v3, %v14312_v34  ;;  %v14672_v54 = vadd.f32 %v12316_v7, %v1944_v47  ;;  %v4197_v7 = vld [vmem:[#allocation2 + $0x71] sm:$0xff] }
 0x148   : > { %v12245_v45 = vpop.f32.mrf.mxu0  ;;  %12540 = vmatmul.mubr.msk.f32.gmra.mxu0 %vm225_vm1, %v3644_v33  ;;  %v12319_v19 = vpop.f32.mrf.mxu1  ;;  %12614 = vmatmul.mubr.msk.f32.gmra.mxu1 %vm225_vm1, %v4194_v55 }
 0x149   : > { %v1946_v13 = vadd.f32 %v12245_v45, %v14319_v58  ;;  %v14677_v22 = vadd.f32 %v2262_v28, %v1943_v6  ;;  %12542 = vmatprep.mubr.msk.f32.mxu0 %vm225_vm1, %v3645_v14  ;;  %12616 = vmatprep.mubr.msk.f32.mxu1 %vm225_vm1, %v4195_v62  ;;  %v3648_v14 = vld [vmem:[#allocation2 + $0x78] sm:$0xff]  ;;  %v3649_v45 = vld [vmem:[#allocation2 + $0x80] sm:$0xff] }
 0x14a   : > { %v1722_v16 = vpop.f32.mrf.mxu0  ;;  %v2272_v34 = vpop.f32.mrf.mxu1  ;;  %v4198_v62 = vld [vmem:[#allocation2 + $0x79] sm:$0xff] }
 0x14b   : > { %v1945_v47 = vadd.f32 %v1722_v16, %v14326_v38  ;;  %v14682_v33 = vadd.f32 %v12319_v19, %v1946_v13  ;;  %v4199_v19 = vld [vmem:[#allocation2 + $0x81] sm:$0xff] }
 0x14c   : > { %v12248_v3 = vpop.f32.mrf.mxu0  ;;  %12543 = vmatmul.mubr.msk.f32.gmra.mxu0 %vm225_vm1, %v3646_v53  ;;  %v12322_v58 = vpop.f32.mrf.mxu1  ;;  %12617 = vmatmul.mubr.msk.f32.gmra.mxu1 %vm225_vm1, %v4196_v23 }
 0x14d   : > { %v1948_v55 = vadd.f32 %v12248_v3, %v14333_v59  ;;  %v14687_v28 = vadd.f32 %v2272_v34, %v1945_v47  ;;  %12545 = vmatprep.mubr.msk.f32.mxu0 %vm225_vm1, %v3647_v21  ;;  %12619 = vmatprep.mubr.msk.f32.mxu1 %vm225_vm1, %v4197_v7  ;;  %v3650_v21 = vld [vmem:[#allocation2 + $0x88] sm:$0xff]  ;;  %v3651_v3 = vld [vmem:[#allocation2 + $0x90] sm:$0xff] }
 0x14e   : > { %v1732_v6 = vpop.f32.mrf.mxu0  ;;  %v2282_v38 = vpop.f32.mrf.mxu1  ;;  %v4200_v7 = vld [vmem:[#allocation2 + $0x89] sm:$0xff] }
 0x14f   : > { %v1947_v13 = vadd.f32 %v1732_v6, %v14340_v43  ;;  %v14692_v53 = vadd.f32 %v12322_v58, %v1948_v55  ;;  %v4201_v58 = vld [vmem:[#allocation2 + $0x91] sm:$0xff] }
 0x150   : > { %v12251_v16 = vpop.f32.mrf.mxu0  ;;  %12546 = vmatmul.mubr.msk.f32.gmra.mxu0 %vm225_vm1, %v3648_v14  ;;  %v12325_v59 = vpop.f32.mrf.mxu1  ;;  %12620 = vmatmul.mubr.msk.f32.gmra.mxu1 %vm225_vm1, %v4198_v62 }
 0x151   : > { %v1950_v23 = vadd.f32 %v12251_v16, %v14347_v27  ;;  %v14697_v34 = vadd.f32 %v2282_v38, %v1947_v13  ;;  %12548 = vmatprep.mubr.msk.f32.mxu0 %vm225_vm1, %v3649_v45  ;;  %12622 = vmatprep.mubr.msk.f32.mxu1 %vm225_vm1, %v4199_v19  ;;  %v3652_v45 = vld [vmem:[#allocation2 + $0x98] sm:$0xff]  ;;  %v3653_v16 = vld [vmem:[#allocation2 + $0xa0] sm:$0xff] }
 0x152   : > { %v1742_v47 = vpop.f32.mrf.mxu0  ;;  %v2292_v43 = vpop.f32.mrf.mxu1  ;;  %v4202_v19 = vld [vmem:[#allocation2 + $0x99] sm:$0xff] }
 0x153   : > { %v1949_v55 = vadd.f32 %v1742_v47, %v14354_v60  ;;  %v14702_v14 = vadd.f32 %v12325_v59, %v1950_v23  ;;  %v4203_v59 = vld [vmem:[#allocation2 + $0xa1] sm:$0xff] }
 0x154   : > { %v12254_v6 = vpop.f32.mrf.mxu0  ;;  %12549 = vmatmul.mubr.msk.f32.gmra.mxu0 %vm225_vm1, %v3650_v21  ;;  %v12328_v27 = vpop.f32.mrf.mxu1  ;;  %12623 = vmatmul.mubr.msk.f32.gmra.mxu1 %vm225_vm1, %v4200_v7 }
 0x155   : > { %v1952_v62 = vadd.f32 %v12254_v6, %v14361_v31  ;;  %v14707_v38 = vadd.f32 %v2292_v43, %v1949_v55  ;;  %12551 = vmatprep.mubr.msk.f32.mxu0 %vm225_vm1, %v3651_v3  ;;  %12625 = vmatprep.mubr.msk.f32.mxu1 %vm225_vm1, %v4201_v58  ;;  %v3654_v3 = vld [vmem:[#allocation2 + $0xa8] sm:$0xff]  ;;  %v3655_v6 = vld [vmem:[#allocation2 + $0xb0] sm:$0xff] }
 0x156   : > { %v1752_v13 = vpop.f32.mrf.mxu0  ;;  %v2302_v60 = vpop.f32.mrf.mxu1  ;;  %v4204_v58 = vld [vmem:[#allocation2 + $0xa9] sm:$0xff] }
 0x157   : > { %v1951_v23 = vadd.f32 %v1752_v13, %v14368_v25  ;;  %v14712_v21 = vadd.f32 %v12328_v27, %v1952_v62  ;;  %v4205_v27 = vld [vmem:[#allocation2 + $0xb1] sm:$0xff] }
 0x158   : > { %v12257_v47 = vpop.f32.mrf.mxu0  ;;  %12552 = vmatmul.mubr.msk.f32.gmra.mxu0 %vm225_vm1, %v3652_v45  ;;  %v12331_v31 = vpop.f32.mrf.mxu1  ;;  %12626 = vmatmul.mubr.msk.f32.gmra.mxu1 %vm225_vm1, %v4202_v19 }
 0x159   : > { %v1954_v7 = vadd.f32 %v12257_v47, %v14375_v44  ;;  %v14717_v43 = vadd.f32 %v2302_v60, %v1951_v23  ;;  %12554 = vmatprep.mubr.msk.f32.mxu0 %vm225_vm1, %v3653_v16  ;;  %12628 = vmatprep.mubr.msk.f32.mxu1 %vm225_vm1, %v4203_v59  ;;  %v3656_v16 = vld [vmem:[#allocation2 + $0xb8] sm:$0xff]  ;;  %v3657_v47 = vld [vmem:[#allocation2 + $0xc0] sm:$0xff] }
 0x15a   : > { %v1762_v55 = vpop.f32.mrf.mxu0  ;;  %v2312_v25 = vpop.f32.mrf.mxu1  ;;  %v4206_v59 = vld [vmem:[#allocation2 + $0xb9] sm:$0xff] }
 0x15b   : > { %v1953_v62 = vadd.f32 %v1762_v55, %v14382_v52  ;;  %v14722_v45 = vadd.f32 %v12331_v31, %v1954_v7  ;;  %v4207_v31 = vld [vmem:[#allocation2 + $0xc1] sm:$0xff] }
 0x15c   : > { %v12260_v13 = vpop.f32.mrf.mxu0  ;;  %12555 = vmatmul.mubr.msk.f32.gmra.mxu0 %vm225_vm1, %v3654_v3  ;;  %v12334_v44 = vpop.f32.mrf.mxu1  ;;  %12629 = vmatmul.mubr.msk.f32.gmra.mxu1 %vm225_vm1, %v4204_v58 }
 0x15d   : > { %v1956_v19 = vadd.f32 %v12260_v13, %v14389_v46  ;;  %v14727_v60 = vadd.f32 %v2312_v25, %v1953_v62  ;;  %12557 = vmatprep.mubr.msk.f32.mxu0 %vm225_vm1, %v3655_v6  ;;  %12631 = vmatprep.mubr.msk.f32.mxu1 %vm225_vm1, %v4205_v27  ;;  %v3658_v6 = vld [vmem:[#allocation2 + $0xc8] sm:$0xff]  ;;  %v3659_v13 = vld [vmem:[#allocation2 + $0xd0] sm:$0xff] }
 0x15e   : > { %v1772_v23 = vpop.f32.mrf.mxu0  ;;  %v2322_v52 = vpop.f32.mrf.mxu1  ;;  %v4208_v27 = vld [vmem:[#allocation2 + $0xc9] sm:$0xff] }
 0x15f   : > { %v1955_v7 = vadd.f32 %v1772_v23, %v14396_v30  ;;  %v14732_v3 = vadd.f32 %v12334_v44, %v1956_v19  ;;  %v4209_v44 = vld [vmem:[#allocation2 + $0xd1] sm:$0xff] }
 0x160   : > { %v12263_v55 = vpop.f32.mrf.mxu0  ;;  %12558 = vmatmul.mubr.msk.f32.gmra.mxu0 %vm225_vm1, %v3656_v16  ;;  %v12337_v46 = vpop.f32.mrf.mxu1  ;;  %12632 = vmatmul.mubr.msk.f32.gmra.mxu1 %vm225_vm1, %v4206_v59 }
 0x161   : > { %v1958_v58 = vadd.f32 %v12263_v55, %v14403_v57  ;;  %v14737_v25 = vadd.f32 %v2322_v52, %v1955_v7  ;;  %12560 = vmatprep.mubr.msk.f32.mxu0 %vm225_vm1, %v3657_v47  ;;  %12634 = vmatprep.mubr.msk.f32.mxu1 %vm225_vm1, %v4207_v31  ;;  %v3660_v47 = vld [vmem:[#allocation2 + $0xd8] sm:$0xff]  ;;  %v3661_v55 = vld [vmem:[#allocation2 + $0xe0] sm:$0xff] }
 0x162   : > { %v1782_v62 = vpop.f32.mrf.mxu0  ;;  %v2332_v30 = vpop.f32.mrf.mxu1  ;;  %v4210_v31 = vld [vmem:[#allocation2 + $0xd9] sm:$0xff] }
 0x163   : > { %v1957_v19 = vadd.f32 %v1782_v62, %v14410_v26  ;;  %v14742_v16 = vadd.f32 %v12337_v46, %v1958_v58  ;;  %v4211_v46 = vld [vmem:[#allocation2 + $0xe1] sm:$0xff] }
 0x164   : > { %v12266_v23 = vpop.f32.mrf.mxu0  ;;  %12561 = vmatmul.mubr.msk.f32.gmra.mxu0 %vm225_vm1, %v3658_v6  ;;  %v12340_v57 = vpop.f32.mrf.mxu1  ;;  %12635 = vmatmul.mubr.msk.f32.gmra.mxu1 %vm225_vm1, %v4208_v27 }
 0x165   : > { %v1960_v59 = vadd.f32 %v12266_v23, %v14417_v2  ;;  %v14747_v52 = vadd.f32 %v2332_v30, %v1957_v19  ;;  %12563 = vmatprep.mubr.msk.f32.mxu0 %vm225_vm1, %v3659_v13  ;;  %12637 = vmatprep.mubr.msk.f32.mxu1 %vm225_vm1, %v4209_v44  ;;  %v3662_v13 = vld [vmem:[#allocation2 + $0xe8] sm:$0xff]  ;;  %v4213_v23 = vld [vmem:[#allocation2 + $0xf1] sm:$0xff] }
 0x166   : > { %v1792_v7 = vpop.f32.mrf.mxu0  ;;  %v2342_v26 = vpop.f32.mrf.mxu1 }
 0x167   : > { %v1959_v58 = vadd.f32 %v1792_v7, %v14424_v36  ;;  %v14752_v6 = vadd.f32 %v12340_v57, %v1960_v59  ;;  %v3663_v36 = vld [vmem:[#allocation2 + $0xf0] sm:$0xff] }
 0x168   : > { %v12269_v62 = vpop.f32.mrf.mxu0  ;;  %12564 = vmatmul.mubr.msk.f32.gmra.mxu0 %vm225_vm1, %v3660_v47  ;;  %v12343_v2 = vpop.f32.mrf.mxu1  ;;  %12638 = vmatmul.mubr.msk.f32.gmra.mxu1 %vm225_vm1, %v4210_v31 }
 0x169   : > { %v1962_v27 = vadd.f32 %v12269_v62, %v14431_v5  ;;  %v14757_v30 = vadd.f32 %v2342_v26, %v1959_v58  ;;  %12566 = vmatprep.mubr.msk.f32.mxu0 %vm225_vm1, %v3661_v55  ;;  %12640 = vmatprep.mubr.msk.f32.mxu1 %vm225_vm1, %v4211_v46  ;;  %v3664_v26 = vld [vmem:[#allocation2 + $0xf8] sm:$0xff]  ;;  %v3665_v46 = vld [vmem:[#allocation2 + $0x100] sm:$0xff] }
 0x16a   : > { %v1802_v44 = vpop.f32.mrf.mxu0  ;;  %v2352_v19 = vpop.f32.mrf.mxu1 }
 0x16b   : > { %v1961_v57 = vadd.f32 %v1802_v44, %v14438_v35  ;;  %v14762_v59 = vadd.f32 %v12343_v2, %v1962_v27 }
 0x16c   : > { %v12272_v47 = vpop.f32.mrf.mxu0  ;;  %12567 = vmatmul.mubr.msk.f32.gmra.mxu0 %vm225_vm1, %v3662_v13  ;;  %v12346_v31 = vpop.f32.mrf.mxu1  ;;  %12641 = vmatmul.mubr.msk.f32.gmra.mxu1 %vm225_vm1, %v14444_v63  ;;  %v3666_v13 = vld [vmem:[#allocation2 + $0x108] sm:$0xff] }
 0x16d   : > { %v1964_v5 = vadd.f32 %v12272_v47, %v14447_v32  ;;  %v14768_v7 = vadd.f32 %v2352_v19, %v1961_v57  ;;  %12569 = vmatprep.mubr.msk.f32.mxu0 %vm225_vm1, %v3663_v36  ;;  %12643 = vmatprep.mubr.msk.f32.mxu1 %vm225_vm1, %v4213_v23  ;;  %v3667_v19 = vld [vmem:[#allocation2 + $0x110] sm:$0xff] }
 0x16e   : > { %v1812_v55 = vpop.f32.mrf.mxu0  ;;  %v2362_v35 = vpop.f32.mrf.mxu1 }
 0x16f   : > { %v1963_v58 = vadd.f32 %v1812_v55, %v14454_v10  ;;  %v14773_v62 = vadd.f32 %v12346_v31, %v1964_v5  ;;  %v3669_v5 = vld [vmem:[#allocation2 + $0x120] sm:$0xff] }
 0x170   : > { %v12275_v2 = vpop.f32.mrf.mxu0  ;;  %12570 = vmatmul.mubr.msk.f32.gmra.mxu0 %vm225_vm1, %v3664_v26  ;;  %v12349_v63 = vpop.f32.mrf.mxu1  ;;  %12644 = vmatmul.mubr.msk.f32.gmra.mxu1 %vm225_vm1, %v14460_v4 }
 0x171   : > { %v1966_v32 = vadd.f32 %v12275_v2, %v14463_v0  ;;  %v14779_v27 = vadd.f32 %v2362_v35, %v1963_v58  ;;  %12572 = vmatprep.mubr.msk.f32.mxu0 %vm225_vm1, %v3665_v46  ;;  %12646 = vmatprep.mubr.msk.f32.mxu1 %vm225_vm1, %v14474_v42  ;;  %v3668_v42 = vld [vmem:[#allocation2 + $0x118] sm:$0xff]  ;;  %v3671_v2 = vld [vmem:[#allocation2 + $0x130] sm:$0xff] }
 0x172   : > { %v1822_v10 = vpop.f32.mrf.mxu0  ;;  %v2372_v44 = vpop.f32.mrf.mxu1 }
 0x173   : > { %v1965_v36 = vadd.f32 %v1822_v10, %v14470_v15  ;;  %v14785_v23 = vadd.f32 %v12349_v63, %v1966_v32 }
 0x174   : > { %v12278_v57 = vpop.f32.mrf.mxu0  ;;  %12573 = vmatmul.mubr.msk.f32.gmra.mxu0 %vm225_vm1, %v3666_v13  ;;  %v12352_v4 = vpop.f32.mrf.mxu1  ;;  %12647 = vmatmul.mubr.msk.f32.gmra.mxu1 %vm225_vm1, %v14478_v18 }
 0x175   : > { %v1968_v0 = vadd.f32 %v12278_v57, %v14481_v8  ;;  %v14791_v47 = vadd.f32 %v2372_v44, %v1965_v36  ;;  %12575 = vmatprep.mubr.msk.f32.mxu0 %vm225_vm1, %v3667_v19  ;;  %12649 = vmatprep.mubr.msk.f32.mxu1 %vm225_vm1, %v14492_v48  ;;  %v3670_v48 = vld [vmem:[#allocation2 + $0x128] sm:$0xff]  ;;  %v3673_v19 = vld [vmem:[#allocation2 + $0x140] sm:$0xff]  ;;  %v17277_v36 = vld [vmem:[#allocation4_spill] sm:$0xff] }
 0x176   : > { %v1832_v15 = vpop.f32.mrf.mxu0  ;;  %v2382_v31 = vpop.f32.mrf.mxu1 }
 0x177   : > { %v1967_v26 = vadd.f32 %v1832_v15, %v14488_v29  ;;  %v14797_v55 = vadd.f32 %v12352_v4, %v1968_v0 }
 0x178   : > { %v12281_v35 = vpop.f32.mrf.mxu0  ;;  %12576 = vmatmul.mubr.msk.f32.gmra.mxu0 %vm225_vm1, %v3668_v42  ;;  %v12355_v18 = vpop.f32.mrf.mxu1  ;;  %12650 = vmatmul.mubr.msk.f32.gmra.mxu1 %vm225_vm1, %v14496_v9 }
 0x179   : > { %v1970_v8 = vadd.f32 %v12281_v35, %v14499_v49  ;;  %v14803_v46 = vadd.f32 %v2382_v31, %v1967_v26  ;;  %12578 = vmatprep.mubr.msk.f32.mxu0 %vm225_vm1, %v3669_v5  ;;  %12652 = vmatprep.mubr.msk.f32.mxu1 %vm225_vm1, %v14510_v56  ;;  %v3672_v56 = vld [vmem:[#allocation2 + $0x138] sm:$0xff]  ;;  %v3675_v26 = vld [vmem:[#allocation2 + $0x150] sm:$0xff]  ;;  %v17279_v35 = vld [vmem:[#allocation6_spill] sm:$0xff] }
 0x17a   : > { %v1842_v29 = vpop.f32.mrf.mxu0  ;;  %v2392_v58 = vpop.f32.mrf.mxu1 }
 0x17b   : > { %v1969_v63 = vadd.f32 %v1842_v29, %v14506_v17  ;;  %v14809_v32 = vadd.f32 %v12355_v18, %v1970_v8  ;;  %v17280_v29 = vld [vmem:[#allocation7_spill] sm:$0xff] }
 0x17c   : > { %v12284_v13 = vpop.f32.mrf.mxu0  ;;  %12579 = vmatmul.mubr.msk.f32.gmra.mxu0 %vm225_vm1, %v3670_v48  ;;  %v12358_v9 = vpop.f32.mrf.mxu1  ;;  %12653 = vmatmul.mubr.msk.f32.gmra.mxu1 %vm225_vm1, %v14514_v37 }
 0x17d   : > { %v1972_v49 = vadd.f32 %v12284_v13, %v14517_v39  ;;  %v14815_v10 = vadd.f32 %v2392_v58, %v1969_v63  ;;  %12581 = vmatprep.mubr.msk.f32.mxu0 %vm225_vm1, %v3671_v2  ;;  %12655 = vmatprep.mubr.msk.f32.mxu1 %vm225_vm1, %v14528_v1  ;;  %v17278_v39 = vld [vmem:[#allocation5_spill] sm:$0xff]  ;;  %v3674_v1 = vld [vmem:[#allocation2 + $0x148] sm:$0xff]  ;;  %v3677_v13 = vld [vmem:[#allocation2 + $0x160] sm:$0xff] }
 0x17e   : > { %v1852_v17 = vpop.f32.mrf.mxu0  ;;  %v2402_v44 = vpop.f32.mrf.mxu1 }
 0x17f   : > { %v1971_v57 = vadd.f32 %v1852_v17, %v17277_v36  ;;  %v14821_v4 = vadd.f32 %v12358_v9, %v1972_v49  ;;  %v17282_v9 = vld [vmem:[#allocation8_spill] sm:$0xff] }
 0x180   : > { %v12287_v0 = vpop.f32.mrf.mxu0  ;;  %12582 = vmatmul.mubr.msk.f32.gmra.mxu0 %vm225_vm1, %v3672_v56  ;;  %v12361_v37 = vpop.f32.mrf.mxu1  ;;  %12656 = vmatmul.mubr.msk.f32.gmra.mxu1 %vm225_vm1, %v14532_v24 }
 0x181   : > { %v1974_v42 = vadd.f32 %v12287_v0, %v17278_v39  ;;  %v14827_v15 = vadd.f32 %v2402_v44, %v1971_v57  ;;  %12584 = vmatprep.mubr.msk.f32.mxu0 %vm225_vm1, %v3673_v19  ;;  %12658 = vmatprep.mubr.msk.f32.mxu1 %vm225_vm1, %v14546_v50  ;;  %v3676_v50 = vld [vmem:[#allocation2 + $0x158] sm:$0xff]  ;;  %v17285_v19 = vld [vmem:[#allocation10_spill] sm:$0xff]  ;;  %v17286_v57 = vld [vmem:[#allocation12_spill] sm:$0xff] }
 0x182   : > { %v1862_v31 = vpop.f32.mrf.mxu0  ;;  %v14832_v5 = vpop.f32.mrf.mxu1  ;;  %v17284_v44 = vld [vmem:[#allocation9_spill] sm:$0xff]  ;;  %v3679_v39 = vld [vmem:[#allocation2 + $0x170] sm:$0xff] }
 0x183   : > { %v14835_v18 = vadd.f32 %v1862_v31, %v17279_v35  ;;  %v14837_v8 = vadd.f32 %v12361_v37, %v1974_v42  ;;  %v17288_v42 = vld [vmem:[#allocation11_spill] sm:$0xff] }
 0x184   : > { %v12290_v24 = vpop.f32.mrf.mxu0  ;;  %12585 = vmatmul.mubr.msk.f32.gmra.mxu0 %vm225_vm1, %v3674_v1  ;;  %v12364_v48 = vpop.f32.mrf.mxu1  ;;  %12659 = vmatmul.mubr.msk.f32.gmra.mxu1 %vm225_vm1, %v14550_v12 }
 0x185   : > { %v1976_v58 = vadd.f32 %v12290_v24, %v17280_v29  ;;  %12587 = vmatprep.mubr.msk.f32.mxu0 %vm225_vm1, %v3675_v26  ;;  %12661 = vmatprep.mubr.msk.f32.mxu1 %vm225_vm1, %v14564_v41  ;;  %v3678_v41 = vld [vmem:[#allocation2 + $0x168] sm:$0xff]  ;;  %v5466_v26 = vld [vmem:[%s17180_s3] sm:$0xf] }
 0x186   : > { %v1872_v2 = vpop.f32.mrf.mxu0  ;;  %v14846_v63 = vpop.f32.mrf.mxu1  ;;  %v17291_v29 = vld [vmem:[#allocation14_spill] sm:$0xff]  ;;  %12753 = vmatprep.subr.msk.mxu1 %vm532_vm0, %v5466_v26 }
 0x187   : > { %17281 = vst [vmem:[#allocation4_spill] sm:$0xff] %v14846_v63  ;;  %v14849_v49 = vadd.f32 %v1872_v2, %v17282_v9  ;;  %v14851_v56 = vadd.f32 %v12364_v48, %v1976_v58  ;;  %v17290_v48 = vld [vmem:[#allocation13_spill] sm:$0xff]  ;;  %v17292_v2 = vld [vmem:[#allocation16_spill] sm:$0xff]  ;;  %12754 = vmatpush3.msk.msra.mxu1 %vm532_vm0, %v5466_v26 }
 0x188   : > { %v12293_v17 = vpop.f32.mrf.mxu0  ;;  %12588 = vmatmul.mubr.msk.f32.gmra.mxu0 %vm225_vm1, %v3676_v50  ;;  %v12367_v12 = vpop.f32.mrf.mxu1  ;;  %12662 = vmatmul.mubr.msk.f32.gmra.mxu1 %vm225_vm1, %v17284_v44  ;;  %v3680_v50 = vld [vmem:[#allocation2 + $0x178] sm:$0xff]  ;;  %v17300_v26 = vld [vmem:[#allocation20_spill] sm:$0xff] }
 0x189   : > { %17283 = vst [vmem:[#allocation5_spill] sm:$0xff] %v14849_v49  ;;  %v1978_v36 = vadd.f32 %v12293_v17, %v17285_v19  ;;  %12590 = vmatprep.mubr.msk.f32.mxu0 %vm225_vm1, %v3677_v13  ;;  %12664 = vmatprep.mubr.msk.f32.mxu1 %vm225_vm1, %v17286_v57  ;;  %v3681_v17 = vld [vmem:[#allocation2 + $0x180] sm:$0xff]  ;;  %v17296_v57 = vld [vmem:[#allocation17_spill] sm:$0xff] }
 0x18a   : > { %v1882_v0 = vpop.f32.mrf.mxu0  ;;  %v14860_v37 = vpop.f32.mrf.mxu1 }
 0x18b   : > { %17287 = vst [vmem:[#allocation6_spill] sm:$0xff] %v14860_v37  ;;  %v14863_v1 = vadd.f32 %v1882_v0, %v17288_v42  ;;  %v14865_v31 = vadd.f32 %v12367_v12, %v1978_v36  ;;  %v17294_v12 = vld [vmem:[#allocation15_spill] sm:$0xff]  ;;  %v17297_v0 = vld [vmem:[#allocation18_spill] sm:$0xff] }
 0x18c   : > { %v12296_v35 = vpop.f32.mrf.mxu0  ;;  %12591 = vmatmul.mubr.msk.f32.gmra.mxu0 %vm225_vm1, %v3678_v41  ;;  %v12370_v24 = vpop.f32.mrf.mxu1  ;;  %12665 = vmatmul.mubr.msk.f32.gmra.mxu1 %vm225_vm1, %v17290_v48  ;;  %v3682_v42 = vld [vmem:[#allocation2 + $0x188] sm:$0xff] }
 0x18d   : > { %17289 = vst [vmem:[#allocation7_spill] sm:$0xff] %v14863_v1  ;;  %v1980_v58 = vadd.f32 %v12296_v35, %v17291_v29  ;;  %12593 = vmatprep.mubr.msk.f32.mxu0 %vm225_vm1, %v3679_v39  ;;  %12667 = vmatprep.mubr.msk.f32.mxu1 %vm225_vm1, %v17292_v2  ;;  %v17298_v35 = vld [vmem:[#allocation21_spill] sm:$0xff]  ;;  %v3683_v29 = vld [vmem:[#allocation2 + $0x190] sm:$0xff] }
 0x18e   : > { %v1892_v13 = vpop.f32.mrf.mxu0  ;;  %v14877_v9 = vpop.f32.mrf.mxu1 }
 0x18f   : > { %17293 = vst [vmem:[#allocation8_spill] sm:$0xff] %v14877_v9  ;;  %v14881_v44 = vadd.f32 %v1892_v13, %v17294_v12  ;;  %v14883_v19 = vadd.f32 %v12370_v24, %v1980_v58  ;;  %v17302_v12 = vld [vmem:[#allocation19_spill] sm:$0xff] }
 0x190   : > { %v12299_v36 = vpop.f32.mrf.mxu0  ;;  %12594 = vmatmul.mubr.msk.f32.gmra.mxu0 %vm225_vm1, %v3680_v50  ;;  %v12373_v41 = vpop.f32.mrf.mxu1  ;;  %12668 = vmatmul.mubr.msk.f32.gmra.mxu1 %vm225_vm1, %v17296_v57  ;;  %v3684_v57 = vld [vmem:[#allocation2 + $0x198] sm:$0xff] }
 0x191   : > { %17295 = vst [vmem:[#allocation9_spill] sm:$0xff] %v14881_v44  ;;  %v1982_v39 = vadd.f32 %v12299_v36, %v17297_v0  ;;  %12596 = vmatprep.mubr.msk.f32.mxu0 %vm225_vm1, %v3681_v17  ;;  %12670 = vmatprep.mubr.msk.f32.mxu1 %vm225_vm1, %v17298_v35  ;;  %v17303_v17 = vld [vmem:[#allocation22_spill] sm:$0xff]  ;;  %v17304_v0 = vld [vmem:[#allocation24_spill] sm:$0xff] }
 0x192   : > { %v1902_v48 = vpop.f32.mrf.mxu0  ;;  %v14893_v24 = vpop.f32.mrf.mxu1  ;;  %v4234_v35 = vld [vmem:[#allocation2 + $0x199] sm:$0xff] }
 0x193   : > { %17299 = vst [vmem:[#allocation10_spill] sm:$0xff] %v14893_v24  ;;  %v14896_v58 = vadd.f32 %v1902_v48, %v17300_v26  ;;  %v14898_v50 = vadd.f32 %v12373_v41, %v1982_v39  ;;  %v3685_v41 = vld [vmem:[#allocation2 + $0x1a0] sm:$0xff]  ;;  %v17306_v24 = vld [vmem:[#allocation23_spill] sm:$0xff] }
 0x194   : > { %v12302_v2 = vpop.f32.mrf.mxu0  ;;  %12597 = vmatmul.mubr.msk.f32.gmra.mxu0 %vm225_vm1, %v3682_v42  ;;  %v12376_v13 = vpop.f32.mrf.mxu1  ;;  %12671 = vmatmul.mubr.msk.f32.gmra.mxu1 %vm225_vm1, %v17302_v12  ;;  %v4235_v39 = vld [vmem:[#allocation2 + $0x1a1] sm:$0xff] }
 0x195   : > { %17301 = vst [vmem:[#allocation12_spill] sm:$0xff] %v14896_v58  ;;  %v1984_v36 = vadd.f32 %v12302_v2, %v17303_v17  ;;  %12599 = vmatprep.mubr.msk.f32.mxu0 %vm225_vm1, %v3683_v29  ;;  %12673 = vmatprep.mubr.msk.f32.mxu1 %vm225_vm1, %v17304_v0  ;;  %v17308_v29 = vld [vmem:[#allocation25_spill] sm:$0xff]  ;;  %v3686_v0 = vld [vmem:[#allocation2 + $0x1a8] sm:$0xff] }
 0x196   : > { %v1912_v48 = vpop.f32.mrf.mxu0  ;;  %v14907_v26 = vpop.f32.mrf.mxu1 }
 0x197   : > { %17305 = vst [vmem:[#allocation11_spill] sm:$0xff] %v14907_v26  ;;  %v14910_v42 = vadd.f32 %v1912_v48, %v17306_v24  ;;  %v14912_v58 = vadd.f32 %v12376_v13, %v1984_v36  ;;  %v4236_v26 = vld [vmem:[#allocation2 + $0x1a9] sm:$0xff]  ;;  %v4739_v24 = vld [vmem:[#allocation2 + $0x32] sm:$0xff] }
 0x198   : > { %v12305_v12 = vpop.f32.mrf.mxu0  ;;  %12600 = vmatmul.mubr.msk.f32.gmra.mxu0 %vm225_vm1, %v3684_v57  ;;  %v12379_v2 = vpop.f32.mrf.mxu1  ;;  %12674 = vmatmul.mubr.msk.f32.gmra.mxu1 %vm225_vm1, %v4234_v35 }
 0x199   : > { %17307 = vst [vmem:[#allocation13_spill] sm:$0xff] %v14910_v42  ;;  %v1986_v17 = vadd.f32 %v12305_v12, %v17308_v29  ;;  %12602 = vmatprep.mubr.msk.f32.mxu0 %vm225_vm1, %v3685_v41  ;;  %12676 = vmatprep.mubr.msk.f32.mxu1 %vm225_vm1, %v4235_v39  ;;  %v4740_v41 = vld [vmem:[#allocation2 + $0x3a] sm:$0xff]  ;;  %v4741_v29 = vld [vmem:[#allocation2 + $0x42] sm:$0xff] }
 0x19a   : > { %v1922_v9 = vpop.f32.mrf.mxu0  ;;  %v14919_v44 = vpop.f32.mrf.mxu1 }
 0x19b   : > { %17309 = vst [vmem:[#allocation14_spill] sm:$0xff] %v14919_v44  ;;  %v14922_v13 = vadd.f32 %v1922_v9, %v14645_v51  ;;  %v14924_v36 = vadd.f32 %v12379_v2, %v1986_v17 }
 0x19c   : > { %v12308_v57 = vpop.f32.mrf.mxu0  ;;  %12603 = vmatmul.mubr.msk.f32.gmra.mxu0 %vm225_vm1, %v3686_v0  ;;  %v12382_v35 = vpop.f32.mrf.mxu1  ;;  %12677 = vmatmul.mubr.msk.f32.gmra.mxu1 %vm225_vm1, %v4236_v26 }
 0x19d   : > { %17310 = vst [vmem:[#allocation16_spill] sm:$0xff] %v14922_v13  ;;  %v1988_v48 = vadd.f32 %v12308_v57, %v14650_v61  ;;  %12681 = vmatprep.mubr.msk.f32.mxu0 %vm225_vm1, %v4739_v24  ;;  %v4742_v61 = vld [vmem:[#allocation2 + $0x4a] sm:$0xff]  ;;  %v4743_v57 = vld [vmem:[#allocation2 + $0x52] sm:$0xff] }
 0x19e   : > { %v1932_v39 = vpop.f32.mrf.mxu0  ;;  %v14930_v12 = vpop.f32.mrf.mxu1 }
 0x19f   : > { %17311 = vst [vmem:[#allocation15_spill] sm:$0xff] %v14930_v12  ;;  %v14933_v51 = vadd.f32 %v1932_v39, %v14654_v11  ;;  %v14935_v9 = vadd.f32 %v12382_v35, %v1988_v48 }
 0x1a0   : > { %v12387_v2 = vpop.f32.mrf.mxu0  ;;  %12682 = vmatmul.mubr.msk.f32.vlgmr.msra.gmra.mxu0 %vm225_vm1, %v4740_v41  ;;  %v12461_v17 = vpop.f32.mrf.mxu1 }
 0x1a1   : > { %17312 = vst [vmem:[#allocation17_spill] sm:$0xff] %v14933_v51  ;;  %v3042_v26 = vadd.f32 %v12387_v2, %v14662_v40  ;;  %12684 = vmatprep.mubr.msk.f32.mxu0 %vm225_vm1, %v4741_v29  ;;  %v4744_v40 = vld [vmem:[#allocation2 + $0x5a] sm:$0xff]  ;;  %v4745_v2 = vld [vmem:[#allocation2 + $0x62] sm:$0xff] }
 0x1a2   : > { %v2802_v0 = vpop.f32.mrf.mxu0  ;;  %v14940_v24 = vpop.f32.mrf.mxu1 }
 0x1a3   : > { %v14943_v12 = vadd.f32 %v2802_v0, %v14667_v20  ;;  %v14945_v11 = vadd.f32 %v12461_v17, %v3042_v26 }
 0x1a4   : > { %v12390_v35 = vpop.f32.mrf.mxu0  ;;  %12685 = vmatmul.mubr.msk.f32.gmra.mxu0 %vm225_vm1, %v4742_v61  ;;  %v12464_v48 = vpop.f32.mrf.mxu1 }
 0x1a5   : > { %v3044_v41 = vadd.f32 %v12390_v35, %v14672_v54  ;;  %12687 = vmatprep.mubr.msk.f32.mxu0 %vm225_vm1, %v4743_v57  ;;  %v4746_v54 = vld [vmem:[#allocation2 + $0x6a] sm:$0xff]  ;;  %v4747_v35 = vld [vmem:[#allocation2 + $0x72] sm:$0xff] }
 0x1a6   : > { %v2812_v39 = vpop.f32.mrf.mxu0  ;;  %v14950_v29 = vpop.f32.mrf.mxu1 }
 0x1a7   : > { %v14953_v51 = vadd.f32 %v2812_v39, %v14677_v22  ;;  %v14955_v20 = vadd.f32 %v12464_v48, %v3044_v41 }
 0x1a8   : > { %v12393_v17 = vpop.f32.mrf.mxu0  ;;  %12688 = vmatmul.mubr.msk.f32.gmra.mxu0 %vm225_vm1, %v4744_v40  ;;  %v12467_v26 = vpop.f32.mrf.mxu1 }
 0x1a9   : > { %v3046_v61 = vadd.f32 %v12393_v17, %v14682_v33  ;;  %12690 = vmatprep.mubr.msk.f32.mxu0 %vm225_vm1, %v4745_v2  ;;  %v4748_v33 = vld [vmem:[#allocation2 + $0x7a] sm:$0xff]  ;;  %v4749_v17 = vld [vmem:[#allocation2 + $0x82] sm:$0xff] }
 0x1aa   : > { %v2822_v0 = vpop.f32.mrf.mxu0  ;;  %v14960_v57 = vpop.f32.mrf.mxu1 }
 0x1ab   : > { %v14963_v44 = vadd.f32 %v2822_v0, %v14687_v28  ;;  %v14965_v22 = vadd.f32 %v12467_v26, %v3046_v61 }
 0x1ac   : > { %v12396_v48 = vpop.f32.mrf.mxu0  ;;  %12691 = vmatmul.mubr.msk.f32.gmra.mxu0 %vm225_vm1, %v4746_v54  ;;  %v12470_v41 = vpop.f32.mrf.mxu1 }
 0x1ad   : > { %v3048_v40 = vadd.f32 %v12396_v48, %v14692_v53  ;;  %12693 = vmatprep.mubr.msk.f32.mxu0 %vm225_vm1, %v4747_v35  ;;  %v4750_v53 = vld [vmem:[#allocation2 + $0x8a] sm:$0xff]  ;;  %v4751_v48 = vld [vmem:[#allocation2 + $0x92] sm:$0xff] }
 0x1ae   : > { %v2832_v39 = vpop.f32.mrf.mxu0  ;;  %v14970_v2 = vpop.f32.mrf.mxu1 }
 0x1af   : > { %v14973_v13 = vadd.f32 %v2832_v39, %v14697_v34  ;;  %v14975_v28 = vadd.f32 %v12470_v41, %v3048_v40 }
 0x1b0   : > { %v12399_v26 = vpop.f32.mrf.mxu0  ;;  %12694 = vmatmul.mubr.msk.f32.gmra.mxu0 %vm225_vm1, %v4748_v33  ;;  %v12473_v61 = vpop.f32.mrf.mxu1 }
 0x1b1   : > { %v3050_v54 = vadd.f32 %v12399_v26, %v14702_v14  ;;  %12696 = vmatprep.mubr.msk.f32.mxu0 %vm225_vm1, %v4749_v17  ;;  %v4752_v14 = vld [vmem:[#allocation2 + $0x9a] sm:$0xff]  ;;  %v4753_v26 = vld [vmem:[#allocation2 + $0xa2] sm:$0xff] }
 0x1b2   : > { %v2842_v0 = vpop.f32.mrf.mxu0  ;;  %v14980_v35 = vpop.f32.mrf.mxu1 }
 0x1b3   : > { %v14983_v42 = vadd.f32 %v2842_v0, %v14707_v38  ;;  %v14985_v34 = vadd.f32 %v12473_v61, %v3050_v54 }
 0x1b4   : > { %v12402_v41 = vpop.f32.mrf.mxu0  ;;  %12697 = vmatmul.mubr.msk.f32.gmra.mxu0 %vm225_vm1, %v4750_v53  ;;  %v12476_v40 = vpop.f32.mrf.mxu1 }
 0x1b5   : > { %v3052_v33 = vadd.f32 %v12402_v41, %v14712_v21  ;;  %12699 = vmatprep.mubr.msk.f32.mxu0 %vm225_vm1, %v4751_v48  ;;  %v4754_v21 = vld [vmem:[#allocation2 + $0xaa] sm:$0xff]  ;;  %v4755_v41 = vld [vmem:[#allocation2 + $0xb2] sm:$0xff] }
 0x1b6   : > { %v2852_v39 = vpop.f32.mrf.mxu0  ;;  %v14990_v17 = vpop.f32.mrf.mxu1 }
 0x1b7   : > { %v14993_v37 = vadd.f32 %v2852_v39, %v14717_v43  ;;  %v14995_v38 = vadd.f32 %v12476_v40, %v3052_v33 }
 0x1b8   : > { %v12405_v61 = vpop.f32.mrf.mxu0  ;;  %12700 = vmatmul.mubr.msk.f32.gmra.mxu0 %vm225_vm1, %v4752_v14  ;;  %v12479_v54 = vpop.f32.mrf.mxu1 }
 0x1b9   : > { %v3054_v53 = vadd.f32 %v12405_v61, %v14722_v45  ;;  %12702 = vmatprep.mubr.msk.f32.mxu0 %vm225_vm1, %v4753_v26  ;;  %v4756_v45 = vld [vmem:[#allocation2 + $0xba] sm:$0xff]  ;;  %v4757_v61 = vld [vmem:[#allocation2 + $0xc2] sm:$0xff] }
 0x1ba   : > { %v2862_v0 = vpop.f32.mrf.mxu0  ;;  %v15000_v48 = vpop.f32.mrf.mxu1 }
 0x1bb   : > { %v15003_v1 = vadd.f32 %v2862_v0, %v14727_v60  ;;  %v15005_v43 = vadd.f32 %v12479_v54, %v3054_v53 }
 0x1bc   : > { %v12408_v40 = vpop.f32.mrf.mxu0  ;;  %12703 = vmatmul.mubr.msk.f32.gmra.mxu0 %vm225_vm1, %v4754_v21  ;;  %v12482_v33 = vpop.f32.mrf.mxu1 }
 0x1bd   : > { %v3056_v14 = vadd.f32 %v12408_v40, %v14732_v3  ;;  %12705 = vmatprep.mubr.msk.f32.mxu0 %vm225_vm1, %v4755_v41  ;;  %v4758_v3 = vld [vmem:[#allocation2 + $0xca] sm:$0xff]  ;;  %v4759_v40 = vld [vmem:[#allocation2 + $0xd2] sm:$0xff] }
 0x1be   : > { %v2872_v39 = vpop.f32.mrf.mxu0  ;;  %v15010_v26 = vpop.f32.mrf.mxu1 }
 0x1bf   : > { %17313 = vst [vmem:[#allocation18_spill] sm:$0xff] %v15010_v26  ;;  %v15013_v63 = vadd.f32 %v2872_v39, %v14737_v25  ;;  %v15015_v60 = vadd.f32 %v12482_v33, %v3056_v14 }
 0x1c0   : > { %v12411_v54 = vpop.f32.mrf.mxu0  ;;  %12706 = vmatmul.mubr.msk.f32.gmra.mxu0 %vm225_vm1, %v4756_v45  ;;  %v12485_v53 = vpop.f32.mrf.mxu1 }
 0x1c1   : > { %v3058_v21 = vadd.f32 %v12411_v54, %v14742_v16  ;;  %12708 = vmatprep.mubr.msk.f32.mxu0 %vm225_vm1, %v4757_v61  ;;  %v4760_v16 = vld [vmem:[#allocation2 + $0xda] sm:$0xff]  ;;  %v4761_v54 = vld [vmem:[#allocation2 + $0xe2] sm:$0xff] }
 0x1c2   : > { %v2882_v0 = vpop.f32.mrf.mxu0  ;;  %v15020_v41 = vpop.f32.mrf.mxu1 }
 0x1c3   : > { %17314 = vst [vmem:[#allocation21_spill] sm:$0xff] %v15020_v41  ;;  %v15023_v49 = vadd.f32 %v2882_v0, %v14747_v52  ;;  %v15025_v25 = vadd.f32 %v12485_v53, %v3058_v21 }
 0x1c4   : > { %v12414_v33 = vpop.f32.mrf.mxu0  ;;  %12709 = vmatmul.mubr.msk.f32.gmra.mxu0 %vm225_vm1, %v4758_v3  ;;  %v12488_v14 = vpop.f32.mrf.mxu1 }
 0x1c5   : > { %17315 = vst [vmem:[#allocation20_spill] sm:$0xff] %v15023_v49  ;;  %v3060_v45 = vadd.f32 %v12414_v33, %v14752_v6  ;;  %12711 = vmatprep.mubr.msk.f32.mxu0 %vm225_vm1, %v4759_v40  ;;  %v4762_v6 = vld [vmem:[#allocation2 + $0xea] sm:$0xff]  ;;  %v4763_v33 = vld [vmem:[#allocation2 + $0xf2] sm:$0xff] }
 0x1c6   : > { %v2892_v39 = vpop.f32.mrf.mxu0  ;;  %v15030_v61 = vpop.f32.mrf.mxu1 }
 0x1c7   : > { %17316 = vst [vmem:[#allocation19_spill] sm:$0xff] %v15030_v61  ;;  %v15033_v41 = vadd.f32 %v2892_v39, %v14757_v30  ;;  %v15035_v52 = vadd.f32 %v12488_v14, %v3060_v45 }
 0x1c8   : > { %v12417_v53 = vpop.f32.mrf.mxu0  ;;  %12712 = vmatmul.mubr.msk.f32.gmra.mxu0 %vm225_vm1, %v4760_v16  ;;  %v12491_v21 = vpop.f32.mrf.mxu1 }
 0x1c9   : > { %17317 = vst [vmem:[#allocation22_spill] sm:$0xff] %v15033_v41  ;;  %v3062_v3 = vadd.f32 %v12417_v53, %v14762_v59  ;;  %12714 = vmatprep.mubr.msk.f32.mxu0 %vm225_vm1, %v4761_v54  ;;  %v4764_v59 = vld [vmem:[#allocation2 + $0xfa] sm:$0xff]  ;;  %v4765_v53 = vld [vmem:[#allocation2 + $0x102] sm:$0xff] }
 0x1ca   : > { %v2902_v0 = vpop.f32.mrf.mxu0  ;;  %v15040_v40 = vpop.f32.mrf.mxu1 }
 0x1cb   : > { %17318 = vst [vmem:[#allocation24_spill] sm:$0xff] %v15040_v40  ;;  %v15043_v61 = vadd.f32 %v2902_v0, %v14768_v7  ;;  %v15045_v30 = vadd.f32 %v12491_v21, %v3062_v3 }
 0x1cc   : > { %v12420_v14 = vpop.f32.mrf.mxu0  ;;  %12715 = vmatmul.mubr.msk.f32.gmra.mxu0 %vm225_vm1, %v4762_v6  ;;  %v12494_v45 = vpop.f32.mrf.mxu1 }
 0x1cd   : > { %17319 = vst [vmem:[#allocation23_spill] sm:$0xff] %v15043_v61  ;;  %v3064_v16 = vadd.f32 %v12420_v14, %v14773_v62  ;;  %12717 = vmatprep.mubr.msk.f32.mxu0 %vm225_vm1, %v4763_v33  ;;  %v4766_v62 = vld [vmem:[#allocation2 + $0x10a] sm:$0xff]  ;;  %v4767_v14 = vld [vmem:[#allocation2 + $0x112] sm:$0xff] }
 0x1ce   : > { %v2912_v39 = vpop.f32.mrf.mxu0  ;;  %v15050_v54 = vpop.f32.mrf.mxu1 }
 0x1cf   : > { %17320 = vst [vmem:[#allocation25_spill] sm:$0xff] %v15050_v54  ;;  %v15053_v40 = vadd.f32 %v2912_v39, %v14779_v27  ;;  %v15055_v7 = vadd.f32 %v12494_v45, %v3064_v16 }
 0x1d0   : > { %v12423_v21 = vpop.f32.mrf.mxu0  ;;  %12718 = vmatmul.mubr.msk.f32.gmra.mxu0 %vm225_vm1, %v4764_v59  ;;  %v12497_v3 = vpop.f32.mrf.mxu1 }
 0x1d1   : > { %17321 = vst [vmem:[#allocation26_spill] sm:$0xff] %v15053_v40  ;;  %v3066_v6 = vadd.f32 %v12423_v21, %v14785_v23  ;;  %12720 = vmatprep.mubr.msk.f32.mxu0 %vm225_vm1, %v4765_v53  ;;  %v4768_v23 = vld [vmem:[#allocation2 + $0x11a] sm:$0xff]  ;;  %v4769_v21 = vld [vmem:[#allocation2 + $0x122] sm:$0xff] }
 0x1d2   : > { %v2922_v0 = vpop.f32.mrf.mxu0  ;;  %v15060_v33 = vpop.f32.mrf.mxu1 }
 0x1d3   : > { %17322 = vst [vmem:[#allocation27_spill] sm:$0xff] %v15060_v33  ;;  %v15063_v54 = vadd.f32 %v2922_v0, %v14791_v47  ;;  %v15065_v27 = vadd.f32 %v12497_v3, %v3066_v6 }
 0x1d4   : > { %v12426_v45 = vpop.f32.mrf.mxu0  ;;  %12721 = vmatmul.mubr.msk.f32.gmra.mxu0 %vm225_vm1, %v4766_v62  ;;  %v12500_v16 = vpop.f32.mrf.mxu1 }
 0x1d5   : > { %17323 = vst [vmem:[#allocation28_spill] sm:$0xff] %v15063_v54  ;;  %v3068_v59 = vadd.f32 %v12426_v45, %v14797_v55  ;;  %12723 = vmatprep.mubr.msk.f32.mxu0 %vm225_vm1, %v4767_v14  ;;  %v4770_v55 = vld [vmem:[#allocation2 + $0x12a] sm:$0xff]  ;;  %v4771_v45 = vld [vmem:[#allocation2 + $0x132] sm:$0xff] }
 0x1d6   : > { %v2932_v39 = vpop.f32.mrf.mxu0  ;;  %v15070_v53 = vpop.f32.mrf.mxu1 }
 0x1d7   : > { %17324 = vst [vmem:[#allocation29_spill] sm:$0xff] %v15070_v53  ;;  %v15073_v33 = vadd.f32 %v2932_v39, %v14803_v46  ;;  %v15075_v47 = vadd.f32 %v12500_v16, %v3068_v59 }
 0x1d8   : > { %v12429_v3 = vpop.f32.mrf.mxu0  ;;  %12724 = vmatmul.mubr.msk.f32.gmra.mxu0 %vm225_vm1, %v4768_v23  ;;  %v12503_v6 = vpop.f32.mrf.mxu1 }
 0x1d9   : > { %17325 = vst [vmem:[#allocation30_spill] sm:$0xff] %v15073_v33  ;;  %v3070_v62 = vadd.f32 %v12429_v3, %v14809_v32  ;;  %12726 = vmatprep.mubr.msk.f32.mxu0 %vm225_vm1, %v4769_v21  ;;  %v4772_v32 = vld [vmem:[#allocation2 + $0x13a] sm:$0xff]  ;;  %v4773_v3 = vld [vmem:[#allocation2 + $0x142] sm:$0xff] }
 0x1da   : > { %v2942_v0 = vpop.f32.mrf.mxu0  ;;  %v15080_v14 = vpop.f32.mrf.mxu1 }
 0x1db   : > { %17326 = vst [vmem:[#allocation31_spill] sm:$0xff] %v15080_v14  ;;  %v15083_v53 = vadd.f32 %v2942_v0, %v14815_v10  ;;  %v15085_v46 = vadd.f32 %v12503_v6, %v3070_v62  ;;  %v4774_v0 = vld [vmem:[#allocation2 + $0x14a] sm:$0xff] }
 0x1dc   : > { %v12432_v16 = vpop.f32.mrf.mxu0  ;;  %12727 = vmatmul.mubr.msk.f32.gmra.mxu0 %vm225_vm1, %v4770_v55  ;;  %v12506_v59 = vpop.f32.mrf.mxu1  ;;  %v2523_v55 = vadd.f32 %v14832_v5, %v14835_v18  ;;  %v4776_v5 = vld [vmem:[#allocation2 + $0x15a] sm:$0xff] }
 0x1dd   : > { %17327 = vst [vmem:[#allocation32_spill] sm:$0xff] %v15083_v53  ;;  %v3072_v23 = vadd.f32 %v12432_v16, %v14821_v4  ;;  %12729 = vmatprep.mubr.msk.f32.mxu0 %vm225_vm1, %v4771_v45 }
 0x1de   : > { %v2952_v39 = vpop.f32.mrf.mxu0  ;;  %v15090_v21 = vpop.f32.mrf.mxu1 }
 0x1df   : > { %17328 = vst [vmem:[#allocation33_spill] sm:$0xff] %v15090_v21  ;;  %v15093_v14 = vadd.f32 %v2952_v39, %v14827_v15  ;;  %v15095_v10 = vadd.f32 %v12506_v59, %v3072_v23  ;;  %v4775_v21 = vld [vmem:[#allocation2 + $0x152] sm:$0xff] }
 0x1e0   : > { %v12435_v6 = vpop.f32.mrf.mxu0  ;;  %12730 = vmatmul.mubr.msk.f32.gmra.mxu0 %vm225_vm1, %v4772_v32  ;;  %v12509_v62 = vpop.f32.mrf.mxu1 }
 0x1e1   : > { %17329 = vst [vmem:[#allocation34_spill] sm:$0xff] %v15093_v14  ;;  %v3074_v4 = vadd.f32 %v12435_v6, %v14837_v8  ;;  %12732 = vmatprep.mubr.msk.f32.mxu0 %vm225_vm1, %v4773_v3  ;;  %v4777_v3 = vld [vmem:[#allocation2 + $0x162] sm:$0xff] }
 0x1e2   : > { %v2962_v45 = vpop.f32.mrf.mxu0  ;;  %v15102_v16 = vpop.f32.mrf.mxu1 }
 0x1e3   : > { %17330 = vst [vmem:[#allocation35_spill] sm:$0xff] %v15102_v16  ;;  %v15104_v15 = vadd.f32 %v2962_v45, %v2523_v55  ;;  %v15106_v59 = vadd.f32 %v12509_v62, %v3074_v4  ;;  %v5418_v4 = vld [vmem:[#allocation3] sm:$0xff]  ;;  %v5419_v45 = vld [vmem:[#allocation3 + $0x8] sm:$0xff] }
 0x1e4   : > { %v12438_v23 = vpop.f32.mrf.mxu0  ;;  %12733 = vmatmul.mubr.msk.f32.gmra.mxu0 %vm225_vm1, %v4774_v0  ;;  %v12512_v32 = vpop.f32.mrf.mxu1  ;;  %v10801_v0 = vld [vmem:[%s17180_s3 + $0x4] sm:$0xf]  ;;  %12755 = vmatprep.mubr.msk.f32.mxu1 %vm225_vm1, %v5418_v4  ;;  %v4780_v4 = vld [vmem:[#allocation2 + $0x17a] sm:$0xff] }
 0x1e5   : > { %17331 = vst [vmem:[#allocation36_spill] sm:$0xff] %v15104_v15  ;;  %v3076_v39 = vadd.f32 %v12438_v23, %v14851_v56  ;;  %12735 = vmatprep.mubr.msk.f32.mxu0 %vm225_vm1, %v4775_v21  ;;  %v4778_v21 = vld [vmem:[#allocation2 + $0x16a] sm:$0xff]  ;;  %12827 = vmatprep.subr.msk.mxu0 %vm532_vm0, %v10801_v0 }
 0x1e6   : > { %v15111_v18 = vpop.f32.mrf.mxu0  ;;  %v15113_v8 = vpop.f32.mrf.mxu1  ;;  %12756 = vmatmul.mubr.msk.f32.vlgmr.msra.gmra.mxu1 %vm225_vm1, %v5419_v45  ;;  %12828 = vmatpush3.msk.msra.mxu0 %vm532_vm0, %v10801_v0  ;;  %v10851_v0 = vld [vmem:[%s17180_s3 + $0x8] sm:$0xf] }
 0x1e7   : > { %17332 = vst [vmem:[#allocation37_spill] sm:$0xff] %v15111_v18  ;;  %17333 = vst [vmem:[#allocation38_spill] sm:$0xff] %v15113_v8  ;;  %v15115_v6 = vadd.f32 %v12512_v32, %v3076_v39  ;;  %v4779_v39 = vld [vmem:[#allocation2 + $0x172] sm:$0xff]  ;;  %v4781_v18 = vld [vmem:[#allocation2 + $0x182] sm:$0xff]  ;;  %12901 = vmatprep.subr.msk.mxu1 %vm532_vm0, %v10851_v0 }
 0x1e8   : > { %v12441_v55 = vpop.f32.mrf.mxu0  ;;  %12736 = vmatmul.mubr.msk.f32.gmra.mxu0 %vm225_vm1, %v4776_v5  ;;  %v12515_v62 = vpop.f32.mrf.mxu1  ;;  %v5420_v8 = vld [vmem:[#allocation3 + $0x10] sm:$0xff]  ;;  %v4782_v45 = vld [vmem:[#allocation2 + $0x18a] sm:$0xff]  ;;  %12902 = vmatpush3.msk.msra.mxu1 %vm532_vm0, %v10851_v0  ;;  %v4785_v0 = vld [vmem:[#allocation2 + $0x1a2] sm:$0xff] }
 0x1e9   : > { %v3078_v56 = vadd.f32 %v12441_v55, %v14865_v31  ;;  %12738 = vmatprep.mubr.msk.f32.mxu0 %vm225_vm1, %v4777_v3  ;;  %12758 = vmatprep.mubr.msk.f32.mxu1 %vm225_vm1, %v5420_v8 }
 0x1ea   : > { %v15124_v23 = vpop.f32.mrf.mxu0  ;;  %v15126_v32 = vpop.f32.mrf.mxu1 }
 0x1eb   : > { %17334 = vst [vmem:[#allocation39_spill] sm:$0xff] %v15124_v23  ;;  %17335 = vst [vmem:[#allocation40_spill] sm:$0xff] %v15126_v32  ;;  %v15130_v5 = vadd.f32 %v12515_v62, %v3078_v56 }
 0x1ec   : > { %v12444_v31 = vpop.f32.mrf.mxu0  ;;  %12739 = vmatmul.mubr.msk.f32.gmra.mxu0 %vm225_vm1, %v4778_v21  ;;  %v12518_v3 = vpop.f32.mrf.mxu1 }
 0x1ed   : > { %v3080_v55 = vadd.f32 %v12444_v31, %v14883_v19  ;;  %12741 = vmatprep.mubr.msk.f32.mxu0 %vm225_vm1, %v4779_v39  ;;  %v4783_v31 = vld [vmem:[#allocation2 + $0x192] sm:$0xff] }
 0x1ee   : > { %v15136_v32 = vpop.f32.mrf.mxu0  ;;  %v15138_v23 = vpop.f32.mrf.mxu1 }
 0x1ef   : > { %17336 = vst [vmem:[#allocation41_spill] sm:$0xff] %v15136_v32  ;;  %17337 = vst [vmem:[#allocation42_spill] sm:$0xff] %v15138_v23  ;;  %v15141_v62 = vadd.f32 %v12518_v3, %v3080_v55 }
 0x1f0   : > { %v12447_v56 = vpop.f32.mrf.mxu0  ;;  %12742 = vmatmul.mubr.msk.f32.gmra.mxu0 %vm225_vm1, %v4780_v4  ;;  %v12521_v19 = vpop.f32.mrf.mxu1 }
 0x1f1   : > { %v3082_v21 = vadd.f32 %v12447_v56, %v14898_v50  ;;  %12744 = vmatprep.mubr.msk.f32.mxu0 %vm225_vm1, %v4781_v18  ;;  %v4784_v50 = vld [vmem:[#allocation2 + $0x19a] sm:$0xff] }
 0x1f2   : > { %v15151_v8 = vpop.f32.mrf.mxu0  ;;  %v15153_v39 = vpop.f32.mrf.mxu1 }
 0x1f3   : > { %17338 = vst [vmem:[#allocation43_spill] sm:$0xff] %v15151_v8  ;;  %17339 = vst [vmem:[#allocation44_spill] sm:$0xff] %v15153_v39  ;;  %v15155_v3 = vadd.f32 %v12521_v19, %v3082_v21 }
 0x1f4   : > { %v12450_v55 = vpop.f32.mrf.mxu0  ;;  %12745 = vmatmul.mubr.msk.f32.gmra.mxu0 %vm225_vm1, %v4782_v45  ;;  %v12524_v4 = vpop.f32.mrf.mxu1  ;;  %v4786_v45 = vld [vmem:[#allocation2 + $0x1aa] sm:$0xff] }
 0x1f5   : > { %v3084_v23 = vadd.f32 %v12450_v55, %v14912_v58  ;;  %12747 = vmatprep.mubr.msk.f32.mxu0 %vm225_vm1, %v4783_v31  ;;  %v5935_v55 = vld [vmem:[#allocation3 + $0x1] sm:$0xff] }
 0x1f6   : > { %v15160_v18 = vpop.f32.mrf.mxu0  ;;  %v15162_v56 = vpop.f32.mrf.mxu1 }
 0x1f7   : > { %17340 = vst [vmem:[#allocation45_spill] sm:$0xff] %v15160_v18  ;;  %17341 = vst [vmem:[#allocation46_spill] sm:$0xff] %v15162_v56  ;;  %v15164_v8 = vadd.f32 %v12524_v4, %v3084_v23 }
 0x1f8   : > { %v12453_v39 = vpop.f32.mrf.mxu0  ;;  %12748 = vmatmul.mubr.msk.f32.gmra.mxu0 %vm225_vm1, %v4784_v50  ;;  %v12527_v19 = vpop.f32.mrf.mxu1  ;;  %v5936_v50 = vld [vmem:[#allocation3 + $0x9] sm:$0xff] }
 0x1f9   : > { %v3086_v21 = vadd.f32 %v12453_v39, %v14924_v36  ;;  %12750 = vmatprep.mubr.msk.f32.mxu0 %vm225_vm1, %v4785_v0  ;;  %v5937_v0 = vld [vmem:[#allocation3 + $0x11] sm:$0xff] }
 0x1fa   : > { %v15169_v58 = vpop.f32.mrf.mxu0  ;;  %v15171_v31 = vpop.f32.mrf.mxu1 }
 0x1fb   : > { %17342 = vst [vmem:[#allocation47_spill] sm:$0xff] %v15169_v58  ;;  %17343 = vst [vmem:[#allocation48_spill] sm:$0xff] %v15171_v31  ;;  %v15173_v18 = vadd.f32 %v12527_v19, %v3086_v21 }
 0x1fc   : > { %v12456_v56 = vpop.f32.mrf.mxu0  ;;  %12751 = vmatmul.mubr.msk.f32.gmra.mxu0 %vm225_vm1, %v4786_v45  ;;  %v12530_v23 = vpop.f32.mrf.mxu1 }
 0x1fd   : > { %v3088_v4 = vadd.f32 %v12456_v56, %v14935_v9  ;;  %12829 = vmatprep.mubr.msk.f32.mxu0 %vm225_vm1, %v5935_v55 }
 0x1fe   : > { %v15178_v36 = vpop.f32.mrf.mxu0  ;;  %v15180_v39 = vpop.f32.mrf.mxu1 }
 0x1ff   : > { %17344 = vst [vmem:[#allocation49_spill] sm:$0xff] %v15178_v36  ;;  %17345 = vst [vmem:[#allocation50_spill] sm:$0xff] %v15180_v39  ;;  %v15182_v58 = vadd.f32 %v12530_v23, %v3088_v4 }
 0x200   : > { %v12535_v31 = vpop.f32.mrf.mxu0  ;;  %v15184_v32 = vpop.f32.mrf.mxu1  ;;  %12830 = vmatmul.mubr.msk.f32.vlgmr.msra.gmra.mxu0 %vm225_vm1, %v5936_v50 }
 0x201   : > { %v15188_v19 = vadd.f32 %v12535_v31, %v14945_v11  ;;  %12832 = vmatprep.mubr.msk.f32.mxu0 %vm225_vm1, %v5937_v0 }
 0x202   : > { %v15191_v9 = vpop.f32.mrf.mxu0  ;;  %v15193_v56 = vpop.f32.mrf.mxu1 }
 0x204   : > { %v12538_v21 = vpop.f32.mrf.mxu0  ;;  %v15200_v23 = vpop.f32.mrf.mxu1 }
 0x205   : > { %v15196_v45 = vadd.f32 %v12538_v21, %v14955_v20 }
 0x206   : > { %v15198_v55 = vpop.f32.mrf.mxu0  ;;  %v15205_v11 = vpop.f32.mrf.mxu1 }
 0x208   : > { %v12541_v4 = vpop.f32.mrf.mxu0  ;;  %v15212_v36 = vpop.f32.mrf.mxu1 }
 0x209   : > { %v15203_v50 = vadd.f32 %v12541_v4, %v14965_v22 }
 0x20a   : > { %v15207_v31 = vpop.f32.mrf.mxu0  ;;  %v15219_v15 = vpop.f32.mrf.mxu1 }
 0x20c   : > { %v12544_v0 = vpop.f32.mrf.mxu0  ;;  %v15226_v53 = vpop.f32.mrf.mxu1 }
 0x20d   : > { %v15210_v39 = vadd.f32 %v12544_v0, %v14975_v28 }
 0x20e   : > { %v15214_v20 = vpop.f32.mrf.mxu0  ;;  %v15233_v54 = vpop.f32.mrf.mxu1 }
 0x210   : > { %v12547_v21 = vpop.f32.mrf.mxu0  ;;  %v15240_v61 = vpop.f32.mrf.mxu1 }
 0x211   : > { %v15217_v16 = vadd.f32 %v12547_v21, %v14985_v34 }
 0x212   : > { %v15221_v22 = vpop.f32.mrf.mxu0  ;;  %v15247_v49 = vpop.f32.mrf.mxu1 }
 0x214   : > { %v12550_v4 = vpop.f32.mrf.mxu0  ;;  %v15254_v26 = vpop.f32.mrf.mxu1 }
 0x215   : > { %v15224_v14 = vadd.f32 %v12550_v4, %v14995_v38 }
 0x216   : > { %v15228_v28 = vpop.f32.mrf.mxu0 }
 0x218   : > { %v12553_v0 = vpop.f32.mrf.mxu0 }
 0x219   : > { %v15231_v33 = vadd.f32 %v12553_v0, %v15005_v43 }
 0x21a   : > { %v15235_v34 = vpop.f32.mrf.mxu0 }
 0x21b   : > { %17346 = vst [vmem:[#allocation51_spill] sm:$0xff] %v15231_v33 }
 0x21c   : > { %v12556_v21 = vpop.f32.mrf.mxu0 }
 0x21d   : > { %v15238_v40 = vadd.f32 %v12556_v21, %v15015_v60 }
 0x21e   : > { %v15242_v38 = vpop.f32.mrf.mxu0 }
 0x21f   : > { %17347 = vst [vmem:[#allocation52_spill] sm:$0xff] %v15238_v40  ;;  %17348 = vst [vmem:[#allocation53_spill] sm:$0xff] %v15242_v38  ;;  %v15261_v38 = vpop.f32.mrf.mxu1 }
 0x220   : > { %v12559_v4 = vpop.f32.mrf.mxu0 }
 0x221   : > { %v15245_v41 = vadd.f32 %v12559_v4, %v15025_v25 }
 0x222   : > { %v15249_v43 = vpop.f32.mrf.mxu0 }
 0x223   : > { %17349 = vst [vmem:[#allocation54_spill] sm:$0xff] %v15245_v41  ;;  %17350 = vst [vmem:[#allocation55_spill] sm:$0xff] %v15249_v43  ;;  %v15268_v43 = vpop.f32.mrf.mxu1 }
 0x224   : > { %v12562_v0 = vpop.f32.mrf.mxu0 }
 0x225   : > { %v15252_v33 = vadd.f32 %v12562_v0, %v15035_v52 }
 0x226   : > { %v15256_v60 = vpop.f32.mrf.mxu0 }
 0x227   : > { %17351 = vst [vmem:[#allocation56_spill] sm:$0xff] %v15252_v33  ;;  %17352 = vst [vmem:[#allocation57_spill] sm:$0xff] %v15256_v60  ;;  %v15275_v60 = vpop.f32.mrf.mxu1 }
 0x228   : > { %v12565_v21 = vpop.f32.mrf.mxu0 }
 0x229   : > { %v15259_v40 = vadd.f32 %v12565_v21, %v15045_v30 }
 0x22a   : > { %v15263_v25 = vpop.f32.mrf.mxu0 }
 0x22b   : > { %17353 = vst [vmem:[#allocation58_spill] sm:$0xff] %v15259_v40  ;;  %17354 = vst [vmem:[#allocation59_spill] sm:$0xff] %v15263_v25  ;;  %v15282_v25 = vpop.f32.mrf.mxu1 }
 0x22c   : > { %v12568_v4 = vpop.f32.mrf.mxu0 }
 0x22d   : > { %v15266_v41 = vadd.f32 %v12568_v4, %v15055_v7 }
 0x22e   : > { %v15270_v52 = vpop.f32.mrf.mxu0 }
 0x22f   : > { %17355 = vst [vmem:[#allocation60_spill] sm:$0xff] %v15266_v41  ;;  %17356 = vst [vmem:[#allocation61_spill] sm:$0xff] %v15270_v52  ;;  %v15289_v52 = vpop.f32.mrf.mxu1 }
 0x230   : > { %v12571_v0 = vpop.f32.mrf.mxu0 }
 0x231   : > { %v15273_v33 = vadd.f32 %v12571_v0, %v15065_v27 }
 0x232   : > { %v15277_v30 = vpop.f32.mrf.mxu0 }
 0x233   : > { %17357 = vst [vmem:[#allocation62_spill] sm:$0xff] %v15273_v33  ;;  %17358 = vst [vmem:[#allocation63_spill] sm:$0xff] %v15277_v30  ;;  %v15296_v30 = vpop.f32.mrf.mxu1 }
 0x234   : > { %v12574_v21 = vpop.f32.mrf.mxu0 }
 0x235   : > { %v15280_v40 = vadd.f32 %v12574_v21, %v15075_v47 }
 0x236   : > { %v15284_v7 = vpop.f32.mrf.mxu0 }
 0x237   : > { %17359 = vst [vmem:[#allocation64_spill] sm:$0xff] %v15280_v40  ;;  %17360 = vst [vmem:[#allocation65_spill] sm:$0xff] %v15284_v7  ;;  %v15303_v7 = vpop.f32.mrf.mxu1 }
 0x238   : > { %v12577_v4 = vpop.f32.mrf.mxu0 }
 0x239   : > { %v15287_v41 = vadd.f32 %v12577_v4, %v15085_v46 }
 0x23a   : > { %v15291_v27 = vpop.f32.mrf.mxu0 }
 0x23b   : > { %17361 = vst [vmem:[#allocation66_spill] sm:$0xff] %v15287_v41  ;;  %17362 = vst [vmem:[#allocation67_spill] sm:$0xff] %v15291_v27  ;;  %v15310_v27 = vpop.f32.mrf.mxu1 }
 0x23c   : > { %v12580_v0 = vpop.f32.mrf.mxu0 }
 0x23d   : > { %v15294_v33 = vadd.f32 %v12580_v0, %v15095_v10 }
 0x23e   : > { %v15298_v47 = vpop.f32.mrf.mxu0 }
 0x23f   : > { %17363 = vst [vmem:[#allocation68_spill] sm:$0xff] %v15294_v33  ;;  %17364 = vst [vmem:[#allocation69_spill] sm:$0xff] %v15298_v47  ;;  %v10901_v33 = vld [vmem:[%s17180_s3 + $0xc] sm:$0xf] }
 0x240   : > { %v12583_v21 = vpop.f32.mrf.mxu0  ;;  %12975 = vmatprep.subr.msk.mxu0 %vm532_vm0, %v10901_v33 }
 0x241   : > { %v15301_v40 = vadd.f32 %v12583_v21, %v15106_v59  ;;  %v10951_v21 = vld [vmem:[%s17180_s3 + $0x10] sm:$0xf]  ;;  %12976 = vmatpush3.msk.msra.mxu0 %vm532_vm0, %v10901_v33 }
 0x242   : > { %v15305_v46 = vpop.f32.mrf.mxu0  ;;  %13049 = vmatprep.subr.msk.mxu1 %vm532_vm0, %v10951_v21 }
 0x243   : > { %17365 = vst [vmem:[#allocation70_spill] sm:$0xff] %v15301_v40  ;;  %17366 = vst [vmem:[#allocation71_spill] sm:$0xff] %v15305_v46 }
 0x244   : > { %v12586_v4 = vpop.f32.mrf.mxu0 }
 0x245   : > { %v15308_v41 = vadd.f32 %v12586_v4, %v15115_v6  ;;  %v15324_v6 = vpop.f32.mrf.mxu1 }
 0x246   : > { %v15312_v10 = vpop.f32.mrf.mxu0 }
 0x247   : > { %17367 = vst [vmem:[#allocation72_spill] sm:$0xff] %v15308_v41  ;;  %17368 = vst [vmem:[#allocation73_spill] sm:$0xff] %v15312_v10 }
 0x248   : > { %v12589_v0 = vpop.f32.mrf.mxu0 }
 0x249   : > { %v15318_v59 = vadd.f32 %v12589_v0, %v15130_v5  ;;  %v15333_v5 = vpop.f32.mrf.mxu1 }
 0x24a   : > { %v15326_v4 = vpop.f32.mrf.mxu0 }
 0x24b   : > { %17369 = vst [vmem:[#allocation74_spill] sm:$0xff] %v15318_v59  ;;  %17370 = vst [vmem:[#allocation75_spill] sm:$0xff] %v15326_v4  ;;  %v15340_v46 = vpop.f32.mrf.mxu1 }
 0x24c   : > { %v12592_v41 = vpop.f32.mrf.mxu0 }
 0x24d   : > { %v15331_v10 = vadd.f32 %v12592_v41, %v15141_v62  ;;  %v15347_v21 = vpop.f32.mrf.mxu1 }
 0x24e   : > { %v15335_v0 = vpop.f32.mrf.mxu0 }
 0x24f   : > { %17371 = vst [vmem:[#allocation76_spill] sm:$0xff] %v15331_v10  ;;  %17372 = vst [vmem:[#allocation77_spill] sm:$0xff] %v15335_v0  ;;  %v15354_v0 = vpop.f32.mrf.mxu1 }
 0x250   : > { %v12595_v59 = vpop.f32.mrf.mxu0 }
 0x251   : > { %v15338_v40 = vadd.f32 %v12595_v59, %v15155_v3  ;;  %v3591_v59 = vadd.f32 %v14940_v24, %v14943_v12 }
 0x252   : > { %v15342_v47 = vpop.f32.mrf.mxu0 }
 0x253   : > { %17373 = vst [vmem:[#allocation78_spill] sm:$0xff] %v15338_v40  ;;  %17374 = vst [vmem:[#allocation79_spill] sm:$0xff] %v15342_v47  ;;  %v4141_v47 = vadd.f32 %v15191_v9, %v3591_v59  ;;  %v4694_v59 = vadd.f32 %v15200_v23, %v15196_v45 }
 0x254   : > { %v12598_v4 = vpop.f32.mrf.mxu0 }
 0x255   : > { %v15345_v33 = vadd.f32 %v12598_v4, %v15164_v8  ;;  %v15364_v4 = vpop.f32.mrf.mxu1 }
 0x256   : > { %v15349_v41 = vpop.f32.mrf.mxu0 }
 0x257   : > { %17375 = vst [vmem:[#allocation80_spill] sm:$0xff] %v15345_v33  ;;  %v15374_v9 = vpop.f32.mrf.mxu1 }
 0x258   : > { %v12601_v62 = vpop.f32.mrf.mxu0 }
 0x259   : > { %v15352_v10 = vadd.f32 %v12601_v62, %v15173_v18  ;;  %v3593_v18 = vadd.f32 %v14950_v29, %v14953_v51  ;;  %v4692_v62 = vadd.f32 %v15184_v32, %v15188_v19 }
 0x25a   : > { %v15356_v3 = vpop.f32.mrf.mxu0 }
 0x25b   : > { %17376 = vst [vmem:[#allocation81_spill] sm:$0xff] %v15352_v10  ;;  %17377 = vst [vmem:[#allocation82_spill] sm:$0xff] %v15356_v3  ;;  %v4691_v3 = vadd.f32 %v15193_v56, %v4141_v47  ;;  %v4143_v12 = vadd.f32 %v15198_v55, %v3593_v18  ;;  %v15383_v47 = vpop.f32.mrf.mxu1 }
 0x25c   : > { %v12604_v40 = vpop.f32.mrf.mxu0 }
 0x25d   : > { %v15362_v8 = vadd.f32 %v12604_v40, %v15182_v58  ;;  %v3595_v58 = vadd.f32 %v14960_v57, %v14963_v44  ;;  %v4693_v32 = vadd.f32 %v15205_v11, %v4143_v12  ;;  %v3597_v44 = vadd.f32 %v14970_v2, %v14973_v13 }
 0x25e   : > { %v15366_v33 = vpop.f32.mrf.mxu0  ;;  %v4696_v57 = vadd.f32 %v15212_v36, %v15203_v50  ;;  %v3599_v13 = vadd.f32 %v14980_v35, %v14983_v42  ;;  %v4698_v2 = vadd.f32 %v15226_v53, %v15210_v39 }
 0x25f   : > { %17378 = vst [vmem:[#allocation83_spill] sm:$0xff] %v15362_v8  ;;  %v4145_v19 = vadd.f32 %v15207_v31, %v3595_v58 }
 0x260   : > { %v12683_v10 = vpop.f32.mrf.mxu0 }
 0x261   : > { %v5242_v24 = vadd.f32 %v12683_v10, %v4692_v62  ;;  %v4695_v31 = vadd.f32 %v15219_v15, %v4145_v19  ;;  %v15393_v62 = vpop.f32.mrf.mxu1  ;;  %v17379_v15 = vmov 0.0  }
 0x262   : > { %v5002_v40 = vpop.f32.mrf.mxu0 }
 0x263   : > { %v5290_v8 = vmax.f32 %v5242_v24, 0.0  ;;  %v5241_v51 = vadd.f32 %v5002_v40, %v4691_v3  ;;  %v4147_v3 = vadd.f32 %v15214_v20, %v3597_v44  ;;  %v4149_v40 = vadd.f32 %v15221_v22, %v3599_v13  ;;  %v15405_v42 = vpop.f32.mrf.mxu1 }
 0x264   : > { %v12686_v29 = vpop.f32.mrf.mxu0  ;;  %v4700_v22 = vadd.f32 %v15240_v61, %v15217_v16  ;;  %v3603_v44 = vadd.f32 %v15000_v48, %v15003_v1 }
 0x265   : > { %5338 = vst.msk [vmem:[#allocation3 + $0x21] sm:$0xff] %vm225_vm1, %v5290_v8  ;;  %v5289_v56 = vmax.f32 %v5241_v51, 0.0  ;;  %v5244_v55 = vadd.f32 %v12686_v29, %v4694_v59  ;;  %v4697_v24 = vadd.f32 %v15233_v54, %v4147_v3  ;;  %v3601_v54 = vadd.f32 %v14990_v17, %v14993_v37 }
 0x266   : > { %v5012_v10 = vpop.f32.mrf.mxu0  ;;  %v4699_v37 = vadd.f32 %v15247_v49, %v4149_v40  ;;  %v4153_v48 = vadd.f32 %v15235_v34, %v3603_v44  ;;  %v17381_v34 = vld [vmem:[#allocation51_spill] sm:$0xff] }
 0x267   : > { %5337 = vst.msk [vmem:[#allocation3 + $0x19] sm:$0xff] %vm225_vm1, %v5289_v56  ;;  %v5292_v45 = vmax.f32 %v5244_v55, 0.0  ;;  %v5243_v23 = vadd.f32 %v5012_v10, %v4693_v32  ;;  %v4151_v17 = vadd.f32 %v15228_v28, %v3601_v54  ;;  %v15427_v55 = vpop.f32.mrf.mxu1 }
 0x268   : > { %v12689_v11 = vpop.f32.mrf.mxu0 }
 0x269   : > { %5340 = vst.msk [vmem:[#allocation3 + $0x31] sm:$0xff] %vm225_vm1, %v5292_v45  ;;  %v5291_v8 = vmax.f32 %v5243_v23, 0.0  ;;  %v5246_v18 = vadd.f32 %v12689_v11, %v4696_v57  ;;  %v4702_v57 = vadd.f32 %v15254_v26, %v15224_v14  ;;  %v4701_v1 = vadd.f32 %v15261_v38, %v4151_v17  ;;  %v17380_v38 = vld [vmem:[#allocation18_spill] sm:$0xff] }
 0x26a   : > { %v5022_v12 = vpop.f32.mrf.mxu0 }
 0x26b   : > { %5339 = vst.msk [vmem:[#allocation3 + $0x29] sm:$0xff] %vm225_vm1, %v5291_v8  ;;  %v5294_v36 = vmax.f32 %v5246_v18, 0.0  ;;  %v5245_v50 = vadd.f32 %v5022_v12, %v4695_v31  ;;  %v15447_v8 = vpop.f32.mrf.mxu1 }
 0x26c   : > { %5395 = vst.msk [vmem:[#allocation3 + $0x29] sm:$0xff] %vm225_vm1, %v17379_v15  ;;  %v12692_v20 = vpop.f32.mrf.mxu0  ;;  %v5939_v19 = vld [vmem:[#allocation3 + $0x21] sm:$0xff] }
 0x26d   : > { %5342 = vst.msk [vmem:[#allocation3 + $0x41] sm:$0xff] %vm225_vm1, %v5294_v36  ;;  %v5293_v58 = vmax.f32 %v5245_v50, 0.0  ;;  %v5248_v59 = vadd.f32 %v12692_v20, %v4698_v2  ;;  %v3605_v36 = vadd.f32 %v17380_v38, %v15013_v63  ;;  %v4704_v50 = vadd.f32 %v15268_v43, %v17381_v34  ;;  %v15469_v54 = vpop.f32.mrf.mxu1 }
 0x26e   : > { %5396 = vst.msk [vmem:[#allocation3 + $0x41] sm:$0xff] %vm225_vm1, %v17379_v15  ;;  %v5032_v35 = vpop.f32.mrf.mxu0  ;;  %v15409_v53 = vld [vmem:[#allocation3 + $0x18] sm:$0xff]  ;;  %v15411_v51 = vld [vmem:[#allocation3 + $0x20] sm:$0xff]  ;;  %v4703_v63 = vadd.f32 %v15275_v60, %v4153_v48 }
 0x26f   : > { %v5938_v39 = vld [vmem:[#allocation3 + $0x19] sm:$0xff]  ;;  %5341 = vst.msk [vmem:[#allocation3 + $0x39] sm:$0xff] %vm225_vm1, %v5293_v58  ;;  %v5296_v29 = vmax.f32 %v5248_v59, 0.0  ;;  %v5247_v32 = vadd.f32 %v5032_v35, %v4697_v24  ;;  %12759 = vmatmul.mubr.msk.f32.gmra.mxu1 %vm225_vm1, %v15409_v53  ;;  %v17382_v59 = vld [vmem:[#allocation53_spill] sm:$0xff] }
 0x270   : > { %12833 = vmatmul.mubr.msk.f32.gmra.mxu0 %vm225_vm1, %v5938_v39  ;;  %v12695_v56 = vpop.f32.mrf.mxu0  ;;  %12761 = vmatprep.mubr.msk.f32.mxu1 %vm225_vm1, %v15411_v51  ;;  %v5941_v3 = vld [vmem:[#allocation3 + $0x31] sm:$0xff]  ;;  %v4155_v35 = vadd.f32 %v17382_v59, %v3605_v36 }
 0x271   : > { %12835 = vmatprep.mubr.msk.f32.mxu0 %vm225_vm1, %v5939_v19  ;;  %5344 = vst.msk [vmem:[#allocation3 + $0x51] sm:$0xff] %vm225_vm1, %v5296_v29  ;;  %v5295_v61 = vmax.f32 %v5247_v32, 0.0  ;;  %v5250_v16 = vadd.f32 %v12695_v56, %v4700_v22  ;;  %v17383_v32 = vld [vmem:[#allocation20_spill] sm:$0xff]  ;;  %v17384_v19 = vld [vmem:[#allocation21_spill] sm:$0xff]  ;;  %v17387_v48 = vld [vmem:[#allocation22_spill] sm:$0xff] }
 0x272   : > { %v5042_v10 = vpop.f32.mrf.mxu0  ;;  %v3607_v56 = vadd.f32 %v17384_v19, %v17383_v32  ;;  %v17391_v32 = vld [vmem:[#allocation23_spill] sm:$0xff] }
 0x273   : > { %5343 = vst.msk [vmem:[#allocation3 + $0x49] sm:$0xff] %vm225_vm1, %v5295_v61  ;;  %v5298_v45 = vmax.f32 %v5250_v16, 0.0  ;;  %v5249_v23 = vadd.f32 %v5042_v10, %v4699_v37  ;;  %v15434_v49 = vld [vmem:[#allocation3 + $0x28] sm:$0xff]  ;;  %v15436_v11 = vld [vmem:[#allocation3 + $0x30] sm:$0xff] }
 0x274   : > { %v5940_v28 = vld [vmem:[#allocation3 + $0x29] sm:$0xff]  ;;  %v12698_v31 = vpop.f32.mrf.mxu0  ;;  %12762 = vmatmul.mubr.msk.f32.gmra.mxu1 %vm225_vm1, %v15434_v49 }
 0x275   : > { %12836 = vmatmul.mubr.msk.f32.gmra.mxu0 %vm225_vm1, %v5940_v28  ;;  %5346 = vst.msk [vmem:[#allocation3 + $0x61] sm:$0xff] %vm225_vm1, %v5298_v45  ;;  %v5297_v26 = vmax.f32 %v5249_v23, 0.0  ;;  %v5252_v14 = vadd.f32 %v12698_v31, %v4702_v57  ;;  %12764 = vmatprep.mubr.msk.f32.mxu1 %vm225_vm1, %v15436_v11  ;;  %v5943_v2 = vld [vmem:[#allocation3 + $0x41] sm:$0xff]  ;;  %v4705_v45 = vadd.f32 %v15289_v52, %v4155_v35 }
 0x276   : > { %12838 = vmatprep.mubr.msk.f32.mxu0 %vm225_vm1, %v5941_v3  ;;  %v5052_v18 = vpop.f32.mrf.mxu0  ;;  %v15449_v12 = vld [vmem:[#allocation3 + $0x38] sm:$0xff]  ;;  %v15461_v58 = vld [vmem:[#allocation3 + $0x40] sm:$0xff]  ;;  %v17385_v37 = vld [vmem:[#allocation52_spill] sm:$0xff]  ;;  %v15491_v3 = vpop.f32.mrf.mxu1 }
 0x277   : > { %v5942_v13 = vld [vmem:[#allocation3 + $0x39] sm:$0xff]  ;;  %5345 = vst.msk [vmem:[#allocation3 + $0x59] sm:$0xff] %vm225_vm1, %v5297_v26  ;;  %v5300_v20 = vmax.f32 %v5252_v14, 0.0  ;;  %v5251_v24 = vadd.f32 %v5052_v18, %v4701_v1  ;;  %v4706_v17 = vadd.f32 %v15282_v25, %v17385_v37 }
 0x278   : > { %5397 = vst.msk [vmem:[#allocation3 + $0x59] sm:$0xff] %vm225_vm1, %v17379_v15  ;;  %v12701_v40 = vpop.f32.mrf.mxu0  ;;  %12765 = vmatmul.mubr.msk.f32.gmra.mxu1 %vm225_vm1, %v15449_v12  ;;  %v5945_v57 = vld [vmem:[#allocation3 + $0x51] sm:$0xff]  ;;  %v17386_v23 = vld [vmem:[#allocation55_spill] sm:$0xff]  ;;  %v15511_v35 = vpop.f32.mrf.mxu1 }
 0x279   : > { %12839 = vmatmul.mubr.msk.f32.gmra.mxu0 %vm225_vm1, %v5942_v13  ;;  %5348 = vst.msk [vmem:[#allocation3 + $0x71] sm:$0xff] %vm225_vm1, %v5300_v20  ;;  %v5299_v43 = vmax.f32 %v5251_v24, 0.0  ;;  %v5254_v39 = vadd.f32 %v12701_v40, %v4704_v50  ;;  %12767 = vmatprep.mubr.msk.f32.mxu1 %vm225_vm1, %v15461_v58  ;;  %v4157_v28 = vadd.f32 %v17386_v23, %v3607_v56  ;;  %v17388_v26 = vld [vmem:[#allocation19_spill] sm:$0xff]  ;;  %v17389_v18 = vld [vmem:[#allocation54_spill] sm:$0xff]  ;;  %v17390_v40 = vld [vmem:[#allocation57_spill] sm:$0xff] }
 0x27a   : > { %12841 = vmatprep.mubr.msk.f32.mxu0 %vm225_vm1, %v5943_v2  ;;  %5398 = vst.msk [vmem:[#allocation3 + $0x71] sm:$0xff] %vm225_vm1, %v17379_v15  ;;  %v5062_v22 = vpop.f32.mrf.mxu0  ;;  %v15473_v29 = vld [vmem:[#allocation3 + $0x48] sm:$0xff]  ;;  %v15483_v44 = vld [vmem:[#allocation3 + $0x50] sm:$0xff]  ;;  %v3609_v14 = vadd.f32 %v17388_v26, %v17387_v48  ;;  %v4708_v52 = vadd.f32 %v15296_v30, %v17389_v18  ;;  %v17395_v48 = vld [vmem:[#allocation26_spill] sm:$0xff] }
 0x27b   : > { %v5944_v60 = vld [vmem:[#allocation3 + $0x49] sm:$0xff]  ;;  %5347 = vst.msk [vmem:[#allocation3 + $0x69] sm:$0xff] %vm225_vm1, %v5299_v43  ;;  %v5302_v61 = vmax.f32 %v5254_v39, 0.0  ;;  %v5253_v16 = vadd.f32 %v5062_v22, %v4703_v63  ;;  %v4707_v24 = vadd.f32 %v15303_v7, %v4157_v28  ;;  %v17397_v18 = vld [vmem:[#allocation58_spill] sm:$0xff] }
 0x27c   : > { %v12704_v10 = vpop.f32.mrf.mxu0  ;;  %12768 = vmatmul.mubr.msk.f32.gmra.mxu1 %vm225_vm1, %v15473_v29  ;;  %v5947_v20 = vld [vmem:[#allocation3 + $0x61] sm:$0xff]  ;;  %v4159_v30 = vadd.f32 %v17390_v40, %v3609_v14  ;;  %v17396_v26 = vld [vmem:[#allocation25_spill] sm:$0xff] }
 0x27d   : > { %12842 = vmatmul.mubr.msk.f32.gmra.mxu0 %vm225_vm1, %v5944_v60  ;;  %5350 = vst.msk [vmem:[#allocation3 + $0x81] sm:$0xff] %vm225_vm1, %v5302_v61  ;;  %v5301_v25 = vmax.f32 %v5253_v16, 0.0  ;;  %v5256_v31 = vadd.f32 %v12704_v10, %v4706_v17  ;;  %12770 = vmatprep.mubr.msk.f32.mxu1 %vm225_vm1, %v15483_v44  ;;  %v17392_v7 = vld [vmem:[#allocation24_spill] sm:$0xff]  ;;  %v3613_v14 = vadd.f32 %v17396_v26, %v17395_v48  ;;  %v17398_v40 = vld [vmem:[#allocation61_spill] sm:$0xff] }
 0x27e   : > { %12844 = vmatprep.mubr.msk.f32.mxu0 %vm225_vm1, %v5945_v57  ;;  %v5072_v1 = vpop.f32.mrf.mxu0  ;;  %v3611_v19 = vadd.f32 %v17392_v7, %v17391_v32  ;;  %v17393_v56 = vld [vmem:[#allocation56_spill] sm:$0xff]  ;;  %v4709_v57 = vadd.f32 %v15324_v6, %v4159_v30 }
 0x27f   : > { %5349 = vst.msk [vmem:[#allocation3 + $0x79] sm:$0xff] %vm225_vm1, %v5301_v25  ;;  %v5304_v13 = vmax.f32 %v5256_v31, 0.0  ;;  %v5255_v2 = vadd.f32 %v5072_v1, %v4705_v45  ;;  %v15498_v38 = vld [vmem:[#allocation3 + $0x58] sm:$0xff]  ;;  %v15500_v34 = vld [vmem:[#allocation3 + $0x60] sm:$0xff]  ;;  %v4710_v37 = vadd.f32 %v15310_v27, %v17393_v56  ;;  %v15533_v25 = vpop.f32.mrf.mxu1  ;;  %v4163_v30 = vadd.f32 %v17398_v40, %v3613_v14  ;;  %v17401_v7 = vld [vmem:[#allocation60_spill] sm:$0xff] }
 0x280   : > { %v5946_v36 = vld [vmem:[#allocation3 + $0x59] sm:$0xff]  ;;  %v12707_v50 = vpop.f32.mrf.mxu0  ;;  %12771 = vmatmul.mubr.msk.f32.gmra.mxu1 %vm225_vm1, %v15498_v38 }
 0x281   : > { %12845 = vmatmul.mubr.msk.f32.gmra.mxu0 %vm225_vm1, %v5946_v36  ;;  %5352 = vst.msk [vmem:[#allocation3 + $0x91] sm:$0xff] %vm225_vm1, %v5304_v13  ;;  %v5303_v63 = vmax.f32 %v5255_v2, 0.0  ;;  %v5258_v59 = vadd.f32 %v12707_v50, %v4708_v52  ;;  %12773 = vmatprep.mubr.msk.f32.mxu1 %vm225_vm1, %v15500_v34  ;;  %v5949_v60 = vld [vmem:[#allocation3 + $0x71] sm:$0xff]  ;;  %v17394_v45 = vld [vmem:[#allocation59_spill] sm:$0xff]  ;;  %v4712_v52 = vadd.f32 %v15333_v5, %v17397_v18 }
 0x282   : > { %12847 = vmatprep.mubr.msk.f32.mxu0 %vm225_vm1, %v5947_v20  ;;  %v5082_v43 = vpop.f32.mrf.mxu0  ;;  %v15513_v39 = vld [vmem:[#allocation3 + $0x68] sm:$0xff]  ;;  %v15525_v10 = vld [vmem:[#allocation3 + $0x70] sm:$0xff]  ;;  %v4161_v23 = vadd.f32 %v17394_v45, %v3611_v19  ;;  %v4713_v45 = vadd.f32 %v15354_v0, %v4163_v30  ;;  %v17403_v18 = vld [vmem:[#allocation30_spill] sm:$0xff] }
 0x283   : > { %v5948_v22 = vld [vmem:[#allocation3 + $0x69] sm:$0xff]  ;;  %5351 = vst.msk [vmem:[#allocation3 + $0x89] sm:$0xff] %vm225_vm1, %v5303_v63  ;;  %v5306_v17 = vmax.f32 %v5258_v59, 0.0  ;;  %v5257_v61 = vadd.f32 %v5082_v43, %v4707_v24  ;;  %v15555_v59 = vpop.f32.mrf.mxu1 }
 0x284   : > { %5399 = vst.msk [vmem:[#allocation3 + $0x89] sm:$0xff] %vm225_vm1, %v17379_v15  ;;  %v12710_v16 = vpop.f32.mrf.mxu0  ;;  %12774 = vmatmul.mubr.msk.f32.gmra.mxu1 %vm225_vm1, %v15513_v39  ;;  %v5951_v20 = vld [vmem:[#allocation3 + $0x81] sm:$0xff]  ;;  %v4711_v24 = vadd.f32 %v15340_v46, %v4161_v23  ;;  %v4714_v46 = vadd.f32 %v15347_v21, %v17401_v7  ;;  %v17404_v0 = vld [vmem:[#allocation29_spill] sm:$0xff] }
 0x285   : > { %12848 = vmatmul.mubr.msk.f32.gmra.mxu0 %vm225_vm1, %v5948_v22  ;;  %5354 = vst.msk [vmem:[#allocation3 + $0xa1] sm:$0xff] %vm225_vm1, %v5306_v17  ;;  %v5305_v27 = vmax.f32 %v5257_v61, 0.0  ;;  %v5260_v28 = vadd.f32 %v12710_v16, %v4710_v37  ;;  %12776 = vmatprep.mubr.msk.f32.mxu1 %vm225_vm1, %v15525_v10  ;;  %v17399_v22 = vld [vmem:[#allocation28_spill] sm:$0xff]  ;;  %v17402_v23 = vld [vmem:[#allocation63_spill] sm:$0xff] }
 0x286   : > { %12850 = vmatprep.mubr.msk.f32.mxu0 %vm225_vm1, %v5949_v60  ;;  %5400 = vst.msk [vmem:[#allocation3 + $0xa1] sm:$0xff] %vm225_vm1, %v17379_v15  ;;  %v5092_v31 = vpop.f32.mrf.mxu0  ;;  %v15537_v1 = vld [vmem:[#allocation3 + $0x78] sm:$0xff]  ;;  %v15547_v50 = vld [vmem:[#allocation3 + $0x80] sm:$0xff]  ;;  %v17407_v7 = vld [vmem:[#allocation32_spill] sm:$0xff] }
 0x287   : > { %v5950_v6 = vld [vmem:[#allocation3 + $0x79] sm:$0xff]  ;;  %5353 = vst.msk [vmem:[#allocation3 + $0x99] sm:$0xff] %vm225_vm1, %v5305_v27  ;;  %v5308_v13 = vmax.f32 %v5260_v28, 0.0  ;;  %v5259_v2 = vadd.f32 %v5092_v31, %v4709_v57  ;;  %v15575_v31 = vpop.f32.mrf.mxu1 }
 0x288   : > { %v12713_v36 = vpop.f32.mrf.mxu0  ;;  %12777 = vmatmul.mubr.msk.f32.gmra.mxu1 %vm225_vm1, %v15537_v1  ;;  %v17400_v60 = vld [vmem:[#allocation27_spill] sm:$0xff]  ;;  %v5953_v57 = vld [vmem:[#allocation3 + $0x91] sm:$0xff] }
 0x289   : > { %12851 = vmatmul.mubr.msk.f32.gmra.mxu0 %vm225_vm1, %v5950_v6  ;;  %5356 = vst.msk [vmem:[#allocation3 + $0xb1] sm:$0xff] %vm225_vm1, %v5308_v13  ;;  %v5307_v5 = vmax.f32 %v5259_v2, 0.0  ;;  %v5262_v63 = vadd.f32 %v12713_v36, %v4712_v52  ;;  %12779 = vmatprep.mubr.msk.f32.mxu1 %vm225_vm1, %v15547_v50  ;;  %v3615_v32 = vadd.f32 %v17400_v60, %v17399_v22  ;;  %v17405_v13 = vld [vmem:[#allocation62_spill] sm:$0xff]  ;;  %v15597_v22 = vpop.f32.mrf.mxu1 }
 0x28a   : > { %12853 = vmatprep.mubr.msk.f32.mxu0 %vm225_vm1, %v5951_v20  ;;  %v5102_v43 = vpop.f32.mrf.mxu0  ;;  %v3617_v52 = vadd.f32 %v17404_v0, %v17403_v18  ;;  %v4716_v2 = vadd.f32 %v15364_v4, %v17405_v13  ;;  %v17411_v0 = vld [vmem:[#allocation34_spill] sm:$0xff] }
 0x28b   : > { %5355 = vst.msk [vmem:[#allocation3 + $0xa9] sm:$0xff] %vm225_vm1, %v5307_v5  ;;  %v5310_v19 = vmax.f32 %v5262_v63, 0.0  ;;  %v5261_v56 = vadd.f32 %v5102_v43, %v4711_v24  ;;  %v15562_v37 = vld [vmem:[#allocation3 + $0x88] sm:$0xff]  ;;  %v15564_v61 = vld [vmem:[#allocation3 + $0x90] sm:$0xff]  ;;  %v4165_v21 = vadd.f32 %v17402_v23, %v3615_v32 }
 0x28c   : > { %v5952_v17 = vld [vmem:[#allocation3 + $0x89] sm:$0xff]  ;;  %v12716_v16 = vpop.f32.mrf.mxu0  ;;  %12780 = vmatmul.mubr.msk.f32.gmra.mxu1 %vm225_vm1, %v15562_v37 }
 0x28d   : > { %12854 = vmatmul.mubr.msk.f32.gmra.mxu0 %vm225_vm1, %v5952_v17  ;;  %5358 = vst.msk [vmem:[#allocation3 + $0xc1] sm:$0xff] %vm225_vm1, %v5310_v19  ;;  %v5309_v27 = vmax.f32 %v5261_v56, 0.0  ;;  %v5264_v28 = vadd.f32 %v12716_v16, %v4714_v46  ;;  %12782 = vmatprep.mubr.msk.f32.mxu1 %vm225_vm1, %v15564_v61  ;;  %v5955_v14 = vld [vmem:[#allocation3 + $0xa1] sm:$0xff]  ;;  %v4715_v30 = vadd.f32 %v15374_v9, %v4165_v21  ;;  %v17406_v5 = vld [vmem:[#allocation65_spill] sm:$0xff] }
 0x28e   : > { %12856 = vmatprep.mubr.msk.f32.mxu0 %vm225_vm1, %v5953_v57  ;;  %v5112_v6 = vpop.f32.mrf.mxu0  ;;  %v15577_v48 = vld [vmem:[#allocation3 + $0x98] sm:$0xff]  ;;  %v15589_v40 = vld [vmem:[#allocation3 + $0xa0] sm:$0xff]  ;;  %v4167_v63 = vadd.f32 %v17406_v5, %v3617_v52  ;;  %v17409_v56 = vld [vmem:[#allocation64_spill] sm:$0xff] }
 0x28f   : > { %v5954_v26 = vld [vmem:[#allocation3 + $0x99] sm:$0xff]  ;;  %5357 = vst.msk [vmem:[#allocation3 + $0xb9] sm:$0xff] %vm225_vm1, %v5309_v27  ;;  %v5312_v36 = vmax.f32 %v5264_v28, 0.0  ;;  %v5263_v20 = vadd.f32 %v5112_v6, %v4713_v45  ;;  %v4718_v17 = vadd.f32 %v15383_v47, %v17409_v56  ;;  %v17412_v52 = vld [vmem:[#allocation33_spill] sm:$0xff] }
 0x290   : > { %5401 = vst.msk [vmem:[#allocation3 + $0xb9] sm:$0xff] %vm225_vm1, %v17379_v15  ;;  %v12719_v24 = vpop.f32.mrf.mxu0  ;;  %12783 = vmatmul.mubr.msk.f32.gmra.mxu1 %vm225_vm1, %v15577_v48  ;;  %v17408_v46 = vld [vmem:[#allocation31_spill] sm:$0xff]  ;;  %v5957_v21 = vld [vmem:[#allocation3 + $0xb1] sm:$0xff]  ;;  %v4717_v27 = vadd.f32 %v15393_v62, %v4167_v63  ;;  %v3621_v13 = vadd.f32 %v17412_v52, %v17411_v0 }
 0x291   : > { %12857 = vmatmul.mubr.msk.f32.gmra.mxu0 %vm225_vm1, %v5954_v26  ;;  %5360 = vst.msk [vmem:[#allocation3 + $0xd1] sm:$0xff] %vm225_vm1, %v5312_v36  ;;  %v5311_v4 = vmax.f32 %v5263_v20, 0.0  ;;  %v5266_v43 = vadd.f32 %v12719_v24, %v4716_v2  ;;  %12785 = vmatprep.mubr.msk.f32.mxu1 %vm225_vm1, %v15589_v40  ;;  %v3619_v19 = vadd.f32 %v17408_v46, %v17407_v7  ;;  %v17410_v28 = vld [vmem:[#allocation67_spill] sm:$0xff]  ;;  %v17413_v2 = vld [vmem:[#allocation66_spill] sm:$0xff]  ;;  %v17414_v63 = vld [vmem:[#allocation5_spill] sm:$0xff] }
 0x292   : > { %12859 = vmatprep.mubr.msk.f32.mxu0 %vm225_vm1, %v5955_v14  ;;  %5402 = vst.msk [vmem:[#allocation3 + $0xd1] sm:$0xff] %vm225_vm1, %v17379_v15  ;;  %v5122_v60 = vpop.f32.mrf.mxu0  ;;  %v15601_v32 = vld [vmem:[#allocation3 + $0xa8] sm:$0xff]  ;;  %v15611_v23 = vld [vmem:[#allocation3 + $0xb0] sm:$0xff]  ;;  %v15619_v14 = vpop.f32.mrf.mxu1  ;;  %v4720_v62 = vadd.f32 %v15405_v42, %v17413_v2  ;;  %v17422_v2 = vld [vmem:[#allocation6_spill] sm:$0xff] }
 0x293   : > { %v5956_v9 = vld [vmem:[#allocation3 + $0xa9] sm:$0xff]  ;;  %5359 = vst.msk [vmem:[#allocation3 + $0xc9] sm:$0xff] %vm225_vm1, %v5311_v4  ;;  %v5314_v16 = vmax.f32 %v5266_v43, 0.0  ;;  %v5265_v57 = vadd.f32 %v5122_v60, %v4715_v30  ;;  %v4169_v6 = vadd.f32 %v17410_v28, %v3619_v19 }
 0x294   : > { %v12722_v45 = vpop.f32.mrf.mxu0  ;;  %12786 = vmatmul.mubr.msk.f32.gmra.mxu1 %vm225_vm1, %v15601_v32  ;;  %v17415_v4 = vld [vmem:[#allocation4_spill] sm:$0xff]  ;;  %v17416_v7 = vld [vmem:[#allocation69_spill] sm:$0xff] }
 0x295   : > { %12860 = vmatmul.mubr.msk.f32.gmra.mxu0 %vm225_vm1, %v5956_v9  ;;  %5362 = vst.msk [vmem:[#allocation3 + $0xe1] sm:$0xff] %vm225_vm1, %v5314_v16  ;;  %v5313_v47 = vmax.f32 %v5265_v57, 0.0  ;;  %v5268_v26 = vadd.f32 %v12722_v45, %v4718_v17  ;;  %12788 = vmatprep.mubr.msk.f32.mxu1 %vm225_vm1, %v15611_v23  ;;  %v2525_v43 = vadd.f32 %v17415_v4, %v17414_v63  ;;  %v5959_v9 = vld [vmem:[#allocation3 + $0xc1] sm:$0xff]  ;;  %v15643_v45 = vpop.f32.mrf.mxu1 }
 0x296   : > { %12862 = vmatprep.mubr.msk.f32.mxu0 %vm225_vm1, %v5957_v21  ;;  %v5132_v18 = vpop.f32.mrf.mxu0  ;;  %v4719_v42 = vadd.f32 %v15427_v55, %v4169_v6  ;;  %v4171_v46 = vadd.f32 %v17416_v7, %v3621_v13  ;;  %v17417_v17 = vld [vmem:[#allocation36_spill] sm:$0xff]  ;;  %v17418_v16 = vld [vmem:[#allocation35_spill] sm:$0xff]  ;;  %v17419_v6 = vld [vmem:[#allocation37_spill] sm:$0xff] }
 0x297   : > { %5361 = vst.msk [vmem:[#allocation3 + $0xd9] sm:$0xff] %vm225_vm1, %v5313_v47  ;;  %v5316_v36 = vmax.f32 %v5268_v26, 0.0  ;;  %v5267_v20 = vadd.f32 %v5132_v18, %v4717_v27  ;;  %v15626_v24 = vld [vmem:[#allocation3 + $0xb8] sm:$0xff]  ;;  %v15628_v5 = vld [vmem:[#allocation3 + $0xc0] sm:$0xff]  ;;  %v3623_v57 = vadd.f32 %v17418_v16, %v17417_v17  ;;  %v3075_v47 = vadd.f32 %v17419_v6, %v2525_v43  ;;  %v17420_v26 = vld [vmem:[#allocation68_spill] sm:$0xff] }
 0x298   : > { %v5958_v30 = vld [vmem:[#allocation3 + $0xb9] sm:$0xff]  ;;  %v12725_v60 = vpop.f32.mrf.mxu0  ;;  %12789 = vmatmul.mubr.msk.f32.gmra.mxu1 %vm225_vm1, %v15626_v24  ;;  %v4722_v18 = vadd.f32 %v15447_v8, %v17420_v26  ;;  %v4721_v8 = vadd.f32 %v15469_v54, %v4171_v46 }
 0x299   : > { %12863 = vmatmul.mubr.msk.f32.gmra.mxu0 %vm225_vm1, %v5958_v30  ;;  %5364 = vst.msk [vmem:[#allocation3 + $0xf1] sm:$0xff] %vm225_vm1, %v5316_v36  ;;  %v5315_v19 = vmax.f32 %v5267_v20, 0.0  ;;  %v5270_v56 = vadd.f32 %v12725_v60, %v4720_v62  ;;  %12791 = vmatprep.mubr.msk.f32.mxu1 %vm225_vm1, %v15628_v5  ;;  %v5961_v28 = vld [vmem:[#allocation3 + $0xd1] sm:$0xff]  ;;  %v17421_v13 = vld [vmem:[#allocation7_spill] sm:$0xff] }
 0x29a   : > { %12865 = vmatprep.mubr.msk.f32.mxu0 %vm225_vm1, %v5959_v9  ;;  %v5142_v21 = vpop.f32.mrf.mxu0  ;;  %v15645_v27 = vld [vmem:[#allocation3 + $0xc8] sm:$0xff]  ;;  %v2527_v62 = vadd.f32 %v17422_v2, %v17421_v13  ;;  %v15658_v20 = vld [vmem:[#allocation3 + $0xd0] sm:$0xff]  ;;  %v17423_v30 = vld [vmem:[#allocation71_spill] sm:$0xff] }
 0x29b   : > { %v5960_v55 = vld [vmem:[#allocation3 + $0xc9] sm:$0xff]  ;;  %5363 = vst.msk [vmem:[#allocation3 + $0xe9] sm:$0xff] %vm225_vm1, %v5315_v19  ;;  %v5318_v0 = vmax.f32 %v5270_v56, 0.0  ;;  %v5269_v52 = vadd.f32 %v5142_v21, %v4719_v42  ;;  %v4173_v63 = vadd.f32 %v17423_v30, %v3623_v57  ;;  %v17424_v60 = vld [vmem:[#allocation39_spill] sm:$0xff]  ;;  %v15667_v42 = vpop.f32.mrf.mxu1  ;;  %v17425_v19 = vld [vmem:[#allocation38_spill] sm:$0xff] }
 0x29c   : > { %5403 = vst.msk [vmem:[#allocation3 + $0xe9] sm:$0xff] %vm225_vm1, %v17379_v15  ;;  %v12728_v36 = vpop.f32.mrf.mxu0  ;;  %12792 = vmatmul.mubr.msk.f32.gmra.mxu1 %vm225_vm1, %v15645_v27  ;;  %v3077_v9 = vadd.f32 %v17424_v60, %v2527_v62  ;;  %v3625_v56 = vadd.f32 %v17425_v19, %v3075_v47  ;;  %v17426_v17 = vld [vmem:[#allocation70_spill] sm:$0xff]  ;;  %v17430_v62 = vld [vmem:[#allocation40_spill] sm:$0xff] }
 0x29d   : > { %12866 = vmatmul.mubr.msk.f32.gmra.mxu0 %vm225_vm1, %v5960_v55  ;;  %5366 = vst.msk [vmem:[#allocation3 + $0x101] sm:$0xff] %vm225_vm1, %v5318_v0  ;;  %v5317_v4 = vmax.f32 %v5269_v52, 0.0  ;;  %v5272_v43 = vadd.f32 %v12728_v36, %v4722_v18  ;;  %12794 = vmatprep.mubr.msk.f32.mxu1 %vm225_vm1, %v15658_v20  ;;  %v4724_v16 = vadd.f32 %v15491_v3, %v17426_v17  ;;  %v17427_v55 = vld [vmem:[#allocation9_spill] sm:$0xff]  ;;  %v5963_v0 = vld [vmem:[#allocation3 + $0xe1] sm:$0xff] }
 0x29e   : > { %12868 = vmatprep.mubr.msk.f32.mxu0 %vm225_vm1, %v5961_v28  ;;  %5404 = vst.msk [vmem:[#allocation3 + $0x101] sm:$0xff] %vm225_vm1, %v17379_v15  ;;  %v5152_v7 = vpop.f32.mrf.mxu0  ;;  %v15671_v54 = vld [vmem:[#allocation3 + $0xd8] sm:$0xff]  ;;  %v17428_v28 = vld [vmem:[#allocation8_spill] sm:$0xff]  ;;  %v15682_v18 = vld [vmem:[#allocation3 + $0xe0] sm:$0xff]  ;;  %v4723_v47 = vadd.f32 %v15511_v35, %v4173_v63  ;;  %v3627_v36 = vadd.f32 %v17430_v62, %v3077_v9 }
 0x29f   : > { %v5962_v46 = vld [vmem:[#allocation3 + $0xd9] sm:$0xff]  ;;  %5365 = vst.msk [vmem:[#allocation3 + $0xf9] sm:$0xff] %vm225_vm1, %v5317_v4  ;;  %v5320_v57 = vmax.f32 %v5272_v43, 0.0  ;;  %v5271_v21 = vadd.f32 %v5152_v7, %v4721_v8  ;;  %v2529_v6 = vadd.f32 %v17428_v28, %v17427_v55  ;;  %v17429_v52 = vld [vmem:[#allocation73_spill] sm:$0xff]  ;;  %v15691_v8 = vpop.f32.mrf.mxu1  ;;  %v17432_v60 = vld [vmem:[#allocation72_spill] sm:$0xff] }
 0x2a0   : > { %v12731_v26 = vpop.f32.mrf.mxu0  ;;  %12795 = vmatmul.mubr.msk.f32.gmra.mxu1 %vm225_vm1, %v15671_v54  ;;  %v4175_v3 = vadd.f32 %v17429_v52, %v3625_v56  ;;  %v17431_v4 = vld [vmem:[#allocation41_spill] sm:$0xff]  ;;  %v4726_v35 = vadd.f32 %v15533_v25, %v17432_v60  ;;  %v17433_v17 = vld [vmem:[#allocation12_spill] sm:$0xff]  ;;  %v17435_v55 = vld [vmem:[#allocation75_spill] sm:$0xff] }
 0x2a1   : > { %12869 = vmatmul.mubr.msk.f32.gmra.mxu0 %vm225_vm1, %v5962_v46  ;;  %5368 = vst.msk [vmem:[#allocation3 + $0x111] sm:$0xff] %vm225_vm1, %v5320_v57  ;;  %v5319_v13 = vmax.f32 %v5271_v21, 0.0  ;;  %v5274_v2 = vadd.f32 %v12731_v26, %v4724_v16  ;;  %12797 = vmatprep.mubr.msk.f32.mxu1 %vm225_vm1, %v15682_v18  ;;  %v3079_v43 = vadd.f32 %v17431_v4, %v2529_v6  ;;  %v17434_v16 = vld [vmem:[#allocation10_spill] sm:$0xff]  ;;  %v15713_v52 = vpop.f32.mrf.mxu1 }
 0x2a2   : > { %12871 = vmatprep.mubr.msk.f32.mxu0 %vm225_vm1, %v5963_v0  ;;  %v5162_v30 = vpop.f32.mrf.mxu0  ;;  %v2531_v9 = vadd.f32 %v17434_v16, %v17433_v17  ;;  %v5965_v21 = vld [vmem:[#allocation3 + $0xf1] sm:$0xff]  ;;  %v4725_v25 = vadd.f32 %v15555_v59, %v4175_v3  ;;  %v4177_v28 = vadd.f32 %v17435_v55, %v3627_v36  ;;  %v17436_v0 = vld [vmem:[#allocation43_spill] sm:$0xff]  ;;  %v17442_v55 = vld [vmem:[#allocation44_spill] sm:$0xff] }
 0x2a3   : > { %5367 = vst.msk [vmem:[#allocation3 + $0x109] sm:$0xff] %vm225_vm1, %v5319_v13  ;;  %v5322_v63 = vmax.f32 %v5274_v2, 0.0  ;;  %v5273_v7 = vadd.f32 %v5162_v30, %v4723_v47  ;;  %v15697_v46 = vld [vmem:[#allocation3 + $0xe8] sm:$0xff]  ;;  %v15699_v56 = vld [vmem:[#allocation3 + $0xf0] sm:$0xff]  ;;  %v17437_v3 = vld [vmem:[#allocation42_spill] sm:$0xff] }
 0x2a4   : > { %v5964_v19 = vld [vmem:[#allocation3 + $0xe9] sm:$0xff]  ;;  %v12734_v57 = vpop.f32.mrf.mxu0  ;;  %12798 = vmatmul.mubr.msk.f32.gmra.mxu1 %vm225_vm1, %v15697_v46  ;;  %v3081_v47 = vadd.f32 %v17436_v0, %v2531_v9  ;;  %v3629_v36 = vadd.f32 %v17437_v3, %v3079_v43  ;;  %v17438_v30 = vld [vmem:[#allocation74_spill] sm:$0xff] }
 0x2a5   : > { %12872 = vmatmul.mubr.msk.f32.gmra.mxu0 %vm225_vm1, %v5964_v19  ;;  %5370 = vst.msk [vmem:[#allocation3 + $0x121] sm:$0xff] %vm225_vm1, %v5322_v63  ;;  %v5321_v6 = vmax.f32 %v5273_v7, 0.0  ;;  %v5276_v26 = vadd.f32 %v12734_v57, %v4726_v35  ;;  %12800 = vmatprep.mubr.msk.f32.mxu1 %vm225_vm1, %v15699_v56  ;;  %v5967_v59 = vld [vmem:[#allocation3 + $0x101] sm:$0xff]  ;;  %v4728_v4 = vadd.f32 %v15575_v31, %v17438_v30  ;;  %v17439_v63 = vld [vmem:[#allocation13_spill] sm:$0xff] }
 0x2a6   : > { %12874 = vmatprep.mubr.msk.f32.mxu0 %vm225_vm1, %v5965_v21  ;;  %v5172_v13 = vpop.f32.mrf.mxu0  ;;  %v15715_v2 = vld [vmem:[#allocation3 + $0xf8] sm:$0xff]  ;;  %v17440_v7 = vld [vmem:[#allocation11_spill] sm:$0xff]  ;;  %v4727_v31 = vadd.f32 %v15597_v22, %v4177_v28  ;;  %v17441_v16 = vld [vmem:[#allocation77_spill] sm:$0xff] }
 0x2a7   : > { %v5966_v62 = vld [vmem:[#allocation3 + $0xf9] sm:$0xff]  ;;  %5369 = vst.msk [vmem:[#allocation3 + $0x119] sm:$0xff] %vm225_vm1, %v5321_v6  ;;  %v5324_v60 = vmax.f32 %v5276_v26, 0.0  ;;  %v5275_v35 = vadd.f32 %v5172_v13, %v4725_v25  ;;  %v2533_v19 = vadd.f32 %v17440_v7, %v17439_v63  ;;  %v4179_v9 = vadd.f32 %v17441_v16, %v3629_v36  ;;  %v15739_v25 = vld [vmem:[%s17180_s3 + $0x14] sm:$0xf]  ;;  %v15742_v26 = vpop.f32.mrf.mxu1  ;;  %v17443_v13 = vld [vmem:[#allocation45_spill] sm:$0xff] }
 0x2a8   : > { %5405 = vst.msk [vmem:[#allocation3 + $0x119] sm:$0xff] %vm225_vm1, %v17379_v15  ;;  %v12737_v17 = vpop.f32.mrf.mxu0  ;;  %12801 = vmatmul.mubr.msk.f32.gmra.mxu1 %vm225_vm1, %v15715_v2  ;;  %v15728_v43 = vld [vmem:[#allocation3 + $0x100] sm:$0xff]  ;;  %v3631_v6 = vadd.f32 %v17442_v55, %v3081_v47  ;;  %13123 = vmatprep.subr.msk.mxu0 %vm532_vm0, %v15739_v25  ;;  %v17445_v30 = vld [vmem:[#allocation16_spill] sm:$0xff]  ;;  %v5969_v7 = vld [vmem:[#allocation3 + $0x111] sm:$0xff] }
 0x2a9   : > { %12875 = vmatmul.mubr.msk.f32.gmra.mxu0 %vm225_vm1, %v5966_v62  ;;  %5372 = vst.msk [vmem:[#allocation3 + $0x131] sm:$0xff] %vm225_vm1, %v5324_v60  ;;  %v5323_v57 = vmax.f32 %v5275_v35, 0.0  ;;  %v5278_v21 = vadd.f32 %v12737_v17, %v4728_v4  ;;  %12803 = vmatprep.mubr.msk.f32.mxu1 %vm225_vm1, %v15728_v43  ;;  %v3083_v62 = vadd.f32 %v17443_v13, %v2533_v19  ;;  %v17446_v4 = vld [vmem:[#allocation14_spill] sm:$0xff]  ;;  %v17447_v17 = vld [vmem:[#allocation79_spill] sm:$0xff]  ;;  %v12675_v55 = vpop.f32.mrf.mxu1 }
 0x2aa   : > { %12877 = vmatprep.mubr.msk.f32.mxu0 %vm225_vm1, %v5967_v59  ;;  %5406 = vst.msk [vmem:[#allocation3 + $0x131] sm:$0xff] %vm225_vm1, %v17379_v15  ;;  %v5182_v22 = vpop.f32.mrf.mxu0  ;;  %v15746_v28 = vld [vmem:[#allocation3 + $0x108] sm:$0xff]  ;;  %v2535_v60 = vadd.f32 %v17446_v4, %v17445_v30  ;;  %v15759_v63 = vld [vmem:[#allocation3 + $0x110] sm:$0xff]  ;;  %v4729_v19 = vadd.f32 %v15643_v45, %v4179_v9  ;;  %v17452_v4 = vld [vmem:[#allocation15_spill] sm:$0xff] }
 0x2ab   : > { %v5968_v0 = vld [vmem:[#allocation3 + $0x109] sm:$0xff]  ;;  %5371 = vst.msk [vmem:[#allocation3 + $0x129] sm:$0xff] %vm225_vm1, %v5323_v57  ;;  %v5326_v47 = vmax.f32 %v5278_v21, 0.0  ;;  %v5277_v36 = vadd.f32 %v5182_v22, %v4727_v31  ;;  %v17448_v57 = vld [vmem:[#allocation47_spill] sm:$0xff] }
 0x2ac   : > { %v17444_v59 = vld [vmem:[#allocation76_spill] sm:$0xff]  ;;  %v12740_v35 = vpop.f32.mrf.mxu0  ;;  %12804 = vmatmul.mubr.msk.f32.gmra.mxu1 %vm225_vm1, %v15746_v28  ;;  %v3085_v21 = vadd.f32 %v17448_v57, %v2535_v60  ;;  %v17451_v30 = vld [vmem:[#allocation17_spill] sm:$0xff]  ;;  %v4672_v57 = vpop.f32.mrf.mxu1 }
 0x2ad   : > { %v4730_v3 = vadd.f32 %v15619_v14, %v17444_v59  ;;  %12878 = vmatmul.mubr.msk.f32.gmra.mxu0 %vm225_vm1, %v5968_v0  ;;  %v4181_v14 = vadd.f32 %v17447_v17, %v3631_v6  ;;  %5374 = vst.msk [vmem:[#allocation3 + $0x141] sm:$0xff] %vm225_vm1, %v5326_v47  ;;  %v5325_v16 = vmax.f32 %v5277_v36, 0.0  ;;  %12806 = vmatprep.mubr.msk.f32.mxu1 %vm225_vm1, %v15759_v63  ;;  %v17449_v0 = vld [vmem:[#allocation46_spill] sm:$0xff] }
 0x2ae   : > { %12880 = vmatprep.mubr.msk.f32.mxu0 %vm225_vm1, %v5969_v7  ;;  %v5192_v22 = vpop.f32.mrf.mxu0  ;;  %v3633_v13 = vadd.f32 %v17449_v0, %v3083_v62  ;;  %v17450_v59 = vld [vmem:[#allocation78_spill] sm:$0xff]  ;;  %v5971_v62 = vld [vmem:[#allocation3 + $0x121] sm:$0xff] }
 0x2af   : > { %v5280_v31 = vadd.f32 %v12740_v35, %v4730_v3  ;;  %v4732_v45 = vadd.f32 %v15667_v42, %v17450_v59  ;;  %5373 = vst.msk [vmem:[#allocation3 + $0x139] sm:$0xff] %vm225_vm1, %v5325_v16  ;;  %v5279_v6 = vadd.f32 %v5192_v22, %v4729_v19  ;;  %v15772_v47 = vld [vmem:[#allocation3 + $0x118] sm:$0xff]  ;;  %v15774_v36 = vld [vmem:[#allocation3 + $0x120] sm:$0xff]  ;;  %v2537_v35 = vadd.f32 %v17452_v4, %v17451_v30  ;;  %v17453_v16 = vld [vmem:[#allocation48_spill] sm:$0xff] }
 0x2b0   : > { %v5970_v3 = vld [vmem:[#allocation3 + $0x119] sm:$0xff]  ;;  %v12743_v60 = vpop.f32.mrf.mxu0  ;;  %12807 = vmatmul.mubr.msk.f32.gmra.mxu1 %vm225_vm1, %v15772_v47  ;;  %v4731_v42 = vadd.f32 %v15691_v8, %v4181_v14  ;;  %v4183_v7 = vadd.f32 %v15349_v41, %v3633_v13  ;;  %v17454_v8 = vld [vmem:[#allocation49_spill] sm:$0xff]  ;;  %v17455_v41 = vld [vmem:[#allocation80_spill] sm:$0xff] }
 0x2b1   : > { %v5328_v9 = vmax.f32 %v5280_v31, 0.0  ;;  %12881 = vmatmul.mubr.msk.f32.gmra.mxu0 %vm225_vm1, %v5970_v3  ;;  %v5327_v19 = vmax.f32 %v5279_v6, 0.0  ;;  %v5282_v17 = vadd.f32 %v12743_v60, %v4732_v45  ;;  %12809 = vmatprep.mubr.msk.f32.mxu1 %vm225_vm1, %v15774_v36  ;;  %v3635_v31 = vadd.f32 %v17453_v16, %v3085_v21  ;;  %v5973_v3 = vld [vmem:[#allocation3 + $0x131] sm:$0xff] }
 0x2b2   : > { %12883 = vmatprep.mubr.msk.f32.mxu0 %vm225_vm1, %v5971_v62  ;;  %v5202_v22 = vpop.f32.mrf.mxu0  ;;  %v15788_v0 = vld [vmem:[#allocation3 + $0x128] sm:$0xff]  ;;  %v3087_v14 = vadd.f32 %v17454_v8, %v2537_v35  ;;  %v4734_v13 = vadd.f32 %v15713_v52, %v17455_v41  ;;  %v15799_v21 = vld [vmem:[#allocation3 + $0x130] sm:$0xff]  ;;  %v4733_v30 = vadd.f32 %v15742_v26, %v4183_v7  ;;  %v17456_v4 = vld [vmem:[#allocation82_spill] sm:$0xff]  ;;  %v12678_v62 = vpop.f32.mrf.mxu1 }
 0x2b3   : > { %5376 = vst.msk [vmem:[#allocation3 + $0x151] sm:$0xff] %vm225_vm1, %v5328_v9  ;;  %v5972_v59 = vld [vmem:[#allocation3 + $0x129] sm:$0xff]  ;;  %5375 = vst.msk [vmem:[#allocation3 + $0x149] sm:$0xff] %vm225_vm1, %v5327_v19  ;;  %v5330_v45 = vmax.f32 %v5282_v17, 0.0  ;;  %v5281_v9 = vadd.f32 %v5202_v22, %v4731_v42  ;;  %v4185_v35 = vadd.f32 %v17456_v4, %v3635_v31  ;;  %v17457_v26 = vld [vmem:[#allocation50_spill] sm:$0xff] }
 0x2b4   : > { %5407 = vst.msk [vmem:[#allocation3 + $0x149] sm:$0xff] %vm225_vm1, %v17379_v15  ;;  %v12746_v6 = vpop.f32.mrf.mxu0  ;;  %12810 = vmatmul.mubr.msk.f32.gmra.mxu1 %vm225_vm1, %v15788_v0  ;;  %v3637_v7 = vadd.f32 %v17457_v26, %v3087_v14  ;;  %v17458_v16 = vld [vmem:[#allocation81_spill] sm:$0xff]  ;;  %v5975_v41 = vld [vmem:[#allocation3 + $0x141] sm:$0xff] }
 0x2b5   : > { %12884 = vmatmul.mubr.msk.f32.gmra.mxu0 %vm225_vm1, %v5972_v59  ;;  %5378 = vst.msk [vmem:[#allocation3 + $0x161] sm:$0xff] %vm225_vm1, %v5330_v45  ;;  %v5329_v52 = vmax.f32 %v5281_v9, 0.0  ;;  %v5284_v60 = vadd.f32 %v12746_v6, %v4734_v13  ;;  %12812 = vmatprep.mubr.msk.f32.mxu1 %vm225_vm1, %v15799_v21  ;;  %v4736_v31 = vadd.f32 %v12675_v55, %v17458_v16  ;;  %v4682_v9 = vpop.f32.mrf.mxu1  ;;  %v17459_v4 = vld [vmem:[#allocation83_spill] sm:$0xff] }
 0x2b6   : > { %12886 = vmatprep.mubr.msk.f32.mxu0 %vm225_vm1, %v5973_v3  ;;  %5408 = vst.msk [vmem:[#allocation3 + $0x161] sm:$0xff] %vm225_vm1, %v17379_v15  ;;  %v5212_v42 = vpop.f32.mrf.mxu0  ;;  %v15809_v19 = vld [vmem:[#allocation3 + $0x138] sm:$0xff]  ;;  %v15817_v3 = vld [vmem:[#allocation3 + $0x140] sm:$0xff]  ;;  %v4735_v13 = vadd.f32 %v4672_v57, %v4185_v35  ;;  %v4187_v45 = vadd.f32 %v15366_v33, %v3637_v7  ;;  %v4738_v57 = vadd.f32 %v12678_v62, %v17459_v4 }
 0x2b7   : > { %v5974_v17 = vld [vmem:[#allocation3 + $0x139] sm:$0xff]  ;;  %5377 = vst.msk [vmem:[#allocation3 + $0x159] sm:$0xff] %vm225_vm1, %v5329_v52  ;;  %v5332_v22 = vmax.f32 %v5284_v60, 0.0  ;;  %v5283_v59 = vadd.f32 %v5212_v42, %v4733_v30  ;;  %v15827_v30 = vld [vmem:[%s17181_s4] ss:$0 sm:$0xff]  ;;  %v12757_v7 = vpop.f32.mrf.mxu1 }
 0x2b8   : > { %v12749_v8 = vpop.f32.mrf.mxu0  ;;  %12813 = vmatmul.mubr.msk.f32.gmra.mxu1 %vm225_vm1, %v15809_v19  ;;  %v4737_v16 = vadd.f32 %v4682_v9, %v4187_v45 }
 0x2b9   : > { %12887 = vmatmul.mubr.msk.f32.gmra.mxu0 %vm225_vm1, %v5974_v17  ;;  %5380 = vst.msk [vmem:[#allocation3 + $0x171] sm:$0xff] %vm225_vm1, %v5332_v22  ;;  %v5331_v14 = vmax.f32 %v5283_v59, 0.0  ;;  %v5286_v55 = vadd.f32 %v12749_v8, %v4736_v31  ;;  %12815 = vmatprep.mubr.msk.f32.mxu1 %vm225_vm1, %v15817_v3  ;;  %v5904_v22 = vadd.f32 %v12757_v7, %v15827_v30 }
 0x2ba   : > { %12889 = vmatprep.mubr.msk.f32.mxu0 %vm225_vm1, %v5975_v41  ;;  %v5222_v6 = vpop.f32.mrf.mxu0  ;;  %v5977_v26 = vld [vmem:[#allocation3 + $0x151] sm:$0xff] }
 0x2bb   : > { %5379 = vst.msk [vmem:[#allocation3 + $0x169] sm:$0xff] %vm225_vm1, %v5331_v14  ;;  %v5334_v33 = vmax.f32 %v5286_v55, 0.0  ;;  %v5285_v35 = vadd.f32 %v5222_v6, %v4735_v13  ;;  %v15831_v52 = vld [vmem:[#allocation3 + $0x148] sm:$0xff]  ;;  %v15833_v42 = vld [vmem:[#allocation3 + $0x150] sm:$0xff] }
 0x2bc   : > { %v5976_v60 = vld [vmem:[#allocation3 + $0x149] sm:$0xff]  ;;  %v12752_v17 = vpop.f32.mrf.mxu0  ;;  %12816 = vmatmul.mubr.msk.f32.gmra.mxu1 %vm225_vm1, %v15831_v52 }
 0x2bd   : > { %12890 = vmatmul.mubr.msk.f32.gmra.mxu0 %vm225_vm1, %v5976_v60  ;;  %5382 = vst.msk [vmem:[#allocation3 + $0x181] sm:$0xff] %vm225_vm1, %v5334_v33  ;;  %v5333_v62 = vmax.f32 %v5285_v35, 0.0  ;;  %v5288_v31 = vadd.f32 %v12752_v17, %v4738_v57  ;;  %12818 = vmatprep.mubr.msk.f32.mxu1 %vm225_vm1, %v15833_v42  ;;  %v5979_v13 = vld [vmem:[#allocation3 + $0x161] sm:$0xff] }
 0x2be   : > { %12892 = vmatprep.mubr.msk.f32.mxu0 %vm225_vm1, %v5977_v26  ;;  %v5232_v59 = vpop.f32.mrf.mxu0  ;;  %v15843_v8 = vld [vmem:[#allocation3 + $0x158] sm:$0xff]  ;;  %v15851_v55 = vld [vmem:[#allocation3 + $0x160] sm:$0xff] }
 0x2bf   : > { %v5978_v41 = vld [vmem:[#allocation3 + $0x159] sm:$0xff]  ;;  %5381 = vst.msk [vmem:[#allocation3 + $0x179] sm:$0xff] %vm225_vm1, %v5333_v62  ;;  %v5336_v14 = vmax.f32 %v5288_v31, 0.0  ;;  %v5287_v45 = vadd.f32 %v5232_v59, %v4737_v16  ;;  %v6453_v17 = vld [vmem:[#allocation3 + $0x2] sm:$0xff]  ;;  %v15888_v62 = vld [vmem:[%s17180_s3 + $0x18] sm:$0xf] }
 0x2c0   : > { %5409 = vst.msk [vmem:[#allocation3 + $0x179] sm:$0xff] %vm225_vm1, %v17379_v15  ;;  %12819 = vmatmul.mubr.msk.f32.gmra.mxu1 %vm225_vm1, %v15843_v8  ;;  %v12831_v9 = vpop.f32.mrf.mxu0  ;;  %v5981_v60 = vld [vmem:[#allocation3 + $0x171] sm:$0xff]  ;;  %v13428_v31 = vld [vmem:[%s17180_s3 + $0x10] sm:$0xf] }
 0x2c1   : > { %12893 = vmatmul.mubr.msk.f32.gmra.mxu0 %vm225_vm1, %v5978_v41  ;;  %5384 = vst.msk [vmem:[#allocation3 + $0x191] sm:$0xff] %vm225_vm1, %v5336_v14  ;;  %v5335_v6 = vmax.f32 %v5287_v45, 0.0  ;;  %12821 = vmatprep.mubr.msk.f32.mxu1 %vm225_vm1, %v15851_v55  ;;  %v15857_v4 = vadd.f32 %v12831_v9, %v5904_v22  ;;  %v6455_v16 = vld [vmem:[#allocation3 + $0x12] sm:$0xff]  ;;  %v16106_v22 = vld [vmem:[#allocation3 + $0x122] sm:$0xff] }
 0x2c2   : > { %12895 = vmatprep.mubr.msk.f32.mxu0 %vm225_vm1, %v5979_v13  ;;  %5389 = vst.msk [vmem:[#allocation3 + $0x198] sm:$0xff] %vm225_vm1, %v17379_v15  ;;  %v15861_v57 = vld [vmem:[#allocation3 + $0x168] sm:$0xff]  ;;  %v15869_v35 = vld [vmem:[#allocation3 + $0x170] sm:$0xff]  ;;  %v7489_v9 = vld [vmem:[#allocation3 + $0x19] sm:$0xff] }
 0x2c3   : > { %v5980_v33 = vld [vmem:[#allocation3 + $0x169] sm:$0xff]  ;;  %5410 = vst.msk [vmem:[#allocation3 + $0x191] sm:$0xff] %vm225_vm1, %v17379_v15  ;;  %5383 = vst.msk [vmem:[#allocation3 + $0x189] sm:$0xff] %vm225_vm1, %v5335_v6  ;;  %v16178_v6 = vpop.f32.mrf.mxu1 }
 0x2c4   : > { %12822 = vmatmul.mubr.msk.f32.gmra.mxu1 %vm225_vm1, %v15861_v57  ;;  %v6454_v15 = vld [vmem:[#allocation3 + $0xa] sm:$0xff]  ;;  %v16154_v59 = vld [vmem:[#allocation3 + $0x162] sm:$0xff] }
 0x2c5   : > { %12896 = vmatmul.mubr.msk.f32.gmra.mxu0 %vm225_vm1, %v5980_v33  ;;  %12824 = vmatprep.mubr.msk.f32.mxu1 %vm225_vm1, %v15869_v35  ;;  %v16180_v33 = vpop.f32.mrf.mxu0 }
 0x2c6   : > { %12898 = vmatprep.mubr.msk.f32.mxu0 %vm225_vm1, %v5981_v60  ;;  %v16188_v60 = vld [vmem:[%s17180_s3 + $0x20] sm:$0xf] }
 0x2c7   : > { %v15874_v26 = vld [vmem:[#allocation3 + $0x178] sm:$0xff]  ;;  %v7016_v41 = vld [vmem:[#allocation3 + $0x180] sm:$0xff] }
 0x2c8   : > { %v5982_v7 = vld [vmem:[#allocation3 + $0x179] sm:$0xff]  ;;  %12825 = vmatmul.mubr.msk.f32.gmra.mxu1 %vm225_vm1, %v15874_v26 }
 0x2c9   : > { %12899 = vmatmul.mubr.msk.f32.gmra.mxu0 %vm225_vm1, %v5982_v7  ;;  %12903 = vmatprep.mubr.msk.f32.mxu1 %vm225_vm1, %v6453_v17  ;;  %v16165_v13 = vld [vmem:[#allocation3 + $0x172] sm:$0xff]  ;;  %v16170_v45 = vld [vmem:[#allocation3 + $0x17a] sm:$0xff] }
 0x2ca   : > { %12977 = vmatprep.mubr.msk.f32.mxu0 %vm225_vm1, %v15409_v53  ;;  %v15899_v53 = vld [vmem:[#allocation3 + $0x1a] sm:$0xff]  ;;  %v7017_v14 = vld [vmem:[#allocation3 + $0x188] sm:$0xff]  ;;  %v16197_v7 = vld [vmem:[#allocation3 + $0x31] sm:$0xff] }
 0x2cc   : > { %12904 = vmatmul.mubr.msk.f32.vlgmr.msra.gmra.mxu1 %vm225_vm1, %v6454_v15 }
 0x2cd   : > { %12978 = vmatmul.mubr.msk.f32.vlgmr.msra.gmra.mxu0 %vm225_vm1, %v15411_v51  ;;  %13050 = vmatpush3.msk.msra.mxu1 %vm532_vm0, %v13428_v31  ;;  %v15907_v51 = vld [vmem:[#allocation3 + $0x22] sm:$0xff] }
 0x2ce   : > { %12906 = vmatprep.mubr.msk.f32.mxu1 %vm225_vm1, %v6455_v16  ;;  %12980 = vmatprep.mubr.msk.f32.mxu0 %vm225_vm1, %v15434_v49  ;;  %v15913_v49 = vld [vmem:[#allocation3 + $0x2a] sm:$0xff]  ;;  %v16206_v16 = vld [vmem:[#allocation3 + $0x39] sm:$0xff] }
 0x2cf   : > { %13124 = vmatpush3.msk.msra.mxu0 %vm532_vm0, %v15739_v25  ;;  %13197 = vmatprep.subr.msk.mxu1 %vm532_vm0, %v15888_v62  ;;  %v15919_v25 = vld [vmem:[#allocation3 + $0x32] sm:$0xff] }
 0x2d0   : > { %12907 = vmatmul.mubr.msk.f32.gmra.mxu1 %vm225_vm1, %v15899_v53 }
 0x2d1   : > { %12981 = vmatmul.mubr.msk.f32.gmra.mxu0 %vm225_vm1, %v15436_v11  ;;  %12909 = vmatprep.mubr.msk.f32.mxu1 %vm225_vm1, %v15907_v51  ;;  %v15925_v11 = vld [vmem:[#allocation3 + $0x3a] sm:$0xff] }
 0x2d2   : > { %12983 = vmatprep.mubr.msk.f32.mxu0 %vm225_vm1, %v15449_v12  ;;  %v15931_v12 = vld [vmem:[#allocation3 + $0x42] sm:$0xff] }
 0x2d4   : > { %12910 = vmatmul.mubr.msk.f32.gmra.mxu1 %vm225_vm1, %v15913_v49 }
 0x2d5   : > { %12984 = vmatmul.mubr.msk.f32.gmra.mxu0 %vm225_vm1, %v15461_v58  ;;  %12912 = vmatprep.mubr.msk.f32.mxu1 %vm225_vm1, %v15919_v25  ;;  %v15937_v58 = vld [vmem:[#allocation3 + $0x4a] sm:$0xff] }
 0x2d6   : > { %12986 = vmatprep.mubr.msk.f32.mxu0 %vm225_vm1, %v15473_v29  ;;  %v15943_v29 = vld [vmem:[#allocation3 + $0x52] sm:$0xff] }
 0x2d8   : > { %12913 = vmatmul.mubr.msk.f32.gmra.mxu1 %vm225_vm1, %v15925_v11 }
 0x2d9   : > { %12987 = vmatmul.mubr.msk.f32.gmra.mxu0 %vm225_vm1, %v15483_v44  ;;  %12915 = vmatprep.mubr.msk.f32.mxu1 %vm225_vm1, %v15931_v12  ;;  %v15949_v44 = vld [vmem:[#allocation3 + $0x5a] sm:$0xff] }
 0x2da   : > { %12989 = vmatprep.mubr.msk.f32.mxu0 %vm225_vm1, %v15498_v38  ;;  %v15955_v38 = vld [vmem:[#allocation3 + $0x62] sm:$0xff] }
 0x2dc   : > { %12916 = vmatmul.mubr.msk.f32.gmra.mxu1 %vm225_vm1, %v15937_v58 }
 0x2dd   : > { %12990 = vmatmul.mubr.msk.f32.gmra.mxu0 %vm225_vm1, %v15500_v34  ;;  %12918 = vmatprep.mubr.msk.f32.mxu1 %vm225_vm1, %v15943_v29  ;;  %v15961_v34 = vld [vmem:[#allocation3 + $0x6a] sm:$0xff] }
 0x2de   : > { %12992 = vmatprep.mubr.msk.f32.mxu0 %vm225_vm1, %v15513_v39  ;;  %v15967_v39 = vld [vmem:[#allocation3 + $0x72] sm:$0xff] }
 0x2e0   : > { %12919 = vmatmul.mubr.msk.f32.gmra.mxu1 %vm225_vm1, %v15949_v44 }
 0x2e1   : > { %12993 = vmatmul.mubr.msk.f32.gmra.mxu0 %vm225_vm1, %v15525_v10  ;;  %12921 = vmatprep.mubr.msk.f32.mxu1 %vm225_vm1, %v15955_v38  ;;  %v15973_v10 = vld [vmem:[#allocation3 + $0x7a] sm:$0xff] }
 0x2e2   : > { %12995 = vmatprep.mubr.msk.f32.mxu0 %vm225_vm1, %v15537_v1  ;;  %v15979_v1 = vld [vmem:[#allocation3 + $0x82] sm:$0xff] }
 0x2e4   : > { %12922 = vmatmul.mubr.msk.f32.gmra.mxu1 %vm225_vm1, %v15961_v34 }
 0x2e5   : > { %12996 = vmatmul.mubr.msk.f32.gmra.mxu0 %vm225_vm1, %v15547_v50  ;;  %12924 = vmatprep.mubr.msk.f32.mxu1 %vm225_vm1, %v15967_v39  ;;  %v15985_v50 = vld [vmem:[#allocation3 + $0x8a] sm:$0xff] }
 0x2e6   : > { %12998 = vmatprep.mubr.msk.f32.mxu0 %vm225_vm1, %v15562_v37  ;;  %v15991_v37 = vld [vmem:[#allocation3 + $0x92] sm:$0xff] }
 0x2e8   : > { %12925 = vmatmul.mubr.msk.f32.gmra.mxu1 %vm225_vm1, %v15973_v10 }
 0x2e9   : > { %12999 = vmatmul.mubr.msk.f32.gmra.mxu0 %vm225_vm1, %v15564_v61  ;;  %12927 = vmatprep.mubr.msk.f32.mxu1 %vm225_vm1, %v15979_v1  ;;  %v15997_v61 = vld [vmem:[#allocation3 + $0x9a] sm:$0xff] }
 0x2ea   : > { %13001 = vmatprep.mubr.msk.f32.mxu0 %vm225_vm1, %v15577_v48  ;;  %v16003_v48 = vld [vmem:[#allocation3 + $0xa2] sm:$0xff] }
 0x2ec   : > { %12928 = vmatmul.mubr.msk.f32.gmra.mxu1 %vm225_vm1, %v15985_v50 }
 0x2ed   : > { %13002 = vmatmul.mubr.msk.f32.gmra.mxu0 %vm225_vm1, %v15589_v40  ;;  %12930 = vmatprep.mubr.msk.f32.mxu1 %vm225_vm1, %v15991_v37  ;;  %v16009_v40 = vld [vmem:[#allocation3 + $0xaa] sm:$0xff] }
 0x2ee   : > { %13004 = vmatprep.mubr.msk.f32.mxu0 %vm225_vm1, %v15601_v32  ;;  %v16015_v32 = vld [vmem:[#allocation3 + $0xb2] sm:$0xff] }
 0x2f0   : > { %12931 = vmatmul.mubr.msk.f32.gmra.mxu1 %vm225_vm1, %v15997_v61 }
 0x2f1   : > { %13005 = vmatmul.mubr.msk.f32.gmra.mxu0 %vm225_vm1, %v15611_v23  ;;  %12933 = vmatprep.mubr.msk.f32.mxu1 %vm225_vm1, %v16003_v48  ;;  %v16021_v23 = vld [vmem:[#allocation3 + $0xba] sm:$0xff] }
 0x2f2   : > { %13007 = vmatprep.mubr.msk.f32.mxu0 %vm225_vm1, %v15626_v24  ;;  %v16027_v24 = vld [vmem:[#allocation3 + $0xc2] sm:$0xff] }
 0x2f4   : > { %12934 = vmatmul.mubr.msk.f32.gmra.mxu1 %vm225_vm1, %v16009_v40 }
 0x2f5   : > { %13008 = vmatmul.mubr.msk.f32.gmra.mxu0 %vm225_vm1, %v15628_v5  ;;  %12936 = vmatprep.mubr.msk.f32.mxu1 %vm225_vm1, %v16015_v32  ;;  %v16033_v5 = vld [vmem:[#allocation3 + $0xca] sm:$0xff] }
 0x2f6   : > { %13010 = vmatprep.mubr.msk.f32.mxu0 %vm225_vm1, %v15645_v27  ;;  %v16039_v27 = vld [vmem:[#allocation3 + $0xd2] sm:$0xff] }
 0x2f8   : > { %12937 = vmatmul.mubr.msk.f32.gmra.mxu1 %vm225_vm1, %v16021_v23 }
 0x2f9   : > { %13011 = vmatmul.mubr.msk.f32.gmra.mxu0 %vm225_vm1, %v15658_v20  ;;  %12939 = vmatprep.mubr.msk.f32.mxu1 %vm225_vm1, %v16027_v24  ;;  %v16045_v20 = vld [vmem:[#allocation3 + $0xda] sm:$0xff] }
 0x2fa   : > { %13013 = vmatprep.mubr.msk.f32.mxu0 %vm225_vm1, %v15671_v54  ;;  %v16051_v54 = vld [vmem:[#allocation3 + $0xe2] sm:$0xff] }
 0x2fc   : > { %12940 = vmatmul.mubr.msk.f32.gmra.mxu1 %vm225_vm1, %v16033_v5 }
 0x2fd   : > { %13014 = vmatmul.mubr.msk.f32.gmra.mxu0 %vm225_vm1, %v15682_v18  ;;  %12942 = vmatprep.mubr.msk.f32.mxu1 %vm225_vm1, %v16039_v27  ;;  %v16057_v18 = vld [vmem:[#allocation3 + $0xea] sm:$0xff] }
 0x2fe   : > { %13016 = vmatprep.mubr.msk.f32.mxu0 %vm225_vm1, %v15697_v46  ;;  %v16063_v46 = vld [vmem:[#allocation3 + $0xf2] sm:$0xff] }
 0x300   : > { %12943 = vmatmul.mubr.msk.f32.gmra.mxu1 %vm225_vm1, %v16045_v20 }
 0x301   : > { %13017 = vmatmul.mubr.msk.f32.gmra.mxu0 %vm225_vm1, %v15699_v56  ;;  %12945 = vmatprep.mubr.msk.f32.mxu1 %vm225_vm1, %v16051_v54  ;;  %v16069_v56 = vld [vmem:[#allocation3 + $0xfa] sm:$0xff] }
 0x302   : > { %13019 = vmatprep.mubr.msk.f32.mxu0 %vm225_vm1, %v15715_v2  ;;  %v16075_v2 = vld [vmem:[#allocation3 + $0x102] sm:$0xff] }
 0x304   : > { %12946 = vmatmul.mubr.msk.f32.gmra.mxu1 %vm225_vm1, %v16057_v18 }
 0x305   : > { %13020 = vmatmul.mubr.msk.f32.gmra.mxu0 %vm225_vm1, %v15728_v43  ;;  %12948 = vmatprep.mubr.msk.f32.mxu1 %vm225_vm1, %v16063_v46  ;;  %v16084_v43 = vld [vmem:[%s17180_s3 + $0x1c] sm:$0xf] }
 0x306   : > { %13022 = vmatprep.mubr.msk.f32.mxu0 %vm225_vm1, %v15746_v28  ;;  %13271 = vmatprep.subr.msk.mxu0 %vm532_vm0, %v16084_v43  ;;  %v16088_v28 = vld [vmem:[#allocation3 + $0x10a] sm:$0xff] }
 0x308   : > { %12949 = vmatmul.mubr.msk.f32.gmra.mxu1 %vm225_vm1, %v16069_v56 }
 0x309   : > { %13023 = vmatmul.mubr.msk.f32.gmra.mxu0 %vm225_vm1, %v15759_v63  ;;  %12951 = vmatprep.mubr.msk.f32.mxu1 %vm225_vm1, %v16075_v2  ;;  %v16094_v63 = vld [vmem:[#allocation3 + $0x112] sm:$0xff] }
 0x30a   : > { %13025 = vmatprep.mubr.msk.f32.mxu0 %vm225_vm1, %v15772_v47  ;;  %v16100_v47 = vld [vmem:[#allocation3 + $0x11a] sm:$0xff] }
 0x30c   : > { %12952 = vmatmul.mubr.msk.f32.gmra.mxu1 %vm225_vm1, %v16088_v28 }
 0x30d   : > { %13026 = vmatmul.mubr.msk.f32.gmra.mxu0 %vm225_vm1, %v15774_v36  ;;  %12954 = vmatprep.mubr.msk.f32.mxu1 %vm225_vm1, %v16094_v63  ;;  %v16112_v36 = vld [vmem:[#allocation3 + $0x12a] sm:$0xff] }
 0x30e   : > { %13028 = vmatprep.mubr.msk.f32.mxu0 %vm225_vm1, %v15788_v0  ;;  %v16118_v0 = vld [vmem:[#allocation3 + $0x132] sm:$0xff] }
 0x310   : > { %12955 = vmatmul.mubr.msk.f32.gmra.mxu1 %vm225_vm1, %v16100_v47 }
 0x311   : > { %13029 = vmatmul.mubr.msk.f32.gmra.mxu0 %vm225_vm1, %v15799_v21  ;;  %12957 = vmatprep.mubr.msk.f32.mxu1 %vm225_vm1, %v16106_v22  ;;  %v16124_v21 = vld [vmem:[#allocation3 + $0x13a] sm:$0xff] }
 0x312   : > { %13031 = vmatprep.mubr.msk.f32.mxu0 %vm225_vm1, %v15809_v19  ;;  %v16130_v19 = vld [vmem:[#allocation3 + $0x142] sm:$0xff] }
 0x314   : > { %12958 = vmatmul.mubr.msk.f32.gmra.mxu1 %vm225_vm1, %v16112_v36 }
 0x315   : > { %13032 = vmatmul.mubr.msk.f32.gmra.mxu0 %vm225_vm1, %v15817_v3  ;;  %12960 = vmatprep.mubr.msk.f32.mxu1 %vm225_vm1, %v16118_v0  ;;  %v16136_v3 = vld [vmem:[#allocation3 + $0x14a] sm:$0xff] }
 0x316   : > { %13034 = vmatprep.mubr.msk.f32.mxu0 %vm225_vm1, %v15831_v52  ;;  %v16142_v52 = vld [vmem:[#allocation3 + $0x152] sm:$0xff] }
 0x318   : > { %12961 = vmatmul.mubr.msk.f32.gmra.mxu1 %vm225_vm1, %v16124_v21 }
 0x319   : > { %13035 = vmatmul.mubr.msk.f32.gmra.mxu0 %vm225_vm1, %v15833_v42  ;;  %12963 = vmatprep.mubr.msk.f32.mxu1 %vm225_vm1, %v16130_v19  ;;  %v16148_v42 = vld [vmem:[#allocation3 + $0x15a] sm:$0xff] }
 0x31a   : > { %13037 = vmatprep.mubr.msk.f32.mxu0 %vm225_vm1, %v15843_v8  ;;  %v16160_v8 = vld [vmem:[#allocation3 + $0x16a] sm:$0xff] }
 0x31c   : > { %12964 = vmatmul.mubr.msk.f32.gmra.mxu1 %vm225_vm1, %v16136_v3 }
 0x31d   : > { %13038 = vmatmul.mubr.msk.f32.gmra.mxu0 %vm225_vm1, %v15851_v55  ;;  %12966 = vmatprep.mubr.msk.f32.mxu1 %vm225_vm1, %v16142_v52  ;;  %v7018_v55 = vld [vmem:[#allocation3 + $0x190] sm:$0xff] }
 0x31e   : > { %13040 = vmatprep.mubr.msk.f32.mxu0 %vm225_vm1, %v15861_v57  ;;  %v7490_v57 = vld [vmem:[#allocation3 + $0x21] sm:$0xff] }
 0x320   : > { %12967 = vmatmul.mubr.msk.f32.gmra.mxu1 %vm225_vm1, %v16148_v42 }
 0x321   : > { %13041 = vmatmul.mubr.msk.f32.gmra.mxu0 %vm225_vm1, %v15869_v35  ;;  %12969 = vmatprep.mubr.msk.f32.mxu1 %vm225_vm1, %v16154_v59  ;;  %v7491_v35 = vld [vmem:[#allocation3 + $0x29] sm:$0xff] }
 0x322   : > { %13043 = vmatprep.mubr.msk.f32.mxu0 %vm225_vm1, %v15874_v26 }
 0x324   : > { %12970 = vmatmul.mubr.msk.f32.gmra.mxu1 %vm225_vm1, %v16160_v8 }
 0x325   : > { %13044 = vmatmul.mubr.msk.f32.gmra.mxu0 %vm225_vm1, %v7016_v41  ;;  %12972 = vmatprep.mubr.msk.f32.mxu1 %vm225_vm1, %v16165_v13 }
 0x326   : > { %13046 = vmatprep.mubr.msk.f32.mxu0 %vm225_vm1, %v7017_v14  ;;  %v16226_v14 = vld [vmem:[#allocation3 + $0x59] sm:$0xff] }
 0x328   : > { %12973 = vmatmul.mubr.msk.f32.gmra.mxu1 %vm225_vm1, %v16170_v45 }
 0x329   : > { %13047 = vmatmul.mubr.msk.f32.gmra.mxu0 %vm225_vm1, %v7018_v55  ;;  %13051 = vmatprep.mubr.msk.f32.mxu1 %vm225_vm1, %v7489_v9  ;;  %v16229_v9 = vld [vmem:[#allocation3 + $0x51] sm:$0xff] }
 0x32a   : > { %13125 = vmatprep.mubr.msk.f32.mxu0 %vm225_vm1, %v15899_v53  ;;  %v16212_v53 = vld [vmem:[#allocation3 + $0x41] sm:$0xff] }
 0x32c   : > { %13052 = vmatmul.mubr.msk.f32.vlgmr.msra.gmra.mxu1 %vm225_vm1, %v7490_v57 }
 0x32d   : > { %13126 = vmatmul.mubr.msk.f32.vlgmr.msra.gmra.mxu0 %vm225_vm1, %v15907_v51  ;;  %13198 = vmatpush3.msk.msra.mxu1 %vm532_vm0, %v15888_v62 }
 0x32e   : > { %13128 = vmatprep.mubr.msk.f32.mxu0 %vm225_vm1, %v15913_v49  ;;  %13054 = vmatprep.mubr.msk.f32.mxu1 %vm225_vm1, %v7491_v35 }
 0x32f   : > { %13272 = vmatpush3.msk.msra.mxu0 %vm532_vm0, %v16084_v43  ;;  %v12760_v17 = vpop.f32.mrf.mxu1  ;;  %13345 = vmatprep.subr.msk.mxu1 %vm532_vm0, %v16188_v60 }
 0x330   : > { %v12834_v26 = vpop.f32.mrf.mxu0  ;;  %v5905_v15 = vadd.f32 %v12760_v17, %v15827_v30  ;;  %13055 = vmatmul.mubr.msk.f32.gmra.mxu1 %vm225_vm1, %v16197_v7 }
 0x331   : > { %13129 = vmatmul.mubr.msk.f32.gmra.mxu0 %vm225_vm1, %v15919_v25  ;;  %v5690_v62 = vpop.f32.mrf.mxu1  ;;  %13057 = vmatprep.mubr.msk.f32.mxu1 %vm225_vm1, %v16206_v16  ;;  %v16220_v25 = vld [vmem:[#allocation3 + $0x49] sm:$0xff] }
 0x332   : > { %v6208_v31 = vpop.f32.mrf.mxu0  ;;  %13131 = vmatprep.mubr.msk.f32.mxu0 %vm225_vm1, %v15925_v11  ;;  %v16214_v51 = vadd.f32 %v12834_v26, %v5905_v15 }
 0x333   : > { %v16245_v31 = vld [vmem:[#allocation3 + $0x61] sm:$0xff] }
 0x334   : > { %v12763_v49 = vpop.f32.mrf.mxu1  ;;  %13058 = vmatmul.mubr.msk.f32.gmra.mxu1 %vm225_vm1, %v16212_v53 }
 0x335   : > { %v12837_v43 = vpop.f32.mrf.mxu0  ;;  %13132 = vmatmul.mubr.msk.f32.gmra.mxu0 %vm225_vm1, %v15931_v12  ;;  %13060 = vmatprep.mubr.msk.f32.mxu1 %vm225_vm1, %v16220_v25 }
 0x336   : > { %13134 = vmatprep.mubr.msk.f32.mxu0 %vm225_vm1, %v15937_v58  ;;  %v5699_v11 = vpop.f32.mrf.mxu1 }
 0x337   : > { %v6217_v41 = vpop.f32.mrf.mxu0  ;;  %v5906_v55 = vadd.f32 %v15827_v30, %v5699_v11 }
 0x338   : > { %v12766_v57 = vpop.f32.mrf.mxu1  ;;  %13061 = vmatmul.mubr.msk.f32.gmra.mxu1 %vm225_vm1, %v16229_v9 }
 0x339   : > { %v12840_v35 = vpop.f32.mrf.mxu0  ;;  %13135 = vmatmul.mubr.msk.f32.gmra.mxu0 %vm225_vm1, %v15943_v29  ;;  %v16235_v12 = vadd.f32 %v6217_v41, %v5906_v55  ;;  %v5908_v58 = vadd.f32 %v12766_v57, %v15827_v30  ;;  %13063 = vmatprep.mubr.msk.f32.mxu1 %vm225_vm1, %v16226_v14  ;;  %v16260_v41 = vld [vmem:[#allocation3 + $0x71] sm:$0xff] }
 0x33a   : > { %13137 = vmatprep.mubr.msk.f32.mxu0 %vm225_vm1, %v15949_v44  ;;  %v5708_v17 = vpop.f32.mrf.mxu1  ;;  %v16251_v44 = vld [vmem:[#allocation3 + $0x69] sm:$0xff] }
 0x33b   : > { %v6226_v26 = vpop.f32.mrf.mxu0  ;;  %v16242_v15 = vadd.f32 %v12840_v35, %v5908_v58  ;;  %v5907_v62 = vadd.f32 %v15827_v30, %v5708_v17  ;;  %v16268_v17 = vld [vmem:[#allocation3 + $0x79] sm:$0xff] }
 0x33c   : > { %v12769_v49 = vpop.f32.mrf.mxu1  ;;  %13064 = vmatmul.mubr.msk.f32.gmra.mxu1 %vm225_vm1, %v16245_v31 }
 0x33d   : > { %v12843_v29 = vpop.f32.mrf.mxu0  ;;  %13138 = vmatmul.mubr.msk.f32.gmra.mxu0 %vm225_vm1, %v15955_v38  ;;  %v16253_v43 = vadd.f32 %v6226_v26, %v5907_v62  ;;  %v5909_v11 = vadd.f32 %v12769_v49, %v15827_v30  ;;  %13066 = vmatprep.mubr.msk.f32.mxu1 %vm225_vm1, %v16251_v44  ;;  %v16274_v62 = vld [vmem:[#allocation3 + $0x89] sm:$0xff] }
 0x33e   : > { %13140 = vmatprep.mubr.msk.f32.mxu0 %vm225_vm1, %v15961_v34  ;;  %v5718_v55 = vpop.f32.mrf.mxu1 }
 0x33f   : > { %v6236_v57 = vpop.f32.mrf.mxu0  ;;  %v16262_v35 = vadd.f32 %v12843_v29, %v5909_v11  ;;  %v16277_v29 = vld [vmem:[#allocation3 + $0x81] sm:$0xff] }
 0x340   : > { %v12772_v58 = vpop.f32.mrf.mxu1  ;;  %13067 = vmatmul.mubr.msk.f32.gmra.mxu1 %vm225_vm1, %v16260_v41  ;;  %17461 = vst [vmem:[#allocation51_spill] sm:$0xff] %v16277_v29 }
 0x341   : > { %17460 = vst [vmem:[#allocation18_spill] sm:$0xff] %v16262_v35  ;;  %v12846_v38 = vpop.f32.mrf.mxu0  ;;  %13141 = vmatmul.mubr.msk.f32.gmra.mxu0 %vm225_vm1, %v15967_v39  ;;  %13069 = vmatprep.mubr.msk.f32.mxu1 %vm225_vm1, %v16268_v17 }
 0x342   : > { %13143 = vmatprep.mubr.msk.f32.mxu0 %vm225_vm1, %v15973_v10  ;;  %v5727_v34 = vpop.f32.mrf.mxu1 }
 0x343   : > { %v6245_v26 = vpop.f32.mrf.mxu0  ;;  %v5910_v49 = vadd.f32 %v15827_v30, %v5727_v34 }
 0x344   : > { %v12775_v11 = vpop.f32.mrf.mxu1  ;;  %13070 = vmatmul.mubr.msk.f32.gmra.mxu1 %vm225_vm1, %v16277_v29  ;;  %v16293_v29 = vld [vmem:[#allocation3 + $0x91] sm:$0xff] }
 0x345   : > { %v12849_v55 = vpop.f32.mrf.mxu0  ;;  %13144 = vmatmul.mubr.msk.f32.gmra.mxu0 %vm225_vm1, %v15979_v1  ;;  %v16283_v39 = vadd.f32 %v6245_v26, %v5910_v49  ;;  %v5912_v10 = vadd.f32 %v12775_v11, %v15827_v30  ;;  %13072 = vmatprep.mubr.msk.f32.mxu1 %vm225_vm1, %v16274_v62  ;;  %v16308_v11 = vld [vmem:[#allocation3 + $0xa1] sm:$0xff] }
 0x346   : > { %13146 = vmatprep.mubr.msk.f32.mxu0 %vm225_vm1, %v15985_v50  ;;  %v5736_v57 = vpop.f32.mrf.mxu1  ;;  %v16299_v50 = vld [vmem:[#allocation3 + $0x99] sm:$0xff] }
 0x347   : > { %v6254_v58 = vpop.f32.mrf.mxu0  ;;  %v16290_v38 = vadd.f32 %v12849_v55, %v5912_v10  ;;  %v5911_v34 = vadd.f32 %v15827_v30, %v5736_v57 }
 0x348   : > { %v12778_v35 = vpop.f32.mrf.mxu1  ;;  %13073 = vmatmul.mubr.msk.f32.gmra.mxu1 %vm225_vm1, %v16293_v29 }
 0x349   : > { %17462 = vst [vmem:[#allocation53_spill] sm:$0xff] %v16290_v38  ;;  %v12852_v1 = vpop.f32.mrf.mxu0  ;;  %13147 = vmatmul.mubr.msk.f32.gmra.mxu0 %vm225_vm1, %v15991_v37  ;;  %v16301_v26 = vadd.f32 %v6254_v58, %v5911_v34  ;;  %v5913_v49 = vadd.f32 %v12778_v35, %v15827_v30  ;;  %13075 = vmatprep.mubr.msk.f32.mxu1 %vm225_vm1, %v16299_v50  ;;  %v16316_v35 = vld [vmem:[#allocation3 + $0xa9] sm:$0xff]  ;;  %v16322_v34 = vld [vmem:[#allocation3 + $0xb9] sm:$0xff] }
 0x34a   : > { %13149 = vmatprep.mubr.msk.f32.mxu0 %vm225_vm1, %v15997_v61  ;;  %v5746_v55 = vpop.f32.mrf.mxu1  ;;  %17464 = vst [vmem:[#allocation21_spill] sm:$0xff] %v16316_v35 }
 0x34b   : > { %v6264_v10 = vpop.f32.mrf.mxu0  ;;  %v16310_v57 = vadd.f32 %v12852_v1, %v5913_v49  ;;  %v16325_v1 = vld [vmem:[#allocation3 + $0xb1] sm:$0xff] }
 0x34c   : > { %v12781_v38 = vpop.f32.mrf.mxu1  ;;  %13076 = vmatmul.mubr.msk.f32.gmra.mxu1 %vm225_vm1, %v16308_v11  ;;  %17465 = vst [vmem:[#allocation52_spill] sm:$0xff] %v16325_v1 }
 0x34d   : > { %17463 = vst [vmem:[#allocation20_spill] sm:$0xff] %v16310_v57  ;;  %v12855_v37 = vpop.f32.mrf.mxu0  ;;  %13150 = vmatmul.mubr.msk.f32.gmra.mxu0 %vm225_vm1, %v16003_v48  ;;  %13078 = vmatprep.mubr.msk.f32.mxu1 %vm225_vm1, %v16316_v35 }
 0x34e   : > { %13152 = vmatprep.mubr.msk.f32.mxu0 %vm225_vm1, %v16009_v40  ;;  %v5755_v61 = vpop.f32.mrf.mxu1 }
 0x34f   : > { %v6273_v58 = vpop.f32.mrf.mxu0  ;;  %v5914_v38 = vadd.f32 %v15827_v30, %v5755_v61 }
 0x350   : > { %v12784_v49 = vpop.f32.mrf.mxu1  ;;  %13079 = vmatmul.mubr.msk.f32.gmra.mxu1 %vm225_vm1, %v16325_v1  ;;  %v16341_v1 = vld [vmem:[#allocation3 + $0xc1] sm:$0xff] }
 0x351   : > { %v12858_v55 = vpop.f32.mrf.mxu0  ;;  %13153 = vmatmul.mubr.msk.f32.gmra.mxu0 %vm225_vm1, %v16015_v32  ;;  %v16331_v48 = vadd.f32 %v6273_v58, %v5914_v38  ;;  %v5916_v40 = vadd.f32 %v12784_v49, %v15827_v30  ;;  %13081 = vmatprep.mubr.msk.f32.mxu1 %vm225_vm1, %v16322_v34  ;;  %v16356_v49 = vld [vmem:[#allocation3 + $0xd1] sm:$0xff] }
 0x352   : > { %13155 = vmatprep.mubr.msk.f32.mxu0 %vm225_vm1, %v16021_v23  ;;  %v5764_v10 = vpop.f32.mrf.mxu1  ;;  %v16347_v23 = vld [vmem:[#allocation3 + $0xc9] sm:$0xff] }
 0x353   : > { %v6282_v37 = vpop.f32.mrf.mxu0  ;;  %v16338_v61 = vadd.f32 %v12858_v55, %v5916_v40  ;;  %v5915_v57 = vadd.f32 %v15827_v30, %v5764_v10 }
 0x354   : > { %v12787_v35 = vpop.f32.mrf.mxu1  ;;  %13082 = vmatmul.mubr.msk.f32.gmra.mxu1 %vm225_vm1, %v16341_v1 }
 0x355   : > { %17466 = vst [vmem:[#allocation55_spill] sm:$0xff] %v16338_v61  ;;  %v12861_v32 = vpop.f32.mrf.mxu0  ;;  %13156 = vmatmul.mubr.msk.f32.gmra.mxu0 %vm225_vm1, %v16027_v24  ;;  %v16349_v58 = vadd.f32 %v6282_v37, %v5915_v57  ;;  %v5917_v38 = vadd.f32 %v12787_v35, %v15827_v30  ;;  %13084 = vmatprep.mubr.msk.f32.mxu1 %vm225_vm1, %v16347_v23  ;;  %v16364_v57 = vld [vmem:[#allocation3 + $0xd9] sm:$0xff]  ;;  %v16370_v37 = vld [vmem:[#allocation3 + $0xe9] sm:$0xff] }
 0x356   : > { %13158 = vmatprep.mubr.msk.f32.mxu0 %vm225_vm1, %v16033_v5  ;;  %v5774_v55 = vpop.f32.mrf.mxu1  ;;  %17468 = vst [vmem:[#allocation19_spill] sm:$0xff] %v16364_v57 }
 0x357   : > { %v6292_v40 = vpop.f32.mrf.mxu0  ;;  %v16358_v10 = vadd.f32 %v12861_v32, %v5917_v38  ;;  %v16373_v32 = vld [vmem:[#allocation3 + $0xe1] sm:$0xff] }
 0x358   : > { %v12790_v61 = vpop.f32.mrf.mxu1  ;;  %13085 = vmatmul.mubr.msk.f32.gmra.mxu1 %vm225_vm1, %v16356_v49  ;;  %17469 = vst [vmem:[#allocation54_spill] sm:$0xff] %v16373_v32 }
 0x359   : > { %17467 = vst [vmem:[#allocation22_spill] sm:$0xff] %v16358_v10  ;;  %v12864_v24 = vpop.f32.mrf.mxu0  ;;  %13159 = vmatmul.mubr.msk.f32.gmra.mxu0 %vm225_vm1, %v16039_v27  ;;  %13087 = vmatprep.mubr.msk.f32.mxu1 %vm225_vm1, %v16364_v57 }
 0x35a   : > { %13161 = vmatprep.mubr.msk.f32.mxu0 %vm225_vm1, %v16045_v20  ;;  %v5783_v5 = vpop.f32.mrf.mxu1 }
 0x35b   : > { %v6301_v35 = vpop.f32.mrf.mxu0  ;;  %v5918_v61 = vadd.f32 %v15827_v30, %v5783_v5 }
 0x35c   : > { %v12793_v38 = vpop.f32.mrf.mxu1  ;;  %13088 = vmatmul.mubr.msk.f32.gmra.mxu1 %vm225_vm1, %v16373_v32  ;;  %v16389_v32 = vld [vmem:[#allocation3 + $0xf1] sm:$0xff] }
 0x35d   : > { %v12867_v55 = vpop.f32.mrf.mxu0  ;;  %13162 = vmatmul.mubr.msk.f32.gmra.mxu0 %vm225_vm1, %v16051_v54  ;;  %v16379_v27 = vadd.f32 %v6301_v35, %v5918_v61  ;;  %v5920_v20 = vadd.f32 %v12793_v38, %v15827_v30  ;;  %13090 = vmatprep.mubr.msk.f32.mxu1 %vm225_vm1, %v16370_v37  ;;  %v16404_v38 = vld [vmem:[#allocation3 + $0x101] sm:$0xff] }
 0x35e   : > { %13164 = vmatprep.mubr.msk.f32.mxu0 %vm225_vm1, %v16057_v18  ;;  %v5792_v40 = vpop.f32.mrf.mxu1  ;;  %v16395_v18 = vld [vmem:[#allocation3 + $0xf9] sm:$0xff] }
 0x35f   : > { %v6310_v24 = vpop.f32.mrf.mxu0  ;;  %v16386_v5 = vadd.f32 %v12867_v55, %v5920_v20  ;;  %v5919_v10 = vadd.f32 %v15827_v30, %v5792_v40 }
 0x360   : > { %v12796_v57 = vpop.f32.mrf.mxu1  ;;  %13091 = vmatmul.mubr.msk.f32.gmra.mxu1 %vm225_vm1, %v16389_v32 }
 0x361   : > { %17470 = vst [vmem:[#allocation57_spill] sm:$0xff] %v16386_v5  ;;  %v12870_v54 = vpop.f32.mrf.mxu0  ;;  %13165 = vmatmul.mubr.msk.f32.gmra.mxu0 %vm225_vm1, %v16063_v46  ;;  %v16397_v35 = vadd.f32 %v6310_v24, %v5919_v10  ;;  %v5921_v61 = vadd.f32 %v12796_v57, %v15827_v30  ;;  %13093 = vmatprep.mubr.msk.f32.mxu1 %vm225_vm1, %v16395_v18  ;;  %v16412_v10 = vld [vmem:[#allocation3 + $0x109] sm:$0xff]  ;;  %v16418_v24 = vld [vmem:[#allocation3 + $0x119] sm:$0xff] }
 0x362   : > { %13167 = vmatprep.mubr.msk.f32.mxu0 %vm225_vm1, %v16069_v56  ;;  %v5802_v55 = vpop.f32.mrf.mxu1  ;;  %17472 = vst [vmem:[#allocation24_spill] sm:$0xff] %v16412_v10 }
 0x363   : > { %v6320_v20 = vpop.f32.mrf.mxu0  ;;  %v16406_v40 = vadd.f32 %v12870_v54, %v5921_v61  ;;  %v16421_v54 = vld [vmem:[#allocation3 + $0x111] sm:$0xff] }
 0x364   : > { %v12799_v5 = vpop.f32.mrf.mxu1  ;;  %13094 = vmatmul.mubr.msk.f32.gmra.mxu1 %vm225_vm1, %v16404_v38  ;;  %17473 = vst [vmem:[#allocation56_spill] sm:$0xff] %v16421_v54 }
 0x365   : > { %17471 = vst [vmem:[#allocation23_spill] sm:$0xff] %v16406_v40  ;;  %v12873_v46 = vpop.f32.mrf.mxu0  ;;  %13168 = vmatmul.mubr.msk.f32.gmra.mxu0 %vm225_vm1, %v16075_v2  ;;  %13096 = vmatprep.mubr.msk.f32.mxu1 %vm225_vm1, %v16412_v10 }
 0x366   : > { %13170 = vmatprep.mubr.msk.f32.mxu0 %vm225_vm1, %v16088_v28  ;;  %v5811_v56 = vpop.f32.mrf.mxu1 }
 0x367   : > { %v6329_v57 = vpop.f32.mrf.mxu0  ;;  %v5922_v5 = vadd.f32 %v15827_v30, %v5811_v56 }
 0x368   : > { %v12802_v61 = vpop.f32.mrf.mxu1  ;;  %13097 = vmatmul.mubr.msk.f32.gmra.mxu1 %vm225_vm1, %v16421_v54  ;;  %v16437_v54 = vld [vmem:[#allocation3 + $0x121] sm:$0xff] }
 0x369   : > { %v12876_v55 = vpop.f32.mrf.mxu0  ;;  %13171 = vmatmul.mubr.msk.f32.gmra.mxu0 %vm225_vm1, %v16094_v63  ;;  %v16427_v2 = vadd.f32 %v6329_v57, %v5922_v5  ;;  %v5924_v28 = vadd.f32 %v12802_v61, %v15827_v30  ;;  %13099 = vmatprep.mubr.msk.f32.mxu1 %vm225_vm1, %v16418_v24  ;;  %v16452_v61 = vld [vmem:[#allocation3 + $0x131] sm:$0xff] }
 0x36a   : > { %13173 = vmatprep.mubr.msk.f32.mxu0 %vm225_vm1, %v16100_v47  ;;  %v5820_v20 = vpop.f32.mrf.mxu1  ;;  %v16443_v47 = vld [vmem:[#allocation3 + $0x129] sm:$0xff] }
 0x36b   : > { %v6338_v46 = vpop.f32.mrf.mxu0  ;;  %v16434_v56 = vadd.f32 %v12876_v55, %v5924_v28  ;;  %v5923_v40 = vadd.f32 %v15827_v30, %v5820_v20 }
 0x36c   : > { %v12805_v10 = vpop.f32.mrf.mxu1  ;;  %13100 = vmatmul.mubr.msk.f32.gmra.mxu1 %vm225_vm1, %v16437_v54 }
 0x36d   : > { %17474 = vst [vmem:[#allocation59_spill] sm:$0xff] %v16434_v56  ;;  %v12879_v63 = vpop.f32.mrf.mxu0  ;;  %13174 = vmatmul.mubr.msk.f32.gmra.mxu0 %vm225_vm1, %v16106_v22  ;;  %v16445_v57 = vadd.f32 %v6338_v46, %v5923_v40  ;;  %v5925_v5 = vadd.f32 %v12805_v10, %v15827_v30  ;;  %13102 = vmatprep.mubr.msk.f32.mxu1 %vm225_vm1, %v16443_v47  ;;  %v16460_v40 = vld [vmem:[#allocation3 + $0x139] sm:$0xff]  ;;  %v16466_v46 = vld [vmem:[#allocation3 + $0x149] sm:$0xff] }
 0x36e   : > { %13176 = vmatprep.mubr.msk.f32.mxu0 %vm225_vm1, %v16112_v36  ;;  %v5830_v55 = vpop.f32.mrf.mxu1  ;;  %17476 = vst [vmem:[#allocation25_spill] sm:$0xff] %v16460_v40 }
 0x36f   : > { %v6348_v28 = vpop.f32.mrf.mxu0  ;;  %v16454_v20 = vadd.f32 %v12879_v63, %v5925_v5  ;;  %v16469_v63 = vld [vmem:[#allocation3 + $0x141] sm:$0xff] }
 0x370   : > { %v12808_v56 = vpop.f32.mrf.mxu1  ;;  %13103 = vmatmul.mubr.msk.f32.gmra.mxu1 %vm225_vm1, %v16452_v61  ;;  %17477 = vst [vmem:[#allocation58_spill] sm:$0xff] %v16469_v63 }
 0x371   : > { %17475 = vst [vmem:[#allocation26_spill] sm:$0xff] %v16454_v20  ;;  %v12882_v22 = vpop.f32.mrf.mxu0  ;;  %13177 = vmatmul.mubr.msk.f32.gmra.mxu0 %vm225_vm1, %v16118_v0  ;;  %13105 = vmatprep.mubr.msk.f32.mxu1 %vm225_vm1, %v16460_v40 }
 0x372   : > { %13179 = vmatprep.mubr.msk.f32.mxu0 %vm225_vm1, %v16124_v21  ;;  %v5839_v36 = vpop.f32.mrf.mxu1 }
 0x373   : > { %v6357_v10 = vpop.f32.mrf.mxu0  ;;  %v5926_v56 = vadd.f32 %v15827_v30, %v5839_v36 }
 0x374   : > { %v12811_v5 = vpop.f32.mrf.mxu1  ;;  %13106 = vmatmul.mubr.msk.f32.gmra.mxu1 %vm225_vm1, %v16469_v63  ;;  %v16485_v63 = vld [vmem:[#allocation3 + $0x151] sm:$0xff] }
 0x375   : > { %v12885_v55 = vpop.f32.mrf.mxu0  ;;  %13180 = vmatmul.mubr.msk.f32.gmra.mxu0 %vm225_vm1, %v16130_v19  ;;  %v16475_v0 = vadd.f32 %v6357_v10, %v5926_v56  ;;  %v5928_v21 = vadd.f32 %v12811_v5, %v15827_v30  ;;  %13108 = vmatprep.mubr.msk.f32.mxu1 %vm225_vm1, %v16466_v46  ;;  %v16500_v5 = vld [vmem:[#allocation3 + $0x161] sm:$0xff] }
 0x376   : > { %13182 = vmatprep.mubr.msk.f32.mxu0 %vm225_vm1, %v16136_v3  ;;  %v5848_v28 = vpop.f32.mrf.mxu1  ;;  %v16491_v3 = vld [vmem:[#allocation3 + $0x159] sm:$0xff] }
 0x377   : > { %v6366_v22 = vpop.f32.mrf.mxu0  ;;  %v16482_v36 = vadd.f32 %v12885_v55, %v5928_v21  ;;  %v5927_v20 = vadd.f32 %v15827_v30, %v5848_v28 }
 0x378   : > { %v12814_v40 = vpop.f32.mrf.mxu1  ;;  %13109 = vmatmul.mubr.msk.f32.gmra.mxu1 %vm225_vm1, %v16485_v63 }
 0x379   : > { %17478 = vst [vmem:[#allocation61_spill] sm:$0xff] %v16482_v36  ;;  %v12888_v19 = vpop.f32.mrf.mxu0  ;;  %13183 = vmatmul.mubr.msk.f32.gmra.mxu0 %vm225_vm1, %v16142_v52  ;;  %v16493_v10 = vadd.f32 %v6366_v22, %v5927_v20  ;;  %v5929_v56 = vadd.f32 %v12814_v40, %v15827_v30  ;;  %13111 = vmatprep.mubr.msk.f32.mxu1 %vm225_vm1, %v16491_v3  ;;  %v16508_v20 = vld [vmem:[#allocation3 + $0x169] sm:$0xff]  ;;  %v16514_v22 = vld [vmem:[#allocation3 + $0x179] sm:$0xff] }
 0x37a   : > { %13185 = vmatprep.mubr.msk.f32.mxu0 %vm225_vm1, %v16148_v42  ;;  %v5858_v55 = vpop.f32.mrf.mxu1  ;;  %17480 = vst [vmem:[#allocation27_spill] sm:$0xff] %v16508_v20  ;;  %17481 = vst [vmem:[#allocation60_spill] sm:$0xff] %v16514_v22 }
 0x37b   : > { %v6376_v21 = vpop.f32.mrf.mxu0  ;;  %v16502_v28 = vadd.f32 %v12888_v19, %v5929_v56  ;;  %v16517_v19 = vld [vmem:[#allocation3 + $0x171] sm:$0xff] }
 0x37c   : > { %v12817_v36 = vpop.f32.mrf.mxu1  ;;  %13112 = vmatmul.mubr.msk.f32.gmra.mxu1 %vm225_vm1, %v16500_v5  ;;  %17482 = vst [vmem:[#allocation63_spill] sm:$0xff] %v16517_v19 }
 0x37d   : > { %17479 = vst [vmem:[#allocation28_spill] sm:$0xff] %v16502_v28  ;;  %v12891_v52 = vpop.f32.mrf.mxu0  ;;  %13186 = vmatmul.mubr.msk.f32.gmra.mxu0 %vm225_vm1, %v16154_v59  ;;  %13114 = vmatprep.mubr.msk.f32.mxu1 %vm225_vm1, %v16508_v20  ;;  %v8052_v20 = vld [vmem:[#allocation3 + $0x182] sm:$0xff] }
 0x37e   : > { %13188 = vmatprep.mubr.msk.f32.mxu0 %vm225_vm1, %v16160_v8  ;;  %v5867_v42 = vpop.f32.mrf.mxu1 }
 0x37f   : > { %v6385_v40 = vpop.f32.mrf.mxu0  ;;  %v5930_v36 = vadd.f32 %v15827_v30, %v5867_v42 }
 0x380   : > { %v12820_v56 = vpop.f32.mrf.mxu1  ;;  %13115 = vmatmul.mubr.msk.f32.gmra.mxu1 %vm225_vm1, %v16517_v19  ;;  %v16533_v19 = vld [vmem:[#allocation3 + $0x181] sm:$0xff] }
 0x381   : > { %v12894_v55 = vpop.f32.mrf.mxu0  ;;  %13189 = vmatmul.mubr.msk.f32.gmra.mxu0 %vm225_vm1, %v16165_v13  ;;  %v16523_v59 = vadd.f32 %v6385_v40, %v5930_v36  ;;  %v5932_v8 = vadd.f32 %v12820_v56, %v15827_v30  ;;  %13117 = vmatprep.mubr.msk.f32.mxu1 %vm225_vm1, %v16514_v22  ;;  %17485 = vst [vmem:[#allocation62_spill] sm:$0xff] %v16533_v19  ;;  %v8053_v36 = vld [vmem:[#allocation3 + $0x18a] sm:$0xff] }
 0x382   : > { %13191 = vmatprep.mubr.msk.f32.mxu0 %vm225_vm1, %v16170_v45  ;;  %v5876_v21 = vpop.f32.mrf.mxu1  ;;  %v16538_v45 = vld [vmem:[#allocation3 + $0x189] sm:$0xff] }
 0x383   : > { %17483 = vst [vmem:[#allocation30_spill] sm:$0xff] %v16523_v59  ;;  %v6394_v52 = vpop.f32.mrf.mxu0  ;;  %v16530_v42 = vadd.f32 %v12894_v55, %v5932_v8  ;;  %v5931_v28 = vadd.f32 %v15827_v30, %v5876_v21  ;;  %v16546_v8 = vld [vmem:[#allocation3 + $0x191] sm:$0xff] }
 0x384   : > { %v12823_v13 = vpop.f32.mrf.mxu1  ;;  %13118 = vmatmul.mubr.msk.f32.gmra.mxu1 %vm225_vm1, %v16533_v19  ;;  %v8054_v21 = vld [vmem:[#allocation3 + $0x192] sm:$0xff] }
 0x385   : > { %17484 = vst [vmem:[#allocation29_spill] sm:$0xff] %v16530_v42  ;;  %v12897_v40 = vpop.f32.mrf.mxu0  ;;  %13192 = vmatmul.mubr.msk.f32.gmra.mxu0 %vm225_vm1, %v8052_v20  ;;  %v16540_v56 = vadd.f32 %v6394_v52, %v5931_v28  ;;  %v5933_v55 = vadd.f32 %v12823_v13, %v15827_v30  ;;  %13120 = vmatprep.mubr.msk.f32.mxu1 %vm225_vm1, %v16538_v45  ;;  %v8525_v28 = vld [vmem:[#allocation3 + $0x30] sm:$0xff] }
 0x386   : > { %13194 = vmatprep.mubr.msk.f32.mxu0 %vm225_vm1, %v8053_v36  ;;  %v5886_v42 = vpop.f32.mrf.mxu1  ;;  %v5903_v52 = vadd.f32 %v15827_v30, %v16178_v6  ;;  %v8527_v30 = vld [vmem:[#allocation3 + $0x40] sm:$0xff] }
 0x387   : > { %v6404_v59 = vpop.f32.mrf.mxu0  ;;  %v16548_v19 = vadd.f32 %v12897_v40, %v5933_v55  ;;  %v8526_v40 = vld [vmem:[#allocation3 + $0x38] sm:$0xff] }
 0x388   : > { %v12826_v20 = vpop.f32.mrf.mxu1  ;;  %13121 = vmatmul.mubr.msk.f32.gmra.mxu1 %vm225_vm1, %v16546_v8  ;;  %v6421_v6 = vadd.f32 %v16180_v33, %v5903_v52 }
 0x389   : > { %v12900_v22 = vpop.f32.mrf.mxu0  ;;  %13195 = vmatmul.mubr.msk.f32.gmra.mxu0 %vm225_vm1, %v8054_v21  ;;  %13199 = vmatprep.mubr.msk.f32.mxu1 %vm225_vm1, %v8525_v28 }
 0x38a   : > { %13273 = vmatprep.mubr.msk.f32.mxu0 %vm225_vm1, %v16197_v7  ;;  %v5895_v42 = vpop.f32.mrf.mxu1  ;;  %v13429_v22 = vld [vmem:[%s17181_s4] ss:$0 sm:$0xff] }
 0x38b   : > { %v6413_v59 = vpop.f32.mrf.mxu0  ;;  %v5934_v13 = vadd.f32 %v13429_v22, %v5895_v42  ;;  %v8528_v22 = vld [vmem:[#allocation3 + $0x48] sm:$0xff] }
 0x38c   : > { %v12905_v36 = vpop.f32.mrf.mxu1  ;;  %13200 = vmatmul.mubr.msk.f32.vlgmr.msra.gmra.mxu1 %vm225_vm1, %v8526_v40 }
 0x38d   : > { %v12979_v55 = vpop.f32.mrf.mxu0  ;;  %13274 = vmatmul.mubr.msk.f32.vlgmr.msra.gmra.mxu0 %vm225_vm1, %v16206_v16  ;;  %v16565_v21 = vadd.f32 %v6413_v59, %v5934_v13  ;;  %v6940_v7 = vadd.f32 %v12905_v36, %v15857_v4  ;;  %13346 = vmatpush3.msk.msra.mxu1 %vm532_vm0, %v16188_v60  ;;  %v8529_v4 = vld [vmem:[#allocation3 + $0x50] sm:$0xff]  ;;  %v8530_v36 = vld [vmem:[#allocation3 + $0x58] sm:$0xff] }
 0x38e   : > { %13202 = vmatprep.mubr.msk.f32.mxu1 %vm225_vm1, %v8527_v30  ;;  %v6716_v20 = vpop.f32.mrf.mxu1  ;;  %13276 = vmatprep.mubr.msk.f32.mxu0 %vm225_vm1, %v16212_v53 }
 0x38f   : > { %v7234_v28 = vpop.f32.mrf.mxu0  ;;  %v16573_v42 = vadd.f32 %v12979_v55, %v6940_v7  ;;  %v6939_v16 = vadd.f32 %v6716_v20, %v6421_v6  ;;  %v8532_v7 = vld [vmem:[#allocation3 + $0x68] sm:$0xff] }
 0x390   : > { %v12908_v40 = vpop.f32.mrf.mxu1  ;;  %13203 = vmatmul.mubr.msk.f32.gmra.mxu1 %vm225_vm1, %v8528_v22 }
 0x391   : > { %v12982_v33 = vpop.f32.mrf.mxu0  ;;  %13277 = vmatmul.mubr.msk.f32.gmra.mxu0 %vm225_vm1, %v16220_v25  ;;  %v16578_v60 = vadd.f32 %v7234_v28, %v6939_v16  ;;  %v6941_v52 = vadd.f32 %v12908_v40, %v16214_v51  ;;  %13205 = vmatprep.mubr.msk.f32.mxu1 %vm225_vm1, %v8529_v4  ;;  %v8531_v25 = vld [vmem:[#allocation3 + $0x60] sm:$0xff]  ;;  %v8533_v16 = vld [vmem:[#allocation3 + $0x70] sm:$0xff]  ;;  %v8534_v4 = vld [vmem:[#allocation3 + $0x78] sm:$0xff] }
 0x392   : > { %13279 = vmatprep.mubr.msk.f32.mxu0 %vm225_vm1, %v16229_v9  ;;  %v6726_v53 = vpop.f32.mrf.mxu1 }
 0x393   : > { %v7244_v59 = vpop.f32.mrf.mxu0  ;;  %v16584_v13 = vadd.f32 %v12982_v33, %v6941_v52 }
 0x394   : > { %v12911_v55 = vpop.f32.mrf.mxu1  ;;  %13206 = vmatmul.mubr.msk.f32.gmra.mxu1 %vm225_vm1, %v8530_v36  ;;  %v17486_v59 = vld [vmem:[#allocation18_spill] sm:$0xff] }
 0x395   : > { %v12985_v30 = vpop.f32.mrf.mxu0  ;;  %13280 = vmatmul.mubr.msk.f32.gmra.mxu0 %vm225_vm1, %v16226_v14  ;;  %13208 = vmatprep.mubr.msk.f32.mxu1 %vm225_vm1, %v8531_v25  ;;  %v8536_v25 = vld [vmem:[#allocation3 + $0x88] sm:$0xff] }
 0x396   : > { %13282 = vmatprep.mubr.msk.f32.mxu0 %vm225_vm1, %v16245_v31  ;;  %v6735_v51 = vpop.f32.mrf.mxu1 }
 0x397   : > { %v7253_v9 = vpop.f32.mrf.mxu0  ;;  %v6942_v6 = vadd.f32 %v6735_v51, %v16235_v12 }
 0x398   : > { %v12914_v20 = vpop.f32.mrf.mxu1  ;;  %13209 = vmatmul.mubr.msk.f32.gmra.mxu1 %vm225_vm1, %v8532_v7 }
 0x399   : > { %v12988_v28 = vpop.f32.mrf.mxu0  ;;  %13283 = vmatmul.mubr.msk.f32.gmra.mxu0 %vm225_vm1, %v16251_v44  ;;  %v16596_v14 = vadd.f32 %v7253_v9, %v6942_v6  ;;  %v6944_v22 = vadd.f32 %v12914_v20, %v16242_v15  ;;  %13211 = vmatprep.mubr.msk.f32.mxu1 %vm225_vm1, %v8533_v16  ;;  %v8535_v15 = vld [vmem:[#allocation3 + $0x80] sm:$0xff] }
 0x39a   : > { %13285 = vmatprep.mubr.msk.f32.mxu0 %vm225_vm1, %v16260_v41  ;;  %v6744_v31 = vpop.f32.mrf.mxu1  ;;  %v17487_v41 = vld [vmem:[#allocation51_spill] sm:$0xff] }
 0x39b   : > { %v7262_v12 = vpop.f32.mrf.mxu0  ;;  %v16602_v40 = vadd.f32 %v12988_v28, %v6944_v22  ;;  %v6943_v33 = vadd.f32 %v6744_v31, %v16253_v43  ;;  %v8538_v28 = vld [vmem:[#allocation3 + $0x98] sm:$0xff]  ;;  %v8539_v31 = vld [vmem:[#allocation3 + $0xa0] sm:$0xff] }
 0x39c   : > { %v12917_v52 = vpop.f32.mrf.mxu1  ;;  %13212 = vmatmul.mubr.msk.f32.gmra.mxu1 %vm225_vm1, %v8534_v4 }
 0x39d   : > { %v12991_v53 = vpop.f32.mrf.mxu0  ;;  %13286 = vmatmul.mubr.msk.f32.gmra.mxu0 %vm225_vm1, %v16268_v17  ;;  %v16608_v44 = vadd.f32 %v7262_v12, %v6943_v33  ;;  %v6945_v36 = vadd.f32 %v12917_v52, %v17486_v59  ;;  %13214 = vmatprep.mubr.msk.f32.mxu1 %vm225_vm1, %v8535_v15  ;;  %v8537_v17 = vld [vmem:[#allocation3 + $0x90] sm:$0xff] }
 0x39e   : > { %13288 = vmatprep.mubr.msk.f32.mxu0 %vm225_vm1, %v17487_v41  ;;  %v6754_v55 = vpop.f32.mrf.mxu1  ;;  %v17488_v12 = vld [vmem:[#allocation53_spill] sm:$0xff] }
 0x39f   : > { %v7272_v43 = vpop.f32.mrf.mxu0  ;;  %v16614_v30 = vadd.f32 %v12991_v53, %v6945_v36  ;;  %v8540_v53 = vld [vmem:[#allocation3 + $0xa8] sm:$0xff]  ;;  %v8541_v36 = vld [vmem:[#allocation3 + $0xb0] sm:$0xff] }
 0x3a0   : > { %v12920_v51 = vpop.f32.mrf.mxu1  ;;  %13215 = vmatmul.mubr.msk.f32.gmra.mxu1 %vm225_vm1, %v8536_v25  ;;  %v17490_v55 = vld [vmem:[#allocation20_spill] sm:$0xff] }
 0x3a1   : > { %v12994_v9 = vpop.f32.mrf.mxu0  ;;  %13289 = vmatmul.mubr.msk.f32.gmra.mxu0 %vm225_vm1, %v16274_v62  ;;  %13217 = vmatprep.mubr.msk.f32.mxu1 %vm225_vm1, %v8537_v17 }
 0x3a2   : > { %13291 = vmatprep.mubr.msk.f32.mxu0 %vm225_vm1, %v16293_v29  ;;  %v6763_v6 = vpop.f32.mrf.mxu1  ;;  %v8542_v9 = vld [vmem:[#allocation3 + $0xb8] sm:$0xff] }
 0x3a3   : > { %v7281_v7 = vpop.f32.mrf.mxu0  ;;  %v6946_v20 = vadd.f32 %v6763_v6, %v16283_v39 }
 0x3a4   : > { %v12923_v16 = vpop.f32.mrf.mxu1  ;;  %13218 = vmatmul.mubr.msk.f32.gmra.mxu1 %vm225_vm1, %v8538_v28 }
 0x3a5   : > { %v12997_v22 = vpop.f32.mrf.mxu0  ;;  %13292 = vmatmul.mubr.msk.f32.gmra.mxu0 %vm225_vm1, %v16299_v50  ;;  %v16626_v62 = vadd.f32 %v7281_v7, %v6946_v20  ;;  %v6948_v33 = vadd.f32 %v12923_v16, %v17488_v12  ;;  %13220 = vmatprep.mubr.msk.f32.mxu1 %vm225_vm1, %v8539_v31  ;;  %v17489_v50 = vld [vmem:[#allocation21_spill] sm:$0xff]  ;;  %v8543_v7 = vld [vmem:[#allocation3 + $0xc0] sm:$0xff] }
 0x3a6   : > { %13294 = vmatprep.mubr.msk.f32.mxu0 %vm225_vm1, %v16308_v11  ;;  %v6772_v29 = vpop.f32.mrf.mxu1  ;;  %v17491_v11 = vld [vmem:[#allocation52_spill] sm:$0xff] }
 0x3a7   : > { %v7290_v39 = vpop.f32.mrf.mxu0  ;;  %v16632_v4 = vadd.f32 %v12997_v22, %v6948_v33  ;;  %v6947_v52 = vadd.f32 %v6772_v29, %v16301_v26  ;;  %v8544_v22 = vld [vmem:[#allocation3 + $0xc8] sm:$0xff]  ;;  %v8545_v33 = vld [vmem:[#allocation3 + $0xd0] sm:$0xff]  ;;  %v17492_v29 = vld [vmem:[#allocation55_spill] sm:$0xff] }
 0x3a8   : > { %v12926_v15 = vpop.f32.mrf.mxu1  ;;  %13221 = vmatmul.mubr.msk.f32.gmra.mxu1 %vm225_vm1, %v8540_v53 }
 0x3a9   : > { %v13000_v59 = vpop.f32.mrf.mxu0  ;;  %13295 = vmatmul.mubr.msk.f32.gmra.mxu0 %vm225_vm1, %v17489_v50  ;;  %v16638_v41 = vadd.f32 %v7290_v39, %v6947_v52  ;;  %v6949_v43 = vadd.f32 %v12926_v15, %v17490_v55  ;;  %13223 = vmatprep.mubr.msk.f32.mxu1 %vm225_vm1, %v8541_v36  ;;  %v8546_v15 = vld [vmem:[#allocation3 + $0xd8] sm:$0xff]  ;;  %v8547_v36 = vld [vmem:[#allocation3 + $0xe0] sm:$0xff] }
 0x3aa   : > { %13297 = vmatprep.mubr.msk.f32.mxu0 %vm225_vm1, %v17491_v11  ;;  %v6782_v25 = vpop.f32.mrf.mxu1 }
 0x3ab   : > { %v7300_v26 = vpop.f32.mrf.mxu0  ;;  %v16644_v51 = vadd.f32 %v13000_v59, %v6949_v43  ;;  %v17494_v43 = vld [vmem:[#allocation22_spill] sm:$0xff] }
 0x3ac   : > { %v12929_v17 = vpop.f32.mrf.mxu1  ;;  %13224 = vmatmul.mubr.msk.f32.gmra.mxu1 %vm225_vm1, %v8542_v9  ;;  %v8548_v9 = vld [vmem:[#allocation3 + $0xe8] sm:$0xff] }
 0x3ad   : > { %v13003_v6 = vpop.f32.mrf.mxu0  ;;  %13298 = vmatmul.mubr.msk.f32.gmra.mxu0 %vm225_vm1, %v16322_v34  ;;  %13226 = vmatprep.mubr.msk.f32.mxu1 %vm225_vm1, %v8543_v7  ;;  %v8549_v7 = vld [vmem:[#allocation3 + $0xf0] sm:$0xff] }
 0x3ae   : > { %13300 = vmatprep.mubr.msk.f32.mxu0 %vm225_vm1, %v16341_v1  ;;  %v6791_v20 = vpop.f32.mrf.mxu1 }
 0x3af   : > { %v7309_v28 = vpop.f32.mrf.mxu0  ;;  %v6950_v16 = vadd.f32 %v6791_v20, %v16331_v48 }
 0x3b0   : > { %v12932_v31 = vpop.f32.mrf.mxu1  ;;  %13227 = vmatmul.mubr.msk.f32.gmra.mxu1 %vm225_vm1, %v8544_v22  ;;  %v8550_v22 = vld [vmem:[#allocation3 + $0xf8] sm:$0xff] }
 0x3b1   : > { %v13006_v12 = vpop.f32.mrf.mxu0  ;;  %13301 = vmatmul.mubr.msk.f32.gmra.mxu0 %vm225_vm1, %v16347_v23  ;;  %v16656_v34 = vadd.f32 %v7309_v28, %v6950_v16  ;;  %v6952_v39 = vadd.f32 %v12932_v31, %v17492_v29  ;;  %13229 = vmatprep.mubr.msk.f32.mxu1 %vm225_vm1, %v8545_v33  ;;  %v17493_v23 = vld [vmem:[#allocation19_spill] sm:$0xff]  ;;  %v17496_v29 = vld [vmem:[#allocation57_spill] sm:$0xff] }
 0x3b2   : > { %13303 = vmatprep.mubr.msk.f32.mxu0 %vm225_vm1, %v16356_v49  ;;  %v6800_v1 = vpop.f32.mrf.mxu1  ;;  %v17495_v49 = vld [vmem:[#allocation54_spill] sm:$0xff]  ;;  %v8551_v33 = vld [vmem:[#allocation3 + $0x100] sm:$0xff] }
 0x3b3   : > { %v7318_v48 = vpop.f32.mrf.mxu0  ;;  %v16662_v52 = vadd.f32 %v13006_v12, %v6952_v39  ;;  %v6951_v53 = vadd.f32 %v6800_v1, %v16349_v58 }
 0x3b4   : > { %v12935_v59 = vpop.f32.mrf.mxu1  ;;  %13230 = vmatmul.mubr.msk.f32.gmra.mxu1 %vm225_vm1, %v8546_v15 }
 0x3b5   : > { %v13009_v50 = vpop.f32.mrf.mxu0  ;;  %13304 = vmatmul.mubr.msk.f32.gmra.mxu0 %vm225_vm1, %v17493_v23  ;;  %v16668_v55 = vadd.f32 %v7318_v48, %v6951_v53  ;;  %v6953_v11 = vadd.f32 %v12935_v59, %v17494_v43  ;;  %13232 = vmatprep.mubr.msk.f32.mxu1 %vm225_vm1, %v8547_v36  ;;  %v8552_v53 = vld [vmem:[#allocation3 + $0x108] sm:$0xff]  ;;  %v17498_v36 = vld [vmem:[#allocation23_spill] sm:$0xff] }
 0x3b6   : > { %13306 = vmatprep.mubr.msk.f32.mxu0 %vm225_vm1, %v17495_v49  ;;  %v6810_v25 = vpop.f32.mrf.mxu1 }
 0x3b7   : > { %v7328_v58 = vpop.f32.mrf.mxu0  ;;  %v16674_v26 = vadd.f32 %v13009_v50, %v6953_v11  ;;  %v8553_v50 = vld [vmem:[#allocation3 + $0x110] sm:$0xff]  ;;  %v8554_v25 = vld [vmem:[#allocation3 + $0x118] sm:$0xff] }
 0x3b8   : > { %v12938_v17 = vpop.f32.mrf.mxu1  ;;  %13233 = vmatmul.mubr.msk.f32.gmra.mxu1 %vm225_vm1, %v8548_v9 }
 0x3b9   : > { %v13012_v6 = vpop.f32.mrf.mxu0  ;;  %13307 = vmatmul.mubr.msk.f32.gmra.mxu0 %vm225_vm1, %v16370_v37  ;;  %13235 = vmatprep.mubr.msk.f32.mxu1 %vm225_vm1, %v8549_v7  ;;  %v8555_v17 = vld [vmem:[#allocation3 + $0x120] sm:$0xff] }
 0x3ba   : > { %13309 = vmatprep.mubr.msk.f32.mxu0 %vm225_vm1, %v16389_v32  ;;  %v6819_v20 = vpop.f32.mrf.mxu1 }
 0x3bb   : > { %v7337_v28 = vpop.f32.mrf.mxu0  ;;  %v6954_v16 = vadd.f32 %v6819_v20, %v16379_v27 }
 0x3bc   : > { %v12941_v31 = vpop.f32.mrf.mxu1  ;;  %13236 = vmatmul.mubr.msk.f32.gmra.mxu1 %vm225_vm1, %v8550_v22 }
 0x3bd   : > { %v13015_v12 = vpop.f32.mrf.mxu0  ;;  %13310 = vmatmul.mubr.msk.f32.gmra.mxu0 %vm225_vm1, %v16395_v18  ;;  %v16686_v37 = vadd.f32 %v7337_v28, %v6954_v16  ;;  %v6956_v39 = vadd.f32 %v12941_v31, %v17496_v29  ;;  %13238 = vmatprep.mubr.msk.f32.mxu1 %vm225_vm1, %v8551_v33  ;;  %v17497_v18 = vld [vmem:[#allocation24_spill] sm:$0xff]  ;;  %v8557_v31 = vld [vmem:[#allocation3 + $0x130] sm:$0xff] }
 0x3be   : > { %13312 = vmatprep.mubr.msk.f32.mxu0 %vm225_vm1, %v16404_v38  ;;  %v6828_v32 = vpop.f32.mrf.mxu1  ;;  %v17499_v38 = vld [vmem:[#allocation56_spill] sm:$0xff] }
 0x3bf   : > { %v7346_v27 = vpop.f32.mrf.mxu0  ;;  %v16692_v1 = vadd.f32 %v13015_v12, %v6956_v39  ;;  %v6955_v48 = vadd.f32 %v6828_v32, %v16397_v35  ;;  %v8556_v28 = vld [vmem:[#allocation3 + $0x128] sm:$0xff]  ;;  %v17500_v12 = vld [vmem:[#allocation59_spill] sm:$0xff]  ;;  %v8558_v32 = vld [vmem:[#allocation3 + $0x138] sm:$0xff] }
 0x3c0   : > { %v12944_v15 = vpop.f32.mrf.mxu1  ;;  %13239 = vmatmul.mubr.msk.f32.gmra.mxu1 %vm225_vm1, %v8552_v53  ;;  %v8559_v53 = vld [vmem:[#allocation3 + $0x140] sm:$0xff] }
 0x3c1   : > { %v13018_v59 = vpop.f32.mrf.mxu0  ;;  %13313 = vmatmul.mubr.msk.f32.gmra.mxu0 %vm225_vm1, %v17497_v18  ;;  %v16698_v23 = vadd.f32 %v7346_v27, %v6955_v48  ;;  %v6957_v43 = vadd.f32 %v12944_v15, %v17498_v36  ;;  %13241 = vmatprep.mubr.msk.f32.mxu1 %vm225_vm1, %v8553_v50 }
 0x3c2   : > { %13315 = vmatprep.mubr.msk.f32.mxu0 %vm225_vm1, %v17499_v38  ;;  %v6838_v11 = vpop.f32.mrf.mxu1 }
 0x3c3   : > { %v7356_v35 = vpop.f32.mrf.mxu0  ;;  %v16704_v49 = vadd.f32 %v13018_v59, %v6957_v43  ;;  %v17502_v59 = vld [vmem:[#allocation26_spill] sm:$0xff]  ;;  %v8560_v43 = vld [vmem:[#allocation3 + $0x148] sm:$0xff] }
 0x3c4   : > { %v12947_v58 = vpop.f32.mrf.mxu1  ;;  %13242 = vmatmul.mubr.msk.f32.gmra.mxu1 %vm225_vm1, %v8554_v25  ;;  %v8561_v35 = vld [vmem:[#allocation3 + $0x150] sm:$0xff] }
 0x3c5   : > { %v13021_v9 = vpop.f32.mrf.mxu0  ;;  %13316 = vmatmul.mubr.msk.f32.gmra.mxu0 %vm225_vm1, %v16418_v24  ;;  %13244 = vmatprep.mubr.msk.f32.mxu1 %vm225_vm1, %v8555_v17  ;;  %v8562_v17 = vld [vmem:[#allocation3 + $0x158] sm:$0xff] }
 0x3c6   : > { %13318 = vmatprep.mubr.msk.f32.mxu0 %vm225_vm1, %v16437_v54  ;;  %v6847_v6 = vpop.f32.mrf.mxu1 }
 0x3c7   : > { %v7365_v7 = vpop.f32.mrf.mxu0  ;;  %v6958_v20 = vadd.f32 %v6847_v6, %v16427_v2 }
 0x3c8   : > { %v12950_v16 = vpop.f32.mrf.mxu1  ;;  %13245 = vmatmul.mubr.msk.f32.gmra.mxu1 %vm225_vm1, %v8556_v28  ;;  %v17504_v28 = vld [vmem:[#allocation61_spill] sm:$0xff] }
 0x3c9   : > { %v13024_v22 = vpop.f32.mrf.mxu0  ;;  %13319 = vmatmul.mubr.msk.f32.gmra.mxu0 %vm225_vm1, %v16443_v47  ;;  %v16716_v24 = vadd.f32 %v7365_v7, %v6958_v20  ;;  %v6960_v33 = vadd.f32 %v12950_v16, %v17500_v12  ;;  %13247 = vmatprep.mubr.msk.f32.mxu1 %vm225_vm1, %v8557_v31  ;;  %v17501_v47 = vld [vmem:[#allocation25_spill] sm:$0xff]  ;;  %v8563_v20 = vld [vmem:[#allocation3 + $0x160] sm:$0xff]  ;;  %v8564_v12 = vld [vmem:[#allocation3 + $0x168] sm:$0xff] }
 0x3ca   : > { %13321 = vmatprep.mubr.msk.f32.mxu0 %vm225_vm1, %v16452_v61  ;;  %v6856_v54 = vpop.f32.mrf.mxu1  ;;  %v17503_v61 = vld [vmem:[#allocation58_spill] sm:$0xff] }
 0x3cb   : > { %v7374_v2 = vpop.f32.mrf.mxu0  ;;  %v16722_v29 = vadd.f32 %v13024_v22, %v6960_v33  ;;  %v6959_v39 = vadd.f32 %v6856_v54, %v16445_v57 }
 0x3cc   : > { %v12953_v27 = vpop.f32.mrf.mxu1  ;;  %13248 = vmatmul.mubr.msk.f32.gmra.mxu1 %vm225_vm1, %v8558_v32  ;;  %v17506_v32 = vld [vmem:[#allocation28_spill] sm:$0xff] }
 0x3cd   : > { %v13027_v48 = vpop.f32.mrf.mxu0  ;;  %13322 = vmatmul.mubr.msk.f32.gmra.mxu0 %vm225_vm1, %v17501_v47  ;;  %v16728_v15 = vadd.f32 %v7374_v2, %v6959_v39  ;;  %v6961_v18 = vadd.f32 %v12953_v27, %v17502_v59  ;;  %13250 = vmatprep.mubr.msk.f32.mxu1 %vm225_vm1, %v8559_v53  ;;  %v8565_v2 = vld [vmem:[#allocation3 + $0x170] sm:$0xff]  ;;  %v8566_v53 = vld [vmem:[#allocation3 + $0x178] sm:$0xff] }
 0x3ce   : > { %13324 = vmatprep.mubr.msk.f32.mxu0 %vm225_vm1, %v17503_v61  ;;  %v6866_v50 = vpop.f32.mrf.mxu1  ;;  %v17508_v61 = vld [vmem:[#allocation60_spill] sm:$0xff] }
 0x3cf   : > { %v7384_v57 = vpop.f32.mrf.mxu0  ;;  %v16734_v36 = vadd.f32 %v13027_v48, %v6961_v18  ;;  %v8567_v50 = vld [vmem:[#allocation3 + $0x180] sm:$0xff] }
 0x3d0   : > { %v12956_v38 = vpop.f32.mrf.mxu1  ;;  %13251 = vmatmul.mubr.msk.f32.gmra.mxu1 %vm225_vm1, %v8560_v43  ;;  %v17509_v57 = vld [vmem:[#allocation62_spill] sm:$0xff] }
 0x3d1   : > { %v13030_v11 = vpop.f32.mrf.mxu0  ;;  %13325 = vmatmul.mubr.msk.f32.gmra.mxu0 %vm225_vm1, %v16466_v46  ;;  %13253 = vmatprep.mubr.msk.f32.mxu1 %vm225_vm1, %v8561_v35 }
 0x3d2   : > { %13327 = vmatprep.mubr.msk.f32.mxu0 %vm225_vm1, %v16485_v63  ;;  %v6875_v25 = vpop.f32.mrf.mxu1  ;;  %v17510_v11 = vld [vmem:[#allocation30_spill] sm:$0xff] }
 0x3d3   : > { %v7393_v58 = vpop.f32.mrf.mxu0  ;;  %v6962_v9 = vadd.f32 %v6875_v25, %v16475_v0  ;;  %v8568_v25 = vld [vmem:[#allocation3 + $0x188] sm:$0xff] }
 0x3d4   : > { %v12959_v6 = vpop.f32.mrf.mxu1  ;;  %13254 = vmatmul.mubr.msk.f32.gmra.mxu1 %vm225_vm1, %v8562_v17  ;;  %v8569_v17 = vld [vmem:[#allocation3 + $0x190] sm:$0xff] }
 0x3d5   : > { %v13033_v7 = vpop.f32.mrf.mxu0  ;;  %13328 = vmatmul.mubr.msk.f32.gmra.mxu0 %vm225_vm1, %v16491_v3  ;;  %v16746_v46 = vadd.f32 %v7393_v58, %v6962_v9  ;;  %v6964_v16 = vadd.f32 %v12959_v6, %v17504_v28  ;;  %13256 = vmatprep.mubr.msk.f32.mxu1 %vm225_vm1, %v8563_v20  ;;  %v17505_v3 = vld [vmem:[#allocation27_spill] sm:$0xff]  ;;  %v8570_v28 = vld [vmem:[#allocation3 + $0x198] sm:$0xff] }
 0x3d6   : > { %13330 = vmatprep.mubr.msk.f32.mxu0 %vm225_vm1, %v16500_v5  ;;  %v6884_v63 = vpop.f32.mrf.mxu1  ;;  %v17507_v5 = vld [vmem:[#allocation63_spill] sm:$0xff] }
 0x3d7   : > { %v7402_v0 = vpop.f32.mrf.mxu0  ;;  %v16752_v22 = vadd.f32 %v13033_v7, %v6964_v16  ;;  %v6963_v31 = vadd.f32 %v6884_v63, %v16493_v10  ;;  %v17511_v7 = vld [vmem:[#allocation29_spill] sm:$0xff]  ;;  %v9088_v16 = vld [vmem:[#allocation3 + $0x199] sm:$0xff] }
 0x3d8   : > { %v12962_v33 = vpop.f32.mrf.mxu1  ;;  %13257 = vmatmul.mubr.msk.f32.gmra.mxu1 %vm225_vm1, %v8564_v12  ;;  %v9089_v12 = vld [vmem:[#allocation3 + $0x1a1] sm:$0xff] }
 0x3d9   : > { %v13036_v54 = vpop.f32.mrf.mxu0  ;;  %13331 = vmatmul.mubr.msk.f32.gmra.mxu0 %vm225_vm1, %v17505_v3  ;;  %v16758_v39 = vadd.f32 %v7402_v0, %v6963_v31  ;;  %v6965_v27 = vadd.f32 %v12962_v33, %v17506_v32  ;;  %13259 = vmatprep.mubr.msk.f32.mxu1 %vm225_vm1, %v8565_v2  ;;  %v8571_v31 = vld [vmem:[#allocation3 + $0x1a0] sm:$0xff] }
 0x3da   : > { %13333 = vmatprep.mubr.msk.f32.mxu0 %vm225_vm1, %v17507_v5  ;;  %v6894_v48 = vpop.f32.mrf.mxu1 }
 0x3db   : > { %v7412_v10 = vpop.f32.mrf.mxu0  ;;  %v16764_v47 = vadd.f32 %v13036_v54, %v6965_v27  ;;  %v9090_v27 = vld [vmem:[#allocation3 + $0x1a9] sm:$0xff] }
 0x3dc   : > { %v12965_v59 = vpop.f32.mrf.mxu1  ;;  %13260 = vmatmul.mubr.msk.f32.gmra.mxu1 %vm225_vm1, %v8566_v53 }
 0x3dd   : > { %v13039_v18 = vpop.f32.mrf.mxu0  ;;  %13334 = vmatmul.mubr.msk.f32.gmra.mxu0 %vm225_vm1, %v17508_v61  ;;  %13262 = vmatprep.mubr.msk.f32.mxu1 %vm225_vm1, %v8567_v50  ;;  %v9561_v59 = vld [vmem:[#allocation3 + $0x32] sm:$0xff]  ;;  %v9562_v50 = vld [vmem:[#allocation3 + $0x3a] sm:$0xff] }
 0x3de   : > { %13336 = vmatprep.mubr.msk.f32.mxu0 %vm225_vm1, %v17509_v57  ;;  %v6903_v43 = vpop.f32.mrf.mxu1 }
 0x3df   : > { %v7421_v38 = vpop.f32.mrf.mxu0  ;;  %v6966_v35 = vadd.f32 %v6903_v43, %v17510_v11 }
 0x3e0   : > { %v12968_v58 = vpop.f32.mrf.mxu1  ;;  %13263 = vmatmul.mubr.msk.f32.gmra.mxu1 %vm225_vm1, %v8568_v25 }
 0x3e1   : > { %v13042_v9 = vpop.f32.mrf.mxu0  ;;  %13337 = vmatmul.mubr.msk.f32.gmra.mxu0 %vm225_vm1, %v16538_v45  ;;  %v16776_v6 = vadd.f32 %v7421_v38, %v6966_v35  ;;  %v6968_v20 = vadd.f32 %v12968_v58, %v17511_v7  ;;  %13265 = vmatprep.mubr.msk.f32.mxu1 %vm225_vm1, %v8569_v17  ;;  %v9563_v38 = vld [vmem:[#allocation3 + $0x42] sm:$0xff]  ;;  %v9564_v7 = vld [vmem:[#allocation3 + $0x4a] sm:$0xff] }
 0x3e2   : > { %13339 = vmatprep.mubr.msk.f32.mxu0 %vm225_vm1, %v16546_v8  ;;  %v6912_v63 = vpop.f32.mrf.mxu1  ;;  %v8572_v8 = vld [vmem:[#allocation3 + $0x1a8] sm:$0xff] }
 0x3e3   : > { %v7430_v0 = vpop.f32.mrf.mxu0  ;;  %v16782_v33 = vadd.f32 %v13042_v9, %v6968_v20  ;;  %v6967_v45 = vadd.f32 %v6912_v63, %v16540_v56 }
 0x3e4   : > { %v12971_v54 = vpop.f32.mrf.mxu1  ;;  %13266 = vmatmul.mubr.msk.f32.gmra.mxu1 %vm225_vm1, %v8570_v28  ;;  %v9565_v28 = vld [vmem:[#allocation3 + $0x52] sm:$0xff] }
 0x3e5   : > { %v13045_v3 = vpop.f32.mrf.mxu0  ;;  %13340 = vmatmul.mubr.msk.f32.gmra.mxu0 %vm225_vm1, %v9088_v16  ;;  %v16787_v2 = vadd.f32 %v7430_v0, %v6967_v45  ;;  %v6969_v32 = vadd.f32 %v12971_v54, %v16548_v19  ;;  %13268 = vmatprep.mubr.msk.f32.mxu1 %vm225_vm1, %v8571_v31 }
 0x3e6   : > { %13342 = vmatprep.mubr.msk.f32.mxu0 %vm225_vm1, %v9089_v12  ;;  %v6922_v5 = vpop.f32.mrf.mxu1  ;;  %v9566_v12 = vld [vmem:[#allocation3 + $0x5a] sm:$0xff] }
 0x3e7   : > { %v7440_v48 = vpop.f32.mrf.mxu0  ;;  %v16792_v10 = vadd.f32 %v13045_v3, %v6969_v32 }
 0x3e8   : > { %v12974_v56 = vpop.f32.mrf.mxu1  ;;  %13269 = vmatmul.mubr.msk.f32.gmra.mxu1 %vm225_vm1, %v8572_v8  ;;  %v9569_v48 = vld [vmem:[#allocation3 + $0x72] sm:$0xff] }
 0x3e9   : > { %v13048_v53 = vpop.f32.mrf.mxu0  ;;  %13343 = vmatmul.mubr.msk.f32.gmra.mxu0 %vm225_vm1, %v9090_v27  ;;  %13347 = vmatprep.mubr.msk.f32.mxu1 %vm225_vm1, %v9561_v59  ;;  %v9568_v27 = vld [vmem:[#allocation3 + $0x6a] sm:$0xff] }
 0x3ea   : > { %v6931_v19 = vpop.f32.mrf.mxu1 }
 0x3eb   : > { %v7449_v18 = vpop.f32.mrf.mxu0  ;;  %v6970_v61 = vadd.f32 %v6931_v19, %v16565_v21 }
 0x3ec   : > { %v13053_v57 = vpop.f32.mrf.mxu1  ;;  %13348 = vmatmul.mubr.msk.f32.vlgmr.msra.gmra.mxu1 %vm225_vm1, %v9562_v50  ;;  %v9570_v50 = vld [vmem:[#allocation3 + $0x7a] sm:$0xff] }
 0x3ed   : > { %v13127_v43 = vpop.f32.mrf.mxu0  ;;  %v16799_v11 = vadd.f32 %v7449_v18, %v6970_v61  ;;  %v7976_v35 = vadd.f32 %v13053_v57, %v16573_v42  ;;  %13350 = vmatprep.mubr.msk.f32.mxu1 %vm225_vm1, %v9563_v38 }
 0x3ee   : > { %v7752_v25 = vpop.f32.mrf.mxu1 }
 0x3ef   : > { %v8270_v58 = vpop.f32.mrf.mxu0  ;;  %v16803_v9 = vadd.f32 %v13127_v43, %v7976_v35  ;;  %v7975_v17 = vadd.f32 %v7752_v25, %v16578_v60  ;;  %v9567_v60 = vld [vmem:[#allocation3 + $0x62] sm:$0xff] }
 0x3f0   : > { %v13056_v21 = vpop.f32.mrf.mxu1  ;;  %13351 = vmatmul.mubr.msk.f32.gmra.mxu1 %vm225_vm1, %v9564_v7  ;;  %v9571_v43 = vld [vmem:[#allocation3 + $0x82] sm:$0xff] }
 0x3f1   : > { %v13130_v20 = vpop.f32.mrf.mxu0  ;;  %v16807_v16 = vadd.f32 %v8270_v58, %v7975_v17  ;;  %v7977_v63 = vadd.f32 %v13056_v21, %v16584_v13  ;;  %13353 = vmatprep.mubr.msk.f32.mxu1 %vm225_vm1, %v9565_v28  ;;  %v9572_v17 = vld [vmem:[#allocation3 + $0x8a] sm:$0xff] }
 0x3f2   : > { %v7762_v42 = vpop.f32.mrf.mxu1 }
 0x3f3   : > { %v8280_v0 = vpop.f32.mrf.mxu0  ;;  %v16811_v31 = vadd.f32 %v13130_v20, %v7977_v63  ;;  %v9574_v42 = vld [vmem:[#allocation3 + $0x9a] sm:$0xff] }
 0x3f4   : > { %v13059_v45 = vpop.f32.mrf.mxu1  ;;  %13354 = vmatmul.mubr.msk.f32.gmra.mxu1 %vm225_vm1, %v9566_v12  ;;  %v9575_v12 = vld [vmem:[#allocation3 + $0xa2] sm:$0xff] }
 0x3f5   : > { %v13133_v54 = vpop.f32.mrf.mxu0  ;;  %13356 = vmatprep.mubr.msk.f32.mxu1 %vm225_vm1, %v9567_v60 }
 0x3f6   : > { %v7771_v3 = vpop.f32.mrf.mxu1 }
 0x3f7   : > { %v8289_v32 = vpop.f32.mrf.mxu0  ;;  %v7978_v8 = vadd.f32 %v7771_v3, %v16596_v14 }
 0x3f8   : > { %v13062_v13 = vpop.f32.mrf.mxu1  ;;  %13357 = vmatmul.mubr.msk.f32.gmra.mxu1 %vm225_vm1, %v9568_v27  ;;  %v9576_v27 = vld [vmem:[#allocation3 + $0xaa] sm:$0xff] }
 0x3f9   : > { %v13136_v5 = vpop.f32.mrf.mxu0  ;;  %v16817_v56 = vadd.f32 %v8289_v32, %v7978_v8  ;;  %v7980_v53 = vadd.f32 %v13062_v13, %v16602_v40  ;;  %13359 = vmatprep.mubr.msk.f32.mxu1 %vm225_vm1, %v9569_v48 }
 0x3fa   : > { %v7780_v59 = vpop.f32.mrf.mxu1 }
 0x3fb   : > { %v8298_v19 = vpop.f32.mrf.mxu0  ;;  %v16821_v18 = vadd.f32 %v13136_v5, %v7980_v53  ;;  %v7979_v61 = vadd.f32 %v7780_v59, %v16608_v44  ;;  %v9573_v44 = vld [vmem:[#allocation3 + $0x92] sm:$0xff] }
 0x3fc   : > { %v13065_v14 = vpop.f32.mrf.mxu1  ;;  %13360 = vmatmul.mubr.msk.f32.gmra.mxu1 %vm225_vm1, %v9570_v50  ;;  %v9577_v5 = vld [vmem:[#allocation3 + $0xb2] sm:$0xff] }
 0x3fd   : > { %v13139_v57 = vpop.f32.mrf.mxu0  ;;  %v16825_v38 = vadd.f32 %v8298_v19, %v7979_v61  ;;  %v7981_v35 = vadd.f32 %v13065_v14, %v16614_v30  ;;  %13362 = vmatprep.mubr.msk.f32.mxu1 %vm225_vm1, %v9571_v43  ;;  %v9578_v61 = vld [vmem:[#allocation3 + $0xba] sm:$0xff] }
 0x3fe   : > { %v7790_v40 = vpop.f32.mrf.mxu1 }
 0x3ff   : > { %v8308_v25 = vpop.f32.mrf.mxu0  ;;  %v16829_v58 = vadd.f32 %v13139_v57, %v7981_v35  ;;  %v9580_v40 = vld [vmem:[#allocation3 + $0xca] sm:$0xff] }
 0x400   : > { %v13068_v7 = vpop.f32.mrf.mxu1  ;;  %13363 = vmatmul.mubr.msk.f32.gmra.mxu1 %vm225_vm1, %v9572_v17  ;;  %v9581_v17 = vld [vmem:[#allocation3 + $0xd2] sm:$0xff] }
 0x401   : > { %v13142_v21 = vpop.f32.mrf.mxu0  ;;  %13365 = vmatprep.mubr.msk.f32.mxu1 %vm225_vm1, %v9573_v44 }
 0x402   : > { %v7799_v20 = vpop.f32.mrf.mxu1 }
 0x403   : > { %v8317_v28 = vpop.f32.mrf.mxu0  ;;  %v7982_v63 = vadd.f32 %v7799_v20, %v16626_v62 }
 0x404   : > { %v13071_v30 = vpop.f32.mrf.mxu1  ;;  %13366 = vmatmul.mubr.msk.f32.gmra.mxu1 %vm225_vm1, %v9574_v42  ;;  %v9582_v42 = vld [vmem:[#allocation3 + $0xda] sm:$0xff] }
 0x405   : > { %v13145_v0 = vpop.f32.mrf.mxu0  ;;  %v16835_v45 = vadd.f32 %v8317_v28, %v7982_v63  ;;  %v7984_v54 = vadd.f32 %v13071_v30, %v16632_v4  ;;  %13368 = vmatprep.mubr.msk.f32.mxu1 %vm225_vm1, %v9575_v12 }
 0x406   : > { %v7808_v60 = vpop.f32.mrf.mxu1 }
 0x407   : > { %v8326_v3 = vpop.f32.mrf.mxu0  ;;  %v16839_v32 = vadd.f32 %v13145_v0, %v7984_v54  ;;  %v7983_v8 = vadd.f32 %v7808_v60, %v16638_v41  ;;  %v9579_v41 = vld [vmem:[#allocation3 + $0xc2] sm:$0xff] }
 0x408   : > { %v13074_v62 = vpop.f32.mrf.mxu1  ;;  %13369 = vmatmul.mubr.msk.f32.gmra.mxu1 %vm225_vm1, %v9576_v27  ;;  %v9583_v0 = vld [vmem:[#allocation3 + $0xe2] sm:$0xff] }
 0x409   : > { %v13148_v13 = vpop.f32.mrf.mxu0  ;;  %v16843_v48 = vadd.f32 %v8326_v3, %v7983_v8  ;;  %v7985_v53 = vadd.f32 %v13074_v62, %v16644_v51  ;;  %13371 = vmatprep.mubr.msk.f32.mxu1 %vm225_vm1, %v9577_v5  ;;  %v9584_v8 = vld [vmem:[#allocation3 + $0xea] sm:$0xff] }
 0x40a   : > { %v7818_v4 = vpop.f32.mrf.mxu1 }
 0x40b   : > { %v8336_v59 = vpop.f32.mrf.mxu0  ;;  %v16847_v19 = vadd.f32 %v13148_v13, %v7985_v53  ;;  %v9586_v4 = vld [vmem:[#allocation3 + $0xfa] sm:$0xff] }
 0x40c   : > { %v13077_v50 = vpop.f32.mrf.mxu1  ;;  %13372 = vmatmul.mubr.msk.f32.gmra.mxu1 %vm225_vm1, %v9578_v61  ;;  %v9587_v61 = vld [vmem:[#allocation3 + $0x102] sm:$0xff] }
 0x40d   : > { %v13151_v14 = vpop.f32.mrf.mxu0  ;;  %13374 = vmatprep.mubr.msk.f32.mxu1 %vm225_vm1, %v9579_v41 }
 0x40e   : > { %v7827_v57 = vpop.f32.mrf.mxu1 }
 0x40f   : > { %v8345_v43 = vpop.f32.mrf.mxu0  ;;  %v7986_v35 = vadd.f32 %v7827_v57, %v16656_v34 }
 0x410   : > { %v13080_v51 = vpop.f32.mrf.mxu1  ;;  %13375 = vmatmul.mubr.msk.f32.gmra.mxu1 %vm225_vm1, %v9580_v40  ;;  %v9588_v40 = vld [vmem:[#allocation3 + $0x10a] sm:$0xff] }
 0x411   : > { %v13154_v25 = vpop.f32.mrf.mxu0  ;;  %v16853_v7 = vadd.f32 %v8345_v43, %v7986_v35  ;;  %v7988_v21 = vadd.f32 %v13080_v51, %v16662_v52  ;;  %13377 = vmatprep.mubr.msk.f32.mxu1 %vm225_vm1, %v9581_v17 }
 0x412   : > { %v7836_v44 = vpop.f32.mrf.mxu1 }
 0x413   : > { %v8354_v20 = vpop.f32.mrf.mxu0  ;;  %v16857_v28 = vadd.f32 %v13154_v25, %v7988_v21  ;;  %v7987_v63 = vadd.f32 %v7836_v44, %v16668_v55  ;;  %v9585_v55 = vld [vmem:[#allocation3 + $0xf2] sm:$0xff] }
 0x414   : > { %v13083_v34 = vpop.f32.mrf.mxu1  ;;  %13378 = vmatmul.mubr.msk.f32.gmra.mxu1 %vm225_vm1, %v9582_v42  ;;  %v9589_v25 = vld [vmem:[#allocation3 + $0x112] sm:$0xff] }
 0x415   : > { %v13157_v30 = vpop.f32.mrf.mxu0  ;;  %v16861_v12 = vadd.f32 %v8354_v20, %v7987_v63  ;;  %v7989_v54 = vadd.f32 %v13083_v34, %v16674_v26  ;;  %13380 = vmatprep.mubr.msk.f32.mxu1 %vm225_vm1, %v9583_v0  ;;  %v9590_v63 = vld [vmem:[#allocation3 + $0x11a] sm:$0xff] }
 0x416   : > { %v7846_v52 = vpop.f32.mrf.mxu1 }
 0x417   : > { %v8364_v60 = vpop.f32.mrf.mxu0  ;;  %v16865_v3 = vadd.f32 %v13157_v30, %v7989_v54  ;;  %v9592_v52 = vld [vmem:[#allocation3 + $0x12a] sm:$0xff] }
 0x418   : > { %v13086_v27 = vpop.f32.mrf.mxu1  ;;  %13381 = vmatmul.mubr.msk.f32.gmra.mxu1 %vm225_vm1, %v9584_v8  ;;  %v9593_v8 = vld [vmem:[#allocation3 + $0x132] sm:$0xff] }
 0x419   : > { %v13160_v62 = vpop.f32.mrf.mxu0  ;;  %13383 = vmatprep.mubr.msk.f32.mxu1 %vm225_vm1, %v9585_v55 }
 0x41a   : > { %v7855_v13 = vpop.f32.mrf.mxu1 }
 0x41b   : > { %v8373_v5 = vpop.f32.mrf.mxu0  ;;  %v7990_v53 = vadd.f32 %v7855_v13, %v16686_v37 }
 0x41c   : > { %v13089_v26 = vpop.f32.mrf.mxu1  ;;  %13384 = vmatmul.mubr.msk.f32.gmra.mxu1 %vm225_vm1, %v9586_v4  ;;  %v9594_v4 = vld [vmem:[#allocation3 + $0x13a] sm:$0xff] }
 0x41d   : > { %v13163_v59 = vpop.f32.mrf.mxu0  ;;  %v16871_v50 = vadd.f32 %v8373_v5, %v7990_v53  ;;  %v7992_v14 = vadd.f32 %v13089_v26, %v16692_v1  ;;  %13386 = vmatprep.mubr.msk.f32.mxu1 %vm225_vm1, %v9587_v61 }
 0x41e   : > { %v7864_v41 = vpop.f32.mrf.mxu1 }
 0x41f   : > { %v8382_v57 = vpop.f32.mrf.mxu0  ;;  %v16875_v43 = vadd.f32 %v13163_v59, %v7992_v14  ;;  %v7991_v35 = vadd.f32 %v7864_v41, %v16698_v23  ;;  %v9591_v23 = vld [vmem:[#allocation3 + $0x122] sm:$0xff] }
 0x420   : > { %v13092_v37 = vpop.f32.mrf.mxu1  ;;  %13387 = vmatmul.mubr.msk.f32.gmra.mxu1 %vm225_vm1, %v9588_v40  ;;  %v9595_v59 = vld [vmem:[#allocation3 + $0x142] sm:$0xff] }
 0x421   : > { %v13166_v51 = vpop.f32.mrf.mxu0  ;;  %v16879_v17 = vadd.f32 %v8382_v57, %v7991_v35  ;;  %v7993_v21 = vadd.f32 %v13092_v37, %v16704_v49  ;;  %13389 = vmatprep.mubr.msk.f32.mxu1 %vm225_vm1, %v9589_v25  ;;  %v9596_v35 = vld [vmem:[#allocation3 + $0x14a] sm:$0xff] }
 0x422   : > { %v7874_v1 = vpop.f32.mrf.mxu1 }
 0x423   : > { %v8392_v44 = vpop.f32.mrf.mxu0  ;;  %v16883_v20 = vadd.f32 %v13166_v51, %v7993_v21  ;;  %v9598_v1 = vld [vmem:[#allocation3 + $0x15a] sm:$0xff] }
 0x424   : > { %v13095_v42 = vpop.f32.mrf.mxu1  ;;  %13390 = vmatmul.mubr.msk.f32.gmra.mxu1 %vm225_vm1, %v9590_v63  ;;  %v9599_v63 = vld [vmem:[#allocation3 + $0x162] sm:$0xff] }
 0x425   : > { %v13169_v34 = vpop.f32.mrf.mxu0  ;;  %13392 = vmatprep.mubr.msk.f32.mxu1 %vm225_vm1, %v9591_v23 }
 0x426   : > { %v7883_v30 = vpop.f32.mrf.mxu1 }
 0x427   : > { %v8401_v0 = vpop.f32.mrf.mxu0  ;;  %v7994_v54 = vadd.f32 %v7883_v30, %v16716_v24 }
 0x428   : > { %v13098_v49 = vpop.f32.mrf.mxu1  ;;  %13393 = vmatmul.mubr.msk.f32.gmra.mxu1 %vm225_vm1, %v9592_v52  ;;  %v9600_v52 = vld [vmem:[#allocation3 + $0x16a] sm:$0xff] }
 0x429   : > { %v13172_v60 = vpop.f32.mrf.mxu0  ;;  %v16889_v27 = vadd.f32 %v8401_v0, %v7994_v54  ;;  %v7996_v62 = vadd.f32 %v13098_v49, %v16722_v29  ;;  %13395 = vmatprep.mubr.msk.f32.mxu1 %vm225_vm1, %v9593_v8 }
 0x42a   : > { %v7892_v55 = vpop.f32.mrf.mxu1 }
 0x42b   : > { %v8410_v13 = vpop.f32.mrf.mxu0  ;;  %v16893_v5 = vadd.f32 %v13172_v60, %v7996_v62  ;;  %v7995_v53 = vadd.f32 %v7892_v55, %v16728_v15  ;;  %v9597_v15 = vld [vmem:[#allocation3 + $0x152] sm:$0xff] }
 0x42c   : > { %v13101_v24 = vpop.f32.mrf.mxu1  ;;  %13396 = vmatmul.mubr.msk.f32.gmra.mxu1 %vm225_vm1, %v9594_v4  ;;  %v9601_v60 = vld [vmem:[#allocation3 + $0x172] sm:$0xff] }
 0x42d   : > { %v13175_v26 = vpop.f32.mrf.mxu0  ;;  %v16897_v61 = vadd.f32 %v8410_v13, %v7995_v53  ;;  %v7997_v14 = vadd.f32 %v13101_v24, %v16734_v36  ;;  %13398 = vmatprep.mubr.msk.f32.mxu1 %vm225_vm1, %v9595_v59  ;;  %v9602_v53 = vld [vmem:[#allocation3 + $0x17a] sm:$0xff] }
 0x42e   : > { %v7902_v29 = vpop.f32.mrf.mxu1 }
 0x42f   : > { %v8420_v41 = vpop.f32.mrf.mxu0  ;;  %v16901_v57 = vadd.f32 %v13175_v26, %v7997_v14  ;;  %v9605_v14 = vld [vmem:[#allocation3 + $0x192] sm:$0xff] }
 0x430   : > { %v13104_v40 = vpop.f32.mrf.mxu1  ;;  %13399 = vmatmul.mubr.msk.f32.gmra.mxu1 %vm225_vm1, %v9596_v35 }
 0x431   : > { %v13178_v37 = vpop.f32.mrf.mxu0  ;;  %13401 = vmatprep.mubr.msk.f32.mxu1 %vm225_vm1, %v9597_v15  ;;  %v9606_v15 = vld [vmem:[#allocation3 + $0x19a] sm:$0xff] }
 0x432   : > { %v7911_v51 = vpop.f32.mrf.mxu1 }
 0x433   : > { %v8429_v25 = vpop.f32.mrf.mxu0  ;;  %v7998_v21 = vadd.f32 %v7911_v51, %v16746_v46 }
 0x434   : > { %v13107_v36 = vpop.f32.mrf.mxu1  ;;  %13402 = vmatmul.mubr.msk.f32.gmra.mxu1 %vm225_vm1, %v9598_v1 }
 0x435   : > { %v13181_v44 = vpop.f32.mrf.mxu0  ;;  %v16907_v42 = vadd.f32 %v8429_v25, %v7998_v21  ;;  %v8000_v34 = vadd.f32 %v13107_v36, %v16752_v22  ;;  %13404 = vmatprep.mubr.msk.f32.mxu1 %vm225_vm1, %v9599_v63  ;;  %v9607_v21 = vld [vmem:[#allocation3 + $0x1a2] sm:$0xff] }
 0x436   : > { %v7920_v23 = vpop.f32.mrf.mxu1 }
 0x437   : > { %v8438_v30 = vpop.f32.mrf.mxu0  ;;  %v16911_v0 = vadd.f32 %v13181_v44, %v8000_v34  ;;  %v7999_v54 = vadd.f32 %v7920_v23, %v16758_v39  ;;  %v9603_v39 = vld [vmem:[#allocation3 + $0x182] sm:$0xff] }
 0x438   : > { %v13110_v46 = vpop.f32.mrf.mxu1  ;;  %13405 = vmatmul.mubr.msk.f32.gmra.mxu1 %vm225_vm1, %v9600_v52 }
 0x439   : > { %v13184_v49 = vpop.f32.mrf.mxu0  ;;  %v16915_v8 = vadd.f32 %v8438_v30, %v7999_v54  ;;  %v8001_v62 = vadd.f32 %v13110_v46, %v16764_v47  ;;  %13407 = vmatprep.mubr.msk.f32.mxu1 %vm225_vm1, %v9601_v60  ;;  %v9604_v47 = vld [vmem:[#allocation3 + $0x18a] sm:$0xff] }
 0x43a   : > { %v7930_v22 = vpop.f32.mrf.mxu1 }
 0x43b   : > { %v8448_v55 = vpop.f32.mrf.mxu0  ;;  %v16919_v13 = vadd.f32 %v13184_v49, %v8001_v62 }
 0x43c   : > { %v13113_v4 = vpop.f32.mrf.mxu1  ;;  %13408 = vmatmul.mubr.msk.f32.gmra.mxu1 %vm225_vm1, %v9602_v53 }
 0x43d   : > { %v13187_v24 = vpop.f32.mrf.mxu0  ;;  %13410 = vmatprep.mubr.msk.f32.mxu1 %vm225_vm1, %v9603_v39 }
 0x43e   : > { %v7939_v26 = vpop.f32.mrf.mxu1 }
 0x43f   : > { %v8457_v59 = vpop.f32.mrf.mxu0  ;;  %v8002_v29 = vadd.f32 %v7939_v26, %v16776_v6 }
 0x440   : > { %v13116_v41 = vpop.f32.mrf.mxu1  ;;  %13411 = vmatmul.mubr.msk.f32.gmra.mxu1 %vm225_vm1, %v9604_v47 }
 0x441   : > { %v13190_v35 = vpop.f32.mrf.mxu0  ;;  %v16925_v40 = vadd.f32 %v8457_v59, %v8002_v29  ;;  %v8004_v37 = vadd.f32 %v13116_v41, %v16782_v33  ;;  %13413 = vmatprep.mubr.msk.f32.mxu1 %vm225_vm1, %v9605_v14  ;;  %v9608_v33 = vld [vmem:[#allocation3 + $0x1aa] sm:$0xff] }
 0x442   : > { %v7948_v51 = vpop.f32.mrf.mxu1 }
 0x443   : > { %v8466_v25 = vpop.f32.mrf.mxu0  ;;  %v16929_v1 = vadd.f32 %v13190_v35, %v8004_v37  ;;  %v8003_v36 = vadd.f32 %v7948_v51, %v16787_v2 }
 0x444   : > { %v13119_v6 = vpop.f32.mrf.mxu1  ;;  %13414 = vmatmul.mubr.msk.f32.gmra.mxu1 %vm225_vm1, %v9606_v15 }
 0x445   : > { %v13193_v44 = vpop.f32.mrf.mxu0  ;;  %v16933_v63 = vadd.f32 %v8466_v25, %v8003_v36  ;;  %v8005_v34 = vadd.f32 %v13119_v6, %v16792_v10  ;;  %13416 = vmatprep.mubr.msk.f32.mxu1 %vm225_vm1, %v9607_v21 }
 0x446   : > { %v7958_v23 = vpop.f32.mrf.mxu1 }
 0x447   : > { %v8476_v30 = vpop.f32.mrf.mxu0  ;;  %v16937_v54 = vadd.f32 %v13193_v44, %v8005_v34 }
 0x448   : > { %v13122_v52 = vpop.f32.mrf.mxu1  ;;  %13417 = vmatmul.mubr.msk.f32.gmra.mxu1 %vm225_vm1, %v9608_v33 }
 0x449   : > { %v13196_v46 = vpop.f32.mrf.mxu0 }
 0x44a   : > { %v7967_v2 = vpop.f32.mrf.mxu1 }
 0x44b   : > { %v8485_v49 = vpop.f32.mrf.mxu0  ;;  %v8006_v60 = vadd.f32 %v7967_v2, %v16799_v11 }
 0x44c   : > { %v13201_v62 = vpop.f32.mrf.mxu1 }
 0x44d   : > { %v13275_v22 = vpop.f32.mrf.mxu0  ;;  %v16941_v55 = vadd.f32 %v8485_v49, %v8006_v60  ;;  %v9012_v10 = vadd.f32 %v13201_v62, %v16803_v9 }
 0x44e   : > { %v8788_v53 = vpop.f32.mrf.mxu1 }
 0x44f   : > { %v9306_v4 = vpop.f32.mrf.mxu0  ;;  %v16944_v24 = vadd.f32 %v13275_v22, %v9012_v10  ;;  %v9011_v39 = vadd.f32 %v8788_v53, %v16807_v16 }
 0x450   : > { %v13204_v26 = vpop.f32.mrf.mxu1 }
 0x451   : > { %v13278_v59 = vpop.f32.mrf.mxu0  ;;  %v16947_v14 = vadd.f32 %v9306_v4, %v9011_v39  ;;  %v9013_v29 = vadd.f32 %v13204_v26, %v16811_v31 }
 0x452   : > { %v8798_v47 = vpop.f32.mrf.mxu1 }
 0x453   : > { %v9316_v11 = vpop.f32.mrf.mxu0  ;;  %v16950_v41 = vadd.f32 %v13278_v59, %v9013_v29 }
 0x454   : > { %v13207_v35 = vpop.f32.mrf.mxu1 }
 0x455   : > { %v13281_v37 = vpop.f32.mrf.mxu0 }
 0x456   : > { %v8807_v15 = vpop.f32.mrf.mxu1 }
 0x457   : > { %v9325_v9 = vpop.f32.mrf.mxu0  ;;  %v9014_v51 = vadd.f32 %v8807_v15, %v16817_v56 }
 0x458   : > { %v13210_v25 = vpop.f32.mrf.mxu1 }
 0x459   : > { %v13284_v21 = vpop.f32.mrf.mxu0  ;;  %v16953_v36 = vadd.f32 %v9325_v9, %v9014_v51  ;;  %v9016_v16 = vadd.f32 %v13210_v25, %v16821_v18 }
 0x45a   : > { %v8816_v6 = vpop.f32.mrf.mxu1 }
 0x45b   : > { %v9334_v44 = vpop.f32.mrf.mxu0  ;;  %v16956_v34 = vadd.f32 %v13284_v21, %v9016_v16  ;;  %v9015_v31 = vadd.f32 %v8816_v6, %v16825_v38 }
 0x45c   : > { %v13213_v33 = vpop.f32.mrf.mxu1 }
 0x45d   : > { %v13287_v23 = vpop.f32.mrf.mxu0  ;;  %v16959_v30 = vadd.f32 %v9334_v44, %v9015_v31  ;;  %v9017_v52 = vadd.f32 %v13213_v33, %v16829_v58 }
 0x45e   : > { %v8826_v46 = vpop.f32.mrf.mxu1 }
 0x45f   : > { %v9344_v56 = vpop.f32.mrf.mxu0  ;;  %v16962_v2 = vadd.f32 %v13287_v23, %v9017_v52 }
 0x460   : > { %v13216_v49 = vpop.f32.mrf.mxu1 }
 0x461   : > { %v13290_v60 = vpop.f32.mrf.mxu0 }
 0x462   : > { %v8835_v62 = vpop.f32.mrf.mxu1 }
 0x463   : > { %v9353_v18 = vpop.f32.mrf.mxu0  ;;  %v9018_v22 = vadd.f32 %v8835_v62, %v16835_v45 }
 0x464   : > { %v13219_v10 = vpop.f32.mrf.mxu1 }
 0x465   : > { %v13293_v53 = vpop.f32.mrf.mxu0  ;;  %v16965_v4 = vadd.f32 %v9353_v18, %v9018_v22  ;;  %v9020_v38 = vadd.f32 %v13219_v10, %v16839_v32 }
 0x466   : > { %v8844_v39 = vpop.f32.mrf.mxu1 }
 0x467   : > { %v9362_v26 = vpop.f32.mrf.mxu0  ;;  %v16968_v59 = vadd.f32 %v13293_v53, %v9020_v38  ;;  %v9019_v58 = vadd.f32 %v8844_v39, %v16843_v48 }
 0x468   : > { %v13222_v29 = vpop.f32.mrf.mxu1 }
 0x469   : > { %v13296_v47 = vpop.f32.mrf.mxu0  ;;  %v16971_v11 = vadd.f32 %v9362_v26, %v9019_v58  ;;  %v9021_v35 = vadd.f32 %v13222_v29, %v16847_v19 }
 0x46a   : > { %v8854_v37 = vpop.f32.mrf.mxu1 }
 0x46b   : > { %v9372_v45 = vpop.f32.mrf.mxu0  ;;  %v16974_v15 = vadd.f32 %v13296_v47, %v9021_v35 }
 0x46c   : > { %v13225_v9 = vpop.f32.mrf.mxu1 }
 0x46d   : > { %v13299_v51 = vpop.f32.mrf.mxu0 }
 0x46e   : > { %v8863_v25 = vpop.f32.mrf.mxu1 }
 0x46f   : > { %v9381_v32 = vpop.f32.mrf.mxu0  ;;  %v9022_v21 = vadd.f32 %v8863_v25, %v16853_v7 }
 0x470   : > { %v13228_v16 = vpop.f32.mrf.mxu1 }
 0x471   : > { %v13302_v6 = vpop.f32.mrf.mxu0  ;;  %v16977_v44 = vadd.f32 %v9381_v32, %v9022_v21  ;;  %v9024_v48 = vadd.f32 %v13228_v16, %v16857_v28 }
 0x472   : > { %v8872_v31 = vpop.f32.mrf.mxu1 }
 0x473   : > { %v9390_v33 = vpop.f32.mrf.mxu0  ;;  %v16980_v23 = vadd.f32 %v13302_v6, %v9024_v48  ;;  %v9023_v19 = vadd.f32 %v8872_v31, %v16861_v12 }
 0x474   : > { %v13231_v52 = vpop.f32.mrf.mxu1 }
 0x475   : > { %v13305_v46 = vpop.f32.mrf.mxu0  ;;  %v16983_v56 = vadd.f32 %v9390_v33, %v9023_v19  ;;  %v9025_v49 = vadd.f32 %v13231_v52, %v16865_v3 }
 0x476   : > { %v8882_v60 = vpop.f32.mrf.mxu1 }
 0x477   : > { %v9400_v7 = vpop.f32.mrf.mxu0  ;;  %v16986_v62 = vadd.f32 %v13305_v46, %v9025_v49 }
 0x478   : > { %v13234_v18 = vpop.f32.mrf.mxu1 }
 0x479   : > { %v13308_v22 = vpop.f32.mrf.mxu0 }
 0x47a   : > { %v8891_v10 = vpop.f32.mrf.mxu1 }
 0x47b   : > { %v9409_v28 = vpop.f32.mrf.mxu0  ;;  %v9026_v53 = vadd.f32 %v8891_v10, %v16871_v50 }
 0x47c   : > { %v13237_v38 = vpop.f32.mrf.mxu1 }
 0x47d   : > { %v13311_v39 = vpop.f32.mrf.mxu0  ;;  %v16989_v26 = vadd.f32 %v9409_v28, %v9026_v53  ;;  %v9028_v12 = vadd.f32 %v13237_v38, %v16875_v43 }
 0x47e   : > { %v8900_v58 = vpop.f32.mrf.mxu1 }
 0x47f   : > { %v9418_v29 = vpop.f32.mrf.mxu0  ;;  %v16992_v47 = vadd.f32 %v13311_v39, %v9028_v12  ;;  %v9027_v3 = vadd.f32 %v8900_v58, %v16879_v17 }
 0x480   : > { %v13240_v35 = vpop.f32.mrf.mxu1 }
 0x481   : > { %v13314_v37 = vpop.f32.mrf.mxu0  ;;  %v16995_v45 = vadd.f32 %v9418_v29, %v9027_v3  ;;  %v9029_v9 = vadd.f32 %v13240_v35, %v16883_v20 }
 0x482   : > { %v8910_v51 = vpop.f32.mrf.mxu1 }
 0x483   : > { %v9428_v50 = vpop.f32.mrf.mxu0  ;;  %v16998_v25 = vadd.f32 %v13314_v37, %v9029_v9 }
 0x484   : > { %v13243_v32 = vpop.f32.mrf.mxu1 }
 0x485   : > { %v13317_v21 = vpop.f32.mrf.mxu0 }
 0x486   : > { %v8919_v16 = vpop.f32.mrf.mxu1 }
 0x487   : > { %v9437_v43 = vpop.f32.mrf.mxu0  ;;  %v9030_v6 = vadd.f32 %v8919_v16, %v16889_v27 }
 0x488   : > { %v13246_v48 = vpop.f32.mrf.mxu1 }
 0x489   : > { %v13320_v31 = vpop.f32.mrf.mxu0  ;;  %v17001_v33 = vadd.f32 %v9437_v43, %v9030_v6  ;;  %v9032_v17 = vadd.f32 %v13246_v48, %v16893_v5 }
 0x48a   : > { %v8928_v19 = vpop.f32.mrf.mxu1 }
 0x48b   : > { %v9446_v52 = vpop.f32.mrf.mxu0  ;;  %v17004_v46 = vadd.f32 %v13320_v31, %v9032_v17  ;;  %v9031_v20 = vadd.f32 %v8928_v19, %v16897_v61 }
 0x48c   : > { %v13249_v49 = vpop.f32.mrf.mxu1 }
 0x48d   : > { %v13323_v60 = vpop.f32.mrf.mxu0  ;;  %v17007_v7 = vadd.f32 %v9446_v52, %v9031_v20  ;;  %v9033_v18 = vadd.f32 %v13249_v49, %v16901_v57 }
 0x48e   : > { %v8938_v22 = vpop.f32.mrf.mxu1 }
 0x48f   : > { %v9456_v27 = vpop.f32.mrf.mxu0  ;;  %v17010_v10 = vadd.f32 %v13323_v60, %v9033_v18 }
 0x490   : > { %v13252_v28 = vpop.f32.mrf.mxu1 }
 0x491   : > { %v13326_v53 = vpop.f32.mrf.mxu0 }
 0x492   : > { %v8947_v38 = vpop.f32.mrf.mxu1 }
 0x493   : > { %v9465_v5 = vpop.f32.mrf.mxu0  ;;  %v9034_v39 = vadd.f32 %v8947_v38, %v16907_v42 }
 0x494   : > { %v13255_v12 = vpop.f32.mrf.mxu1 }
 0x495   : > { %v13329_v58 = vpop.f32.mrf.mxu0  ;;  %v17013_v29 = vadd.f32 %v9465_v5, %v9034_v39  ;;  %v9036_v61 = vadd.f32 %v13255_v12, %v16911_v0 }
 0x496   : > { %v8956_v3 = vpop.f32.mrf.mxu1 }
 0x497   : > { %v9474_v35 = vpop.f32.mrf.mxu0  ;;  %v17016_v37 = vadd.f32 %v13329_v58, %v9036_v61  ;;  %v9035_v57 = vadd.f32 %v8956_v3, %v16915_v8  ;;  %v10112_v61 = vld [vmem:[%s13573_s7 + $0x8] sm:$0xff] }
 0x498   : > { %v13258_v9 = vpop.f32.mrf.mxu1 }
 0x499   : > { %v13332_v51 = vpop.f32.mrf.mxu0  ;;  %v17019_v50 = vadd.f32 %v9474_v35, %v9035_v57  ;;  %v9037_v32 = vadd.f32 %v13258_v9, %v16919_v13 }
 0x49a   : > { %v8966_v21 = vpop.f32.mrf.mxu1 }
 0x49b   : > { %v9484_v42 = vpop.f32.mrf.mxu0  ;;  %v17022_v16 = vadd.f32 %v13332_v51, %v9037_v32  ;;  %v10113_v32 = vld [vmem:[%s13573_s7 + $0x10] sm:$0xff] }
 0x49c   : > { %v13261_v43 = vpop.f32.mrf.mxu1 }
 0x49d   : > { %v13335_v6 = vpop.f32.mrf.mxu0 }
 0x49e   : > { %v8975_v48 = vpop.f32.mrf.mxu1 }
 0x49f   : > { %v9493_v0 = vpop.f32.mrf.mxu0  ;;  %v9038_v31 = vadd.f32 %v8975_v48, %v16925_v40 }
 0x4a0   : > { %v13264_v17 = vpop.f32.mrf.mxu1 }
 0x4a1   : > { %v13338_v19 = vpop.f32.mrf.mxu0  ;;  %v17025_v52 = vadd.f32 %v9493_v0, %v9038_v31  ;;  %v9040_v8 = vadd.f32 %v13264_v17, %v16929_v1 }
 0x4a2   : > { %v8984_v20 = vpop.f32.mrf.mxu1 }
 0x4a3   : > { %v9502_v49 = vpop.f32.mrf.mxu0  ;;  %v17028_v13 = vadd.f32 %v13338_v19, %v9040_v8  ;;  %v9039_v60 = vadd.f32 %v8984_v20, %v16933_v63  ;;  %v10116_v8 = vld [vmem:[%s13573_s7 + $0x28] sm:$0xff] }
 0x4a4   : > { %v13267_v18 = vpop.f32.mrf.mxu1 }
 0x4a5   : > { %v13341_v22 = vpop.f32.mrf.mxu0  ;;  %v17031_v27 = vadd.f32 %v9502_v49, %v9039_v60  ;;  %v9041_v40 = vadd.f32 %v13267_v18, %v16937_v54  ;;  %v10111_v54 = vld [vmem:[%s13573_s7] sm:$0xff] }
 0x4a6   : > { %v8994_v28 = vpop.f32.mrf.mxu1 }
 0x4a7   : > { %v9512_v53 = vpop.f32.mrf.mxu0  ;;  %v17034_v38 = vadd.f32 %v13341_v22, %v9041_v40  ;;  %v10115_v22 = vld [vmem:[%s13573_s7 + $0x20] sm:$0xff] }
 0x4a8   : > { %v13270_v1 = vpop.f32.mrf.mxu1 }
 0x4a9   : > { %v13344_v5 = vpop.f32.mrf.mxu0  ;;  %v10117_v1 = vld [vmem:[%s13573_s7 + $0x30] sm:$0xff] }
 0x4aa   : > { %v9003_v39 = vpop.f32.mrf.mxu1 }
 0x4ab   : > { %v17037_v12 = vadd.f32 %v9003_v39, %v16941_v55 }
 0x4ac   : > { %v13349_v63 = vpop.f32.mrf.mxu1 }
 0x4ad   : > { %v10048_v58 = vadd.f32 %v13349_v63, %v16944_v24 }
 0x4ae   : > { %v9824_v3 = vpop.f32.mrf.mxu1 }
 0x4af   : > { %v10080_v35 = vmax.f32 %v10048_v58, 0.0  ;;  %v10047_v57 = vadd.f32 %v9824_v3, %v16947_v14 }
 0x4b0   : > { %v13352_v55 = vpop.f32.mrf.mxu1 }
 0x4b1   : > { %v10144_v9 = vadd.f32 %v10112_v61, %v10080_v35  ;;  %v10079_v51 = vmax.f32 %v10047_v57, 0.0  ;;  %v10049_v24 = vadd.f32 %v13352_v55, %v16950_v41  ;;  %v10114_v41 = vld [vmem:[%s13573_s7 + $0x18] sm:$0xff] }
 0x4b2   : > { %v9834_v21 = vpop.f32.mrf.mxu1 }
 0x4b3   : > { %10176 = vst.msk [vmem:[%s17047_s27 + $0x8] sm:$0xff] %vm225_vm1, %v10144_v9  ;;  %v10143_v14 = vadd.f32 %v10111_v54, %v10079_v51  ;;  %v10081_v42 = vmax.f32 %v10049_v24, 0.0  ;;  %v10120_v54 = vld [vmem:[%s13573_s7 + $0x48] sm:$0xff] }
 0x4b4   : > { %v13355_v43 = vpop.f32.mrf.mxu1 }
 0x4b5   : > { %10175 = vst.msk [vmem:[%s17047_s27] sm:$0xff] %vm225_vm1, %v10143_v14  ;;  %v10145_v6 = vadd.f32 %v10113_v32, %v10081_v42  ;;  %v10119_v32 = vld [vmem:[%s13573_s7 + $0x40] sm:$0xff]  ;;  %v10121_v43 = vld [vmem:[%s13573_s7 + $0x50] sm:$0xff] }
 0x4b6   : > { %v9843_v48 = vpop.f32.mrf.mxu1 }
 0x4b7   : > { %10177 = vst.msk [vmem:[%s17047_s27 + $0x10] sm:$0xff] %vm225_vm1, %v10145_v6  ;;  %v10050_v0 = vadd.f32 %v9843_v48, %v16953_v36 }
 0x4b8   : > { %v13358_v31 = vpop.f32.mrf.mxu1 }
 0x4b9   : > { %v10082_v17 = vmax.f32 %v10050_v0, 0.0  ;;  %v10052_v19 = vadd.f32 %v13358_v31, %v16956_v34 }
 0x4ba   : > { %v9852_v20 = vpop.f32.mrf.mxu1 }
 0x4bb   : > { %v10146_v49 = vadd.f32 %v10114_v41, %v10082_v17  ;;  %v10084_v60 = vmax.f32 %v10052_v19, 0.0  ;;  %v10051_v18 = vadd.f32 %v9852_v20, %v16959_v30  ;;  %v10124_v20 = vld [vmem:[%s13573_s7 + $0x68] sm:$0xff] }
 0x4bc   : > { %v13361_v40 = vpop.f32.mrf.mxu1 }
 0x4bd   : > { %10178 = vst.msk [vmem:[%s17047_s27 + $0x18] sm:$0xff] %vm225_vm1, %v10146_v49  ;;  %v10148_v36 = vadd.f32 %v10116_v8, %v10084_v60  ;;  %v10083_v28 = vmax.f32 %v10051_v18, 0.0  ;;  %v10053_v53 = vadd.f32 %v13361_v40, %v16962_v2  ;;  %v10118_v2 = vld [vmem:[%s13573_s7 + $0x38] sm:$0xff]  ;;  %v10123_v40 = vld [vmem:[%s13573_s7 + $0x60] sm:$0xff] }
 0x4be   : > { %v9862_v34 = vpop.f32.mrf.mxu1 }
 0x4bf   : > { %10180 = vst.msk [vmem:[%s17047_s27 + $0x28] sm:$0xff] %vm225_vm1, %v10148_v36  ;;  %v10147_v5 = vadd.f32 %v10115_v22, %v10083_v28  ;;  %v10085_v39 = vmax.f32 %v10053_v53, 0.0 }
 0x4c0   : > { %v13364_v63 = vpop.f32.mrf.mxu1 }
 0x4c1   : > { %10179 = vst.msk [vmem:[%s17047_s27 + $0x20] sm:$0xff] %vm225_vm1, %v10147_v5  ;;  %v10149_v30 = vadd.f32 %v10117_v1, %v10085_v39  ;;  %v10125_v1 = vld [vmem:[%s13573_s7 + $0x70] sm:$0xff] }
 0x4c2   : > { %v9871_v58 = vpop.f32.mrf.mxu1 }
 0x4c3   : > { %10181 = vst.msk [vmem:[%s17047_s27 + $0x30] sm:$0xff] %vm225_vm1, %v10149_v30  ;;  %v10054_v61 = vadd.f32 %v9871_v58, %v16965_v4 }
 0x4c4   : > { %v13367_v3 = vpop.f32.mrf.mxu1 }
 0x4c5   : > { %v10086_v35 = vmax.f32 %v10054_v61, 0.0  ;;  %v10056_v57 = vadd.f32 %v13367_v3, %v16968_v59  ;;  %v10128_v3 = vld [vmem:[%s13573_s7 + $0x88] sm:$0xff] }
 0x4c6   : > { %v9880_v55 = vpop.f32.mrf.mxu1 }
 0x4c7   : > { %v10150_v9 = vadd.f32 %v10118_v2, %v10086_v35  ;;  %v10088_v51 = vmax.f32 %v10056_v57, 0.0  ;;  %v10055_v24 = vadd.f32 %v9880_v55, %v16971_v11 }
 0x4c8   : > { %v13370_v21 = vpop.f32.mrf.mxu1 }
 0x4c9   : > { %10182 = vst.msk [vmem:[%s17047_s27 + $0x38] sm:$0xff] %vm225_vm1, %v10150_v9  ;;  %v10152_v4 = vadd.f32 %v10120_v54, %v10088_v51  ;;  %v10087_v14 = vmax.f32 %v10055_v24, 0.0  ;;  %v10057_v42 = vadd.f32 %v13370_v21, %v16974_v15  ;;  %v10122_v15 = vld [vmem:[%s13573_s7 + $0x58] sm:$0xff]  ;;  %v10127_v9 = vld [vmem:[%s13573_s7 + $0x80] sm:$0xff]  ;;  %v10129_v21 = vld [vmem:[%s13573_s7 + $0x90] sm:$0xff] }
 0x4ca   : > { %v9890_v59 = vpop.f32.mrf.mxu1 }
 0x4cb   : > { %10184 = vst.msk [vmem:[%s17047_s27 + $0x48] sm:$0xff] %vm225_vm1, %v10152_v4  ;;  %v10151_v6 = vadd.f32 %v10119_v32, %v10087_v14  ;;  %v10089_v48 = vmax.f32 %v10057_v42, 0.0 }
 0x4cc   : > { %v13373_v0 = vpop.f32.mrf.mxu1 }
 0x4cd   : > { %10183 = vst.msk [vmem:[%s17047_s27 + $0x40] sm:$0xff] %vm225_vm1, %v10151_v6  ;;  %v10153_v11 = vadd.f32 %v10121_v43, %v10089_v48 }
 0x4ce   : > { %v9899_v41 = vpop.f32.mrf.mxu1 }
 0x4cf   : > { %10185 = vst.msk [vmem:[%s17047_s27 + $0x50] sm:$0xff] %vm225_vm1, %v10153_v11  ;;  %v10058_v31 = vadd.f32 %v9899_v41, %v16977_v44  ;;  %v10132_v11 = vld [vmem:[%s13573_s7 + $0xa8] sm:$0xff] }
 0x4d0   : > { %v13376_v17 = vpop.f32.mrf.mxu1 }
 0x4d1   : > { %v10090_v19 = vmax.f32 %v10058_v31, 0.0  ;;  %v10060_v8 = vadd.f32 %v13376_v17, %v16980_v23 }
 0x4d2   : > { %v9908_v49 = vpop.f32.mrf.mxu1 }
 0x4d3   : > { %v10154_v60 = vadd.f32 %v10122_v15, %v10090_v19  ;;  %v10092_v18 = vmax.f32 %v10060_v8, 0.0  ;;  %v10059_v22 = vadd.f32 %v9908_v49, %v16983_v56  ;;  %v10131_v19 = vld [vmem:[%s13573_s7 + $0xa0] sm:$0xff] }
 0x4d4   : > { %v13379_v36 = vpop.f32.mrf.mxu1 }
 0x4d5   : > { %10186 = vst.msk [vmem:[%s17047_s27 + $0x58] sm:$0xff] %vm225_vm1, %v10154_v60  ;;  %v10156_v44 = vadd.f32 %v10124_v20, %v10092_v18  ;;  %v10091_v28 = vmax.f32 %v10059_v22, 0.0  ;;  %v10061_v53 = vadd.f32 %v13379_v36, %v16986_v62  ;;  %v10126_v62 = vld [vmem:[%s13573_s7 + $0x78] sm:$0xff]  ;;  %v10133_v60 = vld [vmem:[%s13573_s7 + $0xb0] sm:$0xff] }
 0x4d6   : > { %v9918_v23 = vpop.f32.mrf.mxu1 }
 0x4d7   : > { %10188 = vst.msk [vmem:[%s17047_s27 + $0x68] sm:$0xff] %vm225_vm1, %v10156_v44  ;;  %v10155_v34 = vadd.f32 %v10123_v40, %v10091_v28  ;;  %v10093_v5 = vmax.f32 %v10061_v53, 0.0  ;;  %v10136_v23 = vld [vmem:[%s13573_s7 + $0xc8] sm:$0xff] }
 0x4d8   : > { %v13382_v39 = vpop.f32.mrf.mxu1 }
 0x4d9   : > { %10187 = vst.msk [vmem:[%s17047_s27 + $0x60] sm:$0xff] %vm225_vm1, %v10155_v34  ;;  %v10157_v56 = vadd.f32 %v10125_v1, %v10093_v5 }
 0x4da   : > { %v9927_v63 = vpop.f32.mrf.mxu1 }
 0x4db   : > { %10189 = vst.msk [vmem:[%s17047_s27 + $0x70] sm:$0xff] %vm225_vm1, %v10157_v56  ;;  %v10062_v30 = vadd.f32 %v9927_v63, %v16989_v26  ;;  %v10135_v63 = vld [vmem:[%s13573_s7 + $0xc0] sm:$0xff] }
 0x4dc   : > { %v13385_v58 = vpop.f32.mrf.mxu1 }
 0x4dd   : > { %v10094_v61 = vmax.f32 %v10062_v30, 0.0  ;;  %v10064_v2 = vadd.f32 %v13385_v58, %v16992_v47 }
 0x4de   : > { %v9936_v35 = vpop.f32.mrf.mxu1 }
 0x4df   : > { %v10158_v57 = vadd.f32 %v10126_v62, %v10094_v61  ;;  %v10096_v54 = vmax.f32 %v10064_v2, 0.0  ;;  %v10063_v55 = vadd.f32 %v9936_v35, %v16995_v45  ;;  %v10137_v61 = vld [vmem:[%s13573_s7 + $0xd0] sm:$0xff] }
 0x4e0   : > { %v13388_v51 = vpop.f32.mrf.mxu1 }
 0x4e1   : > { %10190 = vst.msk [vmem:[%s17047_s27 + $0x78] sm:$0xff] %vm225_vm1, %v10158_v57  ;;  %v10160_v26 = vadd.f32 %v10128_v3, %v10096_v54  ;;  %v10095_v24 = vmax.f32 %v10063_v55, 0.0  ;;  %v10065_v32 = vadd.f32 %v13388_v51, %v16998_v25  ;;  %v10130_v25 = vld [vmem:[%s13573_s7 + $0x98] sm:$0xff] }
 0x4e2   : > { %v9946_v47 = vpop.f32.mrf.mxu1  ;;  %v10138_v55 = vld [vmem:[%s13573_s7 + $0xd8] sm:$0xff] }
 0x4e3   : > { %10192 = vst.msk [vmem:[%s17047_s27 + $0x88] sm:$0xff] %vm225_vm1, %v10160_v26  ;;  %v10159_v4 = vadd.f32 %v10127_v9, %v10095_v24  ;;  %v10097_v14 = vmax.f32 %v10065_v32, 0.0  ;;  %v10140_v26 = vld [vmem:[%s13573_s7 + $0xe8] sm:$0xff] }
 0x4e4   : > { %v13391_v42 = vpop.f32.mrf.mxu1 }
 0x4e5   : > { %10191 = vst.msk [vmem:[%s17047_s27 + $0x80] sm:$0xff] %vm225_vm1, %v10159_v4  ;;  %v10161_v45 = vadd.f32 %v10129_v21, %v10097_v14  ;;  %v10139_v4 = vld [vmem:[%s13573_s7 + $0xe0] sm:$0xff] }
 0x4e6   : > { %v9955_v43 = vpop.f32.mrf.mxu1 }
 0x4e7   : > { %10193 = vst.msk [vmem:[%s17047_s27 + $0x90] sm:$0xff] %vm225_vm1, %v10161_v45  ;;  %v10066_v59 = vadd.f32 %v9955_v43, %v17001_v33  ;;  %v9521_v43 = vpop.f32.mrf.mxu0 }
 0x4e8   : > { %v13394_v6 = vpop.f32.mrf.mxu1 }
 0x4e9   : > { %v10098_v48 = vmax.f32 %v10066_v59, 0.0  ;;  %v10068_v0 = vadd.f32 %v13394_v6, %v17004_v46 }
 0x4ea   : > { %v9964_v41 = vpop.f32.mrf.mxu1 }
 0x4eb   : > { %v10162_v31 = vadd.f32 %v10130_v25, %v10098_v48  ;;  %v10100_v15 = vmax.f32 %v10068_v0, 0.0  ;;  %v10067_v17 = vadd.f32 %v9964_v41, %v17007_v7 }
 0x4ec   : > { %v13397_v8 = vpop.f32.mrf.mxu1 }
 0x4ed   : > { %10194 = vst.msk [vmem:[%s17047_s27 + $0x98] sm:$0xff] %vm225_vm1, %v10162_v31  ;;  %v10164_v33 = vadd.f32 %v10132_v11, %v10100_v15  ;;  %v10099_v20 = vmax.f32 %v10067_v17, 0.0  ;;  %v10069_v49 = vadd.f32 %v13397_v8, %v17010_v10  ;;  %v10134_v10 = vld [vmem:[%s13573_s7 + $0xb8] sm:$0xff] }
 0x4ee   : > { %v9974_v46 = vpop.f32.mrf.mxu1  ;;  %v10142_v31 = vld [vmem:[%s13573_s7 + $0xf8] sm:$0xff] }
 0x4ef   : > { %10196 = vst.msk [vmem:[%s17047_s27 + $0xa8] sm:$0xff] %vm225_vm1, %v10164_v33  ;;  %v10163_v18 = vadd.f32 %v10131_v19, %v10099_v20  ;;  %v10101_v22 = vmax.f32 %v10069_v49, 0.0 }
 0x4f0   : > { %v13400_v40 = vpop.f32.mrf.mxu1 }
 0x4f1   : > { %10195 = vst.msk [vmem:[%s17047_s27 + $0xa0] sm:$0xff] %vm225_vm1, %v10163_v18  ;;  %v10165_v7 = vadd.f32 %v10133_v60, %v10101_v22 }
 0x4f2   : > { %v9983_v36 = vpop.f32.mrf.mxu1 }
 0x4f3   : > { %10197 = vst.msk [vmem:[%s17047_s27 + $0xb0] sm:$0xff] %vm225_vm1, %v10165_v7  ;;  %v10070_v44 = vadd.f32 %v9983_v36, %v17013_v29 }
 0x4f4   : > { %v13403_v28 = vpop.f32.mrf.mxu1 }
 0x4f5   : > { %v10102_v53 = vmax.f32 %v10070_v44, 0.0  ;;  %v10072_v1 = vadd.f32 %v13403_v28, %v17016_v37 }
 0x4f6   : > { %v9992_v34 = vpop.f32.mrf.mxu1 }
 0x4f7   : > { %v10166_v5 = vadd.f32 %v10134_v10, %v10102_v53  ;;  %v10104_v39 = vmax.f32 %v10072_v1, 0.0  ;;  %v10071_v56 = vadd.f32 %v9992_v34, %v17019_v50 }
 0x4f8   : > { %v13406_v30 = vpop.f32.mrf.mxu1 }
 0x4f9   : > { %10198 = vst.msk [vmem:[%s17047_s27 + $0xb8] sm:$0xff] %vm225_vm1, %v10166_v5  ;;  %v10168_v29 = vadd.f32 %v10136_v23, %v10104_v39  ;;  %v10103_v62 = vmax.f32 %v10071_v56, 0.0  ;;  %v10073_v58 = vadd.f32 %v13406_v30, %v17022_v16 }
 0x4fa   : > { %v10002_v37 = vpop.f32.mrf.mxu1 }
 0x4fb   : > { %10200 = vst.msk [vmem:[%s17047_s27 + $0xc8] sm:$0xff] %vm225_vm1, %v10168_v29  ;;  %v10167_v2 = vadd.f32 %v10135_v63, %v10103_v62  ;;  %v10105_v3 = vmax.f32 %v10073_v58, 0.0 }
 0x4fc   : > { %v13409_v35 = vpop.f32.mrf.mxu1 }
 0x4fd   : > { %10199 = vst.msk [vmem:[%s17047_s27 + $0xc0] sm:$0xff] %vm225_vm1, %v10167_v2  ;;  %v10169_v50 = vadd.f32 %v10137_v61, %v10105_v3 }
 0x4fe   : > { %v10011_v57 = vpop.f32.mrf.mxu1 }
 0x4ff   : > { %10201 = vst.msk [vmem:[%s17047_s27 + $0xd0] sm:$0xff] %vm225_vm1, %v10169_v50  ;;  %v10074_v54 = vadd.f32 %v10011_v57, %v17025_v52 }
 0x500   : > { %v13412_v16 = vpop.f32.mrf.mxu1 }
 0x501   : > { %v10106_v9 = vmax.f32 %v10074_v54, 0.0  ;;  %v10076_v51 = vadd.f32 %v13412_v16, %v17028_v13  ;;  %v10141_v13 = vld [vmem:[%s13573_s7 + $0xf0] sm:$0xff] }
 0x502   : > { %v10020_v24 = vpop.f32.mrf.mxu1 }
 0x503   : > { %v10170_v32 = vadd.f32 %v10138_v55, %v10106_v9  ;;  %v10108_v21 = vmax.f32 %v10076_v51, 0.0  ;;  %v10075_v47 = vadd.f32 %v10020_v24, %v17031_v27  ;;  %v9560_v27 = vadd.f32 %v9521_v43, %v17037_v12 }
 0x504   : > { %v13415_v14 = vpop.f32.mrf.mxu1 }
 0x505   : > { %10202 = vst.msk [vmem:[%s17047_s27 + $0xd8] sm:$0xff] %vm225_vm1, %v10170_v32  ;;  %v10172_v52 = vadd.f32 %v10140_v26, %v10108_v21  ;;  %v10107_v42 = vmax.f32 %v10075_v47, 0.0  ;;  %v10077_v45 = vadd.f32 %v13415_v14, %v17034_v38 }
 0x506   : > { %v10030_v59 = vpop.f32.mrf.mxu1 }
 0x507   : > { %10204 = vst.msk [vmem:[%s17047_s27 + $0xe8] sm:$0xff] %vm225_vm1, %v10172_v52  ;;  %v10171_v25 = vadd.f32 %v10139_v4, %v10107_v42  ;;  %v10109_v6 = vmax.f32 %v10077_v45, 0.0 }
 0x508   : > { %v13418_v48 = vpop.f32.mrf.mxu1 }
 0x509   : > { %10203 = vst.msk [vmem:[%s17047_s27 + $0xe0] sm:$0xff] %vm225_vm1, %v10171_v25  ;;  %v10173_v0 = vadd.f32 %v10141_v13, %v10109_v6 }
 0x50a   : > { %v10039_v11 = vpop.f32.mrf.mxu1 }
 0x50b   : > { %10205 = vst.msk [vmem:[%s17047_s27 + $0xf0] sm:$0xff] %vm225_vm1, %v10173_v0  ;;  %v10078_v41 = vadd.f32 %v10039_v11, %v9560_v27 }
 0x50d   : > { %v10110_v38 = vmax.f32 %v10078_v41, 0.0 }
 0x50f   : > { %v10174_v15 = vadd.f32 %v10142_v31, %v10110_v38 }
 0x511   : > { %10206 = vst.msk [vmem:[%s17047_s27 + $0xf8] sm:$0xff] %vm225_vm1, %v10174_v15 }
 0x512 PF: > { %s15_s18 = sadd.s32 1, %s13436_s18  }
 0x513   : > { %p12_p4 = scmp.ge.s32.totalorder %s15_s18, 4  }
 0x515   :  { %14 = sbr.rel (!%p12_p4) target bundleno = 1 (0x1), region = 101 }

</bundles_post_ra>
